<compile_context>
chip_gen: v6e
topology: v6e:2x2x1
jax: 0.10.0
libtpu: 0.0.40
codegen_flags: <defaults>
</compile_context>

<pallas_src>
import functools

import jax
import jax.numpy as jnp
from jax.experimental import pallas as pl
from jax.experimental.pallas import tpu as pltpu


# --------------------------- schedule helpers --------------------------------

def _make_dilations(blocks, layers, kernel_size):
    """Reproduce the PyTorch dilation schedule and receptive field."""
    receptive_field = 1
    dilations = []
    for _ in range(blocks):
        additional_scope = kernel_size - 1
        d = 1
        for _ in range(layers):
            dilations.append(d)
            receptive_field += additional_scope
            additional_scope *= 2
            d *= 2
    return dilations, receptive_field


# ------------------------------ fused kernel ---------------------------------

def _gwnet_kernel(x_ref, nv1_ref, nv2_ref, wt_ref, bt_ref, ws_ref, wm_ref,
                  bm_ref, scale_ref, shift_ref, bs_ref, out_ref,
                  *, dilations, v, c_res, c_dil, c_skip, t_in, t_fin, order):
    f32 = jnp.float32
    bf16 = jnp.bfloat16

    # adaptive adjacency: softmax(relu(E1 @ E2), dim=1), kept transposed so a
    # diffusion hop is a plain (V, V) @ (V, tn*C) matmul.
    logits = jnp.maximum(
        jnp.dot(nv1_ref[...], nv2_ref[...], preferred_element_type=f32), 0.0)
    ex = jnp.exp(logits - jnp.max(logits, axis=1, keepdims=True))
    adp_t = (ex / jnp.sum(ex, axis=1, keepdims=True)).T.astype(bf16)  # (V, V)

    x = x_ref[0]                       # (T, V, C_res) f32, this batch element
    t = t_in
    skip = jnp.zeros((t_fin * v, c_skip), dtype=f32)

    for li, d in enumerate(dilations):
        tn = t - d
        rows = tn * v

        # dilated (1,2) conv taps: free leading-dim time slices; both taps go
        # through a single merged K=2*C_res matmul against the stacked weight.
        x0 = x[:tn]
        x1 = x[d:]                                   # tap 1 == residual input
        xcat = jnp.concatenate([x0, x1], axis=-1).reshape(rows, 2 * c_res)
        fg = (jnp.dot(xcat.astype(bf16), wt_ref[li],
                      preferred_element_type=f32)
              + bt_ref[li])                          # (rows, 2*Cd)

        # gated activation with the 0.5 gate pre-scale folded into the weights:
        # tanh(f) * sigmoid(g) == tanh(f) * (0.5 * tanh(g/2) + 0.5)
        th = jnp.tanh(fg)
        z = th[:, :c_dil] * (0.5 * th[:, c_dil:] + 0.5)      # (rows, Cd) f32

        # skip 1x1 conv: only the last t_fin time steps ever survive the
        # running skip truncation -> only project those (bias hoisted out).
        z_last = (z.reshape(tn, v, c_dil)[tn - t_fin:]
                  .reshape(t_fin * v, c_dil))
        skip = skip + jnp.dot(z_last.astype(bf16), ws_ref[li],
                              preferred_element_type=f32)

        # order-`order` graph diffusion.  Relayout z (time-major rows) to the
        # node-major wide form (V, tn*Cd) via leading-dim gathers + one lane
        # concat; each hop is then a single wide matmul adp^T @ h.  Hop results
        # return to time-major (rows, Cd) via lane slices + a sublane-aligned
        # axis-0 concat (V = 16 is a multiple of 8, so this stacking is cheap).
        z3 = z.reshape(tn, v, c_dil)
        zh = jnp.concatenate([z3[ti] for ti in range(tn)], axis=-1)  # (V, tn*Cd)
        feats = [z.astype(bf16)]
        h_wide = zh.astype(bf16)
        for _ in range(order):
            h_new = jnp.dot(adp_t, h_wide, preferred_element_type=f32)
            h_flat = jnp.concatenate(
                [h_new[:, ti * c_dil:(ti + 1) * c_dil] for ti in range(tn)],
                axis=0)                                      # (rows, Cd)
            feats.append(h_flat.astype(bf16))
            h_wide = h_new.astype(bf16)

        # concat(z, Az, A^2 z, ...) + mix 1x1 conv as one K=(order+1)*Cd matmul.
        mix = (jnp.dot(jnp.concatenate(feats, axis=-1), wm_ref[li],
                       preferred_element_type=f32)
               + bm_ref[li])                                 # (rows, C_res)

        # residual add + eval-mode BatchNorm folded into per-channel affine.
        x = ((mix + x1.reshape(rows, c_res)) * scale_ref[li]
             + shift_ref[li]).reshape(tn, v, c_res)
        t = tn

    out_ref[0] = jnp.maximum(skip + bs_ref[...], 0.0).reshape(t_fin, v, c_skip)


# ------------------------------ params & forward -----------------------------

def init_params(key, num_nodes=16, in_dim=2, residual_channels=32,
                dilation_channels=32, skip_channels=256, blocks=4, layers=2,
                supports_len=1, order=2):
    n_layers = blocks * layers
    keys = iter(jax.random.split(key, 16))

    def nrm(shape, scale=0.1):
        return scale * jax.random.normal(next(keys), shape, dtype=jnp.float32)

    gcn_cin = (order * supports_len + 1) * dilation_channels
    return {
        "start_w": nrm((in_dim, residual_channels)),
        "start_b": nrm((residual_channels,)),
        "nodevec1": jax.random.normal(next(keys), (num_nodes, 10), jnp.float32),
        "nodevec2": jax.random.normal(next(keys), (10, num_nodes), jnp.float32),
        # merged (filter | gate) weights, one per conv tap, stacked over layers
        "wt0": nrm((n_layers, residual_channels, 2 * dilation_channels)),
        "wt1": nrm((n_layers, residual_channels, 2 * dilation_channels)),
        "bt": nrm((n_layers, 2 * dilation_channels)),
        "ws": nrm((n_layers, dilation_channels, skip_channels)),
        "bs": nrm((n_layers, skip_channels)),
        "wm": nrm((n_layers, gcn_cin, residual_channels)),
        "bm": nrm((n_layers, residual_channels)),
        "bn_gamma": jnp.ones((n_layers, residual_channels), jnp.float32),
        "bn_beta": jnp.zeros((n_layers, residual_channels), jnp.float32),
        "bn_mean": jnp.zeros((n_layers, residual_channels), jnp.float32),
        "bn_var": jnp.ones((n_layers, residual_channels), jnp.float32),
    }


def gwnet_forward(params, x_in, *, blocks=4, layers=2, kernel_size=2, order=2):
    dilations, receptive_field = _make_dilations(blocks, layers, kernel_size)
    bsz, _in_dim, v, t = x_in.shape
    t_pad = max(t, receptive_field)
    t_fin = t_pad - sum(dilations)
    assert t_fin >= 1

    c_res = params["start_w"].shape[1]
    c_dil = params["wt0"].shape[2] // 2
    c_skip = params["ws"].shape[2]
    bf16 = jnp.bfloat16

    # NCHW -> channels-last (B, T, V, Cin); left-pad time to the receptive field.
    x = jnp.transpose(x_in, (0, 3, 2, 1))
    if t < receptive_field:
        x = jnp.pad(x, ((0, 0), (receptive_field - t, 0), (0, 0), (0, 0)))
    # start 1x1 conv in plain XLA (a K=2 matmul is pure MXU latency in-kernel).
    x = jnp.dot(x, params["start_w"]) + params["start_b"]   # (B, T_pad, V, C_res)

    # ------------------------- host-side weight folding ----------------------
    # merge the two dilated taps into one (2*C_res, 2*Cd) weight and fold the
    # 0.5 gate pre-scale (sigmoid(g) = 0.5*tanh(g/2) + 0.5) into weights/bias.
    gate_scale = jnp.concatenate(
        [jnp.ones((c_dil,), jnp.float32), jnp.full((c_dil,), 0.5, jnp.float32)])
    wt = (jnp.concatenate([params["wt0"], params["wt1"]], axis=1)
          * gate_scale).astype(bf16)                        # (L, 2*C_res, 2*Cd)
    bt = (params["bt"] * gate_scale)[:, None, :]            # (L, 1, 2*Cd) f32
    ws = params["ws"].astype(bf16)                          # (L, Cd, C_skip)
    wm = params["wm"].astype(bf16)                          # (L, (order+1)*Cd, C_res)
    bm = params["bm"][:, None, :]
    bs_sum = jnp.sum(params["bs"], axis=0, keepdims=True)   # (1, C_skip)
    # eval-mode BatchNorm folded into a per-channel (scale, shift) affine.
    eps = 1e-5
    scale = (params["bn_gamma"] / jnp.sqrt(params["bn_var"] + eps))[:, None, :]
    shift = params["bn_beta"][:, None, :] - params["bn_mean"][:, None, :] * scale

    kernel = functools.partial(
        _gwnet_kernel, dilations=tuple(dilations), v=v, c_res=c_res,
        c_dil=c_dil, c_skip=c_skip, t_in=t_pad, t_fin=t_fin, order=order)

    def rep(arr):   # full-array block, constant index_map -> no per-step re-DMA
        zeros = (0,) * arr.ndim
        return pl.BlockSpec(arr.shape, lambda b, _z=zeros: _z)

    operands = (x, params["nodevec1"], params["nodevec2"],
                wt, bt, ws, wm, bm, scale, shift, bs_sum)
    in_specs = [pl.BlockSpec((1, t_pad, v, c_res), lambda b: (b, 0, 0, 0))]
    in_specs += [rep(a) for a in operands[1:]]

    out = pl.pallas_call(
        kernel,
        out_shape=jax.ShapeDtypeStruct((bsz, t_fin, v, c_skip), jnp.float32),
        grid=(bsz,),
        in_specs=in_specs,
        out_specs=pl.BlockSpec((1, t_fin, v, c_skip), lambda b: (b, 0, 0, 0)),
        compiler_params=pltpu.CompilerParams(
            dimension_semantics=("parallel",),
            vmem_limit_bytes=32 * 1024 * 1024),
    )(*operands)

    # back to NCHW: (B, skip_channels, V, T_fin)
    return jnp.transpose(out, (0, 3, 2, 1))


# ----------------------------------- main ------------------------------------

if __name__ == "__main__":
    key = jax.random.PRNGKey(0)
    k_in, k_p = jax.random.split(key)

    B, in_dim, num_nodes, T = 2, 2, 16, 8   # T(=8) < receptive_field(=13) -> pad
    x = jax.random.normal(k_in, (B, in_dim, num_nodes, T), dtype=jnp.float32)
    params = init_params(k_p, num_nodes=num_nodes, in_dim=in_dim)

    fwd = jax.jit(gwnet_forward)
    out = jax.block_until_ready(fwd(params, x))

    assert out.shape == (B, 256, num_nodes, 1), out.shape
    assert bool(jnp.all(jnp.isfinite(out)))
    print("KERNEL_OK")
</pallas_src>

<mosaic_0001>
module attributes {stable_mosaic.version = 11 : i64} {
  func.func @_gwnet_kernel(%arg0: i32, %arg1: memref<1x13x16x32xf32, #tpu.memory_space<vmem>>, %arg2: memref<16x10xf32, #tpu.memory_space<vmem>>, %arg3: memref<10x16xf32, #tpu.memory_space<vmem>>, %arg4: memref<8x64x64xbf16, #tpu.memory_space<vmem>>, %arg5: memref<8x1x64xf32, #tpu.memory_space<vmem>>, %arg6: memref<8x32x256xbf16, #tpu.memory_space<vmem>>, %arg7: memref<8x96x32xbf16, #tpu.memory_space<vmem>>, %arg8: memref<8x1x32xf32, #tpu.memory_space<vmem>>, %arg9: memref<8x1x32xf32, #tpu.memory_space<vmem>>, %arg10: memref<8x1x32xf32, #tpu.memory_space<vmem>>, %arg11: memref<1x256xf32, #tpu.memory_space<vmem>>, %arg12: memref<1x1x16x256xf32, #tpu.memory_space<vmem>>) attributes {dimension_semantics = [#tpu.dimension_semantics<parallel>], iteration_bounds = array<i64: 2>, scalar_prefetch = 0 : i64, scratch_operands = 0 : i64, tpu.core_type = #tpu.core_type<tc>, window_params = [{transform_indices = @transform_0, window_bounds = array<i64: 1, 13, 16, 32>}, {pipeline_mode = #tpu.pipeline_mode<synchronous>, transform_indices = @transform_1, window_bounds = array<i64: 16, 10>}, {pipeline_mode = #tpu.pipeline_mode<synchronous>, transform_indices = @transform_2, window_bounds = array<i64: 10, 16>}, {pipeline_mode = #tpu.pipeline_mode<synchronous>, transform_indices = @transform_3, window_bounds = array<i64: 8, 64, 64>}, {pipeline_mode = #tpu.pipeline_mode<synchronous>, transform_indices = @transform_4, window_bounds = array<i64: 8, 1, 64>}, {pipeline_mode = #tpu.pipeline_mode<synchronous>, transform_indices = @transform_5, window_bounds = array<i64: 8, 32, 256>}, {pipeline_mode = #tpu.pipeline_mode<synchronous>, transform_indices = @transform_6, window_bounds = array<i64: 8, 96, 32>}, {pipeline_mode = #tpu.pipeline_mode<synchronous>, transform_indices = @transform_7, window_bounds = array<i64: 8, 1, 32>}, {pipeline_mode = #tpu.pipeline_mode<synchronous>, transform_indices = @transform_8, window_bounds = array<i64: 8, 1, 32>}, {pipeline_mode = #tpu.pipeline_mode<synchronous>, transform_indices = @transform_9, window_bounds = array<i64: 8, 1, 32>}, {pipeline_mode = #tpu.pipeline_mode<synchronous>, transform_indices = @transform_10, window_bounds = array<i64: 1, 256>}, {transform_indices = @transform_11, window_bounds = array<i64: 1, 1, 16, 256>}]} {
    %c0 = arith.constant 0 : index
    %c0_0 = arith.constant 0 : index
    %0 = vector.load %arg2[%c0, %c0_0] : memref<16x10xf32, #tpu.memory_space<vmem>>, vector<16x10xf32>
    %c0_1 = arith.constant 0 : index
    %c0_2 = arith.constant 0 : index
    %1 = vector.load %arg3[%c0_1, %c0_2] : memref<10x16xf32, #tpu.memory_space<vmem>>, vector<10x16xf32>
    %cst = arith.constant dense<0.000000e+00> : vector<16x16xf32>
    %2 = tpu.matmul %0, %1, %cst {dimension_numbers = #tpu.dot_dimension_numbers<[1], [0], [0], [1], [0, 0, 1, 1], [], []>} : vector<16x10xf32>, vector<10x16xf32>, vector<16x16xf32> -> vector<16x16xf32>
    %cst_3 = arith.constant 0.000000e+00 : f32
    %3 = vector.broadcast %cst_3 : f32 to vector<16x16xf32>
    %4 = arith.maximumf %2, %3 : vector<16x16xf32>
    %cst_4 = arith.constant dense<0xFF800000> : vector<16xf32>
    %5 = vector.multi_reduction <maximumf>, %4, %cst_4 [1] : vector<16x16xf32> to vector<16xf32>
    %6 = vector.shape_cast %5 : vector<16xf32> to vector<16x1xf32>
    %7 = vector.broadcast %6 : vector<16x1xf32> to vector<16x16xf32>
    %8 = arith.subf %4, %7 : vector<16x16xf32>
    %9 = math.exp %8 : vector<16x16xf32>
    %cst_5 = arith.constant dense<0.000000e+00> : vector<16xf32>
    %10 = vector.multi_reduction <add>, %9, %cst_5 [1] : vector<16x16xf32> to vector<16xf32>
    %11 = vector.shape_cast %10 : vector<16xf32> to vector<16x1xf32>
    %12 = vector.broadcast %11 : vector<16x1xf32> to vector<16x16xf32>
    %13 = arith.divf %9, %12 : vector<16x16xf32>
    %14 = tpu.transpose %13, [1, 0] : vector<16x16xf32> -> vector<16x16xf32>
    %15 = arith.truncf %14 : vector<16x16xf32> to vector<16x16xbf16>
    %c0_6 = arith.constant 0 : index
    %c0_7 = arith.constant 0 : index
    %c0_8 = arith.constant 0 : index
    %c0_9 = arith.constant 0 : index
    %16 = vector.load %arg1[%c0_6, %c0_7, %c0_8, %c0_9] : memref<1x13x16x32xf32, #tpu.memory_space<vmem>>, vector<1x13x16x32xf32>
    %17 = vector.shape_cast %16 : vector<1x13x16x32xf32> to vector<13x16x32xf32>
    %cst_10 = arith.constant 0.000000e+00 : f32
    %18 = vector.broadcast %cst_10 : f32 to vector<16x256xf32>
    %19 = vector.extract_strided_slice %17 {offsets = [0, 0, 0], sizes = [12, 16, 32], strides = [1, 1, 1]} : vector<13x16x32xf32> to vector<12x16x32xf32>
    %20 = vector.extract_strided_slice %17 {offsets = [1, 0, 0], sizes = [12, 16, 32], strides = [1, 1, 1]} : vector<13x16x32xf32> to vector<12x16x32xf32>
    %21 = tpu.concatenate %19, %20 in 2 : vector<12x16x32xf32>, vector<12x16x32xf32> -> vector<12x16x64xf32>
    %22 = vector.shape_cast %21 : vector<12x16x64xf32> to vector<192x64xf32>
    %23 = arith.truncf %22 : vector<192x64xf32> to vector<192x64xbf16>
    %c0_11 = arith.constant 0 : index
    %c0_12 = arith.constant 0 : index
    %c0_13 = arith.constant 0 : index
    %24 = vector.load %arg4[%c0_11, %c0_12, %c0_13] : memref<8x64x64xbf16, #tpu.memory_space<vmem>>, vector<1x64x64xbf16>
    %25 = vector.shape_cast %24 : vector<1x64x64xbf16> to vector<64x64xbf16>
    %cst_14 = arith.constant dense<0.000000e+00> : vector<192x64xf32>
    %26 = tpu.matmul %23, %25, %cst_14 {dimension_numbers = #tpu.dot_dimension_numbers<[1], [0], [0], [1], [0, 0, 1, 1], [], []>} : vector<192x64xbf16>, vector<64x64xbf16>, vector<192x64xf32> -> vector<192x64xf32>
    %c0_15 = arith.constant 0 : index
    %c0_16 = arith.constant 0 : index
    %c0_17 = arith.constant 0 : index
    %27 = vector.load %arg5[%c0_15, %c0_16, %c0_17] : memref<8x1x64xf32, #tpu.memory_space<vmem>>, vector<1x1x64xf32>
    %28 = vector.shape_cast %27 : vector<1x1x64xf32> to vector<1x64xf32>
    %29 = vector.broadcast %28 : vector<1x64xf32> to vector<192x64xf32>
    %30 = arith.addf %26, %29 : vector<192x64xf32>
    %31 = math.tanh %30 : vector<192x64xf32>
    %32 = vector.extract_strided_slice %31 {offsets = [0, 0], sizes = [192, 32], strides = [1, 1]} : vector<192x64xf32> to vector<192x32xf32>
    %33 = vector.extract_strided_slice %31 {offsets = [0, 32], sizes = [192, 32], strides = [1, 1]} : vector<192x64xf32> to vector<192x32xf32>
    %cst_18 = arith.constant 5.000000e-01 : f32
    %34 = vector.broadcast %cst_18 : f32 to vector<192x32xf32>
    %35 = arith.mulf %34, %33 : vector<192x32xf32>
    %cst_19 = arith.constant 5.000000e-01 : f32
    %36 = vector.broadcast %cst_19 : f32 to vector<192x32xf32>
    %37 = arith.addf %35, %36 : vector<192x32xf32>
    %38 = arith.mulf %32, %37 : vector<192x32xf32>
    %39 = vector.shape_cast %38 : vector<192x32xf32> to vector<12x16x32xf32>
    %40 = vector.extract_strided_slice %39 {offsets = [11, 0, 0], sizes = [1, 16, 32], strides = [1, 1, 1]} : vector<12x16x32xf32> to vector<1x16x32xf32>
    %41 = vector.shape_cast %40 : vector<1x16x32xf32> to vector<16x32xf32>
    %42 = arith.truncf %41 : vector<16x32xf32> to vector<16x32xbf16>
    %c0_20 = arith.constant 0 : index
    %c0_21 = arith.constant 0 : index
    %c0_22 = arith.constant 0 : index
    %43 = vector.load %arg6[%c0_20, %c0_21, %c0_22] : memref<8x32x256xbf16, #tpu.memory_space<vmem>>, vector<1x32x256xbf16>
    %44 = vector.shape_cast %43 : vector<1x32x256xbf16> to vector<32x256xbf16>
    %cst_23 = arith.constant dense<0.000000e+00> : vector<16x256xf32>
    %45 = tpu.matmul %42, %44, %cst_23 {dimension_numbers = #tpu.dot_dimension_numbers<[1], [0], [0], [1], [0, 0, 1, 1], [], []>} : vector<16x32xbf16>, vector<32x256xbf16>, vector<16x256xf32> -> vector<16x256xf32>
    %46 = arith.addf %18, %45 : vector<16x256xf32>
    %47 = vector.shape_cast %38 : vector<192x32xf32> to vector<12x16x32xf32>
    %48 = vector.extract_strided_slice %47 {offsets = [0, 0, 0], sizes = [1, 16, 32], strides = [1, 1, 1]} : vector<12x16x32xf32> to vector<1x16x32xf32>
    %49 = vector.shape_cast %48 : vector<1x16x32xf32> to vector<16x32xf32>
    %50 = vector.extract_strided_slice %47 {offsets = [1, 0, 0], sizes = [1, 16, 32], strides = [1, 1, 1]} : vector<12x16x32xf32> to vector<1x16x32xf32>
    %51 = vector.shape_cast %50 : vector<1x16x32xf32> to vector<16x32xf32>
    %52 = vector.extract_strided_slice %47 {offsets = [2, 0, 0], sizes = [1, 16, 32], strides = [1, 1, 1]} : vector<12x16x32xf32> to vector<1x16x32xf32>
    %53 = vector.shape_cast %52 : vector<1x16x32xf32> to vector<16x32xf32>
    %54 = vector.extract_strided_slice %47 {offsets = [3, 0, 0], sizes = [1, 16, 32], strides = [1, 1, 1]} : vector<12x16x32xf32> to vector<1x16x32xf32>
    %55 = vector.shape_cast %54 : vector<1x16x32xf32> to vector<16x32xf32>
    %56 = vector.extract_strided_slice %47 {offsets = [4, 0, 0], sizes = [1, 16, 32], strides = [1, 1, 1]} : vector<12x16x32xf32> to vector<1x16x32xf32>
    %57 = vector.shape_cast %56 : vector<1x16x32xf32> to vector<16x32xf32>
    %58 = vector.extract_strided_slice %47 {offsets = [5, 0, 0], sizes = [1, 16, 32], strides = [1, 1, 1]} : vector<12x16x32xf32> to vector<1x16x32xf32>
    %59 = vector.shape_cast %58 : vector<1x16x32xf32> to vector<16x32xf32>
    %60 = vector.extract_strided_slice %47 {offsets = [6, 0, 0], sizes = [1, 16, 32], strides = [1, 1, 1]} : vector<12x16x32xf32> to vector<1x16x32xf32>
    %61 = vector.shape_cast %60 : vector<1x16x32xf32> to vector<16x32xf32>
    %62 = vector.extract_strided_slice %47 {offsets = [7, 0, 0], sizes = [1, 16, 32], strides = [1, 1, 1]} : vector<12x16x32xf32> to vector<1x16x32xf32>
    %63 = vector.shape_cast %62 : vector<1x16x32xf32> to vector<16x32xf32>
    %64 = vector.extract_strided_slice %47 {offsets = [8, 0, 0], sizes = [1, 16, 32], strides = [1, 1, 1]} : vector<12x16x32xf32> to vector<1x16x32xf32>
    %65 = vector.shape_cast %64 : vector<1x16x32xf32> to vector<16x32xf32>
    %66 = vector.extract_strided_slice %47 {offsets = [9, 0, 0], sizes = [1, 16, 32], strides = [1, 1, 1]} : vector<12x16x32xf32> to vector<1x16x32xf32>
    %67 = vector.shape_cast %66 : vector<1x16x32xf32> to vector<16x32xf32>
    %68 = vector.extract_strided_slice %47 {offsets = [10, 0, 0], sizes = [1, 16, 32], strides = [1, 1, 1]} : vector<12x16x32xf32> to vector<1x16x32xf32>
    %69 = vector.shape_cast %68 : vector<1x16x32xf32> to vector<16x32xf32>
    %70 = vector.extract_strided_slice %47 {offsets = [11, 0, 0], sizes = [1, 16, 32], strides = [1, 1, 1]} : vector<12x16x32xf32> to vector<1x16x32xf32>
    %71 = vector.shape_cast %70 : vector<1x16x32xf32> to vector<16x32xf32>
    %72 = tpu.concatenate %49, %51, %53, %55, %57, %59, %61, %63, %65, %67, %69, %71 in 1 : vector<16x32xf32>, vector<16x32xf32>, vector<16x32xf32>, vector<16x32xf32>, vector<16x32xf32>, vector<16x32xf32>, vector<16x32xf32>, vector<16x32xf32>, vector<16x32xf32>, vector<16x32xf32>, vector<16x32xf32>, vector<16x32xf32> -> vector<16x384xf32>
    %73 = arith.truncf %38 : vector<192x32xf32> to vector<192x32xbf16>
    %74 = arith.truncf %72 : vector<16x384xf32> to vector<16x384xbf16>
    %cst_24 = arith.constant dense<0.000000e+00> : vector<16x384xf32>
    %75 = tpu.matmul %15, %74, %cst_24 {dimension_numbers = #tpu.dot_dimension_numbers<[1], [0], [0], [1], [0, 0, 1, 1], [], []>} : vector<16x16xbf16>, vector<16x384xbf16>, vector<16x384xf32> -> vector<16x384xf32>
    %76 = vector.extract_strided_slice %75 {offsets = [0, 0], sizes = [16, 32], strides = [1, 1]} : vector<16x384xf32> to vector<16x32xf32>
    %77 = vector.extract_strided_slice %75 {offsets = [0, 32], sizes = [16, 32], strides = [1, 1]} : vector<16x384xf32> to vector<16x32xf32>
    %78 = vector.extract_strided_slice %75 {offsets = [0, 64], sizes = [16, 32], strides = [1, 1]} : vector<16x384xf32> to vector<16x32xf32>
    %79 = vector.extract_strided_slice %75 {offsets = [0, 96], sizes = [16, 32], strides = [1, 1]} : vector<16x384xf32> to vector<16x32xf32>
    %80 = vector.extract_strided_slice %75 {offsets = [0, 128], sizes = [16, 32], strides = [1, 1]} : vector<16x384xf32> to vector<16x32xf32>
    %81 = vector.extract_strided_slice %75 {offsets = [0, 160], sizes = [16, 32], strides = [1, 1]} : vector<16x384xf32> to vector<16x32xf32>
    %82 = vector.extract_strided_slice %75 {offsets = [0, 192], sizes = [16, 32], strides = [1, 1]} : vector<16x384xf32> to vector<16x32xf32>
    %83 = vector.extract_strided_slice %75 {offsets = [0, 224], sizes = [16, 32], strides = [1, 1]} : vector<16x384xf32> to vector<16x32xf32>
    %84 = vector.extract_strided_slice %75 {offsets = [0, 256], sizes = [16, 32], strides = [1, 1]} : vector<16x384xf32> to vector<16x32xf32>
    %85 = vector.extract_strided_slice %75 {offsets = [0, 288], sizes = [16, 32], strides = [1, 1]} : vector<16x384xf32> to vector<16x32xf32>
    %86 = vector.extract_strided_slice %75 {offsets = [0, 320], sizes = [16, 32], strides = [1, 1]} : vector<16x384xf32> to vector<16x32xf32>
    %87 = vector.extract_strided_slice %75 {offsets = [0, 352], sizes = [16, 32], strides = [1, 1]} : vector<16x384xf32> to vector<16x32xf32>
    %88 = tpu.concatenate %76, %77, %78, %79, %80, %81, %82, %83, %84, %85, %86, %87 in 0 : vector<16x32xf32>, vector<16x32xf32>, vector<16x32xf32>, vector<16x32xf32>, vector<16x32xf32>, vector<16x32xf32>, vector<16x32xf32>, vector<16x32xf32>, vector<16x32xf32>, vector<16x32xf32>, vector<16x32xf32>, vector<16x32xf32> -> vector<192x32xf32>
    %89 = arith.truncf %88 : vector<192x32xf32> to vector<192x32xbf16>
    %90 = arith.truncf %75 : vector<16x384xf32> to vector<16x384xbf16>
    %cst_25 = arith.constant dense<0.000000e+00> : vector<16x384xf32>
    %91 = tpu.matmul %15, %90, %cst_25 {dimension_numbers = #tpu.dot_dimension_numbers<[1], [0], [0], [1], [0, 0, 1, 1], [], []>} : vector<16x16xbf16>, vector<16x384xbf16>, vector<16x384xf32> -> vector<16x384xf32>
    %92 = vector.extract_strided_slice %91 {offsets = [0, 0], sizes = [16, 32], strides = [1, 1]} : vector<16x384xf32> to vector<16x32xf32>
    %93 = vector.extract_strided_slice %91 {offsets = [0, 32], sizes = [16, 32], strides = [1, 1]} : vector<16x384xf32> to vector<16x32xf32>
    %94 = vector.extract_strided_slice %91 {offsets = [0, 64], sizes = [16, 32], strides = [1, 1]} : vector<16x384xf32> to vector<16x32xf32>
    %95 = vector.extract_strided_slice %91 {offsets = [0, 96], sizes = [16, 32], strides = [1, 1]} : vector<16x384xf32> to vector<16x32xf32>
    %96 = vector.extract_strided_slice %91 {offsets = [0, 128], sizes = [16, 32], strides = [1, 1]} : vector<16x384xf32> to vector<16x32xf32>
    %97 = vector.extract_strided_slice %91 {offsets = [0, 160], sizes = [16, 32], strides = [1, 1]} : vector<16x384xf32> to vector<16x32xf32>
    %98 = vector.extract_strided_slice %91 {offsets = [0, 192], sizes = [16, 32], strides = [1, 1]} : vector<16x384xf32> to vector<16x32xf32>
    %99 = vector.extract_strided_slice %91 {offsets = [0, 224], sizes = [16, 32], strides = [1, 1]} : vector<16x384xf32> to vector<16x32xf32>
    %100 = vector.extract_strided_slice %91 {offsets = [0, 256], sizes = [16, 32], strides = [1, 1]} : vector<16x384xf32> to vector<16x32xf32>
    %101 = vector.extract_strided_slice %91 {offsets = [0, 288], sizes = [16, 32], strides = [1, 1]} : vector<16x384xf32> to vector<16x32xf32>
    %102 = vector.extract_strided_slice %91 {offsets = [0, 320], sizes = [16, 32], strides = [1, 1]} : vector<16x384xf32> to vector<16x32xf32>
    %103 = vector.extract_strided_slice %91 {offsets = [0, 352], sizes = [16, 32], strides = [1, 1]} : vector<16x384xf32> to vector<16x32xf32>
    %104 = tpu.concatenate %92, %93, %94, %95, %96, %97, %98, %99, %100, %101, %102, %103 in 0 : vector<16x32xf32>, vector<16x32xf32>, vector<16x32xf32>, vector<16x32xf32>, vector<16x32xf32>, vector<16x32xf32>, vector<16x32xf32>, vector<16x32xf32>, vector<16x32xf32>, vector<16x32xf32>, vector<16x32xf32>, vector<16x32xf32> -> vector<192x32xf32>
    %105 = arith.truncf %104 : vector<192x32xf32> to vector<192x32xbf16>
    %106 = tpu.concatenate %73, %89, %105 in 1 : vector<192x32xbf16>, vector<192x32xbf16>, vector<192x32xbf16> -> vector<192x96xbf16>
    %c0_26 = arith.constant 0 : index
    %c0_27 = arith.constant 0 : index
    %c0_28 = arith.constant 0 : index
    %107 = vector.load %arg7[%c0_26, %c0_27, %c0_28] : memref<8x96x32xbf16, #tpu.memory_space<vmem>>, vector<1x96x32xbf16>
    %108 = vector.shape_cast %107 : vector<1x96x32xbf16> to vector<96x32xbf16>
    %cst_29 = arith.constant dense<0.000000e+00> : vector<192x32xf32>
    %109 = tpu.matmul %106, %108, %cst_29 {dimension_numbers = #tpu.dot_dimension_numbers<[1], [0], [0], [1], [0, 0, 1, 1], [], []>} : vector<192x96xbf16>, vector<96x32xbf16>, vector<192x32xf32> -> vector<192x32xf32>
    %c0_30 = arith.constant 0 : index
    %c0_31 = arith.constant 0 : index
    %c0_32 = arith.constant 0 : index
    %110 = vector.load %arg8[%c0_30, %c0_31, %c0_32] : memref<8x1x32xf32, #tpu.memory_space<vmem>>, vector<1x1x32xf32>
    %111 = vector.shape_cast %110 : vector<1x1x32xf32> to vector<1x32xf32>
    %112 = vector.broadcast %111 : vector<1x32xf32> to vector<192x32xf32>
    %113 = arith.addf %109, %112 : vector<192x32xf32>
    %114 = vector.shape_cast %20 : vector<12x16x32xf32> to vector<192x32xf32>
    %115 = arith.addf %113, %114 : vector<192x32xf32>
    %c0_33 = arith.constant 0 : index
    %c0_34 = arith.constant 0 : index
    %c0_35 = arith.constant 0 : index
    %116 = vector.load %arg9[%c0_33, %c0_34, %c0_35] : memref<8x1x32xf32, #tpu.memory_space<vmem>>, vector<1x1x32xf32>
    %117 = vector.shape_cast %116 : vector<1x1x32xf32> to vector<1x32xf32>
    %118 = vector.broadcast %117 : vector<1x32xf32> to vector<192x32xf32>
    %119 = arith.mulf %115, %118 : vector<192x32xf32>
    %c0_36 = arith.constant 0 : index
    %c0_37 = arith.constant 0 : index
    %c0_38 = arith.constant 0 : index
    %120 = vector.load %arg10[%c0_36, %c0_37, %c0_38] : memref<8x1x32xf32, #tpu.memory_space<vmem>>, vector<1x1x32xf32>
    %121 = vector.shape_cast %120 : vector<1x1x32xf32> to vector<1x32xf32>
    %122 = vector.broadcast %121 : vector<1x32xf32> to vector<192x32xf32>
    %123 = arith.addf %119, %122 : vector<192x32xf32>
    %124 = vector.shape_cast %123 : vector<192x32xf32> to vector<12x16x32xf32>
    %125 = vector.extract_strided_slice %124 {offsets = [0, 0, 0], sizes = [10, 16, 32], strides = [1, 1, 1]} : vector<12x16x32xf32> to vector<10x16x32xf32>
    %126 = vector.extract_strided_slice %124 {offsets = [2, 0, 0], sizes = [10, 16, 32], strides = [1, 1, 1]} : vector<12x16x32xf32> to vector<10x16x32xf32>
    %127 = tpu.concatenate %125, %126 in 2 : vector<10x16x32xf32>, vector<10x16x32xf32> -> vector<10x16x64xf32>
    %128 = vector.shape_cast %127 : vector<10x16x64xf32> to vector<160x64xf32>
    %129 = arith.truncf %128 : vector<160x64xf32> to vector<160x64xbf16>
    %c1 = arith.constant 1 : index
    %c0_39 = arith.constant 0 : index
    %c0_40 = arith.constant 0 : index
    %130 = vector.load %arg4[%c1, %c0_39, %c0_40] : memref<8x64x64xbf16, #tpu.memory_space<vmem>>, vector<1x64x64xbf16>
    %131 = vector.shape_cast %130 : vector<1x64x64xbf16> to vector<64x64xbf16>
    %cst_41 = arith.constant dense<0.000000e+00> : vector<160x64xf32>
    %132 = tpu.matmul %129, %131, %cst_41 {dimension_numbers = #tpu.dot_dimension_numbers<[1], [0], [0], [1], [0, 0, 1, 1], [], []>} : vector<160x64xbf16>, vector<64x64xbf16>, vector<160x64xf32> -> vector<160x64xf32>
    %c1_42 = arith.constant 1 : index
    %c0_43 = arith.constant 0 : index
    %c0_44 = arith.constant 0 : index
    %133 = vector.load %arg5[%c1_42, %c0_43, %c0_44] : memref<8x1x64xf32, #tpu.memory_space<vmem>>, vector<1x1x64xf32>
    %134 = vector.shape_cast %133 : vector<1x1x64xf32> to vector<1x64xf32>
    %135 = vector.broadcast %134 : vector<1x64xf32> to vector<160x64xf32>
    %136 = arith.addf %132, %135 : vector<160x64xf32>
    %137 = math.tanh %136 : vector<160x64xf32>
    %138 = vector.extract_strided_slice %137 {offsets = [0, 0], sizes = [160, 32], strides = [1, 1]} : vector<160x64xf32> to vector<160x32xf32>
    %139 = vector.extract_strided_slice %137 {offsets = [0, 32], sizes = [160, 32], strides = [1, 1]} : vector<160x64xf32> to vector<160x32xf32>
    %cst_45 = arith.constant 5.000000e-01 : f32
    %140 = vector.broadcast %cst_45 : f32 to vector<160x32xf32>
    %141 = arith.mulf %140, %139 : vector<160x32xf32>
    %cst_46 = arith.constant 5.000000e-01 : f32
    %142 = vector.broadcast %cst_46 : f32 to vector<160x32xf32>
    %143 = arith.addf %141, %142 : vector<160x32xf32>
    %144 = arith.mulf %138, %143 : vector<160x32xf32>
    %145 = vector.shape_cast %144 : vector<160x32xf32> to vector<10x16x32xf32>
    %146 = vector.extract_strided_slice %145 {offsets = [9, 0, 0], sizes = [1, 16, 32], strides = [1, 1, 1]} : vector<10x16x32xf32> to vector<1x16x32xf32>
    %147 = vector.shape_cast %146 : vector<1x16x32xf32> to vector<16x32xf32>
    %148 = arith.truncf %147 : vector<16x32xf32> to vector<16x32xbf16>
    %c1_47 = arith.constant 1 : index
    %c0_48 = arith.constant 0 : index
    %c0_49 = arith.constant 0 : index
    %149 = vector.load %arg6[%c1_47, %c0_48, %c0_49] : memref<8x32x256xbf16, #tpu.memory_space<vmem>>, vector<1x32x256xbf16>
    %150 = vector.shape_cast %149 : vector<1x32x256xbf16> to vector<32x256xbf16>
    %cst_50 = arith.constant dense<0.000000e+00> : vector<16x256xf32>
    %151 = tpu.matmul %148, %150, %cst_50 {dimension_numbers = #tpu.dot_dimension_numbers<[1], [0], [0], [1], [0, 0, 1, 1], [], []>} : vector<16x32xbf16>, vector<32x256xbf16>, vector<16x256xf32> -> vector<16x256xf32>
    %152 = arith.addf %46, %151 : vector<16x256xf32>
    %153 = vector.shape_cast %144 : vector<160x32xf32> to vector<10x16x32xf32>
    %154 = vector.extract_strided_slice %153 {offsets = [0, 0, 0], sizes = [1, 16, 32], strides = [1, 1, 1]} : vector<10x16x32xf32> to vector<1x16x32xf32>
    %155 = vector.shape_cast %154 : vector<1x16x32xf32> to vector<16x32xf32>
    %156 = vector.extract_strided_slice %153 {offsets = [1, 0, 0], sizes = [1, 16, 32], strides = [1, 1, 1]} : vector<10x16x32xf32> to vector<1x16x32xf32>
    %157 = vector.shape_cast %156 : vector<1x16x32xf32> to vector<16x32xf32>
    %158 = vector.extract_strided_slice %153 {offsets = [2, 0, 0], sizes = [1, 16, 32], strides = [1, 1, 1]} : vector<10x16x32xf32> to vector<1x16x32xf32>
    %159 = vector.shape_cast %158 : vector<1x16x32xf32> to vector<16x32xf32>
    %160 = vector.extract_strided_slice %153 {offsets = [3, 0, 0], sizes = [1, 16, 32], strides = [1, 1, 1]} : vector<10x16x32xf32> to vector<1x16x32xf32>
    %161 = vector.shape_cast %160 : vector<1x16x32xf32> to vector<16x32xf32>
    %162 = vector.extract_strided_slice %153 {offsets = [4, 0, 0], sizes = [1, 16, 32], strides = [1, 1, 1]} : vector<10x16x32xf32> to vector<1x16x32xf32>
    %163 = vector.shape_cast %162 : vector<1x16x32xf32> to vector<16x32xf32>
    %164 = vector.extract_strided_slice %153 {offsets = [5, 0, 0], sizes = [1, 16, 32], strides = [1, 1, 1]} : vector<10x16x32xf32> to vector<1x16x32xf32>
    %165 = vector.shape_cast %164 : vector<1x16x32xf32> to vector<16x32xf32>
    %166 = vector.extract_strided_slice %153 {offsets = [6, 0, 0], sizes = [1, 16, 32], strides = [1, 1, 1]} : vector<10x16x32xf32> to vector<1x16x32xf32>
    %167 = vector.shape_cast %166 : vector<1x16x32xf32> to vector<16x32xf32>
    %168 = vector.extract_strided_slice %153 {offsets = [7, 0, 0], sizes = [1, 16, 32], strides = [1, 1, 1]} : vector<10x16x32xf32> to vector<1x16x32xf32>
    %169 = vector.shape_cast %168 : vector<1x16x32xf32> to vector<16x32xf32>
    %170 = vector.extract_strided_slice %153 {offsets = [8, 0, 0], sizes = [1, 16, 32], strides = [1, 1, 1]} : vector<10x16x32xf32> to vector<1x16x32xf32>
    %171 = vector.shape_cast %170 : vector<1x16x32xf32> to vector<16x32xf32>
    %172 = vector.extract_strided_slice %153 {offsets = [9, 0, 0], sizes = [1, 16, 32], strides = [1, 1, 1]} : vector<10x16x32xf32> to vector<1x16x32xf32>
    %173 = vector.shape_cast %172 : vector<1x16x32xf32> to vector<16x32xf32>
    %174 = tpu.concatenate %155, %157, %159, %161, %163, %165, %167, %169, %171, %173 in 1 : vector<16x32xf32>, vector<16x32xf32>, vector<16x32xf32>, vector<16x32xf32>, vector<16x32xf32>, vector<16x32xf32>, vector<16x32xf32>, vector<16x32xf32>, vector<16x32xf32>, vector<16x32xf32> -> vector<16x320xf32>
    %175 = arith.truncf %144 : vector<160x32xf32> to vector<160x32xbf16>
    %176 = arith.truncf %174 : vector<16x320xf32> to vector<16x320xbf16>
    %cst_51 = arith.constant dense<0.000000e+00> : vector<16x320xf32>
    %177 = tpu.matmul %15, %176, %cst_51 {dimension_numbers = #tpu.dot_dimension_numbers<[1], [0], [0], [1], [0, 0, 1, 1], [], []>} : vector<16x16xbf16>, vector<16x320xbf16>, vector<16x320xf32> -> vector<16x320xf32>
    %178 = vector.extract_strided_slice %177 {offsets = [0, 0], sizes = [16, 32], strides = [1, 1]} : vector<16x320xf32> to vector<16x32xf32>
    %179 = vector.extract_strided_slice %177 {offsets = [0, 32], sizes = [16, 32], strides = [1, 1]} : vector<16x320xf32> to vector<16x32xf32>
    %180 = vector.extract_strided_slice %177 {offsets = [0, 64], sizes = [16, 32], strides = [1, 1]} : vector<16x320xf32> to vector<16x32xf32>
    %181 = vector.extract_strided_slice %177 {offsets = [0, 96], sizes = [16, 32], strides = [1, 1]} : vector<16x320xf32> to vector<16x32xf32>
    %182 = vector.extract_strided_slice %177 {offsets = [0, 128], sizes = [16, 32], strides = [1, 1]} : vector<16x320xf32> to vector<16x32xf32>
    %183 = vector.extract_strided_slice %177 {offsets = [0, 160], sizes = [16, 32], strides = [1, 1]} : vector<16x320xf32> to vector<16x32xf32>
    %184 = vector.extract_strided_slice %177 {offsets = [0, 192], sizes = [16, 32], strides = [1, 1]} : vector<16x320xf32> to vector<16x32xf32>
    %185 = vector.extract_strided_slice %177 {offsets = [0, 224], sizes = [16, 32], strides = [1, 1]} : vector<16x320xf32> to vector<16x32xf32>
    %186 = vector.extract_strided_slice %177 {offsets = [0, 256], sizes = [16, 32], strides = [1, 1]} : vector<16x320xf32> to vector<16x32xf32>
    %187 = vector.extract_strided_slice %177 {offsets = [0, 288], sizes = [16, 32], strides = [1, 1]} : vector<16x320xf32> to vector<16x32xf32>
    %188 = tpu.concatenate %178, %179, %180, %181, %182, %183, %184, %185, %186, %187 in 0 : vector<16x32xf32>, vector<16x32xf32>, vector<16x32xf32>, vector<16x32xf32>, vector<16x32xf32>, vector<16x32xf32>, vector<16x32xf32>, vector<16x32xf32>, vector<16x32xf32>, vector<16x32xf32> -> vector<160x32xf32>
    %189 = arith.truncf %188 : vector<160x32xf32> to vector<160x32xbf16>
    %190 = arith.truncf %177 : vector<16x320xf32> to vector<16x320xbf16>
    %cst_52 = arith.constant dense<0.000000e+00> : vector<16x320xf32>
    %191 = tpu.matmul %15, %190, %cst_52 {dimension_numbers = #tpu.dot_dimension_numbers<[1], [0], [0], [1], [0, 0, 1, 1], [], []>} : vector<16x16xbf16>, vector<16x320xbf16>, vector<16x320xf32> -> vector<16x320xf32>
    %192 = vector.extract_strided_slice %191 {offsets = [0, 0], sizes = [16, 32], strides = [1, 1]} : vector<16x320xf32> to vector<16x32xf32>
    %193 = vector.extract_strided_slice %191 {offsets = [0, 32], sizes = [16, 32], strides = [1, 1]} : vector<16x320xf32> to vector<16x32xf32>
    %194 = vector.extract_strided_slice %191 {offsets = [0, 64], sizes = [16, 32], strides = [1, 1]} : vector<16x320xf32> to vector<16x32xf32>
    %195 = vector.extract_strided_slice %191 {offsets = [0, 96], sizes = [16, 32], strides = [1, 1]} : vector<16x320xf32> to vector<16x32xf32>
    %196 = vector.extract_strided_slice %191 {offsets = [0, 128], sizes = [16, 32], strides = [1, 1]} : vector<16x320xf32> to vector<16x32xf32>
    %197 = vector.extract_strided_slice %191 {offsets = [0, 160], sizes = [16, 32], strides = [1, 1]} : vector<16x320xf32> to vector<16x32xf32>
    %198 = vector.extract_strided_slice %191 {offsets = [0, 192], sizes = [16, 32], strides = [1, 1]} : vector<16x320xf32> to vector<16x32xf32>
    %199 = vector.extract_strided_slice %191 {offsets = [0, 224], sizes = [16, 32], strides = [1, 1]} : vector<16x320xf32> to vector<16x32xf32>
    %200 = vector.extract_strided_slice %191 {offsets = [0, 256], sizes = [16, 32], strides = [1, 1]} : vector<16x320xf32> to vector<16x32xf32>
    %201 = vector.extract_strided_slice %191 {offsets = [0, 288], sizes = [16, 32], strides = [1, 1]} : vector<16x320xf32> to vector<16x32xf32>
    %202 = tpu.concatenate %192, %193, %194, %195, %196, %197, %198, %199, %200, %201 in 0 : vector<16x32xf32>, vector<16x32xf32>, vector<16x32xf32>, vector<16x32xf32>, vector<16x32xf32>, vector<16x32xf32>, vector<16x32xf32>, vector<16x32xf32>, vector<16x32xf32>, vector<16x32xf32> -> vector<160x32xf32>
    %203 = arith.truncf %202 : vector<160x32xf32> to vector<160x32xbf16>
    %204 = tpu.concatenate %175, %189, %203 in 1 : vector<160x32xbf16>, vector<160x32xbf16>, vector<160x32xbf16> -> vector<160x96xbf16>
    %c1_53 = arith.constant 1 : index
    %c0_54 = arith.constant 0 : index
    %c0_55 = arith.constant 0 : index
    %205 = vector.load %arg7[%c1_53, %c0_54, %c0_55] : memref<8x96x32xbf16, #tpu.memory_space<vmem>>, vector<1x96x32xbf16>
    %206 = vector.shape_cast %205 : vector<1x96x32xbf16> to vector<96x32xbf16>
    %cst_56 = arith.constant dense<0.000000e+00> : vector<160x32xf32>
    %207 = tpu.matmul %204, %206, %cst_56 {dimension_numbers = #tpu.dot_dimension_numbers<[1], [0], [0], [1], [0, 0, 1, 1], [], []>} : vector<160x96xbf16>, vector<96x32xbf16>, vector<160x32xf32> -> vector<160x32xf32>
    %c1_57 = arith.constant 1 : index
    %c0_58 = arith.constant 0 : index
    %c0_59 = arith.constant 0 : index
    %208 = vector.load %arg8[%c1_57, %c0_58, %c0_59] : memref<8x1x32xf32, #tpu.memory_space<vmem>>, vector<1x1x32xf32>
    %209 = vector.shape_cast %208 : vector<1x1x32xf32> to vector<1x32xf32>
    %210 = vector.broadcast %209 : vector<1x32xf32> to vector<160x32xf32>
    %211 = arith.addf %207, %210 : vector<160x32xf32>
    %212 = vector.shape_cast %126 : vector<10x16x32xf32> to vector<160x32xf32>
    %213 = arith.addf %211, %212 : vector<160x32xf32>
    %c1_60 = arith.constant 1 : index
    %c0_61 = arith.constant 0 : index
    %c0_62 = arith.constant 0 : index
    %214 = vector.load %arg9[%c1_60, %c0_61, %c0_62] : memref<8x1x32xf32, #tpu.memory_space<vmem>>, vector<1x1x32xf32>
    %215 = vector.shape_cast %214 : vector<1x1x32xf32> to vector<1x32xf32>
    %216 = vector.broadcast %215 : vector<1x32xf32> to vector<160x32xf32>
    %217 = arith.mulf %213, %216 : vector<160x32xf32>
    %c1_63 = arith.constant 1 : index
    %c0_64 = arith.constant 0 : index
    %c0_65 = arith.constant 0 : index
    %218 = vector.load %arg10[%c1_63, %c0_64, %c0_65] : memref<8x1x32xf32, #tpu.memory_space<vmem>>, vector<1x1x32xf32>
    %219 = vector.shape_cast %218 : vector<1x1x32xf32> to vector<1x32xf32>
    %220 = vector.broadcast %219 : vector<1x32xf32> to vector<160x32xf32>
    %221 = arith.addf %217, %220 : vector<160x32xf32>
    %222 = vector.shape_cast %221 : vector<160x32xf32> to vector<10x16x32xf32>
    %223 = vector.extract_strided_slice %222 {offsets = [0, 0, 0], sizes = [9, 16, 32], strides = [1, 1, 1]} : vector<10x16x32xf32> to vector<9x16x32xf32>
    %224 = vector.extract_strided_slice %222 {offsets = [1, 0, 0], sizes = [9, 16, 32], strides = [1, 1, 1]} : vector<10x16x32xf32> to vector<9x16x32xf32>
    %225 = tpu.concatenate %223, %224 in 2 : vector<9x16x32xf32>, vector<9x16x32xf32> -> vector<9x16x64xf32>
    %226 = vector.shape_cast %225 : vector<9x16x64xf32> to vector<144x64xf32>
    %227 = arith.truncf %226 : vector<144x64xf32> to vector<144x64xbf16>
    %c2 = arith.constant 2 : index
    %c0_66 = arith.constant 0 : index
    %c0_67 = arith.constant 0 : index
    %228 = vector.load %arg4[%c2, %c0_66, %c0_67] : memref<8x64x64xbf16, #tpu.memory_space<vmem>>, vector<1x64x64xbf16>
    %229 = vector.shape_cast %228 : vector<1x64x64xbf16> to vector<64x64xbf16>
    %cst_68 = arith.constant dense<0.000000e+00> : vector<144x64xf32>
    %230 = tpu.matmul %227, %229, %cst_68 {dimension_numbers = #tpu.dot_dimension_numbers<[1], [0], [0], [1], [0, 0, 1, 1], [], []>} : vector<144x64xbf16>, vector<64x64xbf16>, vector<144x64xf32> -> vector<144x64xf32>
    %c2_69 = arith.constant 2 : index
    %c0_70 = arith.constant 0 : index
    %c0_71 = arith.constant 0 : index
    %231 = vector.load %arg5[%c2_69, %c0_70, %c0_71] : memref<8x1x64xf32, #tpu.memory_space<vmem>>, vector<1x1x64xf32>
    %232 = vector.shape_cast %231 : vector<1x1x64xf32> to vector<1x64xf32>
    %233 = vector.broadcast %232 : vector<1x64xf32> to vector<144x64xf32>
    %234 = arith.addf %230, %233 : vector<144x64xf32>
    %235 = math.tanh %234 : vector<144x64xf32>
    %236 = vector.extract_strided_slice %235 {offsets = [0, 0], sizes = [144, 32], strides = [1, 1]} : vector<144x64xf32> to vector<144x32xf32>
    %237 = vector.extract_strided_slice %235 {offsets = [0, 32], sizes = [144, 32], strides = [1, 1]} : vector<144x64xf32> to vector<144x32xf32>
    %cst_72 = arith.constant 5.000000e-01 : f32
    %238 = vector.broadcast %cst_72 : f32 to vector<144x32xf32>
    %239 = arith.mulf %238, %237 : vector<144x32xf32>
    %cst_73 = arith.constant 5.000000e-01 : f32
    %240 = vector.broadcast %cst_73 : f32 to vector<144x32xf32>
    %241 = arith.addf %239, %240 : vector<144x32xf32>
    %242 = arith.mulf %236, %241 : vector<144x32xf32>
    %243 = vector.shape_cast %242 : vector<144x32xf32> to vector<9x16x32xf32>
    %244 = vector.extract_strided_slice %243 {offsets = [8, 0, 0], sizes = [1, 16, 32], strides = [1, 1, 1]} : vector<9x16x32xf32> to vector<1x16x32xf32>
    %245 = vector.shape_cast %244 : vector<1x16x32xf32> to vector<16x32xf32>
    %246 = arith.truncf %245 : vector<16x32xf32> to vector<16x32xbf16>
    %c2_74 = arith.constant 2 : index
    %c0_75 = arith.constant 0 : index
    %c0_76 = arith.constant 0 : index
    %247 = vector.load %arg6[%c2_74, %c0_75, %c0_76] : memref<8x32x256xbf16, #tpu.memory_space<vmem>>, vector<1x32x256xbf16>
    %248 = vector.shape_cast %247 : vector<1x32x256xbf16> to vector<32x256xbf16>
    %cst_77 = arith.constant dense<0.000000e+00> : vector<16x256xf32>
    %249 = tpu.matmul %246, %248, %cst_77 {dimension_numbers = #tpu.dot_dimension_numbers<[1], [0], [0], [1], [0, 0, 1, 1], [], []>} : vector<16x32xbf16>, vector<32x256xbf16>, vector<16x256xf32> -> vector<16x256xf32>
    %250 = arith.addf %152, %249 : vector<16x256xf32>
    %251 = vector.shape_cast %242 : vector<144x32xf32> to vector<9x16x32xf32>
    %252 = vector.extract_strided_slice %251 {offsets = [0, 0, 0], sizes = [1, 16, 32], strides = [1, 1, 1]} : vector<9x16x32xf32> to vector<1x16x32xf32>
    %253 = vector.shape_cast %252 : vector<1x16x32xf32> to vector<16x32xf32>
    %254 = vector.extract_strided_slice %251 {offsets = [1, 0, 0], sizes = [1, 16, 32], strides = [1, 1, 1]} : vector<9x16x32xf32> to vector<1x16x32xf32>
    %255 = vector.shape_cast %254 : vector<1x16x32xf32> to vector<16x32xf32>
    %256 = vector.extract_strided_slice %251 {offsets = [2, 0, 0], sizes = [1, 16, 32], strides = [1, 1, 1]} : vector<9x16x32xf32> to vector<1x16x32xf32>
    %257 = vector.shape_cast %256 : vector<1x16x32xf32> to vector<16x32xf32>
    %258 = vector.extract_strided_slice %251 {offsets = [3, 0, 0], sizes = [1, 16, 32], strides = [1, 1, 1]} : vector<9x16x32xf32> to vector<1x16x32xf32>
    %259 = vector.shape_cast %258 : vector<1x16x32xf32> to vector<16x32xf32>
    %260 = vector.extract_strided_slice %251 {offsets = [4, 0, 0], sizes = [1, 16, 32], strides = [1, 1, 1]} : vector<9x16x32xf32> to vector<1x16x32xf32>
    %261 = vector.shape_cast %260 : vector<1x16x32xf32> to vector<16x32xf32>
    %262 = vector.extract_strided_slice %251 {offsets = [5, 0, 0], sizes = [1, 16, 32], strides = [1, 1, 1]} : vector<9x16x32xf32> to vector<1x16x32xf32>
    %263 = vector.shape_cast %262 : vector<1x16x32xf32> to vector<16x32xf32>
    %264 = vector.extract_strided_slice %251 {offsets = [6, 0, 0], sizes = [1, 16, 32], strides = [1, 1, 1]} : vector<9x16x32xf32> to vector<1x16x32xf32>
    %265 = vector.shape_cast %264 : vector<1x16x32xf32> to vector<16x32xf32>
    %266 = vector.extract_strided_slice %251 {offsets = [7, 0, 0], sizes = [1, 16, 32], strides = [1, 1, 1]} : vector<9x16x32xf32> to vector<1x16x32xf32>
    %267 = vector.shape_cast %266 : vector<1x16x32xf32> to vector<16x32xf32>
    %268 = vector.extract_strided_slice %251 {offsets = [8, 0, 0], sizes = [1, 16, 32], strides = [1, 1, 1]} : vector<9x16x32xf32> to vector<1x16x32xf32>
    %269 = vector.shape_cast %268 : vector<1x16x32xf32> to vector<16x32xf32>
    %270 = tpu.concatenate %253, %255, %257, %259, %261, %263, %265, %267, %269 in 1 : vector<16x32xf32>, vector<16x32xf32>, vector<16x32xf32>, vector<16x32xf32>, vector<16x32xf32>, vector<16x32xf32>, vector<16x32xf32>, vector<16x32xf32>, vector<16x32xf32> -> vector<16x288xf32>
    %271 = arith.truncf %242 : vector<144x32xf32> to vector<144x32xbf16>
    %272 = arith.truncf %270 : vector<16x288xf32> to vector<16x288xbf16>
    %cst_78 = arith.constant dense<0.000000e+00> : vector<16x288xf32>
    %273 = tpu.matmul %15, %272, %cst_78 {dimension_numbers = #tpu.dot_dimension_numbers<[1], [0], [0], [1], [0, 0, 1, 1], [], []>} : vector<16x16xbf16>, vector<16x288xbf16>, vector<16x288xf32> -> vector<16x288xf32>
    %274 = vector.extract_strided_slice %273 {offsets = [0, 0], sizes = [16, 32], strides = [1, 1]} : vector<16x288xf32> to vector<16x32xf32>
    %275 = vector.extract_strided_slice %273 {offsets = [0, 32], sizes = [16, 32], strides = [1, 1]} : vector<16x288xf32> to vector<16x32xf32>
    %276 = vector.extract_strided_slice %273 {offsets = [0, 64], sizes = [16, 32], strides = [1, 1]} : vector<16x288xf32> to vector<16x32xf32>
    %277 = vector.extract_strided_slice %273 {offsets = [0, 96], sizes = [16, 32], strides = [1, 1]} : vector<16x288xf32> to vector<16x32xf32>
    %278 = vector.extract_strided_slice %273 {offsets = [0, 128], sizes = [16, 32], strides = [1, 1]} : vector<16x288xf32> to vector<16x32xf32>
    %279 = vector.extract_strided_slice %273 {offsets = [0, 160], sizes = [16, 32], strides = [1, 1]} : vector<16x288xf32> to vector<16x32xf32>
    %280 = vector.extract_strided_slice %273 {offsets = [0, 192], sizes = [16, 32], strides = [1, 1]} : vector<16x288xf32> to vector<16x32xf32>
    %281 = vector.extract_strided_slice %273 {offsets = [0, 224], sizes = [16, 32], strides = [1, 1]} : vector<16x288xf32> to vector<16x32xf32>
    %282 = vector.extract_strided_slice %273 {offsets = [0, 256], sizes = [16, 32], strides = [1, 1]} : vector<16x288xf32> to vector<16x32xf32>
    %283 = tpu.concatenate %274, %275, %276, %277, %278, %279, %280, %281, %282 in 0 : vector<16x32xf32>, vector<16x32xf32>, vector<16x32xf32>, vector<16x32xf32>, vector<16x32xf32>, vector<16x32xf32>, vector<16x32xf32>, vector<16x32xf32>, vector<16x32xf32> -> vector<144x32xf32>
    %284 = arith.truncf %283 : vector<144x32xf32> to vector<144x32xbf16>
    %285 = arith.truncf %273 : vector<16x288xf32> to vector<16x288xbf16>
    %cst_79 = arith.constant dense<0.000000e+00> : vector<16x288xf32>
    %286 = tpu.matmul %15, %285, %cst_79 {dimension_numbers = #tpu.dot_dimension_numbers<[1], [0], [0], [1], [0, 0, 1, 1], [], []>} : vector<16x16xbf16>, vector<16x288xbf16>, vector<16x288xf32> -> vector<16x288xf32>
    %287 = vector.extract_strided_slice %286 {offsets = [0, 0], sizes = [16, 32], strides = [1, 1]} : vector<16x288xf32> to vector<16x32xf32>
    %288 = vector.extract_strided_slice %286 {offsets = [0, 32], sizes = [16, 32], strides = [1, 1]} : vector<16x288xf32> to vector<16x32xf32>
    %289 = vector.extract_strided_slice %286 {offsets = [0, 64], sizes = [16, 32], strides = [1, 1]} : vector<16x288xf32> to vector<16x32xf32>
    %290 = vector.extract_strided_slice %286 {offsets = [0, 96], sizes = [16, 32], strides = [1, 1]} : vector<16x288xf32> to vector<16x32xf32>
    %291 = vector.extract_strided_slice %286 {offsets = [0, 128], sizes = [16, 32], strides = [1, 1]} : vector<16x288xf32> to vector<16x32xf32>
    %292 = vector.extract_strided_slice %286 {offsets = [0, 160], sizes = [16, 32], strides = [1, 1]} : vector<16x288xf32> to vector<16x32xf32>
    %293 = vector.extract_strided_slice %286 {offsets = [0, 192], sizes = [16, 32], strides = [1, 1]} : vector<16x288xf32> to vector<16x32xf32>
    %294 = vector.extract_strided_slice %286 {offsets = [0, 224], sizes = [16, 32], strides = [1, 1]} : vector<16x288xf32> to vector<16x32xf32>
    %295 = vector.extract_strided_slice %286 {offsets = [0, 256], sizes = [16, 32], strides = [1, 1]} : vector<16x288xf32> to vector<16x32xf32>
    %296 = tpu.concatenate %287, %288, %289, %290, %291, %292, %293, %294, %295 in 0 : vector<16x32xf32>, vector<16x32xf32>, vector<16x32xf32>, vector<16x32xf32>, vector<16x32xf32>, vector<16x32xf32>, vector<16x32xf32>, vector<16x32xf32>, vector<16x32xf32> -> vector<144x32xf32>
    %297 = arith.truncf %296 : vector<144x32xf32> to vector<144x32xbf16>
    %298 = tpu.concatenate %271, %284, %297 in 1 : vector<144x32xbf16>, vector<144x32xbf16>, vector<144x32xbf16> -> vector<144x96xbf16>
    %c2_80 = arith.constant 2 : index
    %c0_81 = arith.constant 0 : index
    %c0_82 = arith.constant 0 : index
    %299 = vector.load %arg7[%c2_80, %c0_81, %c0_82] : memref<8x96x32xbf16, #tpu.memory_space<vmem>>, vector<1x96x32xbf16>
    %300 = vector.shape_cast %299 : vector<1x96x32xbf16> to vector<96x32xbf16>
    %cst_83 = arith.constant dense<0.000000e+00> : vector<144x32xf32>
    %301 = tpu.matmul %298, %300, %cst_83 {dimension_numbers = #tpu.dot_dimension_numbers<[1], [0], [0], [1], [0, 0, 1, 1], [], []>} : vector<144x96xbf16>, vector<96x32xbf16>, vector<144x32xf32> -> vector<144x32xf32>
    %c2_84 = arith.constant 2 : index
    %c0_85 = arith.constant 0 : index
    %c0_86 = arith.constant 0 : index
    %302 = vector.load %arg8[%c2_84, %c0_85, %c0_86] : memref<8x1x32xf32, #tpu.memory_space<vmem>>, vector<1x1x32xf32>
    %303 = vector.shape_cast %302 : vector<1x1x32xf32> to vector<1x32xf32>
    %304 = vector.broadcast %303 : vector<1x32xf32> to vector<144x32xf32>
    %305 = arith.addf %301, %304 : vector<144x32xf32>
    %306 = vector.shape_cast %224 : vector<9x16x32xf32> to vector<144x32xf32>
    %307 = arith.addf %305, %306 : vector<144x32xf32>
    %c2_87 = arith.constant 2 : index
    %c0_88 = arith.constant 0 : index
    %c0_89 = arith.constant 0 : index
    %308 = vector.load %arg9[%c2_87, %c0_88, %c0_89] : memref<8x1x32xf32, #tpu.memory_space<vmem>>, vector<1x1x32xf32>
    %309 = vector.shape_cast %308 : vector<1x1x32xf32> to vector<1x32xf32>
    %310 = vector.broadcast %309 : vector<1x32xf32> to vector<144x32xf32>
    %311 = arith.mulf %307, %310 : vector<144x32xf32>
    %c2_90 = arith.constant 2 : index
    %c0_91 = arith.constant 0 : index
    %c0_92 = arith.constant 0 : index
    %312 = vector.load %arg10[%c2_90, %c0_91, %c0_92] : memref<8x1x32xf32, #tpu.memory_space<vmem>>, vector<1x1x32xf32>
    %313 = vector.shape_cast %312 : vector<1x1x32xf32> to vector<1x32xf32>
    %314 = vector.broadcast %313 : vector<1x32xf32> to vector<144x32xf32>
    %315 = arith.addf %311, %314 : vector<144x32xf32>
    %316 = vector.shape_cast %315 : vector<144x32xf32> to vector<9x16x32xf32>
    %317 = vector.extract_strided_slice %316 {offsets = [0, 0, 0], sizes = [7, 16, 32], strides = [1, 1, 1]} : vector<9x16x32xf32> to vector<7x16x32xf32>
    %318 = vector.extract_strided_slice %316 {offsets = [2, 0, 0], sizes = [7, 16, 32], strides = [1, 1, 1]} : vector<9x16x32xf32> to vector<7x16x32xf32>
    %319 = tpu.concatenate %317, %318 in 2 : vector<7x16x32xf32>, vector<7x16x32xf32> -> vector<7x16x64xf32>
    %320 = vector.shape_cast %319 : vector<7x16x64xf32> to vector<112x64xf32>
    %321 = arith.truncf %320 : vector<112x64xf32> to vector<112x64xbf16>
    %c3 = arith.constant 3 : index
    %c0_93 = arith.constant 0 : index
    %c0_94 = arith.constant 0 : index
    %322 = vector.load %arg4[%c3, %c0_93, %c0_94] : memref<8x64x64xbf16, #tpu.memory_space<vmem>>, vector<1x64x64xbf16>
    %323 = vector.shape_cast %322 : vector<1x64x64xbf16> to vector<64x64xbf16>
    %cst_95 = arith.constant dense<0.000000e+00> : vector<112x64xf32>
    %324 = tpu.matmul %321, %323, %cst_95 {dimension_numbers = #tpu.dot_dimension_numbers<[1], [0], [0], [1], [0, 0, 1, 1], [], []>} : vector<112x64xbf16>, vector<64x64xbf16>, vector<112x64xf32> -> vector<112x64xf32>
    %c3_96 = arith.constant 3 : index
    %c0_97 = arith.constant 0 : index
    %c0_98 = arith.constant 0 : index
    %325 = vector.load %arg5[%c3_96, %c0_97, %c0_98] : memref<8x1x64xf32, #tpu.memory_space<vmem>>, vector<1x1x64xf32>
    %326 = vector.shape_cast %325 : vector<1x1x64xf32> to vector<1x64xf32>
    %327 = vector.broadcast %326 : vector<1x64xf32> to vector<112x64xf32>
    %328 = arith.addf %324, %327 : vector<112x64xf32>
    %329 = math.tanh %328 : vector<112x64xf32>
    %330 = vector.extract_strided_slice %329 {offsets = [0, 0], sizes = [112, 32], strides = [1, 1]} : vector<112x64xf32> to vector<112x32xf32>
    %331 = vector.extract_strided_slice %329 {offsets = [0, 32], sizes = [112, 32], strides = [1, 1]} : vector<112x64xf32> to vector<112x32xf32>
    %cst_99 = arith.constant 5.000000e-01 : f32
    %332 = vector.broadcast %cst_99 : f32 to vector<112x32xf32>
    %333 = arith.mulf %332, %331 : vector<112x32xf32>
    %cst_100 = arith.constant 5.000000e-01 : f32
    %334 = vector.broadcast %cst_100 : f32 to vector<112x32xf32>
    %335 = arith.addf %333, %334 : vector<112x32xf32>
    %336 = arith.mulf %330, %335 : vector<112x32xf32>
    %337 = vector.shape_cast %336 : vector<112x32xf32> to vector<7x16x32xf32>
    %338 = vector.extract_strided_slice %337 {offsets = [6, 0, 0], sizes = [1, 16, 32], strides = [1, 1, 1]} : vector<7x16x32xf32> to vector<1x16x32xf32>
    %339 = vector.shape_cast %338 : vector<1x16x32xf32> to vector<16x32xf32>
    %340 = arith.truncf %339 : vector<16x32xf32> to vector<16x32xbf16>
    %c3_101 = arith.constant 3 : index
    %c0_102 = arith.constant 0 : index
    %c0_103 = arith.constant 0 : index
    %341 = vector.load %arg6[%c3_101, %c0_102, %c0_103] : memref<8x32x256xbf16, #tpu.memory_space<vmem>>, vector<1x32x256xbf16>
    %342 = vector.shape_cast %341 : vector<1x32x256xbf16> to vector<32x256xbf16>
    %cst_104 = arith.constant dense<0.000000e+00> : vector<16x256xf32>
    %343 = tpu.matmul %340, %342, %cst_104 {dimension_numbers = #tpu.dot_dimension_numbers<[1], [0], [0], [1], [0, 0, 1, 1], [], []>} : vector<16x32xbf16>, vector<32x256xbf16>, vector<16x256xf32> -> vector<16x256xf32>
    %344 = arith.addf %250, %343 : vector<16x256xf32>
    %345 = vector.shape_cast %336 : vector<112x32xf32> to vector<7x16x32xf32>
    %346 = vector.extract_strided_slice %345 {offsets = [0, 0, 0], sizes = [1, 16, 32], strides = [1, 1, 1]} : vector<7x16x32xf32> to vector<1x16x32xf32>
    %347 = vector.shape_cast %346 : vector<1x16x32xf32> to vector<16x32xf32>
    %348 = vector.extract_strided_slice %345 {offsets = [1, 0, 0], sizes = [1, 16, 32], strides = [1, 1, 1]} : vector<7x16x32xf32> to vector<1x16x32xf32>
    %349 = vector.shape_cast %348 : vector<1x16x32xf32> to vector<16x32xf32>
    %350 = vector.extract_strided_slice %345 {offsets = [2, 0, 0], sizes = [1, 16, 32], strides = [1, 1, 1]} : vector<7x16x32xf32> to vector<1x16x32xf32>
    %351 = vector.shape_cast %350 : vector<1x16x32xf32> to vector<16x32xf32>
    %352 = vector.extract_strided_slice %345 {offsets = [3, 0, 0], sizes = [1, 16, 32], strides = [1, 1, 1]} : vector<7x16x32xf32> to vector<1x16x32xf32>
    %353 = vector.shape_cast %352 : vector<1x16x32xf32> to vector<16x32xf32>
    %354 = vector.extract_strided_slice %345 {offsets = [4, 0, 0], sizes = [1, 16, 32], strides = [1, 1, 1]} : vector<7x16x32xf32> to vector<1x16x32xf32>
    %355 = vector.shape_cast %354 : vector<1x16x32xf32> to vector<16x32xf32>
    %356 = vector.extract_strided_slice %345 {offsets = [5, 0, 0], sizes = [1, 16, 32], strides = [1, 1, 1]} : vector<7x16x32xf32> to vector<1x16x32xf32>
    %357 = vector.shape_cast %356 : vector<1x16x32xf32> to vector<16x32xf32>
    %358 = vector.extract_strided_slice %345 {offsets = [6, 0, 0], sizes = [1, 16, 32], strides = [1, 1, 1]} : vector<7x16x32xf32> to vector<1x16x32xf32>
    %359 = vector.shape_cast %358 : vector<1x16x32xf32> to vector<16x32xf32>
    %360 = tpu.concatenate %347, %349, %351, %353, %355, %357, %359 in 1 : vector<16x32xf32>, vector<16x32xf32>, vector<16x32xf32>, vector<16x32xf32>, vector<16x32xf32>, vector<16x32xf32>, vector<16x32xf32> -> vector<16x224xf32>
    %361 = arith.truncf %336 : vector<112x32xf32> to vector<112x32xbf16>
    %362 = arith.truncf %360 : vector<16x224xf32> to vector<16x224xbf16>
    %cst_105 = arith.constant dense<0.000000e+00> : vector<16x224xf32>
    %363 = tpu.matmul %15, %362, %cst_105 {dimension_numbers = #tpu.dot_dimension_numbers<[1], [0], [0], [1], [0, 0, 1, 1], [], []>} : vector<16x16xbf16>, vector<16x224xbf16>, vector<16x224xf32> -> vector<16x224xf32>
    %364 = vector.extract_strided_slice %363 {offsets = [0, 0], sizes = [16, 32], strides = [1, 1]} : vector<16x224xf32> to vector<16x32xf32>
    %365 = vector.extract_strided_slice %363 {offsets = [0, 32], sizes = [16, 32], strides = [1, 1]} : vector<16x224xf32> to vector<16x32xf32>
    %366 = vector.extract_strided_slice %363 {offsets = [0, 64], sizes = [16, 32], strides = [1, 1]} : vector<16x224xf32> to vector<16x32xf32>
    %367 = vector.extract_strided_slice %363 {offsets = [0, 96], sizes = [16, 32], strides = [1, 1]} : vector<16x224xf32> to vector<16x32xf32>
    %368 = vector.extract_strided_slice %363 {offsets = [0, 128], sizes = [16, 32], strides = [1, 1]} : vector<16x224xf32> to vector<16x32xf32>
    %369 = vector.extract_strided_slice %363 {offsets = [0, 160], sizes = [16, 32], strides = [1, 1]} : vector<16x224xf32> to vector<16x32xf32>
    %370 = vector.extract_strided_slice %363 {offsets = [0, 192], sizes = [16, 32], strides = [1, 1]} : vector<16x224xf32> to vector<16x32xf32>
    %371 = tpu.concatenate %364, %365, %366, %367, %368, %369, %370 in 0 : vector<16x32xf32>, vector<16x32xf32>, vector<16x32xf32>, vector<16x32xf32>, vector<16x32xf32>, vector<16x32xf32>, vector<16x32xf32> -> vector<112x32xf32>
    %372 = arith.truncf %371 : vector<112x32xf32> to vector<112x32xbf16>
    %373 = arith.truncf %363 : vector<16x224xf32> to vector<16x224xbf16>
    %cst_106 = arith.constant dense<0.000000e+00> : vector<16x224xf32>
    %374 = tpu.matmul %15, %373, %cst_106 {dimension_numbers = #tpu.dot_dimension_numbers<[1], [0], [0], [1], [0, 0, 1, 1], [], []>} : vector<16x16xbf16>, vector<16x224xbf16>, vector<16x224xf32> -> vector<16x224xf32>
    %375 = vector.extract_strided_slice %374 {offsets = [0, 0], sizes = [16, 32], strides = [1, 1]} : vector<16x224xf32> to vector<16x32xf32>
    %376 = vector.extract_strided_slice %374 {offsets = [0, 32], sizes = [16, 32], strides = [1, 1]} : vector<16x224xf32> to vector<16x32xf32>
    %377 = vector.extract_strided_slice %374 {offsets = [0, 64], sizes = [16, 32], strides = [1, 1]} : vector<16x224xf32> to vector<16x32xf32>
    %378 = vector.extract_strided_slice %374 {offsets = [0, 96], sizes = [16, 32], strides = [1, 1]} : vector<16x224xf32> to vector<16x32xf32>
    %379 = vector.extract_strided_slice %374 {offsets = [0, 128], sizes = [16, 32], strides = [1, 1]} : vector<16x224xf32> to vector<16x32xf32>
    %380 = vector.extract_strided_slice %374 {offsets = [0, 160], sizes = [16, 32], strides = [1, 1]} : vector<16x224xf32> to vector<16x32xf32>
    %381 = vector.extract_strided_slice %374 {offsets = [0, 192], sizes = [16, 32], strides = [1, 1]} : vector<16x224xf32> to vector<16x32xf32>
    %382 = tpu.concatenate %375, %376, %377, %378, %379, %380, %381 in 0 : vector<16x32xf32>, vector<16x32xf32>, vector<16x32xf32>, vector<16x32xf32>, vector<16x32xf32>, vector<16x32xf32>, vector<16x32xf32> -> vector<112x32xf32>
    %383 = arith.truncf %382 : vector<112x32xf32> to vector<112x32xbf16>
    %384 = tpu.concatenate %361, %372, %383 in 1 : vector<112x32xbf16>, vector<112x32xbf16>, vector<112x32xbf16> -> vector<112x96xbf16>
    %c3_107 = arith.constant 3 : index
    %c0_108 = arith.constant 0 : index
    %c0_109 = arith.constant 0 : index
    %385 = vector.load %arg7[%c3_107, %c0_108, %c0_109] : memref<8x96x32xbf16, #tpu.memory_space<vmem>>, vector<1x96x32xbf16>
    %386 = vector.shape_cast %385 : vector<1x96x32xbf16> to vector<96x32xbf16>
    %cst_110 = arith.constant dense<0.000000e+00> : vector<112x32xf32>
    %387 = tpu.matmul %384, %386, %cst_110 {dimension_numbers = #tpu.dot_dimension_numbers<[1], [0], [0], [1], [0, 0, 1, 1], [], []>} : vector<112x96xbf16>, vector<96x32xbf16>, vector<112x32xf32> -> vector<112x32xf32>
    %c3_111 = arith.constant 3 : index
    %c0_112 = arith.constant 0 : index
    %c0_113 = arith.constant 0 : index
    %388 = vector.load %arg8[%c3_111, %c0_112, %c0_113] : memref<8x1x32xf32, #tpu.memory_space<vmem>>, vector<1x1x32xf32>
    %389 = vector.shape_cast %388 : vector<1x1x32xf32> to vector<1x32xf32>
    %390 = vector.broadcast %389 : vector<1x32xf32> to vector<112x32xf32>
    %391 = arith.addf %387, %390 : vector<112x32xf32>
    %392 = vector.shape_cast %318 : vector<7x16x32xf32> to vector<112x32xf32>
    %393 = arith.addf %391, %392 : vector<112x32xf32>
    %c3_114 = arith.constant 3 : index
    %c0_115 = arith.constant 0 : index
    %c0_116 = arith.constant 0 : index
    %394 = vector.load %arg9[%c3_114, %c0_115, %c0_116] : memref<8x1x32xf32, #tpu.memory_space<vmem>>, vector<1x1x32xf32>
    %395 = vector.shape_cast %394 : vector<1x1x32xf32> to vector<1x32xf32>
    %396 = vector.broadcast %395 : vector<1x32xf32> to vector<112x32xf32>
    %397 = arith.mulf %393, %396 : vector<112x32xf32>
    %c3_117 = arith.constant 3 : index
    %c0_118 = arith.constant 0 : index
    %c0_119 = arith.constant 0 : index
    %398 = vector.load %arg10[%c3_117, %c0_118, %c0_119] : memref<8x1x32xf32, #tpu.memory_space<vmem>>, vector<1x1x32xf32>
    %399 = vector.shape_cast %398 : vector<1x1x32xf32> to vector<1x32xf32>
    %400 = vector.broadcast %399 : vector<1x32xf32> to vector<112x32xf32>
    %401 = arith.addf %397, %400 : vector<112x32xf32>
    %402 = vector.shape_cast %401 : vector<112x32xf32> to vector<7x16x32xf32>
    %403 = vector.extract_strided_slice %402 {offsets = [0, 0, 0], sizes = [6, 16, 32], strides = [1, 1, 1]} : vector<7x16x32xf32> to vector<6x16x32xf32>
    %404 = vector.extract_strided_slice %402 {offsets = [1, 0, 0], sizes = [6, 16, 32], strides = [1, 1, 1]} : vector<7x16x32xf32> to vector<6x16x32xf32>
    %405 = tpu.concatenate %403, %404 in 2 : vector<6x16x32xf32>, vector<6x16x32xf32> -> vector<6x16x64xf32>
    %406 = vector.shape_cast %405 : vector<6x16x64xf32> to vector<96x64xf32>
    %407 = arith.truncf %406 : vector<96x64xf32> to vector<96x64xbf16>
    %c4 = arith.constant 4 : index
    %c0_120 = arith.constant 0 : index
    %c0_121 = arith.constant 0 : index
    %408 = vector.load %arg4[%c4, %c0_120, %c0_121] : memref<8x64x64xbf16, #tpu.memory_space<vmem>>, vector<1x64x64xbf16>
    %409 = vector.shape_cast %408 : vector<1x64x64xbf16> to vector<64x64xbf16>
    %cst_122 = arith.constant dense<0.000000e+00> : vector<96x64xf32>
    %410 = tpu.matmul %407, %409, %cst_122 {dimension_numbers = #tpu.dot_dimension_numbers<[1], [0], [0], [1], [0, 0, 1, 1], [], []>} : vector<96x64xbf16>, vector<64x64xbf16>, vector<96x64xf32> -> vector<96x64xf32>
    %c4_123 = arith.constant 4 : index
    %c0_124 = arith.constant 0 : index
    %c0_125 = arith.constant 0 : index
    %411 = vector.load %arg5[%c4_123, %c0_124, %c0_125] : memref<8x1x64xf32, #tpu.memory_space<vmem>>, vector<1x1x64xf32>
    %412 = vector.shape_cast %411 : vector<1x1x64xf32> to vector<1x64xf32>
    %413 = vector.broadcast %412 : vector<1x64xf32> to vector<96x64xf32>
    %414 = arith.addf %410, %413 : vector<96x64xf32>
    %415 = math.tanh %414 : vector<96x64xf32>
    %416 = vector.extract_strided_slice %415 {offsets = [0, 0], sizes = [96, 32], strides = [1, 1]} : vector<96x64xf32> to vector<96x32xf32>
    %417 = vector.extract_strided_slice %415 {offsets = [0, 32], sizes = [96, 32], strides = [1, 1]} : vector<96x64xf32> to vector<96x32xf32>
    %cst_126 = arith.constant 5.000000e-01 : f32
    %418 = vector.broadcast %cst_126 : f32 to vector<96x32xf32>
    %419 = arith.mulf %418, %417 : vector<96x32xf32>
    %cst_127 = arith.constant 5.000000e-01 : f32
    %420 = vector.broadcast %cst_127 : f32 to vector<96x32xf32>
    %421 = arith.addf %419, %420 : vector<96x32xf32>
    %422 = arith.mulf %416, %421 : vector<96x32xf32>
    %423 = vector.shape_cast %422 : vector<96x32xf32> to vector<6x16x32xf32>
    %424 = vector.extract_strided_slice %423 {offsets = [5, 0, 0], sizes = [1, 16, 32], strides = [1, 1, 1]} : vector<6x16x32xf32> to vector<1x16x32xf32>
    %425 = vector.shape_cast %424 : vector<1x16x32xf32> to vector<16x32xf32>
    %426 = arith.truncf %425 : vector<16x32xf32> to vector<16x32xbf16>
    %c4_128 = arith.constant 4 : index
    %c0_129 = arith.constant 0 : index
    %c0_130 = arith.constant 0 : index
    %427 = vector.load %arg6[%c4_128, %c0_129, %c0_130] : memref<8x32x256xbf16, #tpu.memory_space<vmem>>, vector<1x32x256xbf16>
    %428 = vector.shape_cast %427 : vector<1x32x256xbf16> to vector<32x256xbf16>
    %cst_131 = arith.constant dense<0.000000e+00> : vector<16x256xf32>
    %429 = tpu.matmul %426, %428, %cst_131 {dimension_numbers = #tpu.dot_dimension_numbers<[1], [0], [0], [1], [0, 0, 1, 1], [], []>} : vector<16x32xbf16>, vector<32x256xbf16>, vector<16x256xf32> -> vector<16x256xf32>
    %430 = arith.addf %344, %429 : vector<16x256xf32>
    %431 = vector.shape_cast %422 : vector<96x32xf32> to vector<6x16x32xf32>
    %432 = vector.extract_strided_slice %431 {offsets = [0, 0, 0], sizes = [1, 16, 32], strides = [1, 1, 1]} : vector<6x16x32xf32> to vector<1x16x32xf32>
    %433 = vector.shape_cast %432 : vector<1x16x32xf32> to vector<16x32xf32>
    %434 = vector.extract_strided_slice %431 {offsets = [1, 0, 0], sizes = [1, 16, 32], strides = [1, 1, 1]} : vector<6x16x32xf32> to vector<1x16x32xf32>
    %435 = vector.shape_cast %434 : vector<1x16x32xf32> to vector<16x32xf32>
    %436 = vector.extract_strided_slice %431 {offsets = [2, 0, 0], sizes = [1, 16, 32], strides = [1, 1, 1]} : vector<6x16x32xf32> to vector<1x16x32xf32>
    %437 = vector.shape_cast %436 : vector<1x16x32xf32> to vector<16x32xf32>
    %438 = vector.extract_strided_slice %431 {offsets = [3, 0, 0], sizes = [1, 16, 32], strides = [1, 1, 1]} : vector<6x16x32xf32> to vector<1x16x32xf32>
    %439 = vector.shape_cast %438 : vector<1x16x32xf32> to vector<16x32xf32>
    %440 = vector.extract_strided_slice %431 {offsets = [4, 0, 0], sizes = [1, 16, 32], strides = [1, 1, 1]} : vector<6x16x32xf32> to vector<1x16x32xf32>
    %441 = vector.shape_cast %440 : vector<1x16x32xf32> to vector<16x32xf32>
    %442 = vector.extract_strided_slice %431 {offsets = [5, 0, 0], sizes = [1, 16, 32], strides = [1, 1, 1]} : vector<6x16x32xf32> to vector<1x16x32xf32>
    %443 = vector.shape_cast %442 : vector<1x16x32xf32> to vector<16x32xf32>
    %444 = tpu.concatenate %433, %435, %437, %439, %441, %443 in 1 : vector<16x32xf32>, vector<16x32xf32>, vector<16x32xf32>, vector<16x32xf32>, vector<16x32xf32>, vector<16x32xf32> -> vector<16x192xf32>
    %445 = arith.truncf %422 : vector<96x32xf32> to vector<96x32xbf16>
    %446 = arith.truncf %444 : vector<16x192xf32> to vector<16x192xbf16>
    %cst_132 = arith.constant dense<0.000000e+00> : vector<16x192xf32>
    %447 = tpu.matmul %15, %446, %cst_132 {dimension_numbers = #tpu.dot_dimension_numbers<[1], [0], [0], [1], [0, 0, 1, 1], [], []>} : vector<16x16xbf16>, vector<16x192xbf16>, vector<16x192xf32> -> vector<16x192xf32>
    %448 = vector.extract_strided_slice %447 {offsets = [0, 0], sizes = [16, 32], strides = [1, 1]} : vector<16x192xf32> to vector<16x32xf32>
    %449 = vector.extract_strided_slice %447 {offsets = [0, 32], sizes = [16, 32], strides = [1, 1]} : vector<16x192xf32> to vector<16x32xf32>
    %450 = vector.extract_strided_slice %447 {offsets = [0, 64], sizes = [16, 32], strides = [1, 1]} : vector<16x192xf32> to vector<16x32xf32>
    %451 = vector.extract_strided_slice %447 {offsets = [0, 96], sizes = [16, 32], strides = [1, 1]} : vector<16x192xf32> to vector<16x32xf32>
    %452 = vector.extract_strided_slice %447 {offsets = [0, 128], sizes = [16, 32], strides = [1, 1]} : vector<16x192xf32> to vector<16x32xf32>
    %453 = vector.extract_strided_slice %447 {offsets = [0, 160], sizes = [16, 32], strides = [1, 1]} : vector<16x192xf32> to vector<16x32xf32>
    %454 = tpu.concatenate %448, %449, %450, %451, %452, %453 in 0 : vector<16x32xf32>, vector<16x32xf32>, vector<16x32xf32>, vector<16x32xf32>, vector<16x32xf32>, vector<16x32xf32> -> vector<96x32xf32>
    %455 = arith.truncf %454 : vector<96x32xf32> to vector<96x32xbf16>
    %456 = arith.truncf %447 : vector<16x192xf32> to vector<16x192xbf16>
    %cst_133 = arith.constant dense<0.000000e+00> : vector<16x192xf32>
    %457 = tpu.matmul %15, %456, %cst_133 {dimension_numbers = #tpu.dot_dimension_numbers<[1], [0], [0], [1], [0, 0, 1, 1], [], []>} : vector<16x16xbf16>, vector<16x192xbf16>, vector<16x192xf32> -> vector<16x192xf32>
    %458 = vector.extract_strided_slice %457 {offsets = [0, 0], sizes = [16, 32], strides = [1, 1]} : vector<16x192xf32> to vector<16x32xf32>
    %459 = vector.extract_strided_slice %457 {offsets = [0, 32], sizes = [16, 32], strides = [1, 1]} : vector<16x192xf32> to vector<16x32xf32>
    %460 = vector.extract_strided_slice %457 {offsets = [0, 64], sizes = [16, 32], strides = [1, 1]} : vector<16x192xf32> to vector<16x32xf32>
    %461 = vector.extract_strided_slice %457 {offsets = [0, 96], sizes = [16, 32], strides = [1, 1]} : vector<16x192xf32> to vector<16x32xf32>
    %462 = vector.extract_strided_slice %457 {offsets = [0, 128], sizes = [16, 32], strides = [1, 1]} : vector<16x192xf32> to vector<16x32xf32>
    %463 = vector.extract_strided_slice %457 {offsets = [0, 160], sizes = [16, 32], strides = [1, 1]} : vector<16x192xf32> to vector<16x32xf32>
    %464 = tpu.concatenate %458, %459, %460, %461, %462, %463 in 0 : vector<16x32xf32>, vector<16x32xf32>, vector<16x32xf32>, vector<16x32xf32>, vector<16x32xf32>, vector<16x32xf32> -> vector<96x32xf32>
    %465 = arith.truncf %464 : vector<96x32xf32> to vector<96x32xbf16>
    %466 = tpu.concatenate %445, %455, %465 in 1 : vector<96x32xbf16>, vector<96x32xbf16>, vector<96x32xbf16> -> vector<96x96xbf16>
    %c4_134 = arith.constant 4 : index
    %c0_135 = arith.constant 0 : index
    %c0_136 = arith.constant 0 : index
    %467 = vector.load %arg7[%c4_134, %c0_135, %c0_136] : memref<8x96x32xbf16, #tpu.memory_space<vmem>>, vector<1x96x32xbf16>
    %468 = vector.shape_cast %467 : vector<1x96x32xbf16> to vector<96x32xbf16>
    %cst_137 = arith.constant dense<0.000000e+00> : vector<96x32xf32>
    %469 = tpu.matmul %466, %468, %cst_137 {dimension_numbers = #tpu.dot_dimension_numbers<[1], [0], [0], [1], [0, 0, 1, 1], [], []>} : vector<96x96xbf16>, vector<96x32xbf16>, vector<96x32xf32> -> vector<96x32xf32>
    %c4_138 = arith.constant 4 : index
    %c0_139 = arith.constant 0 : index
    %c0_140 = arith.constant 0 : index
    %470 = vector.load %arg8[%c4_138, %c0_139, %c0_140] : memref<8x1x32xf32, #tpu.memory_space<vmem>>, vector<1x1x32xf32>
    %471 = vector.shape_cast %470 : vector<1x1x32xf32> to vector<1x32xf32>
    %472 = vector.broadcast %471 : vector<1x32xf32> to vector<96x32xf32>
    %473 = arith.addf %469, %472 : vector<96x32xf32>
    %474 = vector.shape_cast %404 : vector<6x16x32xf32> to vector<96x32xf32>
    %475 = arith.addf %473, %474 : vector<96x32xf32>
    %c4_141 = arith.constant 4 : index
    %c0_142 = arith.constant 0 : index
    %c0_143 = arith.constant 0 : index
    %476 = vector.load %arg9[%c4_141, %c0_142, %c0_143] : memref<8x1x32xf32, #tpu.memory_space<vmem>>, vector<1x1x32xf32>
    %477 = vector.shape_cast %476 : vector<1x1x32xf32> to vector<1x32xf32>
    %478 = vector.broadcast %477 : vector<1x32xf32> to vector<96x32xf32>
    %479 = arith.mulf %475, %478 : vector<96x32xf32>
    %c4_144 = arith.constant 4 : index
    %c0_145 = arith.constant 0 : index
    %c0_146 = arith.constant 0 : index
    %480 = vector.load %arg10[%c4_144, %c0_145, %c0_146] : memref<8x1x32xf32, #tpu.memory_space<vmem>>, vector<1x1x32xf32>
    %481 = vector.shape_cast %480 : vector<1x1x32xf32> to vector<1x32xf32>
    %482 = vector.broadcast %481 : vector<1x32xf32> to vector<96x32xf32>
    %483 = arith.addf %479, %482 : vector<96x32xf32>
    %484 = vector.shape_cast %483 : vector<96x32xf32> to vector<6x16x32xf32>
    %485 = vector.extract_strided_slice %484 {offsets = [0, 0, 0], sizes = [4, 16, 32], strides = [1, 1, 1]} : vector<6x16x32xf32> to vector<4x16x32xf32>
    %486 = vector.extract_strided_slice %484 {offsets = [2, 0, 0], sizes = [4, 16, 32], strides = [1, 1, 1]} : vector<6x16x32xf32> to vector<4x16x32xf32>
    %487 = tpu.concatenate %485, %486 in 2 : vector<4x16x32xf32>, vector<4x16x32xf32> -> vector<4x16x64xf32>
    %488 = vector.shape_cast %487 : vector<4x16x64xf32> to vector<64x64xf32>
    %489 = arith.truncf %488 : vector<64x64xf32> to vector<64x64xbf16>
    %c5 = arith.constant 5 : index
    %c0_147 = arith.constant 0 : index
    %c0_148 = arith.constant 0 : index
    %490 = vector.load %arg4[%c5, %c0_147, %c0_148] : memref<8x64x64xbf16, #tpu.memory_space<vmem>>, vector<1x64x64xbf16>
    %491 = vector.shape_cast %490 : vector<1x64x64xbf16> to vector<64x64xbf16>
    %cst_149 = arith.constant dense<0.000000e+00> : vector<64x64xf32>
    %492 = tpu.matmul %489, %491, %cst_149 {dimension_numbers = #tpu.dot_dimension_numbers<[1], [0], [0], [1], [0, 0, 1, 1], [], []>} : vector<64x64xbf16>, vector<64x64xbf16>, vector<64x64xf32> -> vector<64x64xf32>
    %c5_150 = arith.constant 5 : index
    %c0_151 = arith.constant 0 : index
    %c0_152 = arith.constant 0 : index
    %493 = vector.load %arg5[%c5_150, %c0_151, %c0_152] : memref<8x1x64xf32, #tpu.memory_space<vmem>>, vector<1x1x64xf32>
    %494 = vector.shape_cast %493 : vector<1x1x64xf32> to vector<1x64xf32>
    %495 = vector.broadcast %494 : vector<1x64xf32> to vector<64x64xf32>
    %496 = arith.addf %492, %495 : vector<64x64xf32>
    %497 = math.tanh %496 : vector<64x64xf32>
    %498 = vector.extract_strided_slice %497 {offsets = [0, 0], sizes = [64, 32], strides = [1, 1]} : vector<64x64xf32> to vector<64x32xf32>
    %499 = vector.extract_strided_slice %497 {offsets = [0, 32], sizes = [64, 32], strides = [1, 1]} : vector<64x64xf32> to vector<64x32xf32>
    %cst_153 = arith.constant 5.000000e-01 : f32
    %500 = vector.broadcast %cst_153 : f32 to vector<64x32xf32>
    %501 = arith.mulf %500, %499 : vector<64x32xf32>
    %cst_154 = arith.constant 5.000000e-01 : f32
    %502 = vector.broadcast %cst_154 : f32 to vector<64x32xf32>
    %503 = arith.addf %501, %502 : vector<64x32xf32>
    %504 = arith.mulf %498, %503 : vector<64x32xf32>
    %505 = vector.shape_cast %504 : vector<64x32xf32> to vector<4x16x32xf32>
    %506 = vector.extract_strided_slice %505 {offsets = [3, 0, 0], sizes = [1, 16, 32], strides = [1, 1, 1]} : vector<4x16x32xf32> to vector<1x16x32xf32>
    %507 = vector.shape_cast %506 : vector<1x16x32xf32> to vector<16x32xf32>
    %508 = arith.truncf %507 : vector<16x32xf32> to vector<16x32xbf16>
    %c5_155 = arith.constant 5 : index
    %c0_156 = arith.constant 0 : index
    %c0_157 = arith.constant 0 : index
    %509 = vector.load %arg6[%c5_155, %c0_156, %c0_157] : memref<8x32x256xbf16, #tpu.memory_space<vmem>>, vector<1x32x256xbf16>
    %510 = vector.shape_cast %509 : vector<1x32x256xbf16> to vector<32x256xbf16>
    %cst_158 = arith.constant dense<0.000000e+00> : vector<16x256xf32>
    %511 = tpu.matmul %508, %510, %cst_158 {dimension_numbers = #tpu.dot_dimension_numbers<[1], [0], [0], [1], [0, 0, 1, 1], [], []>} : vector<16x32xbf16>, vector<32x256xbf16>, vector<16x256xf32> -> vector<16x256xf32>
    %512 = arith.addf %430, %511 : vector<16x256xf32>
    %513 = vector.shape_cast %504 : vector<64x32xf32> to vector<4x16x32xf32>
    %514 = vector.extract_strided_slice %513 {offsets = [0, 0, 0], sizes = [1, 16, 32], strides = [1, 1, 1]} : vector<4x16x32xf32> to vector<1x16x32xf32>
    %515 = vector.shape_cast %514 : vector<1x16x32xf32> to vector<16x32xf32>
    %516 = vector.extract_strided_slice %513 {offsets = [1, 0, 0], sizes = [1, 16, 32], strides = [1, 1, 1]} : vector<4x16x32xf32> to vector<1x16x32xf32>
    %517 = vector.shape_cast %516 : vector<1x16x32xf32> to vector<16x32xf32>
    %518 = vector.extract_strided_slice %513 {offsets = [2, 0, 0], sizes = [1, 16, 32], strides = [1, 1, 1]} : vector<4x16x32xf32> to vector<1x16x32xf32>
    %519 = vector.shape_cast %518 : vector<1x16x32xf32> to vector<16x32xf32>
    %520 = vector.extract_strided_slice %513 {offsets = [3, 0, 0], sizes = [1, 16, 32], strides = [1, 1, 1]} : vector<4x16x32xf32> to vector<1x16x32xf32>
    %521 = vector.shape_cast %520 : vector<1x16x32xf32> to vector<16x32xf32>
    %522 = tpu.concatenate %515, %517, %519, %521 in 1 : vector<16x32xf32>, vector<16x32xf32>, vector<16x32xf32>, vector<16x32xf32> -> vector<16x128xf32>
    %523 = arith.truncf %504 : vector<64x32xf32> to vector<64x32xbf16>
    %524 = arith.truncf %522 : vector<16x128xf32> to vector<16x128xbf16>
    %cst_159 = arith.constant dense<0.000000e+00> : vector<16x128xf32>
    %525 = tpu.matmul %15, %524, %cst_159 {dimension_numbers = #tpu.dot_dimension_numbers<[1], [0], [0], [1], [0, 0, 1, 1], [], []>} : vector<16x16xbf16>, vector<16x128xbf16>, vector<16x128xf32> -> vector<16x128xf32>
    %526 = vector.extract_strided_slice %525 {offsets = [0, 0], sizes = [16, 32], strides = [1, 1]} : vector<16x128xf32> to vector<16x32xf32>
    %527 = vector.extract_strided_slice %525 {offsets = [0, 32], sizes = [16, 32], strides = [1, 1]} : vector<16x128xf32> to vector<16x32xf32>
    %528 = vector.extract_strided_slice %525 {offsets = [0, 64], sizes = [16, 32], strides = [1, 1]} : vector<16x128xf32> to vector<16x32xf32>
    %529 = vector.extract_strided_slice %525 {offsets = [0, 96], sizes = [16, 32], strides = [1, 1]} : vector<16x128xf32> to vector<16x32xf32>
    %530 = tpu.concatenate %526, %527, %528, %529 in 0 : vector<16x32xf32>, vector<16x32xf32>, vector<16x32xf32>, vector<16x32xf32> -> vector<64x32xf32>
    %531 = arith.truncf %530 : vector<64x32xf32> to vector<64x32xbf16>
    %532 = arith.truncf %525 : vector<16x128xf32> to vector<16x128xbf16>
    %cst_160 = arith.constant dense<0.000000e+00> : vector<16x128xf32>
    %533 = tpu.matmul %15, %532, %cst_160 {dimension_numbers = #tpu.dot_dimension_numbers<[1], [0], [0], [1], [0, 0, 1, 1], [], []>} : vector<16x16xbf16>, vector<16x128xbf16>, vector<16x128xf32> -> vector<16x128xf32>
    %534 = vector.extract_strided_slice %533 {offsets = [0, 0], sizes = [16, 32], strides = [1, 1]} : vector<16x128xf32> to vector<16x32xf32>
    %535 = vector.extract_strided_slice %533 {offsets = [0, 32], sizes = [16, 32], strides = [1, 1]} : vector<16x128xf32> to vector<16x32xf32>
    %536 = vector.extract_strided_slice %533 {offsets = [0, 64], sizes = [16, 32], strides = [1, 1]} : vector<16x128xf32> to vector<16x32xf32>
    %537 = vector.extract_strided_slice %533 {offsets = [0, 96], sizes = [16, 32], strides = [1, 1]} : vector<16x128xf32> to vector<16x32xf32>
    %538 = tpu.concatenate %534, %535, %536, %537 in 0 : vector<16x32xf32>, vector<16x32xf32>, vector<16x32xf32>, vector<16x32xf32> -> vector<64x32xf32>
    %539 = arith.truncf %538 : vector<64x32xf32> to vector<64x32xbf16>
    %540 = tpu.concatenate %523, %531, %539 in 1 : vector<64x32xbf16>, vector<64x32xbf16>, vector<64x32xbf16> -> vector<64x96xbf16>
    %c5_161 = arith.constant 5 : index
    %c0_162 = arith.constant 0 : index
    %c0_163 = arith.constant 0 : index
    %541 = vector.load %arg7[%c5_161, %c0_162, %c0_163] : memref<8x96x32xbf16, #tpu.memory_space<vmem>>, vector<1x96x32xbf16>
    %542 = vector.shape_cast %541 : vector<1x96x32xbf16> to vector<96x32xbf16>
    %cst_164 = arith.constant dense<0.000000e+00> : vector<64x32xf32>
    %543 = tpu.matmul %540, %542, %cst_164 {dimension_numbers = #tpu.dot_dimension_numbers<[1], [0], [0], [1], [0, 0, 1, 1], [], []>} : vector<64x96xbf16>, vector<96x32xbf16>, vector<64x32xf32> -> vector<64x32xf32>
    %c5_165 = arith.constant 5 : index
    %c0_166 = arith.constant 0 : index
    %c0_167 = arith.constant 0 : index
    %544 = vector.load %arg8[%c5_165, %c0_166, %c0_167] : memref<8x1x32xf32, #tpu.memory_space<vmem>>, vector<1x1x32xf32>
    %545 = vector.shape_cast %544 : vector<1x1x32xf32> to vector<1x32xf32>
    %546 = vector.broadcast %545 : vector<1x32xf32> to vector<64x32xf32>
    %547 = arith.addf %543, %546 : vector<64x32xf32>
    %548 = vector.shape_cast %486 : vector<4x16x32xf32> to vector<64x32xf32>
    %549 = arith.addf %547, %548 : vector<64x32xf32>
    %c5_168 = arith.constant 5 : index
    %c0_169 = arith.constant 0 : index
    %c0_170 = arith.constant 0 : index
    %550 = vector.load %arg9[%c5_168, %c0_169, %c0_170] : memref<8x1x32xf32, #tpu.memory_space<vmem>>, vector<1x1x32xf32>
    %551 = vector.shape_cast %550 : vector<1x1x32xf32> to vector<1x32xf32>
    %552 = vector.broadcast %551 : vector<1x32xf32> to vector<64x32xf32>
    %553 = arith.mulf %549, %552 : vector<64x32xf32>
    %c5_171 = arith.constant 5 : index
    %c0_172 = arith.constant 0 : index
    %c0_173 = arith.constant 0 : index
    %554 = vector.load %arg10[%c5_171, %c0_172, %c0_173] : memref<8x1x32xf32, #tpu.memory_space<vmem>>, vector<1x1x32xf32>
    %555 = vector.shape_cast %554 : vector<1x1x32xf32> to vector<1x32xf32>
    %556 = vector.broadcast %555 : vector<1x32xf32> to vector<64x32xf32>
    %557 = arith.addf %553, %556 : vector<64x32xf32>
    %558 = vector.shape_cast %557 : vector<64x32xf32> to vector<4x16x32xf32>
    %559 = vector.extract_strided_slice %558 {offsets = [0, 0, 0], sizes = [3, 16, 32], strides = [1, 1, 1]} : vector<4x16x32xf32> to vector<3x16x32xf32>
    %560 = vector.extract_strided_slice %558 {offsets = [1, 0, 0], sizes = [3, 16, 32], strides = [1, 1, 1]} : vector<4x16x32xf32> to vector<3x16x32xf32>
    %561 = tpu.concatenate %559, %560 in 2 : vector<3x16x32xf32>, vector<3x16x32xf32> -> vector<3x16x64xf32>
    %562 = vector.shape_cast %561 : vector<3x16x64xf32> to vector<48x64xf32>
    %563 = arith.truncf %562 : vector<48x64xf32> to vector<48x64xbf16>
    %c6 = arith.constant 6 : index
    %c0_174 = arith.constant 0 : index
    %c0_175 = arith.constant 0 : index
    %564 = vector.load %arg4[%c6, %c0_174, %c0_175] : memref<8x64x64xbf16, #tpu.memory_space<vmem>>, vector<1x64x64xbf16>
    %565 = vector.shape_cast %564 : vector<1x64x64xbf16> to vector<64x64xbf16>
    %cst_176 = arith.constant dense<0.000000e+00> : vector<48x64xf32>
    %566 = tpu.matmul %563, %565, %cst_176 {dimension_numbers = #tpu.dot_dimension_numbers<[1], [0], [0], [1], [0, 0, 1, 1], [], []>} : vector<48x64xbf16>, vector<64x64xbf16>, vector<48x64xf32> -> vector<48x64xf32>
    %c6_177 = arith.constant 6 : index
    %c0_178 = arith.constant 0 : index
    %c0_179 = arith.constant 0 : index
    %567 = vector.load %arg5[%c6_177, %c0_178, %c0_179] : memref<8x1x64xf32, #tpu.memory_space<vmem>>, vector<1x1x64xf32>
    %568 = vector.shape_cast %567 : vector<1x1x64xf32> to vector<1x64xf32>
    %569 = vector.broadcast %568 : vector<1x64xf32> to vector<48x64xf32>
    %570 = arith.addf %566, %569 : vector<48x64xf32>
    %571 = math.tanh %570 : vector<48x64xf32>
    %572 = vector.extract_strided_slice %571 {offsets = [0, 0], sizes = [48, 32], strides = [1, 1]} : vector<48x64xf32> to vector<48x32xf32>
    %573 = vector.extract_strided_slice %571 {offsets = [0, 32], sizes = [48, 32], strides = [1, 1]} : vector<48x64xf32> to vector<48x32xf32>
    %cst_180 = arith.constant 5.000000e-01 : f32
    %574 = vector.broadcast %cst_180 : f32 to vector<48x32xf32>
    %575 = arith.mulf %574, %573 : vector<48x32xf32>
    %cst_181 = arith.constant 5.000000e-01 : f32
    %576 = vector.broadcast %cst_181 : f32 to vector<48x32xf32>
    %577 = arith.addf %575, %576 : vector<48x32xf32>
    %578 = arith.mulf %572, %577 : vector<48x32xf32>
    %579 = vector.shape_cast %578 : vector<48x32xf32> to vector<3x16x32xf32>
    %580 = vector.extract_strided_slice %579 {offsets = [2, 0, 0], sizes = [1, 16, 32], strides = [1, 1, 1]} : vector<3x16x32xf32> to vector<1x16x32xf32>
    %581 = vector.shape_cast %580 : vector<1x16x32xf32> to vector<16x32xf32>
    %582 = arith.truncf %581 : vector<16x32xf32> to vector<16x32xbf16>
    %c6_182 = arith.constant 6 : index
    %c0_183 = arith.constant 0 : index
    %c0_184 = arith.constant 0 : index
    %583 = vector.load %arg6[%c6_182, %c0_183, %c0_184] : memref<8x32x256xbf16, #tpu.memory_space<vmem>>, vector<1x32x256xbf16>
    %584 = vector.shape_cast %583 : vector<1x32x256xbf16> to vector<32x256xbf16>
    %cst_185 = arith.constant dense<0.000000e+00> : vector<16x256xf32>
    %585 = tpu.matmul %582, %584, %cst_185 {dimension_numbers = #tpu.dot_dimension_numbers<[1], [0], [0], [1], [0, 0, 1, 1], [], []>} : vector<16x32xbf16>, vector<32x256xbf16>, vector<16x256xf32> -> vector<16x256xf32>
    %586 = arith.addf %512, %585 : vector<16x256xf32>
    %587 = vector.shape_cast %578 : vector<48x32xf32> to vector<3x16x32xf32>
    %588 = vector.extract_strided_slice %587 {offsets = [0, 0, 0], sizes = [1, 16, 32], strides = [1, 1, 1]} : vector<3x16x32xf32> to vector<1x16x32xf32>
    %589 = vector.shape_cast %588 : vector<1x16x32xf32> to vector<16x32xf32>
    %590 = vector.extract_strided_slice %587 {offsets = [1, 0, 0], sizes = [1, 16, 32], strides = [1, 1, 1]} : vector<3x16x32xf32> to vector<1x16x32xf32>
    %591 = vector.shape_cast %590 : vector<1x16x32xf32> to vector<16x32xf32>
    %592 = vector.extract_strided_slice %587 {offsets = [2, 0, 0], sizes = [1, 16, 32], strides = [1, 1, 1]} : vector<3x16x32xf32> to vector<1x16x32xf32>
    %593 = vector.shape_cast %592 : vector<1x16x32xf32> to vector<16x32xf32>
    %594 = tpu.concatenate %589, %591, %593 in 1 : vector<16x32xf32>, vector<16x32xf32>, vector<16x32xf32> -> vector<16x96xf32>
    %595 = arith.truncf %578 : vector<48x32xf32> to vector<48x32xbf16>
    %596 = arith.truncf %594 : vector<16x96xf32> to vector<16x96xbf16>
    %cst_186 = arith.constant dense<0.000000e+00> : vector<16x96xf32>
    %597 = tpu.matmul %15, %596, %cst_186 {dimension_numbers = #tpu.dot_dimension_numbers<[1], [0], [0], [1], [0, 0, 1, 1], [], []>} : vector<16x16xbf16>, vector<16x96xbf16>, vector<16x96xf32> -> vector<16x96xf32>
    %598 = vector.extract_strided_slice %597 {offsets = [0, 0], sizes = [16, 32], strides = [1, 1]} : vector<16x96xf32> to vector<16x32xf32>
    %599 = vector.extract_strided_slice %597 {offsets = [0, 32], sizes = [16, 32], strides = [1, 1]} : vector<16x96xf32> to vector<16x32xf32>
    %600 = vector.extract_strided_slice %597 {offsets = [0, 64], sizes = [16, 32], strides = [1, 1]} : vector<16x96xf32> to vector<16x32xf32>
    %601 = tpu.concatenate %598, %599, %600 in 0 : vector<16x32xf32>, vector<16x32xf32>, vector<16x32xf32> -> vector<48x32xf32>
    %602 = arith.truncf %601 : vector<48x32xf32> to vector<48x32xbf16>
    %603 = arith.truncf %597 : vector<16x96xf32> to vector<16x96xbf16>
    %cst_187 = arith.constant dense<0.000000e+00> : vector<16x96xf32>
    %604 = tpu.matmul %15, %603, %cst_187 {dimension_numbers = #tpu.dot_dimension_numbers<[1], [0], [0], [1], [0, 0, 1, 1], [], []>} : vector<16x16xbf16>, vector<16x96xbf16>, vector<16x96xf32> -> vector<16x96xf32>
    %605 = vector.extract_strided_slice %604 {offsets = [0, 0], sizes = [16, 32], strides = [1, 1]} : vector<16x96xf32> to vector<16x32xf32>
    %606 = vector.extract_strided_slice %604 {offsets = [0, 32], sizes = [16, 32], strides = [1, 1]} : vector<16x96xf32> to vector<16x32xf32>
    %607 = vector.extract_strided_slice %604 {offsets = [0, 64], sizes = [16, 32], strides = [1, 1]} : vector<16x96xf32> to vector<16x32xf32>
    %608 = tpu.concatenate %605, %606, %607 in 0 : vector<16x32xf32>, vector<16x32xf32>, vector<16x32xf32> -> vector<48x32xf32>
    %609 = arith.truncf %608 : vector<48x32xf32> to vector<48x32xbf16>
    %610 = tpu.concatenate %595, %602, %609 in 1 : vector<48x32xbf16>, vector<48x32xbf16>, vector<48x32xbf16> -> vector<48x96xbf16>
    %c6_188 = arith.constant 6 : index
    %c0_189 = arith.constant 0 : index
    %c0_190 = arith.constant 0 : index
    %611 = vector.load %arg7[%c6_188, %c0_189, %c0_190] : memref<8x96x32xbf16, #tpu.memory_space<vmem>>, vector<1x96x32xbf16>
    %612 = vector.shape_cast %611 : vector<1x96x32xbf16> to vector<96x32xbf16>
    %cst_191 = arith.constant dense<0.000000e+00> : vector<48x32xf32>
    %613 = tpu.matmul %610, %612, %cst_191 {dimension_numbers = #tpu.dot_dimension_numbers<[1], [0], [0], [1], [0, 0, 1, 1], [], []>} : vector<48x96xbf16>, vector<96x32xbf16>, vector<48x32xf32> -> vector<48x32xf32>
    %c6_192 = arith.constant 6 : index
    %c0_193 = arith.constant 0 : index
    %c0_194 = arith.constant 0 : index
    %614 = vector.load %arg8[%c6_192, %c0_193, %c0_194] : memref<8x1x32xf32, #tpu.memory_space<vmem>>, vector<1x1x32xf32>
    %615 = vector.shape_cast %614 : vector<1x1x32xf32> to vector<1x32xf32>
    %616 = vector.broadcast %615 : vector<1x32xf32> to vector<48x32xf32>
    %617 = arith.addf %613, %616 : vector<48x32xf32>
    %618 = vector.shape_cast %560 : vector<3x16x32xf32> to vector<48x32xf32>
    %619 = arith.addf %617, %618 : vector<48x32xf32>
    %c6_195 = arith.constant 6 : index
    %c0_196 = arith.constant 0 : index
    %c0_197 = arith.constant 0 : index
    %620 = vector.load %arg9[%c6_195, %c0_196, %c0_197] : memref<8x1x32xf32, #tpu.memory_space<vmem>>, vector<1x1x32xf32>
    %621 = vector.shape_cast %620 : vector<1x1x32xf32> to vector<1x32xf32>
    %622 = vector.broadcast %621 : vector<1x32xf32> to vector<48x32xf32>
    %623 = arith.mulf %619, %622 : vector<48x32xf32>
    %c6_198 = arith.constant 6 : index
    %c0_199 = arith.constant 0 : index
    %c0_200 = arith.constant 0 : index
    %624 = vector.load %arg10[%c6_198, %c0_199, %c0_200] : memref<8x1x32xf32, #tpu.memory_space<vmem>>, vector<1x1x32xf32>
    %625 = vector.shape_cast %624 : vector<1x1x32xf32> to vector<1x32xf32>
    %626 = vector.broadcast %625 : vector<1x32xf32> to vector<48x32xf32>
    %627 = arith.addf %623, %626 : vector<48x32xf32>
    %628 = vector.shape_cast %627 : vector<48x32xf32> to vector<3x16x32xf32>
    %629 = vector.extract_strided_slice %628 {offsets = [0, 0, 0], sizes = [1, 16, 32], strides = [1, 1, 1]} : vector<3x16x32xf32> to vector<1x16x32xf32>
    %630 = vector.extract_strided_slice %628 {offsets = [2, 0, 0], sizes = [1, 16, 32], strides = [1, 1, 1]} : vector<3x16x32xf32> to vector<1x16x32xf32>
    %631 = tpu.concatenate %629, %630 in 2 : vector<1x16x32xf32>, vector<1x16x32xf32> -> vector<1x16x64xf32>
    %632 = vector.shape_cast %631 : vector<1x16x64xf32> to vector<16x64xf32>
    %633 = arith.truncf %632 : vector<16x64xf32> to vector<16x64xbf16>
    %c7 = arith.constant 7 : index
    %c0_201 = arith.constant 0 : index
    %c0_202 = arith.constant 0 : index
    %634 = vector.load %arg4[%c7, %c0_201, %c0_202] : memref<8x64x64xbf16, #tpu.memory_space<vmem>>, vector<1x64x64xbf16>
    %635 = vector.shape_cast %634 : vector<1x64x64xbf16> to vector<64x64xbf16>
    %cst_203 = arith.constant dense<0.000000e+00> : vector<16x64xf32>
    %636 = tpu.matmul %633, %635, %cst_203 {dimension_numbers = #tpu.dot_dimension_numbers<[1], [0], [0], [1], [0, 0, 1, 1], [], []>} : vector<16x64xbf16>, vector<64x64xbf16>, vector<16x64xf32> -> vector<16x64xf32>
    %c7_204 = arith.constant 7 : index
    %c0_205 = arith.constant 0 : index
    %c0_206 = arith.constant 0 : index
    %637 = vector.load %arg5[%c7_204, %c0_205, %c0_206] : memref<8x1x64xf32, #tpu.memory_space<vmem>>, vector<1x1x64xf32>
    %638 = vector.shape_cast %637 : vector<1x1x64xf32> to vector<1x64xf32>
    %639 = vector.broadcast %638 : vector<1x64xf32> to vector<16x64xf32>
    %640 = arith.addf %636, %639 : vector<16x64xf32>
    %641 = math.tanh %640 : vector<16x64xf32>
    %642 = vector.extract_strided_slice %641 {offsets = [0, 0], sizes = [16, 32], strides = [1, 1]} : vector<16x64xf32> to vector<16x32xf32>
    %643 = vector.extract_strided_slice %641 {offsets = [0, 32], sizes = [16, 32], strides = [1, 1]} : vector<16x64xf32> to vector<16x32xf32>
    %cst_207 = arith.constant 5.000000e-01 : f32
    %644 = vector.broadcast %cst_207 : f32 to vector<16x32xf32>
    %645 = arith.mulf %644, %643 : vector<16x32xf32>
    %cst_208 = arith.constant 5.000000e-01 : f32
    %646 = vector.broadcast %cst_208 : f32 to vector<16x32xf32>
    %647 = arith.addf %645, %646 : vector<16x32xf32>
    %648 = arith.mulf %642, %647 : vector<16x32xf32>
    %649 = vector.shape_cast %648 : vector<16x32xf32> to vector<1x16x32xf32>
    %650 = vector.shape_cast %649 : vector<1x16x32xf32> to vector<16x32xf32>
    %651 = arith.truncf %650 : vector<16x32xf32> to vector<16x32xbf16>
    %c7_209 = arith.constant 7 : index
    %c0_210 = arith.constant 0 : index
    %c0_211 = arith.constant 0 : index
    %652 = vector.load %arg6[%c7_209, %c0_210, %c0_211] : memref<8x32x256xbf16, #tpu.memory_space<vmem>>, vector<1x32x256xbf16>
    %653 = vector.shape_cast %652 : vector<1x32x256xbf16> to vector<32x256xbf16>
    %cst_212 = arith.constant dense<0.000000e+00> : vector<16x256xf32>
    %654 = tpu.matmul %651, %653, %cst_212 {dimension_numbers = #tpu.dot_dimension_numbers<[1], [0], [0], [1], [0, 0, 1, 1], [], []>} : vector<16x32xbf16>, vector<32x256xbf16>, vector<16x256xf32> -> vector<16x256xf32>
    %655 = arith.addf %586, %654 : vector<16x256xf32>
    %c0_213 = arith.constant 0 : index
    %c0_214 = arith.constant 0 : index
    %656 = vector.load %arg11[%c0_213, %c0_214] : memref<1x256xf32, #tpu.memory_space<vmem>>, vector<1x256xf32>
    %657 = vector.broadcast %656 : vector<1x256xf32> to vector<16x256xf32>
    %658 = arith.addf %655, %657 : vector<16x256xf32>
    %cst_215 = arith.constant 0.000000e+00 : f32
    %659 = vector.broadcast %cst_215 : f32 to vector<16x256xf32>
    %660 = arith.maximumf %658, %659 : vector<16x256xf32>
    %661 = vector.shape_cast %660 : vector<16x256xf32> to vector<1x16x256xf32>
    %c0_216 = arith.constant 0 : index
    %c0_217 = arith.constant 0 : index
    %c0_218 = arith.constant 0 : index
    %c0_219 = arith.constant 0 : index
    %662 = vector.load %arg12[%c0_216, %c0_217, %c0_218, %c0_219] : memref<1x1x16x256xf32, #tpu.memory_space<vmem>>, vector<1x1x16x256xf32>
    %663 = vector.shape_cast %662 : vector<1x1x16x256xf32> to vector<1x16x256xf32>
    %664 = vector.shape_cast %661 : vector<1x16x256xf32> to vector<1x1x16x256xf32>
    tpu.vector_store %arg12[%c0_216, %c0_217, %c0_218, %c0_219], %664 {strides = array<i32>} : memref<1x1x16x256xf32, #tpu.memory_space<vmem>>, vector<1x1x16x256xf32>,
    return
  }
  func.func @transform_0(%arg0: i32) -> (i32, i32, i32, i32) {
    %c0_i32 = arith.constant 0 : i32
    %c0_i32_0 = arith.constant 0 : i32
    %c0_i32_1 = arith.constant 0 : i32
    %c0_i32_2 = arith.constant 0 : i32
    return %arg0, %c0_i32, %c0_i32_0, %c0_i32_1 : i32, i32, i32, i32
  }
  func.func @transform_1(%arg0: i32) -> (i32, i32) {
    %c0_i32 = arith.constant 0 : i32
    %c0_i32_0 = arith.constant 0 : i32
    %c0_i32_1 = arith.constant 0 : i32
    return %c0_i32, %c0_i32_0 : i32, i32
  }
  func.func @transform_2(%arg0: i32) -> (i32, i32) {
    %c0_i32 = arith.constant 0 : i32
    %c0_i32_0 = arith.constant 0 : i32
    %c0_i32_1 = arith.constant 0 : i32
    return %c0_i32, %c0_i32_0 : i32, i32
  }
  func.func @transform_3(%arg0: i32) -> (i32, i32, i32) {
    %c0_i32 = arith.constant 0 : i32
    %c0_i32_0 = arith.constant 0 : i32
    %c0_i32_1 = arith.constant 0 : i32
    %c0_i32_2 = arith.constant 0 : i32
    return %c0_i32, %c0_i32_0, %c0_i32_1 : i32, i32, i32
  }
  func.func @transform_4(%arg0: i32) -> (i32, i32, i32) {
    %c0_i32 = arith.constant 0 : i32
    %c0_i32_0 = arith.constant 0 : i32
    %c0_i32_1 = arith.constant 0 : i32
    %c0_i32_2 = arith.constant 0 : i32
    return %c0_i32, %c0_i32_0, %c0_i32_1 : i32, i32, i32
  }
  func.func @transform_5(%arg0: i32) -> (i32, i32, i32) {
    %c0_i32 = arith.constant 0 : i32
    %c0_i32_0 = arith.constant 0 : i32
    %c0_i32_1 = arith.constant 0 : i32
    %c0_i32_2 = arith.constant 0 : i32
    return %c0_i32, %c0_i32_0, %c0_i32_1 : i32, i32, i32
  }
  func.func @transform_6(%arg0: i32) -> (i32, i32, i32) {
    %c0_i32 = arith.constant 0 : i32
    %c0_i32_0 = arith.constant 0 : i32
    %c0_i32_1 = arith.constant 0 : i32
    %c0_i32_2 = arith.constant 0 : i32
    return %c0_i32, %c0_i32_0, %c0_i32_1 : i32, i32, i32
  }
  func.func @transform_7(%arg0: i32) -> (i32, i32, i32) {
    %c0_i32 = arith.constant 0 : i32
    %c0_i32_0 = arith.constant 0 : i32
    %c0_i32_1 = arith.constant 0 : i32
    %c0_i32_2 = arith.constant 0 : i32
    return %c0_i32, %c0_i32_0, %c0_i32_1 : i32, i32, i32
  }
  func.func @transform_8(%arg0: i32) -> (i32, i32, i32) {
    %c0_i32 = arith.constant 0 : i32
    %c0_i32_0 = arith.constant 0 : i32
    %c0_i32_1 = arith.constant 0 : i32
    %c0_i32_2 = arith.constant 0 : i32
    return %c0_i32, %c0_i32_0, %c0_i32_1 : i32, i32, i32
  }
  func.func @transform_9(%arg0: i32) -> (i32, i32, i32) {
    %c0_i32 = arith.constant 0 : i32
    %c0_i32_0 = arith.constant 0 : i32
    %c0_i32_1 = arith.constant 0 : i32
    %c0_i32_2 = arith.constant 0 : i32
    return %c0_i32, %c0_i32_0, %c0_i32_1 : i32, i32, i32
  }
  func.func @transform_10(%arg0: i32) -> (i32, i32) {
    %c0_i32 = arith.constant 0 : i32
    %c0_i32_0 = arith.constant 0 : i32
    %c0_i32_1 = arith.constant 0 : i32
    return %c0_i32, %c0_i32_0 : i32, i32
  }
  func.func @transform_11(%arg0: i32) -> (i32, i32, i32, i32) {
    %c0_i32 = arith.constant 0 : i32
    %c0_i32_0 = arith.constant 0 : i32
    %c0_i32_1 = arith.constant 0 : i32
    %c0_i32_2 = arith.constant 0 : i32
    return %arg0, %c0_i32, %c0_i32_0, %c0_i32_1 : i32, i32, i32, i32
  }
}

</mosaic_0001>

<bundles_post_ra>
// kernel: gwnet_forward.1
= control target key start
LH: loop header
LB: loop body
LE: loop exit
PB: predicated region body
PF: predicated region fallthrough
CT: control target
= control target key end

     0   :  { %s10172_s17 = smov 0   ;;  %s13465_s0 = inlined_call_operand.vmem [shape: f32[2,13,16,32], index: 0, kind: input, shape index: {}]   ;;  %s13466_s1 = inlined_call_operand.vmem [shape: f32[16,10], index: 1, kind: input, shape index: {}]   ;;  %s13467_s2 = inlined_call_operand.vmem [shape: f32[10,16], index: 2, kind: input, shape index: {}]   ;;  %s13468_s3 = inlined_call_operand.vmem [shape: bf16[8,64,64], index: 3, kind: input, shape index: {}]   ;;  %s13469_s4 = inlined_call_operand.vmem [shape: f32[8,1,64], index: 4, kind: input, shape index: {}]   ;;  %s13470_s5 = inlined_call_operand.vmem [shape: bf16[8,32,256], index: 5, kind: input, shape index: {}]   ;;  %s13471_s6 = inlined_call_operand.vmem [shape: bf16[8,96,32], index: 6, kind: input, shape index: {}]   ;;  %s13472_s7 = inlined_call_operand.vmem [shape: f32[8,1,32], index: 7, kind: input, shape index: {}]   ;;  %s13473_s8 = inlined_call_operand.vmem [shape: f32[8,1,32], index: 8, kind: input, shape index: {}]   ;;  %s13474_s9 = inlined_call_operand.vmem [shape: f32[8,1,32], index: 9, kind: input, shape index: {}]   ;;  %s13475_s10 = inlined_call_operand.vmem [shape: f32[1,256], index: 10, kind: input, shape index: {}]   ;;  %s13476_s11 = inlined_call_operand.vmem [shape: f32[2,1,16,256], index: 11, kind: output, shape index: {}]  }
   0x1 LB: > { %s7760_s18 = sadd.s32 4294967295, %s10104_s17   ;;  %p7764_p0 = scmp.ge.s32.totalorder %s10104_s17, 1  ;;  %s10104_s17 = sphi %s10172_s17, %s21_s17  }
   0x2   : > { %p337_p1 = scmp.lt.s32.totalorder %s10104_s17, 3 }
   0x4   : > { %p338_p2 = pnand %p7764_p0, %p337_p1 }
   0x6   : > { %341 = sbr.rel (%p338_p2) target bundleno = 11102 (0x2b5e), region = 64 }
   0xb   : > { %v391_v0 = vld [vmem:[%s13467_s2 + $0x8] sm:$0x3]  ;;  %vm399_vm0 = vcmask 1041408   ;;  %v390_v1 = vld [vmem:[%s13467_s2] sm:$0xff]  ;;  %vm392_vm1 = vcmask 80896   ;;  %p377_p3 = scmp.lt.s32.totalorder %s7760_s18, 1 }
   0xc   : > { %v388_v2 = vld [vmem:[%s13466_s1] sm:$0xff]  ;;  %8422 = vmatprep.subr.msk.mxu0 %vm399_vm0, %v391_v0  ;;  %v389_v3 = vld [vmem:[%s13466_s1 + $0x8] sm:$0xff]  ;;  %v9736_v4 = vld [vmem:[%s13468_s3 + $0x18] sm:$0xff]   ;;  %s10106_s22 = smov 32   ;;  %vm658_vm2 = vcmask 261120   ;;  %vm734_vm3 = vcmask 523264  }
   0xd   : > { %8426 = vmatprep.mubr.msk.f32.mxu0 %vm392_vm1, %v388_v2  ;;  %8423 = vmatpush3.msk.msra.mxu0 %vm399_vm0, %v391_v0  ;;  %s13508_s18 = smov (!%p377_p3, %s7760_s18), 1  ;;  %v9737_v5 = vld [vmem:[%s13468_s3 + $0x10] sm:$0xff]   ;;  %v9738_v6 = vld [vmem:[%s13468_s3 + $0x8] sm:$0xff]   ;;  %v9739_v7 = vld [vmem:[%s13468_s3] sm:$0xff]   ;;  %vm480_vm4 = vcmask 130048   ;;  %s10107_s25 = smov 96  }
   0xe   : > { %8424 = vmatprep.subr.mxu0 %v390_v1  ;;  %8429 = vmatprep.subr.bf16.mxu1 %v9736_v4  ;;  %s8921_s12 = smul.u32 208, %s13508_s18  ;;  %s10108_s26 = smov 64   ;;  %vm1173_vm5 = vcmask 785408   ;;  %vm10111_vm6 = vmmov 0  }
   0xf   : > { %8425 = vmatpush3.msra.mxu0 %v390_v1  ;;  %8430 = vmatpush3.bf16.msra.mxu1 %v9736_v4 }
  0x10   : > { %8427 = vmatmul.mubr.msk.f32.vlgmr.msra.gmra.mxu0 %vm392_vm1, %v389_v3  ;;  %8431 = vmatprep.subr.bf16.mxu1 %v9737_v5  ;;  %s10207_s19 = scalar_lea.vmem %s13465_s0, %s8921_s12 }
  0x11   : > { %v10213_v8 = vld [vmem:[%s10207_s19 + $0x10] sm:$0xff]  ;;  %v10216_v9 = vld [vmem:[%s10207_s19 + $0x18] sm:$0xff]  ;;  %v10219_v10 = vld [vmem:[%s10207_s19 + $0x20] sm:$0xff] }
  0x12   : > { %v8936_v11 = vpack.i.bf16 %v10216_v9, %v10213_v8  ;;  %v10224_v12 = vld [vmem:[%s10207_s19 + $0x28] sm:$0xff]  ;;  %v10227_v13 = vld [vmem:[%s10207_s19 + $0x30] sm:$0xff]  ;;  %v10230_v14 = vld [vmem:[%s10207_s19 + $0x38] sm:$0xff] }
  0x13   : > { %8432 = vmatpush3.bf16.msra.mxu1 %v9737_v5  ;;  %v8946_v15 = vpack.i.bf16 %v10230_v14, %v10227_v13  ;;  %v10235_v16 = vld [vmem:[%s10207_s19 + $0x40] sm:$0xff]  ;;  %v10238_v17 = vld [vmem:[%s10207_s19 + $0x48] sm:$0xff]  ;;  %v8941_v18 = vpack.i.bf16 %v10224_v12, %v10219_v10  ;;  %v10247_v20 = vld [vmem:[%s10207_s19 + $0x50] sm:$0xff] }
  0x14   : > { %8433 = vmatprep.subr.bf16.mxu1 %v9738_v6  ;;  %8937 = vrot.lane.b32.xlu0 %v8936_v11, %s10106_s22  ;;  %v8951_v19 = vpack.i.bf16 %v10238_v17, %v10235_v16  ;;  %v10250_v21 = vld [vmem:[%s10207_s19 + $0x58] sm:$0xff]  ;;  %v10253_v22 = vld [vmem:[%s10207_s19 + $0x60] sm:$0xff]  ;;  %v10256_v23 = vld [vmem:[%s10207_s19 + $0x68] sm:$0xff] }
  0x15   : > { %8947 = vrot.lane.b32.xlu1 %v8946_v15, %s10106_s22  ;;  %v8956_v24 = vpack.i.bf16 %v10250_v21, %v10247_v20  ;;  %v10262_v25 = vld [vmem:[%s10207_s19 + $0x70] sm:$0xff]  ;;  %v10265_v26 = vld [vmem:[%s10207_s19 + $0x78] sm:$0xff]  ;;  %v8961_v27 = vpack.i.bf16 %v10256_v23, %v10253_v22  ;;  %v10271_v28 = vld [vmem:[%s10207_s19 + $0x80] sm:$0xff] }
  0x16   : > { %v10274_v29 = vld [vmem:[%s10207_s19 + $0x88] sm:$0xff]  ;;  %v10277_v30 = vld [vmem:[%s10207_s19 + $0x90] sm:$0xff]  ;;  %v10280_v31 = vld [vmem:[%s10207_s19 + $0x98] sm:$0xff]  ;;  %v8966_v32 = vpack.i.bf16 %v10265_v26, %v10262_v25 }
  0x17   : > { %8434 = vmatpush3.bf16.msra.mxu1 %v9738_v6  ;;  %v10286_v33 = vld [vmem:[%s10207_s19 + $0xa0] sm:$0xff]  ;;  %v10289_v34 = vld [vmem:[%s10207_s19 + $0xa8] sm:$0xff]  ;;  %v8971_v35 = vpack.i.bf16 %v10274_v29, %v10271_v28  ;;  %v10295_v36 = vld [vmem:[%s10207_s19 + $0xb0] sm:$0xff]  ;;  %v8976_v38 = vpack.i.bf16 %v10280_v31, %v10277_v30 }
  0x18   : > { %8435 = vmatprep.subr.bf16.mxu1 %v9739_v7  ;;  %8942 = vrot.lane.b32.xlu0 %v8941_v18, %s10106_s22  ;;  %v10298_v37 = vld [vmem:[%s10207_s19 + $0xb8] sm:$0xff]  ;;  %v560_v39 = vld [vmem:[%s10207_s19 + $0xc0] sm:$0xff]  ;;  %v561_v40 = vld [vmem:[%s10207_s19 + $0xc8] sm:$0xff]  ;;  %v8981_v41 = vpack.i.bf16 %v10289_v34, %v10286_v33 }
  0x19   : > { %8952 = vrot.lane.b32.xlu1 %v8951_v19, %s10106_s22  ;;  %v8986_v42 = vpack.i.bf16 %v10298_v37, %v10295_v36  ;;  %v8991_v43 = vpack.i.bf16 %v561_v40, %v560_v39  ;;  %v536_v45 = vld [vmem:[%s10207_s19] sm:$0xff]  ;;  %v537_v46 = vld [vmem:[%s10207_s19 + $0x8] sm:$0xff] }
  0x1b   : > { %8436 = vmatpush3.bf16.msra.mxu1 %v9739_v7 }
  0x1c   : > { %8957 = vrot.lane.b32.xlu0 %v8956_v24, %s10106_s22 }
  0x1d   : > { %8962 = vrot.lane.b32.xlu1 %v8961_v27, %s10106_s22 }
  0x20   : > { %8967 = vrot.lane.b32.xlu0 %v8966_v32, %s10106_s22 }
  0x21   : > { %8972 = vrot.lane.b32.xlu1 %v8971_v35, %s10106_s22 }
  0x24   : > { %8977 = vrot.lane.b32.xlu0 %v8976_v38, %s10106_s22 }
  0x25   : > { %8982 = vrot.lane.b32.xlu1 %v8981_v41, %s10106_s22 }
  0x28   : > { %8987 = vrot.lane.b32.xlu0 %v8986_v42, %s10106_s22 }
  0x29   : > { %8992 = vrot.lane.b32.xlu1 %v8991_v43, %s10106_s22 }
  0x86   : > { %v8938_v44 = vpop.permute.xlu0 %8937 }
  0x87   : > { %v8940_v47 = vunpack.i.h.bf16 %v8938_v44  ;;  %v8939_v48 = vunpack.i.l.bf16 %v8938_v44  ;;  %v8948_v49 = vpop.permute.xlu1 %8947 }
  0x88   : > { %v8950_v50 = vunpack.i.h.bf16 %v8948_v49  ;;  %v8949_v51 = vunpack.i.l.bf16 %v8948_v49 }
  0x89   : > { %v659_v52 = vsel %vm658_vm2, %v536_v45, %v8939_v48  ;;  %v660_v53 = vsel %vm658_vm2, %v537_v46, %v8940_v47 }
  0x8a   : > { %v8943_v54 = vpop.permute.xlu0 %8942  ;;  %v683_v55 = vpack.c.bf16 %v660_v53, %v659_v52  ;;  %v663_v56 = vsel %vm658_vm2, %v10219_v10, %v8949_v51  ;;  %v664_v57 = vsel %vm658_vm2, %v10224_v12, %v8950_v50 }
  0x8b   : > { %v8945_v58 = vunpack.i.h.bf16 %v8943_v54  ;;  %v8944_v59 = vunpack.i.l.bf16 %v8943_v54  ;;  %v8953_v60 = vpop.permute.xlu1 %8952  ;;  %v685_v61 = vpack.c.bf16 %v664_v57, %v663_v56 }
  0x8c   : > { %8437 = vmatprep.mubr.msk.bf16.mxu1 %vm734_vm3, %v683_v55  ;;  %v8955_v0 = vunpack.i.h.bf16 %v8953_v60  ;;  %v8954_v1 = vunpack.i.l.bf16 %v8953_v60  ;;  %v10389_v60 = vld [vmem:[%s13469_s4] ss:$0 sm:$0xff] }
  0x8d   : > { %v662_v62 = vsel %vm658_vm2, %v10216_v9, %v8945_v58  ;;  %v661_v63 = vsel %vm658_vm2, %v10213_v8, %v8944_v59 }
  0x8e   : > { %v684_v2 = vpack.c.bf16 %v662_v62, %v661_v63  ;;  %v8958_v3 = vpop.permute.xlu0 %8957  ;;  %v666_v6 = vsel %vm658_vm2, %v10230_v14, %v8955_v0  ;;  %v665_v7 = vsel %vm658_vm2, %v10227_v13, %v8954_v1 }
  0x8f   : > { %v8960_v4 = vunpack.i.h.bf16 %v8958_v3  ;;  %v8959_v5 = vunpack.i.l.bf16 %v8958_v3  ;;  %v8963_v10 = vpop.permute.xlu1 %8962  ;;  %v686_v12 = vpack.c.bf16 %v666_v6, %v665_v7 }
  0x90   : > { %8438 = vmatmul.mubr.msk.bf16.vlgmr.msra.gmra.mxu1 %vm734_vm3, %v684_v2  ;;  %v8965_v15 = vunpack.i.h.bf16 %v8963_v10  ;;  %v8964_v18 = vunpack.i.l.bf16 %v8963_v10 }
  0x91   : > { %8441 = vmatprep.mubr.msk.bf16.mxu1 %vm734_vm3, %v685_v61  ;;  %v668_v9 = vsel %vm658_vm2, %v10238_v17, %v8960_v4  ;;  %v667_v8 = vsel %vm658_vm2, %v10235_v16, %v8959_v5 }
  0x92   : > { %v8968_v11 = vpop.permute.xlu0 %8967  ;;  %v687_v19 = vpack.c.bf16 %v668_v9, %v667_v8  ;;  %v670_v13 = vsel %vm658_vm2, %v10250_v21, %v8965_v15  ;;  %v669_v14 = vsel %vm658_vm2, %v10247_v20, %v8964_v18 }
  0x93   : > { %v8970_v24 = vunpack.i.h.bf16 %v8968_v11  ;;  %v8969_v27 = vunpack.i.l.bf16 %v8968_v11  ;;  %v8973_v32 = vpop.permute.xlu1 %8972  ;;  %v688_v38 = vpack.c.bf16 %v670_v13, %v669_v14 }
  0x94   : > { %v8975_v39 = vunpack.i.h.bf16 %v8973_v32  ;;  %v8974_v40 = vunpack.i.l.bf16 %v8973_v32 }
  0x95   : > { %v672_v16 = vsel %vm658_vm2, %v10256_v23, %v8970_v24  ;;  %v671_v17 = vsel %vm658_vm2, %v10253_v22, %v8969_v27 }
  0x96   : > { %v8978_v35 = vpop.permute.xlu0 %8977  ;;  %v689_v41 = vpack.c.bf16 %v672_v16, %v671_v17  ;;  %v674_v20 = vsel %vm658_vm2, %v10265_v26, %v8975_v39  ;;  %v673_v21 = vsel %vm658_vm2, %v10262_v25, %v8974_v40 }
  0x97   : > { %v8980_v42 = vunpack.i.h.bf16 %v8978_v35  ;;  %v8979_v43 = vunpack.i.l.bf16 %v8978_v35  ;;  %v8983_v44 = vpop.permute.xlu1 %8982  ;;  %v690_v46 = vpack.c.bf16 %v674_v20, %v673_v21 }
  0x98   : > { %8442 = vmatmul.mubr.msk.bf16.gmra.mxu1 %vm734_vm3, %v686_v12  ;;  %v8985_v47 = vunpack.i.h.bf16 %v8983_v44  ;;  %v8984_v48 = vunpack.i.l.bf16 %v8983_v44 }
  0x99   : > { %8445 = vmatprep.mubr.msk.bf16.mxu1 %vm734_vm3, %v687_v19  ;;  %v676_v22 = vsel %vm658_vm2, %v10274_v29, %v8980_v42  ;;  %v675_v23 = vsel %vm658_vm2, %v10271_v28, %v8979_v43 }
  0x9a   : > { %v8988_v45 = vpop.permute.xlu0 %8987  ;;  %v691_v49 = vpack.c.bf16 %v676_v22, %v675_v23  ;;  %v678_v25 = vsel %vm658_vm2, %v10280_v31, %v8985_v47  ;;  %v677_v26 = vsel %vm658_vm2, %v10277_v30, %v8984_v48 }
  0x9b   : > { %v8990_v50 = vunpack.i.h.bf16 %v8988_v45  ;;  %v8989_v51 = vunpack.i.l.bf16 %v8988_v45  ;;  %v8993_v52 = vpop.permute.xlu1 %8992  ;;  %v692_v53 = vpack.c.bf16 %v678_v25, %v677_v26 }
  0x9c   : > { %v8995_v54 = vunpack.i.h.bf16 %v8993_v52  ;;  %v8994_v55 = vunpack.i.l.bf16 %v8993_v52 }
  0x9d   : > { %v680_v28 = vsel %vm658_vm2, %v10289_v34, %v8990_v50  ;;  %v679_v29 = vsel %vm658_vm2, %v10286_v33, %v8989_v51 }
  0x9e   : > { %v693_v56 = vpack.c.bf16 %v680_v28, %v679_v29  ;;  %v682_v31 = vsel %vm658_vm2, %v10298_v37, %v8995_v54  ;;  %v681_v30 = vsel %vm658_vm2, %v10295_v36, %v8994_v55 }
  0x9f   : > { %v694_v57 = vpack.c.bf16 %v682_v31, %v681_v30 }
  0xa0   : > { %8446 = vmatmul.mubr.msk.bf16.gmra.mxu1 %vm734_vm3, %v688_v38 }
  0xa1   : > { %8449 = vmatprep.mubr.msk.bf16.mxu1 %vm734_vm3, %v689_v41 }
  0xa8   : > { %8450 = vmatmul.mubr.msk.bf16.gmra.mxu1 %vm734_vm3, %v690_v46 }
  0xa9   : > { %8453 = vmatprep.mubr.msk.bf16.mxu1 %vm734_vm3, %v691_v49 }
  0xb0   : > { %8454 = vmatmul.mubr.msk.bf16.gmra.mxu1 %vm734_vm3, %v692_v53 }
  0xb1   : > { %8457 = vmatprep.mubr.msk.bf16.mxu1 %vm734_vm3, %v693_v56 }
  0xb8   : > { %8458 = vmatmul.mubr.msk.bf16.gmra.mxu1 %vm734_vm3, %v694_v57 }
  0xd0   : > { %v10374_v34 = vpop.f32.mrf.mxu0 }
  0xd1   : > { %v479_v33 = vmax.f32 %v10374_v34, 0.0 }
  0xd2   : > { %v10377_v58 = vpop.f32.mrf.mxu0 }
  0xd3   : > { %v478_v59 = vmax.f32 %v10377_v58, 0.0  ;;  %v484_v37 = vsel %vm480_vm4, %v479_v33, -inf }
  0xd4   : > { %485 = vmax.xlane.f32.xlu1 %v484_v37 }
  0xd5   : > { %v481_v36 = vsel %vm480_vm4, %v478_v59, -inf }
  0xd6   : > { %482 = vmax.xlane.f32.xlu0 %v481_v36 }
 0x150   : > { %v8439_v61 = vpop.f32.mrf.mxu1 }
 0x151   : > { %v814_v62 = vadd.f32 %v8439_v61, %v10389_v60 }
 0x152   : > { %v805_v63 = vpop.f32.mrf.mxu1 }
 0x153   : > { %9858 = vtanh.f32 %v814_v62  ;;  %v10393_v0 = vadd.f32 %v10389_v60, %v805_v63 }
 0x154   : > { %v8440_v1 = vpop.f32.mrf.mxu1 }
 0x155   : > { %v817_v2 = vadd.f32 %v8440_v1, %v10389_v60 }
 0x156   : > { %v10396_v3 = vpop.f32.mrf.mxu1 }
 0x157   : > { %9860 = vtanh.f32 %v817_v2 }
 0x158   : > { %v8443_v4 = vpop.f32.mrf.mxu1 }
 0x159   : > { %v830_v43 = vadd.f32 %v8443_v4, %v10389_v60 }
 0x15a   : > { %v821_v5 = vpop.f32.mrf.mxu1 }
 0x15b   : > { %v822_v12 = vadd.f32 %v10389_v60, %v821_v5 }
 0x15c   : > { %v8444_v6 = vpop.f32.mrf.mxu1 }
 0x15d   : > { %v833_v45 = vadd.f32 %v8444_v6, %v10389_v60 }
 0x15e   : > { %v824_v7 = vpop.f32.mrf.mxu1 }
 0x15f   : > { %v825_v17 = vadd.f32 %v10389_v60, %v824_v7  ;;  %v483_v36 = vpop.xlane.xlu0 %482 }
 0x160   : > { %v10398_v9 = vpop.eup %9858  ;;  %v8447_v8 = vpop.f32.mrf.mxu1  ;;  %v487_v63 = vsub.f32 %v478_v59, %v483_v36 }
 0x161   : > { %v846_v10 = vadd.f32 %v8447_v8, %v10389_v60  ;;  %v926_v11 = vmul.f32 0.5, %v10398_v9 }
 0x162   : > { %v837_v15 = vpop.f32.mrf.mxu1  ;;  %v489_v5 = vmul.f32 1.442695, %v487_v63 }
 0x163   : > { %9862 = vtanh.f32 %v846_v10  ;;  %v10404_v18 = vadd.f32 %v10389_v60, %v837_v15  ;;  %v950_v19 = vadd.f32 0.5, %v926_v11 }
 0x164   : > { %v10406_v24 = vpop.eup %9860  ;;  %v8448_v27 = vpop.f32.mrf.mxu1  ;;  %9864 = vtanh.f32 %v822_v12 }
 0x165   : > { %v849_v13 = vadd.f32 %v8448_v27, %v10389_v60  ;;  %1000 = vrot.lane.b32.xlu0 %v950_v19, %s10107_s25  ;;  %v927_v14 = vmul.f32 0.5, %v10406_v24 }
 0x166   : > { %v10411_v16 = vpop.f32.mrf.mxu1 }
 0x167   : > { %9866 = vtanh.f32 %v849_v13  ;;  %v951_v32 = vadd.f32 0.5, %v927_v14  ;;  %v486_v13 = vpop.xlane.xlu1 %485 }
 0x168   : > { %v8451_v35 = vpop.f32.mrf.mxu1  ;;  %9868 = vtanh.f32 %v825_v17 }
 0x169   : > { %v862_v38 = vadd.f32 %v8451_v35, %v10389_v60  ;;  %1002 = vrot.lane.b32.xlu1 %v951_v32, %s10107_s25  ;;  %v488_v35 = vsub.f32 %v479_v33, %v486_v13 }
 0x16a   : > { %v853_v39 = vpop.f32.mrf.mxu1 }
 0x16b   : > { %v854_v40 = vadd.f32 %v10389_v60, %v853_v39  ;;  %9870 = vtanh.f32 %v862_v38  ;;  %v491_v39 = vmul.f32 1.442695, %v488_v35 }
 0x16c   : > { %v8452_v41 = vpop.f32.mrf.mxu1 }
 0x16d   : > { %9872 = vtanh.f32 %v854_v40  ;;  %v865_v51 = vadd.f32 %v8452_v41, %v10389_v60 }
 0x16e   : > { %v856_v42 = vpop.f32.mrf.mxu1  ;;  %9874 = vtanh.f32 %v830_v43 }
 0x16f   : > { %9876 = vtanh.f32 %v833_v45  ;;  %v857_v53 = vadd.f32 %v10389_v60, %v856_v42 }
 0x170   : > { %v10418_v20 = vpop.eup %9862  ;;  %v8455_v21 = vpop.f32.mrf.mxu1  ;;  %9878 = vtanh.f32 %v865_v51  ;;  %v809_v51 = vadd.f32 %v10389_v60, %v10396_v3 }
 0x171   : > { %v934_v22 = vmul.f32 0.5, %v10418_v20  ;;  %v10421_v44 = vpop.eup %9864  ;;  %9880 = vtanh.f32 %v857_v53  ;;  %v878_v15 = vadd.f32 %v8455_v21, %v10389_v60 }
 0x172   : > { %v869_v23 = vpop.f32.mrf.mxu1  ;;  %v928_v50 = vmul.f32 0.5, %v10421_v44  ;;  %9882 = vpow2.f32 %v489_v5 }
 0x173   : > { %v958_v46 = vadd.f32 0.5, %v934_v22  ;;  %v10425_v47 = vadd.f32 %v10389_v60, %v869_v23  ;;  %9884 = vtanh.f32 %v878_v15 }
 0x174   : > { %v10427_v48 = vpop.eup %9866  ;;  %v952_v52 = vadd.f32 0.5, %v928_v50  ;;  %v8456_v10 = vpop.f32.mrf.mxu1 }
 0x175   : > { %1016 = vrot.lane.b32.xlu0 %v958_v46, %s10107_s25  ;;  %v935_v49 = vmul.f32 0.5, %v10427_v48  ;;  %v10433_v26 = vpop.eup %9868  ;;  %v881_v14 = vadd.f32 %v8456_v10, %v10389_v60 }
 0x176   : > { %v929_v55 = vmul.f32 0.5, %v10433_v26  ;;  %v10466_v12 = vpop.f32.mrf.mxu1 }
 0x177   : > { %v959_v25 = vadd.f32 0.5, %v935_v49  ;;  %9886 = vtanh.f32 %v881_v14  ;;  %v841_v49 = vadd.f32 %v10389_v60, %v10411_v16 }
 0x178   : > { %v10435_v28 = vpop.eup %9870  ;;  %v953_v30 = vadd.f32 0.5, %v929_v55  ;;  %v8459_v19 = vpop.f32.mrf.mxu1 }
 0x179   : > { %1018 = vrot.lane.b32.xlu1 %v959_v25, %s10107_s25  ;;  %v938_v31 = vmul.f32 0.5, %v10435_v28  ;;  %v894_v40 = vadd.f32 %v8459_v19, %v10389_v60 }
 0x17a   : > { %v10438_v29 = vpop.eup %9872  ;;  %v885_v32 = vpop.f32.mrf.mxu1 }
 0x17b   : > { %v936_v54 = vmul.f32 0.5, %v10438_v29  ;;  %v10446_v57 = vpop.eup %9874  ;;  %v962_v37 = vadd.f32 0.5, %v938_v31  ;;  %v886_v38 = vadd.f32 %v10389_v60, %v885_v32 }
 0x17c   : > { %v930_v61 = vmul.f32 0.5, %v10446_v57  ;;  %v10450_v62 = vpop.eup %9876  ;;  %v8460_v41 = vpop.f32.mrf.mxu1 }
 0x17d   : > { %1004 = vrot.lane.b32.xlu1 %v952_v52, %s10107_s25  ;;  %v960_v56 = vadd.f32 0.5, %v936_v54  ;;  %v931_v2 = vmul.f32 0.5, %v10450_v62  ;;  %v10456_v4 = vpop.eup %9878  ;;  %9888 = vtanh.f32 %v886_v38  ;;  %v897_v42 = vadd.f32 %v8460_v41, %v10389_v60 }
 0x17e   : > { %v954_v1 = vadd.f32 0.5, %v930_v61  ;;  %v939_v7 = vmul.f32 0.5, %v10456_v4  ;;  %v10460_v8 = vpop.eup %9880  ;;  %9890 = vpow2.f32 %v491_v39  ;;  %v888_v21 = vpop.f32.mrf.mxu1 }
 0x17f   : > { %1020 = vrot.lane.b32.xlu0 %v960_v56, %s10107_s25  ;;  %v955_v6 = vadd.f32 0.5, %v931_v2  ;;  %v937_v59 = vmul.f32 0.5, %v10460_v8  ;;  %v10469_v27 = vpop.eup %9882  ;;  %9892 = vtanh.f32 %v894_v40  ;;  %v889_v33 = vadd.f32 %v10389_v60, %v888_v21 }
 0x180   : > { %v963_v58 = vadd.f32 0.5, %v939_v7  ;;  %v493_v17 = vsel %vm480_vm4, %v10469_v27, 0.0  ;;  %v10479_v43 = vpop.eup %9884  ;;  %9894 = vtanh.f32 %v897_v42  ;;  %v873_v42 = vadd.f32 %v10389_v60, %v10466_v12 }
 0x181   : > { %1006 = vrot.lane.b32.xlu1 %v953_v30, %s10107_s25  ;;  %v961_v11 = vadd.f32 0.5, %v937_v59  ;;  %v942_v22 = vmul.f32 0.5, %v10479_v43  ;;  %9896 = vtanh.f32 %v10404_v18 }
 0x182   : > { %9898 = vtanh.f32 %v889_v33 }
 0x183   : > { %v966_v23 = vadd.f32 0.5, %v942_v22  ;;  %9900 = vtanh.f32 %v841_v49 }
 0x184   : > { %v10482_v34 = vpop.eup %9886  ;;  %9902 = vtanh.f32 %v809_v51 }
 0x185   : > { %1024 = vrot.lane.b32.xlu1 %v962_v37, %s10107_s25  ;;  %v943_v45 = vmul.f32 0.5, %v10482_v34  ;;  %9904 = vtanh.f32 %v10393_v0 }
 0x186   : > { %9906 = vtanh.f32 %v10425_v47 }
 0x187   : > { %v967_v25 = vadd.f32 0.5, %v943_v45  ;;  %9908 = vtanh.f32 %v873_v42 }
 0x189   : > { %1008 = vrot.lane.b32.xlu1 %v954_v1, %s10107_s25 }
 0x18a   : > { %v10486_v46 = vpop.eup %9888 }
 0x18b   : > { %v10491_v50 = vpop.eup %9890  ;;  %v944_v52 = vmul.f32 0.5, %v10486_v46 }
 0x18c   : > { %v10497_v53 = vpop.eup %9892  ;;  %v496_v18 = vsel %vm480_vm4, %v10491_v50, 0.0 }
 0x18d   : > { %1010 = vrot.lane.b32.xlu1 %v955_v6, %s10107_s25  ;;  %v968_v16 = vadd.f32 0.5, %v944_v52  ;;  %v946_v54 = vmul.f32 0.5, %v10497_v53  ;;  %v10503_v55 = vpop.eup %9894 }
 0x18e   : > { %v947_v56 = vmul.f32 0.5, %v10503_v55  ;;  %v10508_v31 = vpop.eup %9896 }
 0x18f   : > { %v970_v3 = vadd.f32 0.5, %v946_v54  ;;  %v10510_v30 = vpop.eup %9898  ;;  %v932_v36 = vmul.f32 0.5, %v10508_v31 }
 0x190   : > { %v971_v37 = vadd.f32 0.5, %v947_v56  ;;  %v945_v61 = vmul.f32 0.5, %v10510_v30  ;;  %v10515_v63 = vpop.eup %9900 }
 0x191   : > { %1026 = vrot.lane.b32.xlu1 %v963_v58, %s10107_s25  ;;  %v10518_v0 = vpop.eup %9902  ;;  %v956_v1 = vadd.f32 0.5, %v932_v36  ;;  %v933_v5 = vmul.f32 0.5, %v10515_v63 }
 0x192   : > { %v969_v2 = vadd.f32 0.5, %v945_v61  ;;  %v10521_v6 = vpop.eup %9904  ;;  %v925_v7 = vmul.f32 0.5, %v10518_v0 }
 0x193   : > { %v957_v58 = vadd.f32 0.5, %v933_v5  ;;  %v924_v59 = vmul.f32 0.5, %v10521_v6  ;;  %v10566_v60 = vpop.eup %9906 }
 0x194   : > { %v949_v10 = vadd.f32 0.5, %v925_v7  ;;  %v940_v51 = vmul.f32 0.5, %v10566_v60 }
 0x195   : > { %1022 = vrot.lane.b32.xlu1 %v961_v11, %s10107_s25  ;;  %v948_v11 = vadd.f32 0.5, %v924_v59 }
 0x19e   : > { %494 = vadd.xlane.f32.xlu0 %v493_v17 }
 0x1b4   : > { %1032 = vrot.lane.b32.xlu0 %v966_v23, %s10107_s25 }
 0x1b8   : > { %1034 = vrot.lane.b32.xlu0 %v967_v25, %s10107_s25  ;;  %v10579_v25 = vpop.eup %9908 }
 0x1b9   : > { %497 = vadd.xlane.f32.xlu1 %v496_v18  ;;  %v941_v56 = vmul.f32 0.5, %v10579_v25 }
 0x1bc   : > { %1036 = vrot.lane.b32.xlu0 %v968_v16, %s10107_s25 }
 0x1c0   : > { %1040 = vrot.lane.b32.xlu0 %v970_v3, %s10107_s25  ;;  %v964_v3 = vadd.f32 0.5, %v940_v51 }
 0x1c4   : > { %1042 = vrot.lane.b32.xlu0 %v971_v37, %s10107_s25 }
 0x1c8   : > { %1012 = vrot.lane.b32.xlu0 %v956_v1, %s10107_s25  ;;  %v965_v1 = vadd.f32 0.5, %v941_v56 }
 0x1ca   : > { %1038 = vrot.lane.b32.xlu1 %v969_v2, %s10107_s25 }
 0x1cc   : > { %1014 = vrot.lane.b32.xlu0 %v957_v58, %s10107_s25 }
 0x1ce   : > { %998 = vrot.lane.b32.xlu1 %v949_v10, %s10107_s25 }
 0x1d0   : > { %996 = vrot.lane.b32.xlu0 %v948_v11, %s10107_s25 }
 0x1d7   : > { %v1001_v15 = vpop.permute.xlu0 %1000 }
 0x1d8   : > { %v10531_v13 = vmul.f32 %v10398_v9, %v1001_v15 }
 0x1db   : > { %v1003_v19 = vpop.permute.xlu1 %1002 }
 0x1dc   : > { %v10534_v14 = vmul.f32 %v10406_v24, %v1003_v19 }
 0x1de   : > { %v8996_v17 = vpack.i.bf16 %v10534_v14, %v10531_v13  ;;  %v1189_v32 = vpack.c.bf16 %v10534_v14, %v10531_v13 }
 0x1e0   : > { %8997 = vrot.lane.b32.xlu1 %v8996_v17, %s10106_s22 }
 0x1e7   : > { %v1017_v35 = vpop.permute.xlu0 %1016 }
 0x1e8   : > { %v10542_v39 = vmul.f32 %v10418_v20, %v1017_v35 }
 0x1eb   : > { %v1019_v38 = vpop.permute.xlu1 %1018 }
 0x1ec   : > { %v10545_v40 = vmul.f32 %v10427_v48, %v1019_v38 }
 0x1ee   : > { %v9011_v9 = vpack.i.bf16 %v10545_v40, %v10542_v39  ;;  %v1193_v24 = vpack.c.bf16 %v10545_v40, %v10542_v39 }
 0x1ef   : > { %v1005_v41 = vpop.permute.xlu1 %1004 }
 0x1f0   : > { %9012 = vrot.lane.b32.xlu0 %v9011_v9, %s10106_s22  ;;  %v10556_v20 = vmul.f32 %v10421_v44, %v1005_v41 }
 0x1f3   : > { %v1007_v21 = vpop.permute.xlu1 %1006 }
 0x1f4   : > { %v10559_v48 = vmul.f32 %v10433_v26, %v1007_v21 }
 0x1f6   : > { %v9001_v22 = vpack.i.bf16 %v10559_v48, %v10556_v20  ;;  %v1190_v33 = vpack.c.bf16 %v10559_v48, %v10556_v20 }
 0x1f7   : > { %v1025_v23 = vpop.permute.xlu1 %1024 }
 0x1f8   : > { %9002 = vrot.lane.b32.xlu1 %v9001_v22, %s10108_s26  ;;  %v10582_v18 = vmul.f32 %v10435_v28, %v1025_v23 }
 0x1fb   : > { %v1009_v47 = vpop.permute.xlu1 %1008 }
 0x1fc   : > { %v10569_v44 = vmul.f32 %v10446_v57, %v1009_v47 }
 0x1ff   : > { %v1011_v12 = vpop.permute.xlu1 %1010 }
 0x200   : > { %v10572_v26 = vmul.f32 %v10450_v62, %v1011_v12  ;;  %v1021_v62 = vpop.permute.xlu0 %1020 }
 0x201   : > { %v10594_v36 = vmul.f32 %v10438_v29, %v1021_v62  ;;  %v13480_v62 = vmov 0  }
 0x202   : > { %v9006_v45 = vpack.i.bf16 %v10572_v26, %v10569_v44  ;;  %v1191_v49 = vpack.c.bf16 %v10572_v26, %v10569_v44  ;;  %1237 = vmatprep.mubr.bf16.mxu0 %v13480_v62 }
 0x203   : > { %v1027_v52 = vpop.permute.xlu1 %1026 }
 0x204   : > { %v10585_v57 = vmul.f32 %v10456_v4, %v1027_v52  ;;  %9007 = vrot.lane.b32.xlu1 %v9006_v45, %s10107_s25 }
 0x206   : > { %v9016_v16 = vpack.i.bf16 %v10585_v57, %v10582_v18  ;;  %v1195_v54 = vpack.c.bf16 %v10585_v57, %v10582_v18 }
 0x207   : > { %v1023_v37 = vpop.permute.xlu1 %1022 }
 0x208   : > { %v10597_v28 = vmul.f32 %v10460_v8, %v1023_v37  ;;  %1028 = vrot.lane.b32.xlu1 %v964_v3, %s10107_s25  ;;  %9017 = vrot.lane.b32.xlu0 %v9016_v16, %s10107_s25 }
 0x20a   : > { %v9021_v4 = vpack.i.bf16 %v10597_v28, %v10594_v36  ;;  %v1194_v61 = vpack.c.bf16 %v10597_v28, %v10594_v36 }
 0x20c   : > { %1030 = vrot.lane.b32.xlu1 %v965_v1, %s10107_s25  ;;  %9022 = vrot.lane.b32.xlu0 %v9021_v4, %s10108_s26 }
 0x227   : > { %v495_v29 = vpop.xlane.xlu0 %494 }
 0x228   : > { %9910 = vrcp.f32 %v495_v29 }
 0x22b   : > { %v1033_v2 = vpop.permute.xlu0 %1032 }
 0x22c   : > { %v10608_v5 = vmul.f32 %v10479_v43, %v1033_v2 }
 0x22f   : > { %v1035_v8 = vpop.permute.xlu0 %1034 }
 0x230   : > { %v10611_v7 = vmul.f32 %v10482_v34, %v1035_v8 }
 0x232   : > { %v9026_v58 = vpack.i.bf16 %v10611_v7, %v10608_v5  ;;  %v1197_v59 = vpack.c.bf16 %v10611_v7, %v10608_v5  ;;  %v9747_v5 = vld [vmem:[%s13468_s3 + $0x30] sm:$0xff]  }
 0x233   : > { %v1037_v10 = vpop.permute.xlu0 %1036 }
 0x234   : > { %9027 = vrot.lane.b32.xlu1 %v9026_v58, %s10106_s22 }
 0x235   : > { %v9911_v11 = vpop.eup %9910 }
 0x236   : > { %v500_v15 = vmul.f32 %v9911_v11, %v10469_v27 }
 0x237   : > { %v1041_v19 = vpop.permute.xlu0 %1040 }
 0x238   : > { %503 = vxpose.xlu0.b32.start [1/2] (short) (narrow) %v500_v15, 16  ;;  %v1090_v43 = vmul.f32 %v10497_v53, %v1041_v19  ;;  %v10632_v53 = vmul.f32 %v10486_v46, %v1037_v10 }
 0x23b   : > { %v1043_v17 = vpop.permute.xlu0 %1042 }
 0x23c   : > { %v1091_v34 = vmul.f32 %v10503_v55, %v1043_v17 }
 0x23e   : > { %v10621_v35 = vpack.c.bf16 %v1091_v34, %v1090_v43  ;;  %v9036_v46 = vpack.i.bf16 %v1091_v34, %v1090_v43 }
 0x23f   : > { %v1013_v38 = vpop.permute.xlu0 %1012 }
 0x240   : > { %v10624_v42 = vmul.f32 %v10508_v31, %v1013_v38 }
 0x242   : > { %v498_v9 = vpop.xlane.xlu1 %497 }
 0x243   : > { %9912 = vrcp.f32 %v498_v9  ;;  %v1015_v41 = vpop.permute.xlu0 %1014 }
 0x244   : > { %v10627_v21 = vmul.f32 %v10515_v63, %v1015_v41 }
 0x246   : > { %v1192_v27 = vpack.c.bf16 %v10627_v21, %v10624_v42  ;;  %v1039_v22 = vpop.permute.xlu1 %1038 }
 0x247   : > { %v10635_v55 = vmul.f32 %v10510_v30, %v1039_v22  ;;  %v997_v23 = vpop.permute.xlu0 %996 }
 0x248   : > { %v10642_v63 = vmul.f32 %v10521_v6, %v997_v23 }
 0x249   : > { %v9031_v47 = vpack.i.bf16 %v10635_v55, %v10632_v53  ;;  %v1198_v31 = vpack.c.bf16 %v10635_v55, %v10632_v53 }
 0x24a   : > { %v999_v12 = vpop.permute.xlu1 %998 }
 0x24b   : > { %v10645_v45 = vmul.f32 %v10518_v0, %v999_v12  ;;  %9032 = vrot.lane.b32.xlu1 %v9031_v47, %s10108_s26 }
 0x24d   : > { %v1188_v30 = vpack.c.bf16 %v10645_v45, %v10642_v63 }
 0x24f   : > { %9037 = vrot.lane.b32.xlu1 %v9036_v46, %s10107_s25 }
 0x250   : > { %v9913_v51 = vpop.eup %9912 }
 0x251   : > { %v502_v52 = vmul.f32 %v9913_v51, %v10491_v50 }
 0x252   : > { %v8998_v6 = vpop.permute.xlu1 %8997 }
 0x253   : > { %504 = vxpose.xlu0.b32.end [2/2] (short) (narrow) %v502_v52, 16  ;;  %v8999_v56 = vunpack.i.l.bf16 %v8998_v6  ;;  %v9000_v37 = vunpack.i.h.bf16 %v8998_v6 }
 0x255   : > { %v1169_v50 = vsel %vm658_vm2, %v10642_v63, %v8999_v56  ;;  %v1170_v15 = vsel %vm658_vm2, %v10645_v45, %v9000_v37  ;;  %v13477_v37 = vmov 0.0  }
 0x262   : > { %v9013_v3 = vpop.permute.xlu0 %9012 }
 0x263   : > { %v9015_v4 = vunpack.i.h.bf16 %v9013_v3  ;;  %v9014_v1 = vunpack.i.l.bf16 %v9013_v3 }
 0x265   : > { %v1177_v19 = vsel %vm658_vm2, %v10627_v21, %v9015_v4  ;;  %v1176_v17 = vsel %vm658_vm2, %v10624_v42, %v9014_v1 }
 0x26a   : > { %v9003_v16 = vpop.permute.xlu1 %9002 }
 0x26b   : > { %v9004_v29 = vunpack.i.l.bf16 %v9003_v16  ;;  %v9005_v58 = vunpack.i.h.bf16 %v9003_v16 }
 0x26d   : > { %v1171_v43 = vsel %vm734_vm3, %v1169_v50, %v9004_v29  ;;  %v1172_v47 = vsel %vm734_vm3, %v1170_v15, %v9005_v58 }
 0x276   : > { %v9008_v0 = vpop.permute.xlu1 %9007 }
 0x277   : > { %v9009_v10 = vunpack.i.l.bf16 %v9008_v0  ;;  %v9010_v11 = vunpack.i.h.bf16 %v9008_v0 }
 0x279   : > { %v1174_v12 = vsel %vm1173_vm5, %v1171_v43, %v9009_v10  ;;  %v1175_v52 = vsel %vm1173_vm5, %v1172_v47, %v9010_v11 }
 0x27a   : > { %v1029_v2 = vpop.permute.xlu1 %1028  ;;  %v9018_v8 = vpop.permute.xlu0 %9017  ;;  %v1199_v56 = vpack.c.bf16 %v1175_v52, %v1174_v12 }
 0x27b   : > { %v10663_v9 = vmul.f32 %v10566_v60, %v1029_v2  ;;  %v9020_v46 = vunpack.i.h.bf16 %v9018_v8  ;;  %v9019_v51 = vunpack.i.l.bf16 %v9018_v8 }
 0x27e   : > { %v1031_v34 = vpop.permute.xlu1 %1030  ;;  %v9023_v38 = vpop.permute.xlu0 %9022 }
 0x27f   : > { %v10666_v41 = vmul.f32 %v10579_v25, %v1031_v34  ;;  %v9025_v22 = vunpack.i.h.bf16 %v9023_v38  ;;  %v9024_v23 = vunpack.i.l.bf16 %v9023_v38 }
 0x281   : > { %v1196_v6 = vpack.c.bf16 %v10666_v41, %v10663_v9  ;;  %v1178_v16 = vsel %vm734_vm3, %v1176_v17, %v9024_v23  ;;  %v1179_v60 = vsel %vm734_vm3, %v1177_v19, %v9025_v22 }
 0x282   : > { %v1180_v25 = vsel %vm1173_vm5, %v1178_v16, %v9019_v51  ;;  %v1181_v3 = vsel %vm1173_vm5, %v1179_v60, %v9020_v46 }
 0x283   : > { %v1200_v0 = vpack.c.bf16 %v1181_v3, %v1180_v25 }
 0x285   : > { %1219 = vmatprep.subr.bf16.mxu0 %v1200_v0 }
 0x286   : > { %1220 = vmatpush1.bf16.msra.mxu0 %v1199_v56 }
 0x287   : > { %8461 = vmatprep.subr.bf16.mxu0 %v13477_v37 }
 0x2a6   : > { %v9028_v4 = vpop.permute.xlu1 %9027 }
 0x2a7   : > { %v9030_v2 = vunpack.i.h.bf16 %v9028_v4  ;;  %v9029_v8 = vunpack.i.l.bf16 %v9028_v4 }
 0x2a9   : > { %v1183_v19 = vsel %vm658_vm2, %v10666_v41, %v9030_v2  ;;  %v1182_v17 = vsel %vm658_vm2, %v10663_v9, %v9029_v8 }
 0x2bd   : > { %v9033_v1 = vpop.permute.xlu1 %9032 }
 0x2be   : > { %v9035_v58 = vunpack.i.h.bf16 %v9033_v1  ;;  %v9034_v10 = vunpack.i.l.bf16 %v9033_v1 }
 0x2c0   : > { %v1184_v43 = vsel %vm734_vm3, %v1182_v17, %v9034_v10  ;;  %v1185_v34 = vsel %vm734_vm3, %v1183_v19, %v9035_v58 }
 0x2c1   : > { %v9038_v29 = vpop.permute.xlu1 %9037 }
 0x2c2   : > { %v9040_v50 = vunpack.i.h.bf16 %v9038_v29  ;;  %v9039_v11 = vunpack.i.l.bf16 %v9038_v29 }
 0x2c4   : > { %v1186_v38 = vsel %vm1173_vm5, %v1184_v43, %v9039_v11  ;;  %v1187_v22 = vsel %vm1173_vm5, %v1185_v34, %v9040_v50 }
 0x2c5   : > { %v1201_v12 = vpack.c.bf16 %v1187_v22, %v1186_v38 }
 0x2cb   : > { %v519_v15 = vpop.trf.xlu0 }
 0x2cf   : > { %v520_v23 = vpop.trf.xlu0 }
 0x2d0   : > { %v10686_v47 = vpack.c.bf16 %v520_v23, %v519_v15 }
 0x2d2   : > { %7788 = vmatmul.mubr.msk.bf16.vlgmr.msra.gmra.mxu0 %vm480_vm4, %v10686_v47 }
 0x2d3   : > { %8462 = vmatpush3.bf16.msra.mxu0 %v1201_v12  ;;  %8463 = vmatprep.mubr.msk.bf16.mxu0 %vm10111_vm6, %v13477_v37 }
 0x2da   : > { %8464 = vmatmul.mubr.msk.bf16.vlgmr.msra.gmra.mxu0 %vm480_vm4, %v10686_v47 }
 0x2db   : > { %1393 = vmatprep.mubr.bf16.mxu0 %v13480_v62 }
 0x392   : > { %v1239_v46 = vpop.f32.mrf.mxu0 }
 0x394   : > { %v1241_v51 = vpop.f32.mrf.mxu0 }
 0x396   : > { %v1243_v52 = vpop.f32.mrf.mxu0 }
 0x397   : > { %v9041_v16 = vpack.i.bf16 %v1243_v52, %v1239_v46  ;;  %v1349_v3 = vpack.c.bf16 %v1243_v52, %v1239_v46 }
 0x398   : > { %v1245_v60 = vpop.f32.mrf.mxu0 }
 0x399   : > { %9042 = vrot.lane.b32.xlu1 %v9041_v16, %s10107_s25  ;;  %v10696_v25 = vpack.c.bf16 %v1245_v60, %v1241_v51  ;;  %v9066_v46 = vpack.i.bf16 %v1245_v60, %v1241_v51  ;;  %v9740_v60 = vld [vmem:[%s13471_s6 + $0x28] sm:$0xff]  }
 0x39a   : > { %v1282_v0 = vpop.f32.mrf.mxu0 }
 0x39b   : > { %1375 = vmatprep.subr.bf16.mxu0 %v10696_v25 }
 0x39c   : > { %v8465_v56 = vpop.f32.mrf.mxu0  ;;  %1376 = vmatpush1.bf16.msra.mxu0 %v1349_v3 }
 0x39d   : > { %9047 = vrot.lane.b32.xlu1 %v9041_v16, %s10108_s26  ;;  %8467 = vmatprep.subr.bf16.mxu0 %v13477_v37 }
 0x39e   : > { %v1285_v4 = vpop.f32.mrf.mxu0 }
 0x39f   : > { %v10701_v1 = vpack.i.bf16 %v1285_v4, %v1282_v0  ;;  %v10703_v29 = vpack.c.bf16 %v1285_v4, %v1282_v0  ;;  %7790 = vmatmul.mubr.msk.bf16.vlgmr.msra.gmra.mxu0 %vm480_vm4, %v10686_v47 }
 0x3a0   : > { %v8466_v2 = vpop.f32.mrf.mxu0  ;;  %8469 = vmatprep.mubr.msk.bf16.mxu0 %vm10111_vm6, %v13477_v37 }
 0x3a1   : > { %9052 = vrot.lane.b32.xlu1 %v9041_v16, %s10106_s22  ;;  %8468 = vmatpush3.bf16.msra.mxu0 %v10703_v29 }
 0x3a2   : > { %8473 = vmatprep.subr.bf16.mxu0 %v9740_v60 }
 0x3a7   : > { %8470 = vmatmul.mubr.msk.bf16.vlgmr.msra.gmra.mxu0 %vm480_vm4, %v10686_v47 }
 0x3a8   : > { %8474 = vmatpush3.bf16.msra.mxu0 %v9740_v60 }
 0x40b   : > { %v9043_v8 = vpop.permute.xlu1 %9042 }
 0x40c   : > { %v9045_v15 = vunpack.i.h.bf16 %v9043_v8  ;;  %v9044_v19 = vunpack.i.l.bf16 %v9043_v8  ;;  %v9741_v8 = vld [vmem:[%s13471_s6 + $0x20] sm:$0xff]  }
 0x40d   : > { %8475 = vmatprep.subr.bf16.mxu0 %v9741_v8 }
 0x40e   : > { %v1350_v12 = vpack.c.bf16 %v9045_v15, %v9044_v19  ;;  %8476 = vmatpush3.bf16.msra.mxu0 %v9741_v8 }
 0x40f   : > { %v9048_v58 = vpop.permute.xlu1 %9047 }
 0x410   : > { %v9050_v15 = vunpack.i.h.bf16 %v9048_v58  ;;  %v9049_v19 = vunpack.i.l.bf16 %v9048_v58  ;;  %v9745_v58 = vld [vmem:[%s13471_s6] sm:$0xff]  }
 0x413   : > { %v9053_v43 = vpop.permute.xlu1 %9052 }
 0x414   : > { %v9055_v22 = vunpack.i.h.bf16 %v9053_v43  ;;  %v9054_v23 = vunpack.i.l.bf16 %v9053_v43  ;;  %v9742_v43 = vld [vmem:[%s13471_s6 + $0x18] sm:$0xff]  }
 0x415   : > { %8477 = vmatprep.subr.bf16.mxu0 %v9742_v43 }
 0x416   : > { %v1352_v4 = vpack.c.bf16 %v9055_v22, %v9054_v23  ;;  %v1351_v22 = vpack.c.bf16 %v9050_v15, %v9049_v19  ;;  %v9743_v23 = vld [vmem:[%s13471_s6 + $0x10] sm:$0xff]   ;;  %8478 = vmatpush3.bf16.msra.mxu0 %v9742_v43 }
 0x417   : > { %8479 = vmatprep.subr.bf16.mxu0 %v9743_v23 }
 0x41a   : > { %8480 = vmatpush3.bf16.msra.mxu0 %v9743_v23 }
 0x45f   : > { %v1395_v10 = vpop.f32.mrf.mxu0 }
 0x461   : > { %v10713_v50 = vpop.f32.mrf.mxu0 }
 0x463   : > { %v1399_v11 = vpop.f32.mrf.mxu0 }
 0x464   : > { %v9061_v17 = vpack.i.bf16 %v1399_v11, %v1395_v10 }
 0x465   : > { %v10715_v34 = vpop.f32.mrf.mxu0 }
 0x466   : > { %9062 = vrot.lane.b32.xlu0 %v9061_v17, %s10108_s26  ;;  %9057 = vrot.lane.b32.xlu1 %v9061_v17, %s10107_s25  ;;  %v9086_v51 = vpack.i.bf16 %v10715_v34, %v10713_v50  ;;  %v1509_v19 = vpack.c.bf16 %v10715_v34, %v10713_v50 }
 0x467   : > { %v10719_v38 = vpop.f32.mrf.mxu0 }
 0x469   : > { %v8471_v52 = vpop.f32.mrf.mxu0 }
 0x46a   : > { %1531 = vrot.lane.b32.xlu0 %v1350_v12, %s10106_s22  ;;  %9067 = vrot.lane.b32.xlu1 %v9066_v46, %s10107_s25 }
 0x46b   : > { %v10723_v16 = vpop.f32.mrf.mxu0 }
 0x46c   : > { %v10727_v0 = vpack.i.bf16 %v10723_v16, %v10719_v38  ;;  %v1513_v56 = vpack.c.bf16 %v10723_v16, %v10719_v38 }
 0x46d   : > { %v8472_v2 = vpop.f32.mrf.mxu0 }
 0x46e   : > { %1535 = vrot.lane.b32.xlu0 %v1352_v4, %s10106_s22  ;;  %9072 = vrot.lane.b32.xlu1 %v9066_v46, %s10108_s26 }
 0x472   : > { %9077 = vrot.lane.b32.xlu1 %v9061_v17, %s10106_s22  ;;  %v1505_v17 = vpack.c.bf16 %v1399_v11, %v1395_v10 }
 0x476   : > { %9082 = vrot.lane.b32.xlu1 %v9066_v46, %s10106_s22 }
 0x47a   : > { %9087 = vrot.lane.b32.xlu1 %v9086_v51, %s10107_s25 }
 0x47e   : > { %9092 = vrot.lane.b32.xlu1 %v9086_v51, %s10108_s26 }
 0x482   : > { %9097 = vrot.lane.b32.xlu1 %v9086_v51, %s10106_s22 }
 0x486   : > { %9102 = vrot.lane.b32.xlu1 %v10701_v1, %s10107_s25 }
 0x48a   : > { %9107 = vrot.lane.b32.xlu1 %v10727_v0, %s10107_s25 }
 0x48e   : > { %1529 = vrot.lane.b32.xlu1 %v1349_v3, %s10106_s22  ;;  %v9744_v3 = vld [vmem:[%s13471_s6 + $0x8] sm:$0xff]  }
 0x48f   : > { %8481 = vmatprep.subr.bf16.mxu0 %v9744_v3 }
 0x490   : > { %8482 = vmatpush3.bf16.msra.mxu0 %v9744_v3 }
 0x491   : > { %8483 = vmatprep.subr.bf16.mxu0 %v9745_v58 }
 0x492   : > { %1565 = vrot.lane.b32.xlu1 %v1505_v17, %s10108_s26 }
 0x494   : > { %8484 = vmatpush3.bf16.msra.mxu0 %v9745_v58 }
 0x496   : > { %1533 = vrot.lane.b32.xlu1 %v1351_v22, %s10106_s22 }
 0x49a   : > { %1537 = vrot.lane.b32.xlu1 %v10696_v25, %s10106_s22 }
 0x4d8   : > { %v9063_v10 = vpop.permute.xlu0 %9062  ;;  %v9058_v11 = vpop.permute.xlu1 %9057 }
 0x4d9   : > { %v9065_v12 = vunpack.i.h.bf16 %v9063_v10  ;;  %v9064_v46 = vunpack.i.l.bf16 %v9063_v10  ;;  %v9060_v52 = vunpack.i.h.bf16 %v9058_v11  ;;  %v9059_v4 = vunpack.i.l.bf16 %v9058_v11 }
 0x4db   : > { %v1506_v2 = vpack.c.bf16 %v9060_v52, %v9059_v4  ;;  %v1507_v51 = vpack.c.bf16 %v9065_v12, %v9064_v46 }
 0x4dc   : > { %v9068_v60 = vpop.permute.xlu1 %9067 }
 0x4dd   : > { %v9070_v8 = vunpack.i.h.bf16 %v9068_v60  ;;  %v9069_v25 = vunpack.i.l.bf16 %v9068_v60  ;;  %1567 = vrot.lane.b32.xlu0 %v1506_v2, %s10108_s26  ;;  %1569 = vrot.lane.b32.xlu1 %v1507_v51, %s10108_s26 }
 0x4df   : > { %v1354_v15 = vpack.c.bf16 %v9070_v8, %v9069_v25 }
 0x4e0   : > { %v9073_v17 = vpop.permute.xlu1 %9072 }
 0x4e1   : > { %v9075_v43 = vunpack.i.h.bf16 %v9073_v17  ;;  %v9074_v22 = vunpack.i.l.bf16 %v9073_v17  ;;  %1539 = vrot.lane.b32.xlu0 %v1354_v15, %s10106_s22  ;;  %1573 = vrot.lane.b32.xlu1 %v1509_v19, %s10108_s26 }
 0x4e3   : > { %v1355_v23 = vpack.c.bf16 %v9075_v43, %v9074_v22 }
 0x4e4   : > { %v9078_v3 = vpop.permute.xlu1 %9077 }
 0x4e5   : > { %v9080_v58 = vunpack.i.h.bf16 %v9078_v3  ;;  %v9079_v10 = vunpack.i.l.bf16 %v9078_v3  ;;  %1541 = vrot.lane.b32.xlu1 %v1355_v23, %s10106_s22 }
 0x4e7   : > { %v1508_v11 = vpack.c.bf16 %v9080_v58, %v9079_v10 }
 0x4e8   : > { %v9083_v12 = vpop.permute.xlu1 %9082 }
 0x4e9   : > { %v9085_v46 = vunpack.i.h.bf16 %v9083_v12  ;;  %v9084_v52 = vunpack.i.l.bf16 %v9083_v12  ;;  %1571 = vrot.lane.b32.xlu0 %v1508_v11, %s10108_s26  ;;  %1545 = vrot.lane.b32.xlu1 %v10703_v29, %s10106_s22 }
 0x4eb   : > { %v1356_v50 = vpack.c.bf16 %v9085_v46, %v9084_v52 }
 0x4ec   : > { %v9088_v34 = vpop.permute.xlu1 %9087 }
 0x4ed   : > { %v9090_v4 = vunpack.i.h.bf16 %v9088_v34  ;;  %v9089_v2 = vunpack.i.l.bf16 %v9088_v34  ;;  %1543 = vrot.lane.b32.xlu0 %v1356_v50, %s10106_s22  ;;  %v1532_v50 = vpop.permute.xlu0 %1531 }
 0x4ee   : > { %v1594_v45 = vsel %vm658_vm2, %v1189_v32, %v1532_v50 }
 0x4ef   : > { %v1510_v51 = vpack.c.bf16 %v9090_v4, %v9089_v2 }
 0x4f0   : > { %v9093_v60 = vpop.permute.xlu1 %9092 }
 0x4f1   : > { %v9095_v8 = vunpack.i.h.bf16 %v9093_v60  ;;  %v9094_v25 = vunpack.i.l.bf16 %v9093_v60  ;;  %1575 = vrot.lane.b32.xlu0 %v1510_v51, %s10108_s26  ;;  %v1536_v4 = vpop.permute.xlu0 %1535 }
 0x4f2   : > { %v1600_v13 = vsel %vm658_vm2, %v1191_v49, %v1536_v4 }
 0x4f3   : > { %v1511_v15 = vpack.c.bf16 %v9095_v8, %v9094_v25 }
 0x4f4   : > { %v9098_v19 = vpop.permute.xlu1 %9097 }
 0x4f5   : > { %1577 = vrot.lane.b32.xlu1 %v1511_v15, %s10108_s26  ;;  %v9100_v29 = vunpack.i.h.bf16 %v9098_v19  ;;  %v9099_v23 = vunpack.i.l.bf16 %v9098_v19 }
 0x4f7   : > { %v1512_v10 = vpack.c.bf16 %v9100_v29, %v9099_v23 }
 0x4f8   : > { %v9103_v17 = vpop.permute.xlu1 %9102 }
 0x4f9   : > { %v9105_v43 = vunpack.i.h.bf16 %v9103_v17  ;;  %v9104_v22 = vunpack.i.l.bf16 %v9103_v17  ;;  %1581 = vrot.lane.b32.xlu1 %v1513_v56, %s10108_s26 }
 0x4fb   : > { %v1358_v3 = vpack.c.bf16 %v9105_v43, %v9104_v22 }
 0x4fc   : > { %v9108_v58 = vpop.permute.xlu1 %9107 }
 0x4fd   : > { %1547 = vrot.lane.b32.xlu0 %v1358_v3, %s10106_s22  ;;  %9112 = vrot.lane.b32.xlu1 %v10701_v1, %s10108_s26  ;;  %v9110_v12 = vunpack.i.h.bf16 %v9108_v58  ;;  %v9109_v46 = vunpack.i.l.bf16 %v9108_v58 }
 0x4ff   : > { %v1514_v52 = vpack.c.bf16 %v9110_v12, %v9109_v46 }
 0x500   : > { %v1530_v11 = vpop.permute.xlu1 %1529 }
 0x501   : > { %1579 = vrot.lane.b32.xlu0 %v1512_v10, %s10108_s26  ;;  %9122 = vrot.lane.b32.xlu1 %v10727_v0, %s10108_s26  ;;  %v1591_v38 = vsel %vm658_vm2, %v1188_v30, %v1530_v11 }
 0x504   : > { %v1566_v16 = vpop.permute.xlu1 %1565 }
 0x505   : > { %v1626_v56 = vsel %vm734_vm3, %v1591_v38, %v1566_v16  ;;  %9117 = vrot.lane.b32.xlu0 %v10701_v1, %s10106_s22 }
 0x506   : > { %8485 = vmatprep.mubr.msk.bf16.mxu0 %vm1173_vm5, %v1626_v56  ;;  %v9746_v56 = vld [vmem:[%s13468_s3 + $0x38] sm:$0xff]  }
 0x507   : > { %8509 = vmatprep.subr.bf16.mxu1 %v9746_v56 }
 0x508   : > { %v1534_v34 = vpop.permute.xlu1 %1533  ;;  %8510 = vmatpush3.bf16.msra.mxu1 %v9746_v56 }
 0x509   : > { %1583 = vrot.lane.b32.xlu0 %v1514_v52, %s10108_s26  ;;  %v1597_v30 = vsel %vm658_vm2, %v1190_v33, %v1534_v34  ;;  %8511 = vmatprep.subr.bf16.mxu1 %v9747_v5 }
 0x50c   : > { %v1538_v63 = vpop.permute.xlu1 %1537  ;;  %8512 = vmatpush3.bf16.msra.mxu1 %v9747_v5 }
 0x50d   : > { %9127 = vrot.lane.b32.xlu0 %v10727_v0, %s10106_s22  ;;  %v1603_v32 = vsel %vm658_vm2, %v1192_v27, %v1538_v63 }
 0x54f   : > { %v1568_v1 = vpop.permute.xlu0 %1567  ;;  %v1570_v2 = vpop.permute.xlu1 %1569 }
 0x550   : > { %v1628_v51 = vsel %vm734_vm3, %v1594_v45, %v1568_v1  ;;  %v1630_v0 = vsel %vm734_vm3, %v1597_v30, %v1570_v2  ;;  %v10887_v1 = vld [vmem:[%s13472_s7] ss:$0 sm:$0xff] }
 0x551   : > { %8486 = vmatmul.mubr.msk.bf16.vlgmr.msra.gmra.mxu0 %vm1173_vm5, %v1628_v51 }
 0x552   : > { %8489 = vmatprep.mubr.msk.bf16.mxu0 %vm1173_vm5, %v1630_v0  ;;  %v9748_v0 = vld [vmem:[%s13468_s3 + $0x28] sm:$0xff]  }
 0x553   : > { %v1540_v60 = vpop.permute.xlu0 %1539  ;;  %v1574_v8 = vpop.permute.xlu1 %1573  ;;  %8513 = vmatprep.subr.bf16.mxu1 %v9748_v0 }
 0x554   : > { %v1634_v48 = vsel %vm734_vm3, %v1603_v32, %v1574_v8  ;;  %v1606_v44 = vsel %vm658_vm2, %v1193_v24, %v1540_v60  ;;  %8514 = vmatpush3.bf16.msra.mxu1 %v9748_v0 }
 0x557   : > { %v1542_v33 = vpop.permute.xlu1 %1541 }
 0x558   : > { %v1609_v21 = vsel %vm658_vm2, %v1194_v61, %v1542_v33  ;;  %v10075_v33 = vld [vmem:[%s10207_s19 + $0x30] sm:$0xff] }
 0x55b   : > { %v1572_v14 = vpop.permute.xlu0 %1571  ;;  %v1546_v26 = vpop.permute.xlu1 %1545 }
 0x55c   : > { %v1632_v20 = vsel %vm734_vm3, %v1600_v13, %v1572_v14  ;;  %v1615_v28 = vsel %vm658_vm2, %v1196_v6, %v1546_v26  ;;  %v10074_v13 = vld [vmem:[%s10207_s19 + $0x40] sm:$0xff] }
 0x55d   : > { %8490 = vmatmul.mubr.msk.bf16.gmra.mxu0 %vm1173_vm5, %v1632_v20  ;;  %v10903_v26 = vld [vmem:[%s13473_s8] ss:$0 sm:$0xff] }
 0x55e   : > { %8493 = vmatprep.mubr.msk.bf16.mxu0 %vm1173_vm5, %v1634_v48  ;;  %v9749_v48 = vld [vmem:[%s13468_s3 + $0x20] sm:$0xff]  }
 0x55f   : > { %v1544_v25 = vpop.permute.xlu0 %1543  ;;  %8515 = vmatprep.subr.bf16.mxu1 %v9749_v48 }
 0x560   : > { %v1612_v22 = vsel %vm658_vm2, %v1195_v54, %v1544_v25  ;;  %8516 = vmatpush3.bf16.msra.mxu1 %v9749_v48  ;;  %v10083_v48 = vld [vmem:[%s10207_s19 + $0x70] sm:$0xff] }
 0x563   : > { %v1576_v49 = vpop.permute.xlu0 %1575 }
 0x564   : > { %v1636_v42 = vsel %vm734_vm3, %v1606_v44, %v1576_v49  ;;  %v10076_v49 = vld [vmem:[%s10207_s19 + $0x48] sm:$0xff] }
 0x565   : > { %8494 = vmatmul.mubr.msk.bf16.gmra.mxu0 %vm1173_vm5, %v1636_v42 }
 0x567   : > { %v1578_v27 = vpop.permute.xlu1 %1577 }
 0x568   : > { %v1638_v15 = vsel %vm734_vm3, %v1609_v21, %v1578_v27 }
 0x569   : > { %8497 = vmatprep.mubr.msk.bf16.mxu0 %vm1173_vm5, %v1638_v15 }
 0x56b   : > { %v1582_v19 = vpop.permute.xlu1 %1581 }
 0x56c   : > { %v1642_v58 = vsel %vm734_vm3, %v1615_v28, %v1582_v19  ;;  %v10078_v28 = vld [vmem:[%s10207_s19 + $0x60] sm:$0xff] }
 0x56f   : > { %v1548_v39 = vpop.permute.xlu0 %1547  ;;  %v9113_v40 = vpop.permute.xlu1 %9112 }
 0x570   : > { %v9115_v24 = vunpack.i.h.bf16 %v9113_v40  ;;  %v9114_v17 = vunpack.i.l.bf16 %v9113_v40  ;;  %v1618_v41 = vsel %vm658_vm2, %v1197_v59, %v1548_v39  ;;  %v10077_v39 = vld [vmem:[%s10207_s19 + $0x38] sm:$0xff] }
 0x572   : > { %v1359_v43 = vpack.c.bf16 %v9115_v24, %v9114_v17  ;;  %v10914_v17 = vld [vmem:[%s13474_s9] ss:$0 sm:$0xff] }
 0x573   : > { %v1580_v29 = vpop.permute.xlu0 %1579  ;;  %v9123_v36 = vpop.permute.xlu1 %9122 }
 0x574   : > { %v1640_v61 = vsel %vm734_vm3, %v1612_v22, %v1580_v29  ;;  %v9125_v23 = vunpack.i.h.bf16 %v9123_v36  ;;  %v9124_v3 = vunpack.i.l.bf16 %v9123_v36  ;;  %1549 = vrot.lane.b32.xlu1 %v1359_v43, %s10106_s22 }
 0x575   : > { %8498 = vmatmul.mubr.msk.bf16.gmra.mxu0 %vm1173_vm5, %v1640_v61 }
 0x576   : > { %v1515_v18 = vpack.c.bf16 %v9125_v23, %v9124_v3  ;;  %8501 = vmatprep.mubr.msk.bf16.mxu0 %vm1173_vm5, %v1642_v58 }
 0x577   : > { %v9118_v57 = vpop.permute.xlu0 %9117 }
 0x578   : > { %v9120_v54 = vunpack.i.h.bf16 %v9118_v57  ;;  %v9119_v10 = vunpack.i.l.bf16 %v9118_v57  ;;  %1585 = vrot.lane.b32.xlu1 %v1515_v18, %s10108_s26  ;;  %v10079_v57 = vld [vmem:[%s10207_s19 + $0x50] sm:$0xff] }
 0x57a   : > { %v1360_v9 = vpack.c.bf16 %v9120_v54, %v9119_v10 }
 0x57b   : > { %v1584_v6 = vpop.permute.xlu0 %1583 }
 0x57c   : > { %v1644_v11 = vsel %vm734_vm3, %v1618_v41, %v1584_v6  ;;  %1551 = vrot.lane.b32.xlu0 %v1360_v9, %s10106_s22 }
 0x57d   : > { %8502 = vmatmul.mubr.msk.bf16.gmra.mxu0 %vm1173_vm5, %v1644_v11 }
 0x57f   : > { %v9128_v12 = vpop.permute.xlu0 %9127 }
 0x580   : > { %v9130_v46 = vunpack.i.h.bf16 %v9128_v12  ;;  %v9129_v38 = vunpack.i.l.bf16 %v9128_v12  ;;  %v10080_v12 = vld [vmem:[%s10207_s19 + $0x68] sm:$0xff] }
 0x582   : > { %v1516_v16 = vpack.c.bf16 %v9130_v46, %v9129_v38 }
 0x584   : > { %1587 = vrot.lane.b32.xlu0 %v1516_v16, %s10108_s26 }
 0x5e6   : > { %v1550_v7 = vpop.permute.xlu1 %1549 }
 0x5e7   : > { %v1621_v59 = vsel %vm658_vm2, %v1198_v31, %v1550_v7  ;;  %v10081_v7 = vld [vmem:[%s10207_s19 + $0x58] sm:$0xff] }
 0x5ea   : > { %v1586_v52 = vpop.permute.xlu1 %1585 }
 0x5eb   : > { %v1646_v50 = vsel %vm734_vm3, %v1621_v59, %v1586_v52 }
 0x5ec   : > { %8505 = vmatprep.mubr.msk.bf16.mxu0 %vm1173_vm5, %v1646_v50 }
 0x5ee   : > { %v1552_v34 = vpop.permute.xlu0 %1551 }
 0x5ef   : > { %v1624_v4 = vsel %vm658_vm2, %v10621_v35, %v1552_v34 }
 0x5f6   : > { %v1588_v63 = vpop.permute.xlu0 %1587 }
 0x5f7   : > { %v1648_v45 = vsel %vm734_vm3, %v1624_v4, %v1588_v63 }
 0x5f8   : > { %8506 = vmatmul.mubr.msk.bf16.gmra.mxu0 %vm1173_vm5, %v1648_v45 }
 0x5f9   : > { %2648 = vmatprep.mubr.bf16.mxu0 %v13480_v62 }
 0x611   : > { %v10876_v53 = vpop.f32.mrf.mxu0 }
 0x613   : > { %v10878_v55 = vpop.f32.mrf.mxu0 }
 0x615   : > { %v10880_v31 = vpop.f32.mrf.mxu0 }
 0x617   : > { %v10882_v30 = vpop.f32.mrf.mxu0 }
 0x61d   : > { %v8491_v2 = vpop.f32.mrf.mxu0 }
 0x61e   : > { %v1787_v51 = vadd.f32 %v8491_v2, %v10887_v1 }
 0x61f   : > { %v1778_v60 = vpop.f32.mrf.mxu0 }
 0x620   : > { %v1779_v8 = vadd.f32 %v10887_v1, %v1778_v60  ;;  %v1863_v14 = vadd.f32 %v10074_v13, %v1787_v51  ;;  %v10082_v13 = vld [vmem:[%s10207_s19 + $0x80] sm:$0xff] }
 0x621   : > { %v8492_v32 = vpop.f32.mrf.mxu0 }
 0x622   : > { %v1790_v20 = vadd.f32 %v8492_v32, %v10887_v1  ;;  %v1861_v25 = vadd.f32 %v10075_v33, %v1779_v8  ;;  %v1894_v27 = vmul.f32 %v10903_v26, %v1863_v14 }
 0x623   : > { %v1781_v44 = vpop.f32.mrf.mxu0 }
 0x624   : > { %v1864_v42 = vadd.f32 %v10076_v49, %v1790_v20  ;;  %v1782_v21 = vadd.f32 %v10887_v1, %v1781_v44  ;;  %v1892_v43 = vmul.f32 %v10903_v26, %v1861_v25  ;;  %v10924_v3 = vadd.f32 %v10914_v17, %v1894_v27  ;;  %v10084_v44 = vld [vmem:[%s10207_s19 + $0x88] sm:$0xff] }
 0x625   : > { %v8495_v15 = vpop.f32.mrf.mxu0 }
 0x626   : > { %v1895_v19 = vmul.f32 %v10903_v26, %v1864_v42  ;;  %v1862_v40 = vadd.f32 %v10077_v39, %v1782_v21  ;;  %v1803_v24 = vadd.f32 %v8495_v15, %v10887_v1  ;;  %v10932_v9 = vadd.f32 %v10914_v17, %v1892_v43 }
 0x627   : > { %v1794_v22 = vpop.f32.mrf.mxu0 }
 0x628   : > { %v10918_v29 = vadd.f32 %v10914_v17, %v1895_v19  ;;  %v1893_v36 = vmul.f32 %v10903_v26, %v1862_v40  ;;  %v1867_v61 = vadd.f32 %v10078_v28, %v1803_v24  ;;  %v1795_v23 = vadd.f32 %v10887_v1, %v1794_v22  ;;  %v10085_v19 = vld [vmem:[%s10207_s19 + $0x78] sm:$0xff]  ;;  %v10086_v28 = vld [vmem:[%s10207_s19 + $0xa0] sm:$0xff] }
 0x629   : > { %v8496_v58 = vpop.f32.mrf.mxu0 }
 0x62a   : > { %v10927_v18 = vadd.f32 %v10914_v17, %v1893_v36  ;;  %v1865_v54 = vadd.f32 %v10079_v57, %v1795_v23  ;;  %v1806_v10 = vadd.f32 %v8496_v58, %v10887_v1  ;;  %v9136_v6 = vpack.i.bf16 %v10918_v29, %v10924_v3 }
 0x62b   : > { %v1797_v41 = vpop.f32.mrf.mxu0  ;;  %v1898_v11 = vmul.f32 %v10903_v26, %v1867_v61 }
 0x62c   : > { %13482 = vst [vmem:[#allocation2_spill] sm:$0xff] %v10927_v18  ;;  %v1868_v46 = vadd.f32 %v10080_v12, %v1806_v10  ;;  %v1798_v38 = vadd.f32 %v10887_v1, %v1797_v41  ;;  %9137 = vrot.lane.b32.xlu0 %v9136_v6, %s10106_s22  ;;  %v9131_v16 = vpack.i.bf16 %v10927_v18, %v10932_v9  ;;  %v10087_v10 = vld [vmem:[%s10207_s19 + $0x90] sm:$0xff] }
 0x62d   : > { %v1896_v56 = vmul.f32 %v10903_v26, %v1865_v54  ;;  %v10947_v52 = vadd.f32 %v10914_v17, %v1898_v11 }
 0x62e   : > { %v1899_v5 = vmul.f32 %v10903_v26, %v1868_v46  ;;  %v1866_v59 = vadd.f32 %v10081_v7, %v1798_v38  ;;  %9132 = vrot.lane.b32.xlu1 %v9131_v16, %s10106_s22  ;;  %v10088_v16 = vld [vmem:[%s10207_s19 + $0xa8] sm:$0xff] }
 0x62f   : > { %v10954_v4 = vadd.f32 %v10914_v17, %v1896_v56 }
 0x630   : > { %v10950_v50 = vadd.f32 %v10914_v17, %v1899_v5  ;;  %v1897_v34 = vmul.f32 %v10903_v26, %v1866_v59 }
 0x632   : > { %v10957_v63 = vadd.f32 %v10914_v17, %v1897_v34  ;;  %v9146_v45 = vpack.i.bf16 %v10950_v50, %v10947_v52 }
 0x634   : > { %9147 = vrot.lane.b32.xlu0 %v9146_v45, %s10106_s22  ;;  %v9141_v2 = vpack.i.bf16 %v10957_v63, %v10954_v4  ;;  %v10089_v45 = vld [vmem:[%s10207_s19 + $0x98] sm:$0xff] }
 0x635   : > { %v8499_v51 = vpop.f32.mrf.mxu0 }
 0x636   : > { %v1819_v0 = vadd.f32 %v8499_v51, %v10887_v1  ;;  %9142 = vrot.lane.b32.xlu1 %v9141_v2, %s10106_s22 }
 0x637   : > { %v1810_v60 = vpop.f32.mrf.mxu0 }
 0x638   : > { %v1811_v8 = vadd.f32 %v10887_v1, %v1810_v60  ;;  %v1871_v14 = vadd.f32 %v10082_v13, %v1819_v0 }
 0x639   : > { %v8500_v32 = vpop.f32.mrf.mxu0 }
 0x63a   : > { %v1822_v20 = vadd.f32 %v8500_v32, %v10887_v1  ;;  %v1869_v33 = vadd.f32 %v10083_v48, %v1811_v8  ;;  %v1902_v21 = vmul.f32 %v10903_v26, %v1871_v14  ;;  %v1774_v48 = vadd.f32 %v10880_v31, %v10887_v1 }
 0x63b   : > { %v1813_v25 = vpop.f32.mrf.mxu0 }
 0x63c   : > { %v1872_v49 = vadd.f32 %v10084_v44, %v1822_v20  ;;  %v1814_v42 = vadd.f32 %v10887_v1, %v1813_v25  ;;  %v1900_v24 = vmul.f32 %v10903_v26, %v1869_v33  ;;  %v10984_v58 = vadd.f32 %v10914_v17, %v1902_v21  ;;  %v10090_v44 = vld [vmem:[%s10207_s19 + $0x20] sm:$0xff] }
 0x63d   : > { %v8503_v27 = vpop.f32.mrf.mxu0  ;;  %v1771_v20 = vadd.f32 %v10876_v53, %v10887_v1  ;;  %v1763_v33 = vadd.f32 %v10887_v1, %v10878_v55  ;;  %v1766_v25 = vadd.f32 %v10887_v1, %v10882_v30 }
 0x63e   : > { %v1903_v15 = vmul.f32 %v10903_v26, %v1872_v49  ;;  %v1870_v39 = vadd.f32 %v10085_v19, %v1814_v42  ;;  %v1835_v40 = vadd.f32 %v8503_v27, %v10887_v1  ;;  %v10992_v11 = vadd.f32 %v10914_v17, %v1900_v24  ;;  %v10091_v42 = vld [vmem:[%s10207_s19 + $0x28] sm:$0xff]  ;;  %v10092_v27 = vld [vmem:[%s10207_s19 + $0x10] sm:$0xff]  ;;  %v10093_v19 = vld [vmem:[%s10207_s19 + $0x18] sm:$0xff] }
 0x63f   : > { %v1826_v43 = vpop.f32.mrf.mxu0  ;;  %v1859_v49 = vadd.f32 %v10090_v44, %v1771_v20  ;;  %v1860_v21 = vadd.f32 %v10091_v42, %v1774_v48 }
 0x640   : > { %v10978_v22 = vadd.f32 %v10914_v17, %v1903_v15  ;;  %v1901_v36 = vmul.f32 %v10903_v26, %v1870_v39  ;;  %v1875_v61 = vadd.f32 %v10086_v28, %v1835_v40  ;;  %v1827_v23 = vadd.f32 %v10887_v1, %v1826_v43 }
 0x641   : > { %v8504_v57 = vpop.f32.mrf.mxu0  ;;  %v1857_v15 = vadd.f32 %v10092_v27, %v1763_v33  ;;  %v1858_v39 = vadd.f32 %v10093_v19, %v1766_v25  ;;  %v1890_v40 = vmul.f32 %v10903_v26, %v1859_v49  ;;  %v1891_v53 = vmul.f32 %v10903_v26, %v1860_v21 }
 0x642   : > { %v10987_v54 = vadd.f32 %v10914_v17, %v1901_v36  ;;  %v1873_v41 = vadd.f32 %v10087_v10, %v1827_v23  ;;  %v1838_v6 = vadd.f32 %v8504_v57, %v10887_v1  ;;  %v9156_v46 = vpack.i.bf16 %v10978_v22, %v10984_v58 }
 0x643   : > { %v1829_v12 = vpop.f32.mrf.mxu0  ;;  %v1906_v38 = vmul.f32 %v10903_v26, %v1875_v61  ;;  %v1888_v31 = vmul.f32 %v10903_v26, %v1857_v15  ;;  %v1889_v24 = vmul.f32 %v10903_v26, %v1858_v39  ;;  %v1921_v43 = vadd.f32 %v10914_v17, %v1890_v40 }
 0x644   : > { %v1876_v56 = vadd.f32 %v10088_v16, %v1838_v6  ;;  %v1830_v5 = vadd.f32 %v10887_v1, %v1829_v12  ;;  %9157 = vrot.lane.b32.xlu0 %v9156_v46, %s10106_s22  ;;  %v9151_v7 = vpack.i.bf16 %v10987_v54, %v10992_v11  ;;  %v1904_v59 = vmul.f32 %v10903_v26, %v1873_v41 }
 0x645   : > { %v11007_v51 = vadd.f32 %v10914_v17, %v1906_v38  ;;  %v1922_v30 = vadd.f32 %v10914_v17, %v1891_v53  ;;  %v1919_v61 = vadd.f32 %v10914_v17, %v1888_v31  ;;  %v1920_v23 = vadd.f32 %v10914_v17, %v1889_v24  ;;  %v10094_v31 = vld [vmem:[%s10207_s19 + $0xc0] sm:$0xff] }
 0x646   : > { %v1907_v34 = vmul.f32 %v10903_v26, %v1876_v56  ;;  %v1874_v2 = vadd.f32 %v10089_v45, %v1830_v5  ;;  %9152 = vrot.lane.b32.xlu1 %v9151_v7, %s10106_s22  ;;  %v11014_v8 = vadd.f32 %v10914_v17, %v1904_v59 }
 0x648   : > { %v11010_v0 = vadd.f32 %v10914_v17, %v1907_v34  ;;  %v1905_v60 = vmul.f32 %v10903_v26, %v1874_v2 }
 0x64a   : > { %v11017_v13 = vadd.f32 %v10914_v17, %v1905_v60  ;;  %v9166_v14 = vpack.i.bf16 %v11010_v0, %v11007_v51 }
 0x64c   : > { %9167 = vrot.lane.b32.xlu0 %v9166_v14, %s10106_s22  ;;  %v9161_v32 = vpack.i.bf16 %v11017_v13, %v11014_v8 }
 0x64e   : > { %9162 = vrot.lane.b32.xlu1 %v9161_v32, %s10106_s22 }
 0x69e   : > { %v9138_v55 = vpop.permute.xlu0 %9137 }
 0x69f   : > { %v9140_v36 = vunpack.i.h.bf16 %v9138_v55  ;;  %v9139_v28 = vunpack.i.l.bf16 %v9138_v55 }
 0x6a0   : > { %v9133_v57 = vpop.permute.xlu1 %9132 }
 0x6a1   : > { %v2026_v10 = vsel %vm658_vm2, %v1922_v30, %v9140_v36  ;;  %v2025_v41 = vsel %vm658_vm2, %v1921_v43, %v9139_v28  ;;  %v9135_v6 = vunpack.i.h.bf16 %v9133_v57  ;;  %v9134_v12 = vunpack.i.l.bf16 %v9133_v57 }
 0x6a2   : > { %v2044_v46 = vpack.c.bf16 %v2026_v10, %v2025_v41 }
 0x6a3   : > { %v2023_v38 = vsel %vm658_vm2, %v1919_v61, %v9134_v12  ;;  %v2024_v16 = vsel %vm658_vm2, %v1920_v23, %v9135_v6  ;;  %v10095_v23 = vld [vmem:[%s10207_s19 + $0xb0] sm:$0xff] }
 0x6a4   : > { %v2043_v56 = vpack.c.bf16 %v2024_v16, %v2023_v38 }
 0x6a6   : > { %v9148_v5 = vpop.permute.xlu0 %9147  ;;  %8517 = vmatprep.mubr.msk.bf16.mxu1 %vm734_vm3, %v2043_v56 }
 0x6a7   : > { %v9150_v7 = vunpack.i.h.bf16 %v9148_v5  ;;  %v9149_v59 = vunpack.i.l.bf16 %v9148_v5  ;;  %8518 = vmatmul.mubr.msk.bf16.vlgmr.msra.gmra.mxu1 %vm734_vm3, %v2044_v46  ;;  %v10096_v46 = vld [vmem:[%s10207_s19 + $0xc8] sm:$0xff] }
 0x6a8   : > { %v9143_v34 = vpop.permute.xlu1 %9142 }
 0x6a9   : > { %v9145_v45 = vunpack.i.h.bf16 %v9143_v34  ;;  %v9144_v2 = vunpack.i.l.bf16 %v9143_v34  ;;  %v2030_v60 = vsel %vm658_vm2, %v10918_v29, %v9150_v7  ;;  %v2029_v14 = vsel %vm658_vm2, %v10924_v3, %v9149_v59 }
 0x6aa   : > { %v2046_v33 = vpack.c.bf16 %v2030_v60, %v2029_v14 }
 0x6ab   : > { %v2028_v32 = vsel %vm658_vm2, %v10927_v18, %v9145_v45  ;;  %v2027_v20 = vsel %vm658_vm2, %v10932_v9, %v9144_v2  ;;  %v10097_v45 = vld [vmem:[%s10207_s19 + $0xb8] sm:$0xff] }
 0x6ac   : > { %v2045_v48 = vpack.c.bf16 %v2028_v32, %v2027_v20 }
 0x6ae   : > { %8521 = vmatprep.mubr.msk.bf16.mxu1 %vm734_vm3, %v2045_v48 }
 0x6af   : > { %8522 = vmatmul.mubr.msk.bf16.gmra.mxu1 %vm734_vm3, %v2046_v33 }
 0x6b6   : > { %v9158_v25 = vpop.permute.xlu0 %9157 }
 0x6b7   : > { %v9160_v44 = vunpack.i.h.bf16 %v9158_v25  ;;  %v9159_v49 = vunpack.i.l.bf16 %v9158_v25 }
 0x6b8   : > { %v8507_v42 = vpop.f32.mrf.mxu0  ;;  %v9153_v27 = vpop.permute.xlu1 %9152 }
 0x6b9   : > { %v1851_v21 = vadd.f32 %v8507_v42, %v10887_v1  ;;  %v9155_v15 = vunpack.i.h.bf16 %v9153_v27  ;;  %v9154_v19 = vunpack.i.l.bf16 %v9153_v27  ;;  %v2034_v40 = vsel %vm658_vm2, %v10950_v50, %v9160_v44 }
 0x6ba   : > { %v1842_v39 = vpop.f32.mrf.mxu0  ;;  %v2033_v53 = vsel %vm658_vm2, %v10947_v52, %v9159_v49 }
 0x6bb   : > { %v1879_v24 = vadd.f32 %v10094_v31, %v1851_v21  ;;  %v1843_v55 = vadd.f32 %v10887_v1, %v1842_v39  ;;  %v2032_v43 = vsel %vm658_vm2, %v10957_v63, %v9155_v15  ;;  %v2031_v30 = vsel %vm658_vm2, %v10954_v4, %v9154_v19 }
 0x6bc   : > { %v8508_v36 = vpop.f32.mrf.mxu0  ;;  %v2047_v61 = vpack.c.bf16 %v2032_v43, %v2031_v30  ;;  %v2048_v6 = vpack.c.bf16 %v2034_v40, %v2033_v53 }
 0x6bd   : > { %v1854_v28 = vadd.f32 %v8508_v36, %v10887_v1  ;;  %v1877_v57 = vadd.f32 %v10095_v23, %v1843_v55  ;;  %v1910_v12 = vmul.f32 %v10903_v26, %v1879_v24 }
 0x6be   : > { %v9168_v10 = vpop.permute.xlu0 %9167  ;;  %v1845_v41 = vpop.f32.mrf.mxu0  ;;  %8525 = vmatprep.mubr.msk.bf16.mxu1 %vm734_vm3, %v2047_v61  ;;  %v11125_v61 = vld [vmem:[%s13469_s4 + $0x1] ss:$0 sm:$0xff] }
 0x6bf   : > { %v1880_v38 = vadd.f32 %v10096_v46, %v1854_v28  ;;  %v9170_v16 = vunpack.i.h.bf16 %v9168_v10  ;;  %v9169_v56 = vunpack.i.l.bf16 %v9168_v10  ;;  %v1846_v5 = vadd.f32 %v10887_v1, %v1845_v41  ;;  %8526 = vmatmul.mubr.msk.bf16.gmra.mxu1 %vm734_vm3, %v2048_v6 }
 0x6c0   : > { %v9163_v7 = vpop.permute.xlu1 %9162  ;;  %v1908_v34 = vmul.f32 %v10903_v26, %v1877_v57  ;;  %v11087_v48 = vadd.f32 %v10914_v17, %v1910_v12 }
 0x6c1   : > { %v1911_v59 = vmul.f32 %v10903_v26, %v1880_v38  ;;  %v1878_v2 = vadd.f32 %v10097_v45, %v1846_v5  ;;  %v9165_v60 = vunpack.i.h.bf16 %v9163_v7  ;;  %v9164_v14 = vunpack.i.l.bf16 %v9163_v7 }
 0x6c2   : > { %v2038_v32 = vsel %vm658_vm2, %v10978_v22, %v9170_v16  ;;  %v2037_v20 = vsel %vm658_vm2, %v10984_v58, %v9169_v56  ;;  %v11100_v21 = vadd.f32 %v10914_v17, %v1908_v34 }
 0x6c3   : > { %v11090_v1 = vadd.f32 %v10914_v17, %v1911_v59  ;;  %v1909_v33 = vmul.f32 %v10903_v26, %v1878_v2  ;;  %v2036_v25 = vsel %vm658_vm2, %v10987_v54, %v9165_v60  ;;  %v2035_v44 = vsel %vm658_vm2, %v10992_v11, %v9164_v14 }
 0x6c4   : > { %v2049_v49 = vpack.c.bf16 %v2036_v25, %v2035_v44  ;;  %v2050_v15 = vpack.c.bf16 %v2038_v32, %v2037_v20 }
 0x6c5   : > { %v9176_v42 = vpack.i.bf16 %v11090_v1, %v11087_v48  ;;  %v11103_v27 = vadd.f32 %v10914_v17, %v1909_v33 }
 0x6c6   : > { %8529 = vmatprep.mubr.msk.bf16.mxu1 %vm734_vm3, %v2049_v49 }
 0x6c7   : > { %9177 = vrot.lane.b32.xlu0 %v9176_v42, %s10106_s22  ;;  %8530 = vmatmul.mubr.msk.bf16.gmra.mxu1 %vm734_vm3, %v2050_v15  ;;  %v9171_v26 = vpack.i.bf16 %v11103_v27, %v11100_v21 }
 0x6c9   : > { %9172 = vrot.lane.b32.xlu1 %v9171_v26, %s10106_s22 }
 0x739   : > { %v9178_v19 = vpop.permute.xlu0 %9177 }
 0x73a   : > { %v9180_v39 = vunpack.i.h.bf16 %v9178_v19  ;;  %v9179_v40 = vunpack.i.l.bf16 %v9178_v19 }
 0x73b   : > { %v9173_v53 = vpop.permute.xlu1 %9172 }
 0x73c   : > { %v9175_v31 = vunpack.i.h.bf16 %v9173_v53  ;;  %v9174_v24 = vunpack.i.l.bf16 %v9173_v53  ;;  %v2042_v17 = vsel %vm658_vm2, %v11010_v0, %v9180_v39  ;;  %v2041_v55 = vsel %vm658_vm2, %v11007_v51, %v9179_v40 }
 0x73d   : > { %v2052_v28 = vpack.c.bf16 %v2042_v17, %v2041_v55 }
 0x73e   : > { %v2040_v43 = vsel %vm658_vm2, %v11017_v13, %v9175_v31  ;;  %v2039_v30 = vsel %vm658_vm2, %v11014_v8, %v9174_v24 }
 0x73f   : > { %v2051_v36 = vpack.c.bf16 %v2040_v43, %v2039_v30 }
 0x741   : > { %8533 = vmatprep.mubr.msk.bf16.mxu1 %vm734_vm3, %v2051_v36 }
 0x742   : > { %8534 = vmatmul.mubr.msk.bf16.gmra.mxu1 %vm734_vm3, %v2052_v28 }
 0x743   : > { %2458 = vmatprep.mubr.bf16.mxu1 %v13480_v62 }
 0x767   : > { %v8519_v23 = vpop.f32.mrf.mxu1 }
 0x768   : > { %v2167_v57 = vadd.f32 %v8519_v23, %v11125_v61 }
 0x769   : > { %v2158_v10 = vpop.f32.mrf.mxu1 }
 0x76a   : > { %9914 = vtanh.f32 %v2167_v57 }
 0x76b   : > { %v8520_v41 = vpop.f32.mrf.mxu1 }
 0x76c   : > { %v2170_v6 = vadd.f32 %v8520_v41, %v11125_v61 }
 0x76d   : > { %v2161_v12 = vpop.f32.mrf.mxu1 }
 0x76e   : > { %9916 = vtanh.f32 %v2170_v6 }
 0x76f   : > { %v8523_v46 = vpop.f32.mrf.mxu1 }
 0x770   : > { %v2183_v24 = vadd.f32 %v8523_v46, %v11125_v61  ;;  %v2159_v46 = vadd.f32 %v11125_v61, %v2158_v10 }
 0x771   : > { %v2174_v38 = vpop.f32.mrf.mxu1 }
 0x772   : > { %v2175_v16 = vadd.f32 %v11125_v61, %v2174_v38 }
 0x773   : > { %v8524_v56 = vpop.f32.mrf.mxu1 }
 0x774   : > { %9918 = vtanh.f32 %v2175_v16  ;;  %v2186_v36 = vadd.f32 %v8524_v56, %v11125_v61 }
 0x775   : > { %v2177_v5 = vpop.f32.mrf.mxu1 }
 0x776   : > { %v2178_v7 = vadd.f32 %v11125_v61, %v2177_v5 }
 0x777   : > { %v11131_v59 = vpop.eup %9914 }
 0x778   : > { %9920 = vtanh.f32 %v2178_v7  ;;  %v2259_v34 = vmul.f32 0.5, %v11131_v59  ;;  %v2162_v7 = vadd.f32 %v11125_v61, %v2161_v12 }
 0x77a   : > { %v2279_v45 = vadd.f32 0.5, %v2259_v34 }
 0x77b   : > { %v11134_v2 = vpop.eup %9916 }
 0x77c   : > { %2321 = vrot.lane.b32.xlu1 %v2279_v45, %s10107_s25  ;;  %v2260_v60 = vmul.f32 0.5, %v11134_v2 }
 0x77e   : > { %v2280_v14 = vadd.f32 0.5, %v2260_v60 }
 0x77f   : > { %v8527_v32 = vpop.f32.mrf.mxu1 }
 0x780   : > { %v2199_v20 = vadd.f32 %v8527_v32, %v11125_v61  ;;  %2323 = vrot.lane.b32.xlu0 %v2280_v14, %s10107_s25 }
 0x781   : > { %v11140_v33 = vpop.eup %9918  ;;  %v2190_v25 = vpop.f32.mrf.mxu1 }
 0x782   : > { %9922 = vtanh.f32 %v2199_v20  ;;  %v2261_v44 = vmul.f32 0.5, %v11140_v33  ;;  %v2191_v23 = vadd.f32 %v11125_v61, %v2190_v25 }
 0x783   : > { %v8528_v49 = vpop.f32.mrf.mxu1 }
 0x784   : > { %v2202_v42 = vadd.f32 %v8528_v49, %v11125_v61  ;;  %v2281_v15 = vadd.f32 0.5, %v2261_v44 }
 0x785   : > { %v11144_v26 = vpop.eup %9920  ;;  %v2193_v19 = vpop.f32.mrf.mxu1 }
 0x786   : > { %9924 = vtanh.f32 %v2202_v42  ;;  %2325 = vrot.lane.b32.xlu1 %v2281_v15, %s10107_s25  ;;  %v2262_v39 = vmul.f32 0.5, %v11144_v26  ;;  %v2194_v38 = vadd.f32 %v11125_v61, %v2193_v19 }
 0x787   : > { %v8531_v40 = vpop.f32.mrf.mxu1 }
 0x788   : > { %v2215_v53 = vadd.f32 %v8531_v40, %v11125_v61  ;;  %v2282_v31 = vadd.f32 0.5, %v2262_v39 }
 0x789   : > { %v2206_v17 = vpop.f32.mrf.mxu1 }
 0x78a   : > { %9926 = vtanh.f32 %v2215_v53  ;;  %v2207_v55 = vadd.f32 %v11125_v61, %v2206_v17  ;;  %2327 = vrot.lane.b32.xlu0 %v2282_v31, %s10107_s25 }
 0x78b   : > { %v8532_v43 = vpop.f32.mrf.mxu1 }
 0x78c   : > { %9928 = vtanh.f32 %v2207_v55  ;;  %v2218_v30 = vadd.f32 %v8532_v43, %v11125_v61 }
 0x78d   : > { %9930 = vtanh.f32 %v2183_v24  ;;  %v2209_v28 = vpop.f32.mrf.mxu1 }
 0x78e   : > { %9932 = vtanh.f32 %v2218_v30  ;;  %v2210_v57 = vadd.f32 %v11125_v61, %v2209_v28 }
 0x78f   : > { %v11156_v41 = vpop.eup %9922 }
 0x790   : > { %9934 = vtanh.f32 %v2210_v57  ;;  %v2267_v6 = vmul.f32 0.5, %v11156_v41 }
 0x791   : > { %9936 = vtanh.f32 %v2186_v36 }
 0x792   : > { %9938 = vtanh.f32 %v2191_v23  ;;  %v2287_v16 = vadd.f32 0.5, %v2267_v6 }
 0x793   : > { %v11161_v5 = vpop.eup %9924  ;;  %9940 = vtanh.f32 %v2159_v46 }
 0x794   : > { %2337 = vrot.lane.b32.xlu1 %v2287_v16, %s10107_s25  ;;  %v2268_v56 = vmul.f32 0.5, %v11161_v5  ;;  %9942 = vtanh.f32 %v2194_v38 }
 0x795   : > { %9944 = vtanh.f32 %v2162_v7 }
 0x796   : > { %v2288_v34 = vadd.f32 0.5, %v2268_v56 }
 0x797   : > { %v11166_v45 = vpop.eup %9926 }
 0x798   : > { %2339 = vrot.lane.b32.xlu0 %v2288_v34, %s10107_s25  ;;  %v2271_v10 = vmul.f32 0.5, %v11166_v45 }
 0x799   : > { %v11170_v60 = vpop.eup %9928 }
 0x79a   : > { %v11172_v14 = vpop.eup %9930  ;;  %v2291_v32 = vadd.f32 0.5, %v2271_v10  ;;  %v2269_v20 = vmul.f32 0.5, %v11170_v60 }
 0x79b   : > { %v11175_v25 = vpop.eup %9932  ;;  %v2263_v39 = vmul.f32 0.5, %v11172_v14 }
 0x79c   : > { %2345 = vrot.lane.b32.xlu1 %v2291_v32, %s10107_s25  ;;  %v2272_v12 = vmul.f32 0.5, %v11175_v25  ;;  %v2289_v15 = vadd.f32 0.5, %v2269_v20 }
 0x79d   : > { %v11179_v44 = vpop.eup %9934  ;;  %v2283_v24 = vadd.f32 0.5, %v2263_v39 }
 0x79e   : > { %v11181_v49 = vpop.eup %9936  ;;  %v2292_v42 = vadd.f32 0.5, %v2272_v12  ;;  %v2270_v19 = vmul.f32 0.5, %v11179_v44 }
 0x79f   : > { %v11185_v40 = vpop.eup %9938  ;;  %v2264_v17 = vmul.f32 0.5, %v11181_v49 }
 0x7a0   : > { %2347 = vrot.lane.b32.xlu0 %v2292_v42, %s10107_s25  ;;  %2341 = vrot.lane.b32.xlu1 %v2289_v15, %s10107_s25  ;;  %v11189_v53 = vpop.eup %9940  ;;  %v2290_v31 = vadd.f32 0.5, %v2270_v19  ;;  %v2265_v55 = vmul.f32 0.5, %v11185_v40 }
 0x7a1   : > { %v11193_v43 = vpop.eup %9942  ;;  %v2284_v30 = vadd.f32 0.5, %v2264_v17  ;;  %v2257_v23 = vmul.f32 0.5, %v11189_v53 }
 0x7a2   : > { %v2285_v36 = vadd.f32 0.5, %v2265_v55  ;;  %v2266_v28 = vmul.f32 0.5, %v11193_v43  ;;  %v11199_v57 = vpop.eup %9944 }
 0x7a3   : > { %v2277_v46 = vadd.f32 0.5, %v2257_v23  ;;  %v2258_v38 = vmul.f32 0.5, %v11199_v57  ;;  %v9755_v23 = vld [vmem:[%s13470_s5 + $0x24] ss:$8 sps:$4 sm:$0xff]  }
 0x7a4   : > { %2343 = vrot.lane.b32.xlu0 %v2290_v31, %s10107_s25  ;;  %2329 = vrot.lane.b32.xlu1 %v2283_v24, %s10107_s25  ;;  %v2286_v6 = vadd.f32 0.5, %v2266_v28 }
 0x7a5   : > { %v2278_v16 = vadd.f32 0.5, %v2258_v38  ;;  %v9753_v38 = vld [vmem:[%s13470_s5 + $0x20] ss:$8 sps:$4 sm:$0xff]  }
 0x7a8   : > { %2331 = vrot.lane.b32.xlu0 %v2284_v30, %s10107_s25  ;;  %2333 = vrot.lane.b32.xlu1 %v2285_v36, %s10107_s25 }
 0x7ac   : > { %2335 = vrot.lane.b32.xlu0 %v2286_v6, %s10107_s25  ;;  %2317 = vrot.lane.b32.xlu1 %v2277_v46, %s10107_s25 }
 0x7b0   : > { %2319 = vrot.lane.b32.xlu0 %v2278_v16, %s10107_s25 }
 0x7ee   : > { %v2322_v56 = vpop.permute.xlu1 %2321 }
 0x7ef   : > { %v11208_v34 = vmul.f32 %v11131_v59, %v2322_v56 }
 0x7f2   : > { %v2324_v7 = vpop.permute.xlu0 %2323 }
 0x7f3   : > { %v11211_v10 = vmul.f32 %v11134_v2, %v2324_v7 }
 0x7f8   : > { %v2326_v20 = vpop.permute.xlu1 %2325 }
 0x7f9   : > { %v11216_v42 = vmul.f32 %v11140_v33, %v2326_v20  ;;  %v9752_v33 = vld [vmem:[%s13470_s5 + $0x34] ss:$8 sps:$4 sm:$0xff]  }
 0x7fa   : > { %2438 = vmatprep.subr.bf16.mxu1 %v9752_v33 }
 0x7fc   : > { %v2328_v12 = vpop.permute.xlu0 %2327 }
 0x7fd   : > { %v11219_v15 = vmul.f32 %v11144_v26, %v2328_v12  ;;  %v9750_v26 = vld [vmem:[%s13470_s5 + $0x30] ss:$8 sps:$4 sm:$0xff]  }
 0x7fe   : > { %2439 = vmatpush1.bf16.msra.mxu1 %v9750_v26 }
 0x7ff   : > { %2440 = vmatprep.subr.bf16.mxu1 %v9755_v23 }
 0x802   : > { %v8535_v39 = vpop.f32.mrf.mxu1  ;;  %2441 = vmatpush1.bf16.msra.mxu1 %v9753_v38 }
 0x803   : > { %v2231_v59 = vadd.f32 %v8535_v39, %v11125_v61 }
 0x804   : > { %v2222_v31 = vpop.f32.mrf.mxu1 }
 0x805   : > { %9946 = vtanh.f32 %v2231_v59 }
 0x806   : > { %v8536_v2 = vpop.f32.mrf.mxu1  ;;  %v2338_v17 = vpop.permute.xlu1 %2337 }
 0x807   : > { %v2234_v24 = vadd.f32 %v8536_v2, %v11125_v61  ;;  %v11232_v36 = vmul.f32 %v11156_v41, %v2338_v17  ;;  %v9758_v41 = vld [vmem:[%s13470_s5 + $0x14] ss:$8 sps:$4 sm:$0xff]  }
 0x808   : > { %v2225_v55 = vpop.f32.mrf.mxu1  ;;  %2503 = vmatprep.subr.bf16.mxu1 %v9758_v41 }
 0x809   : > { %9948 = vtanh.f32 %v2234_v24  ;;  %v2226_v6 = vadd.f32 %v11125_v61, %v2225_v55 }
 0x80a   : > { %v2340_v30 = vpop.permute.xlu0 %2339 }
 0x80b   : > { %v11235_v28 = vmul.f32 %v11161_v5, %v2340_v30  ;;  %v2223_v5 = vadd.f32 %v11125_v61, %v2222_v31  ;;  %9950 = vtanh.f32 %v2226_v6 }
 0x80d   : > { %9952 = vtanh.f32 %v2223_v5  ;;  %v9191_v38 = vpack.i.bf16 %v11235_v28, %v11232_v36 }
 0x80e   : > { %v2346_v16 = vpop.permute.xlu1 %2345 }
 0x80f   : > { %v11251_v12 = vmul.f32 %v11166_v45, %v2346_v16 }
 0x812   : > { %v9947_v56 = vpop.eup %9946  ;;  %v2348_v7 = vpop.permute.xlu0 %2347 }
 0x813   : > { %v2342_v20 = vpop.permute.xlu1 %2341  ;;  %v11254_v39 = vmul.f32 %v11175_v25, %v2348_v7  ;;  %v2275_v59 = vmul.f32 0.5, %v9947_v56  ;;  %v9181_v25 = vpack.i.bf16 %v11211_v10, %v11208_v34 }
 0x814   : > { %v11259_v61 = vmul.f32 %v11170_v60, %v2342_v20 }
 0x815   : > { %v2295_v24 = vadd.f32 0.5, %v2275_v59  ;;  %v9201_v20 = vpack.i.bf16 %v11254_v39, %v11251_v12 }
 0x816   : > { %v9949_v17 = vpop.eup %9948  ;;  %v2344_v33 = vpop.permute.xlu0 %2343 }
 0x817   : > { %v11262_v31 = vmul.f32 %v11179_v44, %v2344_v33  ;;  %2353 = vrot.lane.b32.xlu0 %v2295_v24, %s10107_s25  ;;  %v2276_v45 = vmul.f32 0.5, %v9949_v17  ;;  %v2330_v26 = vpop.permute.xlu1 %2329  ;;  %v9186_v44 = vpack.i.bf16 %v11219_v15, %v11216_v42 }
 0x818   : > { %v11270_v6 = vmul.f32 %v11172_v14, %v2330_v26  ;;  %v11283_v41 = vpop.eup %9950 }
 0x819   : > { %v2296_v30 = vadd.f32 0.5, %v2276_v45  ;;  %v9196_v14 = vpack.i.bf16 %v11262_v31, %v11259_v61  ;;  %v2274_v5 = vmul.f32 0.5, %v11283_v41 }
 0x81a   : > { %v2332_v23 = vpop.permute.xlu0 %2331  ;;  %v11292_v7 = vpop.eup %9952 }
 0x81b   : > { %v11273_v60 = vmul.f32 %v11181_v49, %v2332_v23  ;;  %9182 = vrot.lane.b32.xlu0 %v9181_v25, %s10106_s22  ;;  %2355 = vrot.lane.b32.xlu1 %v2296_v30, %s10107_s25  ;;  %v2294_v59 = vadd.f32 0.5, %v2274_v5  ;;  %v2273_v24 = vmul.f32 0.5, %v11292_v7  ;;  %v2334_v26 = vpop.permute.xlu1 %2333  ;;  %v9756_v5 = vld [vmem:[%s13470_s5 + $0x10] ss:$8 sps:$4 sm:$0xff]  }
 0x81d   : > { %v9206_v49 = vpack.i.bf16 %v11273_v60, %v11270_v6  ;;  %v2293_v33 = vadd.f32 0.5, %v2273_v24 }
 0x81e   : > { %v2336_v45 = vpop.permute.xlu0 %2335 }
 0x81f   : > { %9187 = vrot.lane.b32.xlu0 %v9186_v44, %s10108_s26  ;;  %9192 = vrot.lane.b32.xlu1 %v9191_v38, %s10106_s22  ;;  %v2318_v30 = vpop.permute.xlu1 %2317 }
 0x820   : > { %v11318_v46 = vmul.f32 %v11189_v53, %v2318_v30 }
 0x822   : > { %v2320_v25 = vpop.permute.xlu0 %2319 }
 0x823   : > { %9207 = vrot.lane.b32.xlu0 %v9206_v49, %s10107_s25  ;;  %9197 = vrot.lane.b32.xlu1 %v9196_v14, %s10108_s26 }
 0x827   : > { %2351 = vrot.lane.b32.xlu0 %v2294_v59, %s10107_s25  ;;  %9202 = vrot.lane.b32.xlu1 %v9201_v20, %s10107_s25  ;;  %v9761_v20 = vld [vmem:[%s13470_s5 + $0x4] ss:$8 sps:$4 sm:$0xff]  }
 0x82b   : > { %2349 = vrot.lane.b32.xlu1 %v2293_v33, %s10107_s25 }
 0x889   : > { %v2354_v23 = vpop.permute.xlu0 %2353 }
 0x88a   : > { %v2395_v14 = vmul.f32 %v9947_v56, %v2354_v23  ;;  %v9759_v56 = vld [vmem:[%s13470_s5] ss:$8 sps:$4 sm:$0xff]  }
 0x88d   : > { %v9183_v44 = vpop.permute.xlu0 %9182  ;;  %v2356_v38 = vpop.permute.xlu1 %2355 }
 0x88e   : > { %v2396_v49 = vmul.f32 %v9949_v17, %v2356_v38  ;;  %v9185_v17 = vunpack.i.h.bf16 %v9183_v44  ;;  %v9184_v23 = vunpack.i.l.bf16 %v9183_v44  ;;  %v11324_v44 = vmul.f32 %v11185_v40, %v2334_v26 }
 0x890   : > { %v9211_v2 = vpack.i.bf16 %v2396_v49, %v2395_v14  ;;  %v11305_v59 = vpack.c.bf16 %v2396_v49, %v2395_v14 }
 0x891   : > { %v9188_v24 = vpop.permute.xlu0 %9187  ;;  %v9193_v33 = vpop.permute.xlu1 %9192 }
 0x892   : > { %9212 = vrot.lane.b32.xlu1 %v9211_v2, %s10106_s22  ;;  %7845 = vmatmul.mubr.msk.bf16.vlgmr.msra.gmra.mxu1 %vm658_vm2, %v11305_v59  ;;  %v9190_v38 = vunpack.i.h.bf16 %v9188_v24  ;;  %v9189_v14 = vunpack.i.l.bf16 %v9188_v24  ;;  %v11321_v2 = vmul.f32 %v11199_v57, %v2320_v25  ;;  %v9194_v16 = vunpack.i.l.bf16 %v9193_v33 }
 0x893   : > { %2504 = vmatpush1.bf16.msra.mxu1 %v9756_v5  ;;  %2523 = vmatprep.mubr.bf16.mxu1 %v13480_v62  ;;  %v9195_v5 = vunpack.i.h.bf16 %v9193_v33  ;;  %v2590_v57 = vsel %vm658_vm2, %v11318_v46, %v9184_v23  ;;  %v13483_v25 = vmov 0.0  }
 0x894   : > { %2505 = vmatprep.subr.bf16.mxu1 %v9761_v20  ;;  %v11327_v20 = vmul.f32 %v11193_v43, %v2336_v45  ;;  %v2591_v53 = vsel %vm658_vm2, %v11321_v2, %v9185_v17  ;;  %v2592_v30 = vsel %vm734_vm3, %v2590_v57, %v9189_v14  ;;  %v2596_v43 = vsel %vm658_vm2, %v11324_v44, %v9194_v16 }
 0x895   : > { %v9208_v49 = vpop.permute.xlu0 %9207  ;;  %v9198_v55 = vpop.permute.xlu1 %9197  ;;  %v2593_v24 = vsel %vm734_vm3, %v2591_v53, %v9190_v38 }
 0x896   : > { %v9210_v32 = vunpack.i.h.bf16 %v9208_v49  ;;  %v9209_v19 = vunpack.i.l.bf16 %v9208_v49  ;;  %v9200_v37 = vunpack.i.h.bf16 %v9198_v55  ;;  %v9199_v18 = vunpack.i.l.bf16 %v9198_v55 }
 0x897   : > { %2506 = vmatpush1.bf16.msra.mxu1 %v9759_v56  ;;  %v2597_v40 = vsel %vm658_vm2, %v11327_v20, %v9195_v5 }
 0x898   : > { %8537 = vmatprep.subr.bf16.mxu1 %v13483_v25  ;;  %v2594_v33 = vsel %vm1173_vm5, %v2592_v30, %v9209_v19  ;;  %v2595_v56 = vsel %vm1173_vm5, %v2593_v24, %v9210_v32  ;;  %v2598_v17 = vsel %vm734_vm3, %v2596_v43, %v9199_v18  ;;  %v2599_v23 = vsel %vm734_vm3, %v2597_v40, %v9200_v37 }
 0x899   : > { %v9203_v55 = vpop.permute.xlu1 %9202  ;;  %v2613_v49 = vpack.c.bf16 %v2595_v56, %v2594_v33  ;;  %v2352_v18 = vpop.permute.xlu0 %2351 }
 0x89a   : > { %v9205_v45 = vunpack.i.h.bf16 %v9203_v55  ;;  %v9204_v26 = vunpack.i.l.bf16 %v9203_v55  ;;  %7850 = vmatmul.mubr.msk.bf16.vlgmr.msra.gmra.mxu1 %vm658_vm2, %v10621_v35  ;;  %v11354_v37 = vmul.f32 %v11283_v41, %v2352_v18 }
 0x89b   : > { %8539 = vmatprep.mubr.msk.bf16.mxu1 %vm10111_vm6, %v13483_v25 }
 0x89c   : > { %v2600_v38 = vsel %vm1173_vm5, %v2598_v17, %v9204_v26  ;;  %v2601_v16 = vsel %vm1173_vm5, %v2599_v23, %v9205_v45 }
 0x89d   : > { %v2614_v14 = vpack.c.bf16 %v2601_v16, %v2600_v38  ;;  %v2350_v35 = vpop.permute.xlu1 %2349 }
 0x89e   : > { %v11357_v19 = vmul.f32 %v11292_v7, %v2350_v35 }
 0x89f   : > { %2630 = vmatprep.subr.bf16.mxu0 %v2614_v14 }
 0x8a0   : > { %2631 = vmatpush1.bf16.msra.mxu0 %v2613_v49 }
 0x8a3   : > { %7851 = vmatmul.mubr.msk.bf16.vlgmr.msra.gmra.mxu0 %vm480_vm4, %v10686_v47 }
 0x8a4   : > { %2790 = vmatprep.mubr.bf16.mxu0 %v13480_v62 }
 0x904   : > { %v9213_v32 = vpop.permute.xlu1 %9212 }
 0x905   : > { %v9215_v5 = vunpack.i.h.bf16 %v9213_v32  ;;  %v9214_v53 = vunpack.i.l.bf16 %v9213_v32 }
 0x907   : > { %v2603_v57 = vsel %vm658_vm2, %v11354_v37, %v9215_v5  ;;  %v2602_v30 = vsel %vm658_vm2, %v11357_v19, %v9214_v53 }
 0x908   : > { %v2615_v24 = vpack.c.bf16 %v2603_v57, %v2602_v30 }
 0x90a   : > { %8538 = vmatpush3.bf16.msra.mxu1 %v2615_v24 }
 0x90b   : > { %8543 = vmatprep.subr.bf16.mxu1 %v13483_v25 }
 0x90d   : > { %8540 = vmatmul.mubr.msk.bf16.vlgmr.msra.gmra.mxu1 %vm480_vm4, %v10686_v47 }
 0x90e   : > { %8545 = vmatprep.mubr.msk.bf16.mxu1 %vm10111_vm6, %v13483_v25 }
 0x952   : > { %v2460_v41 = vpop.f32.mrf.mxu1 }
 0x954   : > { %v2462_v7 = vpop.f32.mrf.mxu1 }
 0x956   : > { %v2464_v55 = vpop.f32.mrf.mxu1 }
 0x958   : > { %v11368_v40 = vpop.f32.mrf.mxu1 }
 0x959   : > { %13484 = vst [vmem:[#allocation3_spill] sm:$0xff] %v11368_v40 }
 0x95a   : > { %v2525_v43 = vpop.f32.mrf.mxu1 }
 0x95b   : > { %v11370_v45 = vadd.f32 %v2525_v43, %v2460_v41 }
 0x95c   : > { %v2527_v26 = vpop.f32.mrf.mxu1 }
 0x95d   : > { %13485 = vst [vmem:[#allocation4_spill] sm:$0xff] %v11370_v45  ;;  %v11372_v33 = vadd.f32 %v2527_v26, %v2462_v7 }
 0x95e   : > { %v2529_v56 = vpop.f32.mrf.mxu1 }
 0x95f   : > { %13486 = vst [vmem:[#allocation5_spill] sm:$0xff] %v11372_v33  ;;  %v11374_v17 = vadd.f32 %v2529_v56, %v2464_v55 }
 0x960   : > { %v11383_v32 = vpop.f32.mrf.mxu1 }
 0x961   : > { %13487 = vst [vmem:[#allocation6_spill] sm:$0xff] %v11374_v17  ;;  %13488 = vst [vmem:[#allocation7_spill] sm:$0xff] %v11383_v32 }
 0x963   : > { %v2650_v23 = vpop.f32.mrf.mxu0 }
 0x965   : > { %v2652_v38 = vpop.f32.mrf.mxu0 }
 0x967   : > { %v2654_v16 = vpop.f32.mrf.mxu0 }
 0x968   : > { %v9231_v14 = vpack.i.bf16 %v2654_v16, %v2650_v23  ;;  %v2748_v18 = vpack.c.bf16 %v2654_v16, %v2650_v23 }
 0x969   : > { %v2656_v49 = vpop.f32.mrf.mxu0 }
 0x96a   : > { %9217 = vrot.lane.b32.xlu0 %v9231_v14, %s10107_s25  ;;  %v11377_v35 = vpack.c.bf16 %v2656_v49, %v2652_v38  ;;  %v9246_v56 = vpack.i.bf16 %v2656_v49, %v2652_v38  ;;  %v9763_v49 = vld [vmem:[%s13471_s6 + $0x50] sm:$0xff]  }
 0x96c   : > { %2772 = vmatprep.subr.bf16.mxu0 %v11377_v35 }
 0x96d   : > { %2773 = vmatpush1.bf16.msra.mxu0 %v2748_v18 }
 0x96e   : > { %9222 = vrot.lane.b32.xlu0 %v9231_v14, %s10108_s26 }
 0x970   : > { %7853 = vmatmul.mubr.msk.bf16.vlgmr.msra.gmra.mxu0 %vm480_vm4, %v10686_v47 }
 0x9cd   : > { %v2693_v5 = vpop.f32.mrf.mxu1 }
 0x9cf   : > { %v8541_v53 = vpop.f32.mrf.mxu1 }
 0x9d1   : > { %v2696_v57 = vpop.f32.mrf.mxu1 }
 0x9d2   : > { %v9276_v30 = vpack.i.bf16 %v2696_v57, %v2693_v5  ;;  %v11385_v24 = vpack.c.bf16 %v2696_v57, %v2693_v5 }
 0x9d3   : > { %v8542_v41 = vpop.f32.mrf.mxu1 }
 0x9d4   : > { %8544 = vmatpush3.bf16.msra.mxu1 %v11385_v24 }
 0x9d5   : > { %8581 = vmatprep.subr.bf16.mxu1 %v13483_v25 }
 0x9d7   : > { %8546 = vmatmul.mubr.msk.bf16.vlgmr.msra.gmra.mxu1 %vm480_vm4, %v10686_v47 }
 0x9d8   : > { %8589 = vmatprep.mubr.msk.bf16.mxu1 %vm10111_vm6, %v13483_v25 }
 0x9dc   : > { %v9218_v5 = vpop.permute.xlu0 %9217 }
 0x9e0   : > { %v9223_v38 = vpop.permute.xlu0 %9222 }
 0x9e1   : > { %v9225_v53 = vunpack.i.h.bf16 %v9223_v38  ;;  %v9224_v57 = vunpack.i.l.bf16 %v9223_v38 }
 0xa30   : > { %v2792_v7 = vpop.f32.mrf.mxu0 }
 0xa32   : > { %v11393_v55 = vpop.f32.mrf.mxu0 }
 0xa34   : > { %v2796_v43 = vpop.f32.mrf.mxu0 }
 0xa35   : > { %v9236_v26 = vpack.i.bf16 %v2796_v43, %v2792_v7  ;;  %v2890_v41 = vpack.c.bf16 %v2796_v43, %v2792_v7  ;;  %v9766_v7 = vld [vmem:[%s13471_s6 + $0x38] sm:$0xff]  }
 0xa36   : > { %v11399_v23 = vpop.f32.mrf.mxu0 }
 0xa37   : > { %9237 = vrot.lane.b32.xlu0 %v9236_v26, %s10108_s26  ;;  %9227 = vrot.lane.b32.xlu1 %v9236_v26, %s10107_s25  ;;  %v9266_v16 = vpack.i.bf16 %v11399_v23, %v11393_v55 }
 0xa3b   : > { %9247 = vrot.lane.b32.xlu0 %v9246_v56, %s10107_s25  ;;  %9232 = vrot.lane.b32.xlu1 %v9231_v14, %s10106_s22  ;;  %v9762_v14 = vld [vmem:[%s13471_s6 + $0x58] sm:$0xff]  }
 0xa3c   : > { %8549 = vmatprep.subr.bf16.mxu0 %v9762_v14 }
 0xa3d   : > { %8550 = vmatpush3.bf16.msra.mxu0 %v9762_v14  ;;  %v9220_v14 = vunpack.i.h.bf16 %v9218_v5 }
 0xa3e   : > { %8551 = vmatprep.subr.bf16.mxu0 %v9763_v49 }
 0xa3f   : > { %9257 = vrot.lane.b32.xlu0 %v9246_v56, %s10108_s26  ;;  %9242 = vrot.lane.b32.xlu1 %v9236_v26, %s10106_s22  ;;  %v9764_v26 = vld [vmem:[%s13471_s6 + $0x48] sm:$0xff]  }
 0xa41   : > { %8552 = vmatpush3.bf16.msra.mxu0 %v9763_v49  ;;  %v9219_v49 = vunpack.i.l.bf16 %v9218_v5 }
 0xa42   : > { %8553 = vmatprep.subr.bf16.mxu0 %v9764_v26 }
 0xa43   : > { %9267 = vrot.lane.b32.xlu0 %v9266_v16, %s10108_s26  ;;  %9252 = vrot.lane.b32.xlu1 %v9266_v16, %s10107_s25 }
 0xa45   : > { %8554 = vmatpush3.bf16.msra.mxu0 %v9764_v26 }
 0xa47   : > { %9277 = vrot.lane.b32.xlu0 %v9276_v30, %s10107_s25  ;;  %9262 = vrot.lane.b32.xlu1 %v9246_v56, %s10106_s22  ;;  %v2750_v30 = vpack.c.bf16 %v9225_v53, %v9224_v57 }
 0xa4b   : > { %2910 = vrot.lane.b32.xlu0 %v2748_v18, %s10106_s22  ;;  %9272 = vrot.lane.b32.xlu1 %v9266_v16, %s10106_s22  ;;  %v9765_v18 = vld [vmem:[%s13471_s6 + $0x40] sm:$0xff]   ;;  %v9767_v16 = vld [vmem:[%s13471_s6 + $0x30] sm:$0xff]  }
 0xa4c   : > { %8555 = vmatprep.subr.bf16.mxu0 %v9765_v18 }
 0xa4d   : > { %8556 = vmatpush3.bf16.msra.mxu0 %v9765_v18 }
 0xa4e   : > { %8557 = vmatprep.subr.bf16.mxu0 %v9766_v7 }
 0xa4f   : > { %2940 = vrot.lane.b32.xlu0 %v2890_v41, %s10108_s26  ;;  %v2749_v41 = vpack.c.bf16 %v9220_v14, %v9219_v49 }
 0xa51   : > { %8558 = vmatpush3.bf16.msra.mxu0 %v9766_v7 }
 0xa52   : > { %8559 = vmatprep.subr.bf16.mxu0 %v9767_v16 }
 0xa53   : > { %2914 = vrot.lane.b32.xlu0 %v2750_v30, %s10106_s22 }
 0xa55   : > { %8560 = vmatpush3.bf16.msra.mxu0 %v9767_v16 }
 0xa97   : > { %v11428_v43 = vpop.f32.mrf.mxu1 }
 0xa99   : > { %v8547_v56 = vpop.f32.mrf.mxu1 }
 0xa9b   : > { %v11433_v38 = vpop.f32.mrf.mxu1 }
 0xa9c   : > { %v9281_v53 = vpack.i.bf16 %v11433_v38, %v11428_v43 }
 0xa9d   : > { %v8548_v57 = vpop.f32.mrf.mxu1 }
 0xa9e   : > { %9282 = vrot.lane.b32.xlu1 %v9281_v53, %s10107_s25 }
 0xaa2   : > { %2912 = vrot.lane.b32.xlu1 %v2749_v41, %s10106_s22 }
 0xaa9   : > { %v9238_v30 = vpop.permute.xlu0 %9237  ;;  %v9228_v26 = vpop.permute.xlu1 %9227 }
 0xaaa   : > { %v9240_v18 = vunpack.i.h.bf16 %v9238_v30  ;;  %v9239_v56 = vunpack.i.l.bf16 %v9238_v30  ;;  %v9230_v62 = vunpack.i.h.bf16 %v9228_v26  ;;  %v9229_v32 = vunpack.i.l.bf16 %v9228_v26 }
 0xaac   : > { %v2892_v40 = vpack.c.bf16 %v9240_v18, %v9239_v56  ;;  %v2891_v5 = vpack.c.bf16 %v9230_v62, %v9229_v32 }
 0xaad   : > { %v9248_v17 = vpop.permute.xlu0 %9247  ;;  %v9233_v33 = vpop.permute.xlu1 %9232 }
 0xaae   : > { %v9235_v45 = vunpack.i.h.bf16 %v9233_v33  ;;  %v9234_v7 = vunpack.i.l.bf16 %v9233_v33  ;;  %2944 = vrot.lane.b32.xlu0 %v2892_v40, %s10108_s26  ;;  %2942 = vrot.lane.b32.xlu1 %v2891_v5, %s10108_s26  ;;  %v9250_v41 = vunpack.i.h.bf16 %v9248_v17  ;;  %v9249_v62 = vunpack.i.l.bf16 %v9248_v17 }
 0xaaf   : > { %v2894_v40 = vpack.c.bf16 %v11399_v23, %v11393_v55 }
 0xab0   : > { %v2751_v14 = vpack.c.bf16 %v9235_v45, %v9234_v7  ;;  %v2753_v45 = vpack.c.bf16 %v9250_v41, %v9249_v62  ;;  %v2604_v41 = vpack.c.bf16 %v11321_v2, %v11318_v46 }
 0xab1   : > { %v9258_v16 = vpop.permute.xlu0 %9257  ;;  %v9243_v49 = vpop.permute.xlu1 %9242 }
 0xab2   : > { %v9245_v53 = vunpack.i.h.bf16 %v9243_v49  ;;  %v9244_v57 = vunpack.i.l.bf16 %v9243_v49  ;;  %2918 = vrot.lane.b32.xlu0 %v11377_v35, %s10106_s22  ;;  %2916 = vrot.lane.b32.xlu1 %v2751_v14, %s10106_s22  ;;  %v9260_v32 = vunpack.i.h.bf16 %v9258_v16  ;;  %v9259_v30 = vunpack.i.l.bf16 %v9258_v16 }
 0xab4   : > { %v2893_v26 = vpack.c.bf16 %v9245_v53, %v9244_v57  ;;  %v2754_v56 = vpack.c.bf16 %v9260_v32, %v9259_v30 }
 0xab5   : > { %v9268_v33 = vpop.permute.xlu0 %9267  ;;  %v9253_v18 = vpop.permute.xlu1 %9252 }
 0xab6   : > { %2946 = vrot.lane.b32.xlu1 %v2893_v26, %s10108_s26  ;;  %2948 = vrot.lane.b32.xlu0 %v2894_v40, %s10108_s26  ;;  %v9270_v5 = vunpack.i.h.bf16 %v9268_v33  ;;  %v9269_v35 = vunpack.i.l.bf16 %v9268_v33  ;;  %v9255_v7 = vunpack.i.h.bf16 %v9253_v18  ;;  %v9254_v14 = vunpack.i.l.bf16 %v9253_v18 }
 0xab8   : > { %v2896_v16 = vpack.c.bf16 %v9270_v5, %v9269_v35  ;;  %v2895_v55 = vpack.c.bf16 %v9255_v7, %v9254_v14 }
 0xab9   : > { %v9278_v49 = vpop.permute.xlu0 %9277  ;;  %v9263_v17 = vpop.permute.xlu1 %9262 }
 0xaba   : > { %2920 = vrot.lane.b32.xlu1 %v2753_v45, %s10106_s22  ;;  %2922 = vrot.lane.b32.xlu0 %v2754_v56, %s10106_s22  ;;  %v9265_v23 = vunpack.i.h.bf16 %v9263_v17  ;;  %v9264_v53 = vunpack.i.l.bf16 %v9263_v17  ;;  %v2898_v45 = vpack.c.bf16 %v11433_v38, %v11428_v43  ;;  %v9280_v56 = vunpack.i.h.bf16 %v9278_v49 }
 0xabb   : > { %v9279_v46 = vunpack.i.l.bf16 %v9278_v49  ;;  %v13489_v43 = vpack.c.bf16 %v11219_v15, %v11216_v42  ;;  %v13490_v49 = vpack.c.bf16 %v11211_v10, %v11208_v34  ;;  %v2608_v42 = vpack.c.bf16 %v11327_v20, %v11324_v44 }
 0xabc   : > { %v2755_v62 = vpack.c.bf16 %v9265_v23, %v9264_v53  ;;  %v13491_v34 = vpack.c.bf16 %v11273_v60, %v11270_v6  ;;  %v13492_v44 = vpack.c.bf16 %v11235_v28, %v11232_v36  ;;  %v13493_v6 = vpack.c.bf16 %v11262_v31, %v11259_v61 }
 0xabd   : > { %v2911_v57 = vpop.permute.xlu0 %2910  ;;  %v9273_v26 = vpop.permute.xlu1 %9272  ;;  %v2757_v5 = vpack.c.bf16 %v9280_v56, %v9279_v46  ;;  %v2612_v36 = vpack.c.bf16 %v11354_v37, %v11357_v19  ;;  %v13494_v28 = vpack.c.bf16 %v11254_v39, %v11251_v12  ;;  %v13495_v39 = vmov 0  }
 0xabe   : > { %2950 = vrot.lane.b32.xlu1 %v2895_v55, %s10108_s26  ;;  %2952 = vrot.lane.b32.xlu0 %v2896_v16, %s10108_s26  ;;  %v9275_v32 = vunpack.i.h.bf16 %v9273_v26  ;;  %v9274_v30 = vunpack.i.l.bf16 %v9273_v26  ;;  %v2962_v40 = vsel %vm658_vm2, %v2604_v41, %v2911_v57 }
 0xac0   : > { %v2897_v2 = vpack.c.bf16 %v9275_v32, %v9274_v30 }
 0xac1   : > { %v2941_v33 = vpop.permute.xlu0 %2940 }
 0xac2   : > { %v2990_v18 = vsel %vm734_vm3, %v2962_v40, %v2941_v33  ;;  %2924 = vrot.lane.b32.xlu1 %v2755_v62, %s10106_s22  ;;  %2926 = vrot.lane.b32.xlu0 %v11385_v24, %s10106_s22 }
 0xac3   : > { %8561 = vmatprep.mubr.msk.bf16.mxu0 %vm1173_vm5, %v2990_v18 }
 0xac5   : > { %v2915_v24 = vpop.permute.xlu0 %2914 }
 0xac6   : > { %2954 = vrot.lane.b32.xlu1 %v2897_v2, %s10108_s26  ;;  %2956 = vrot.lane.b32.xlu0 %v2898_v45, %s10108_s26  ;;  %v2968_v38 = vsel %vm658_vm2, %v13489_v43, %v2915_v24 }
 0xaca   : > { %2928 = vrot.lane.b32.xlu1 %v2757_v5, %s10106_s22 }
 0xb10   : > { %v9283_v35 = vpop.permute.xlu1 %9282 }
 0xb11   : > { %v9285_v7 = vunpack.i.h.bf16 %v9283_v35  ;;  %v9284_v14 = vunpack.i.l.bf16 %v9283_v35 }
 0xb13   : > { %v2899_v17 = vpack.c.bf16 %v9285_v7, %v9284_v14 }
 0xb14   : > { %v2913_v16 = vpop.permute.xlu1 %2912 }
 0xb15   : > { %2958 = vrot.lane.b32.xlu1 %v2899_v17, %s10108_s26  ;;  %v2965_v55 = vsel %vm658_vm2, %v13490_v49, %v2913_v16  ;;  %v9769_v49 = vld [vmem:[%s13468_s3 + $0x50] sm:$0xff]  }
 0xb20   : > { %v2945_v23 = vpop.permute.xlu0 %2944  ;;  %v2943_v53 = vpop.permute.xlu1 %2942 }
 0xb21   : > { %v2994_v57 = vsel %vm734_vm3, %v2968_v38, %v2945_v23  ;;  %v2992_v26 = vsel %vm734_vm3, %v2965_v55, %v2943_v53  ;;  %v9768_v38 = vld [vmem:[%s13468_s3 + $0x58] sm:$0xff]   ;;  %v11531_v55 = vld [vmem:[%s13472_s7 + $0x1] ss:$0 sm:$0xff] }
 0xb22   : > { %8562 = vmatmul.mubr.msk.bf16.vlgmr.msra.gmra.mxu0 %vm1173_vm5, %v2992_v26  ;;  %8582 = vmatpush3.bf16.msra.mxu1 %v9768_v38  ;;  %v9771_v26 = vld [vmem:[%s13468_s3 + $0x40] sm:$0xff]  }
 0xb23   : > { %8565 = vmatprep.mubr.msk.bf16.mxu0 %vm1173_vm5, %v2994_v57  ;;  %8583 = vmatprep.subr.bf16.mxu1 %v13483_v25 }
 0xb24   : > { %v2919_v41 = vpop.permute.xlu0 %2918  ;;  %v2917_v62 = vpop.permute.xlu1 %2916 }
 0xb25   : > { %v2974_v15 = vsel %vm658_vm2, %v2608_v42, %v2919_v41  ;;  %v2971_v10 = vsel %vm658_vm2, %v13491_v34, %v2917_v62  ;;  %v11544_v42 = vld [vmem:[%s13473_s8 + $0x1] ss:$0 sm:$0xff] }
 0xb26   : > { %8584 = vmatpush3.bf16.msra.mxu1 %v9769_v49 }
 0xb27   : > { %8585 = vmatprep.subr.bf16.mxu1 %v13483_v25 }
 0xb28   : > { %v2947_v32 = vpop.permute.xlu1 %2946  ;;  %v2949_v30 = vpop.permute.xlu0 %2948 }
 0xb29   : > { %v2996_v40 = vsel %vm734_vm3, %v2971_v10, %v2947_v32  ;;  %v2998_v33 = vsel %vm734_vm3, %v2974_v15, %v2949_v30 }
 0xb2a   : > { %8566 = vmatmul.mubr.msk.bf16.gmra.mxu0 %vm1173_vm5, %v2996_v40 }
 0xb2b   : > { %8569 = vmatprep.mubr.msk.bf16.mxu0 %vm1173_vm5, %v2998_v33 }
 0xb2c   : > { %v2921_v18 = vpop.permute.xlu1 %2920  ;;  %v2923_v45 = vpop.permute.xlu0 %2922 }
 0xb2d   : > { %v2977_v20 = vsel %vm658_vm2, %v13492_v44, %v2921_v18  ;;  %v2980_v60 = vsel %vm658_vm2, %v13493_v6, %v2923_v45 }
 0xb30   : > { %v2951_v56 = vpop.permute.xlu1 %2950  ;;  %v2953_v46 = vpop.permute.xlu0 %2952 }
 0xb31   : > { %v3000_v2 = vsel %vm734_vm3, %v2977_v20, %v2951_v56  ;;  %v3002_v5 = vsel %vm734_vm3, %v2980_v60, %v2953_v46 }
 0xb32   : > { %8570 = vmatmul.mubr.msk.bf16.gmra.mxu0 %vm1173_vm5, %v3000_v2 }
 0xb33   : > { %8573 = vmatprep.mubr.msk.bf16.mxu0 %vm1173_vm5, %v3002_v5 }
 0xb34   : > { %v2925_v35 = vpop.permute.xlu1 %2924  ;;  %v2927_v7 = vpop.permute.xlu0 %2926 }
 0xb35   : > { %v2983_v61 = vsel %vm658_vm2, %v13494_v28, %v2925_v35  ;;  %v2986_v31 = vsel %vm658_vm2, %v2612_v36, %v2927_v7 }
 0xb38   : > { %v2955_v14 = vpop.permute.xlu1 %2954  ;;  %v2957_v17 = vpop.permute.xlu0 %2956 }
 0xb39   : > { %v3004_v24 = vsel %vm734_vm3, %v2983_v61, %v2955_v14  ;;  %v3006_v16 = vsel %vm734_vm3, %v2986_v31, %v2957_v17 }
 0xb3a   : > { %8574 = vmatmul.mubr.msk.bf16.gmra.mxu0 %vm1173_vm5, %v3004_v24 }
 0xb3b   : > { %8577 = vmatprep.mubr.msk.bf16.mxu0 %vm1173_vm5, %v3006_v16 }
 0xb3c   : > { %v2929_v43 = vpop.permute.xlu1 %2928 }
 0xb3d   : > { %v2988_v37 = vsel %vm658_vm2, %v11305_v59, %v2929_v43  ;;  %v9770_v59 = vld [vmem:[%s13468_s3 + $0x48] sm:$0xff]  }
 0xb3e   : > { %8586 = vmatpush3.bf16.msra.mxu1 %v9770_v59 }
 0xb3f   : > { %8587 = vmatprep.subr.bf16.mxu1 %v13483_v25 }
 0xb42   : > { %8588 = vmatpush3.bf16.msra.mxu1 %v9771_v26 }
 0xb43   : > { %8631 = vmatprep.subr.bf16.mxu1 %v13483_v25 }
 0xb87   : > { %v2959_v19 = vpop.permute.xlu1 %2958 }
 0xb88   : > { %v3008_v12 = vsel %vm734_vm3, %v2988_v37, %v2959_v19 }
 0xb89   : > { %8578 = vmatmul.mubr.msk.bf16.gmra.mxu0 %vm1173_vm5, %v3008_v12 }
 0xb8a   : > { %3752 = vmatprep.mubr.bf16.mxu0 %v13495_v39 }
 0xbe2   : > { %v8563_v23 = vpop.f32.mrf.mxu0 }
 0xbe3   : > { %v3129_v53 = vadd.f32 %v8563_v23, %v11531_v55 }
 0xbe4   : > { %v11535_v57 = vpop.f32.mrf.mxu0 }
 0xbe5   : > { %v3201_v41 = vadd.f32 %v3129_v53, %v10924_v3  ;;  %v11555_v3 = vld [vmem:[%s13474_s9 + $0x1] ss:$0 sm:$0xff] }
 0xbe6   : > { %v8564_v62 = vpop.f32.mrf.mxu0 }
 0xbe7   : > { %v3132_v15 = vadd.f32 %v8564_v62, %v11531_v55  ;;  %v3229_v32 = vmul.f32 %v11544_v42, %v3201_v41 }
 0xbe8   : > { %v11547_v34 = vpop.f32.mrf.mxu0 }
 0xbe9   : > { %v3202_v10 = vadd.f32 %v3132_v15, %v10918_v29  ;;  %v11564_v29 = vadd.f32 %v11555_v3, %v3229_v32 }
 0xbea   : > { %v8567_v30 = vpop.f32.mrf.mxu0 }
 0xbeb   : > { %v3230_v40 = vmul.f32 %v11544_v42, %v3202_v10  ;;  %v3145_v33 = vadd.f32 %v8567_v30, %v11531_v55 }
 0xbec   : > { %v3136_v18 = vpop.f32.mrf.mxu0 }
 0xbed   : > { %v11560_v45 = vadd.f32 %v11555_v3, %v3230_v40  ;;  %v3137_v44 = vadd.f32 %v11531_v55, %v3136_v18  ;;  %v3205_v20 = vadd.f32 %v3145_v33, %v10947_v52 }
 0xbee   : > { %v8568_v6 = vpop.f32.mrf.mxu0 }
 0xbef   : > { %v3148_v60 = vadd.f32 %v8568_v6, %v11531_v55  ;;  %v3203_v56 = vadd.f32 %v3137_v44, %v10954_v4  ;;  %v9286_v2 = vpack.i.bf16 %v11560_v45, %v11564_v29  ;;  %v3233_v7 = vmul.f32 %v11544_v42, %v3205_v20 }
 0xbf0   : > { %v3139_v46 = vpop.f32.mrf.mxu0 }
 0xbf1   : > { %v3206_v5 = vadd.f32 %v3148_v60, %v10950_v50  ;;  %v3140_v35 = vadd.f32 %v11531_v55, %v3139_v46  ;;  %9287 = vrot.lane.b32.xlu0 %v9286_v2, %s10106_s22  ;;  %v3231_v4 = vmul.f32 %v11544_v42, %v3203_v56  ;;  %v11585_v24 = vadd.f32 %v11555_v3, %v3233_v7 }
 0xbf2   : > { %v8571_v36 = vpop.f32.mrf.mxu0 }
 0xbf3   : > { %v3234_v52 = vmul.f32 %v11544_v42, %v3206_v5  ;;  %v3204_v28 = vadd.f32 %v3140_v35, %v10957_v63  ;;  %v3161_v61 = vadd.f32 %v8571_v36, %v11531_v55  ;;  %v11593_v19 = vadd.f32 %v11555_v3, %v3231_v4 }
 0xbf4   : > { %v3152_v31 = vpop.f32.mrf.mxu0 }
 0xbf5   : > { %v11580_v14 = vadd.f32 %v11555_v3, %v3234_v52  ;;  %v3232_v50 = vmul.f32 %v11544_v42, %v3204_v28  ;;  %v3153_v17 = vadd.f32 %v11531_v55, %v3152_v31  ;;  %v3209_v16 = vadd.f32 %v3161_v61, %v10984_v58 }
 0xbf6   : > { %v8572_v43 = vpop.f32.mrf.mxu0 }
 0xbf7   : > { %v11589_v63 = vadd.f32 %v11555_v3, %v3232_v50  ;;  %v3164_v37 = vadd.f32 %v8572_v43, %v11531_v55  ;;  %v3207_v12 = vadd.f32 %v3153_v17, %v10992_v11  ;;  %v9296_v49 = vpack.i.bf16 %v11580_v14, %v11585_v24 }
 0xbf8   : > { %v3155_v38 = vpop.f32.mrf.mxu0  ;;  %v3237_v58 = vmul.f32 %v11544_v42, %v3209_v16 }
 0xbf9   : > { %v3210_v59 = vadd.f32 %v3164_v37, %v10978_v22  ;;  %v3156_v23 = vadd.f32 %v11531_v55, %v3155_v38  ;;  %9297 = vrot.lane.b32.xlu0 %v9296_v49, %s10106_s22  ;;  %v9291_v26 = vpack.i.bf16 %v11589_v63, %v11593_v19  ;;  %v3235_v15 = vmul.f32 %v11544_v42, %v3207_v12 }
 0xbfa   : > { %v8575_v53 = vpop.f32.mrf.mxu0  ;;  %v11616_v33 = vadd.f32 %v11555_v3, %v3237_v58 }
 0xbfb   : > { %v3238_v41 = vmul.f32 %v11544_v42, %v3210_v59  ;;  %v3208_v11 = vadd.f32 %v3156_v23, %v10987_v54  ;;  %v3177_v62 = vadd.f32 %v8575_v53, %v11531_v55  ;;  %9292 = vrot.lane.b32.xlu1 %v9291_v26, %s10106_s22  ;;  %v11624_v6 = vadd.f32 %v11555_v3, %v3235_v15 }
 0xbfc   : > { %v3168_v22 = vpop.f32.mrf.mxu0 }
 0xbfd   : > { %v11610_v10 = vadd.f32 %v11555_v3, %v3238_v41  ;;  %v3236_v32 = vmul.f32 %v11544_v42, %v3208_v11  ;;  %v3213_v30 = vadd.f32 %v3177_v62, %v11007_v51  ;;  %v3169_v40 = vadd.f32 %v11531_v55, %v3168_v22 }
 0xbfe   : > { %v8576_v54 = vpop.f32.mrf.mxu0  ;;  %v3121_v22 = vadd.f32 %v11531_v55, %v11535_v57 }
 0xbff   : > { %v11619_v18 = vadd.f32 %v11555_v3, %v3236_v32  ;;  %v3211_v44 = vadd.f32 %v3169_v40, %v11014_v8  ;;  %v3180_v20 = vadd.f32 %v8576_v54, %v11531_v55  ;;  %v9306_v51 = vpack.i.bf16 %v11610_v10, %v11616_v33  ;;  %v13496_v40 = vld [vmem:[#allocation2_spill] sm:$0xff] }
 0xc00   : > { %v3171_v60 = vpop.f32.mrf.mxu0  ;;  %v3241_v56 = vmul.f32 %v11544_v42, %v3213_v30  ;;  %v3124_v32 = vadd.f32 %v11531_v55, %v11547_v34  ;;  %v3199_v30 = vadd.f32 %v3121_v22, %v10932_v9 }
 0xc01   : > { %v3214_v46 = vadd.f32 %v3180_v20, %v11010_v0  ;;  %v3172_v2 = vadd.f32 %v11531_v55, %v3171_v60  ;;  %9307 = vrot.lane.b32.xlu0 %v9306_v51, %s10106_s22  ;;  %v9301_v8 = vpack.i.bf16 %v11619_v18, %v11624_v6  ;;  %v3239_v5 = vmul.f32 %v11544_v42, %v3211_v44 }
 0xc02   : > { %v11639_v36 = vadd.f32 %v11555_v3, %v3241_v56  ;;  %v3200_v54 = vadd.f32 %v3124_v32, %v13496_v40  ;;  %v3227_v44 = vmul.f32 %v11544_v42, %v3199_v30 }
 0xc03   : > { %v3242_v35 = vmul.f32 %v11544_v42, %v3214_v46  ;;  %v3212_v7 = vadd.f32 %v3172_v2, %v11017_v13  ;;  %9302 = vrot.lane.b32.xlu1 %v9301_v8, %s10106_s22  ;;  %v11646_v28 = vadd.f32 %v11555_v3, %v3239_v5 }
 0xc04   : > { %v3228_v20 = vmul.f32 %v11544_v42, %v3200_v54  ;;  %v3255_v51 = vadd.f32 %v11555_v3, %v3227_v44 }
 0xc05   : > { %v11642_v0 = vadd.f32 %v11555_v3, %v3242_v35  ;;  %v3240_v52 = vmul.f32 %v11544_v42, %v3212_v7 }
 0xc06   : > { %v3256_v56 = vadd.f32 %v11555_v3, %v3228_v20 }
 0xc07   : > { %v11649_v61 = vadd.f32 %v11555_v3, %v3240_v52  ;;  %v9316_v4 = vpack.i.bf16 %v11642_v0, %v11639_v36 }
 0xc09   : > { %9317 = vrot.lane.b32.xlu0 %v9316_v4, %s10106_s22  ;;  %v9311_v13 = vpack.i.bf16 %v11649_v61, %v11646_v28 }
 0xc0b   : > { %9312 = vrot.lane.b32.xlu1 %v9311_v13, %s10106_s22 }
 0xc49   : > { %v8579_v31 = vpop.f32.mrf.mxu0 }
 0xc4a   : > { %v3193_v50 = vadd.f32 %v8579_v31, %v11531_v55 }
 0xc4b   : > { %v3184_v17 = vpop.f32.mrf.mxu0 }
 0xc4c   : > { %v3217_v16 = vadd.f32 %v3193_v50, %v11087_v48  ;;  %v3185_v43 = vadd.f32 %v11531_v55, %v3184_v17 }
 0xc4d   : > { %v8580_v37 = vpop.f32.mrf.mxu0 }
 0xc4e   : > { %v3215_v12 = vadd.f32 %v3185_v43, %v11100_v21  ;;  %v3196_v38 = vadd.f32 %v8580_v37, %v11531_v55  ;;  %v3245_v59 = vmul.f32 %v11544_v42, %v3217_v16 }
 0xc4f   : > { %v3187_v49 = vpop.f32.mrf.mxu0 }
 0xc50   : > { %v3218_v23 = vadd.f32 %v3196_v38, %v11090_v1  ;;  %v3188_v58 = vadd.f32 %v11531_v55, %v3187_v49  ;;  %v3243_v53 = vmul.f32 %v11544_v42, %v3215_v12  ;;  %v11669_v41 = vadd.f32 %v11555_v3, %v3245_v59 }
 0xc52   : > { %v3246_v26 = vmul.f32 %v11544_v42, %v3218_v23  ;;  %v3216_v48 = vadd.f32 %v3188_v58, %v11103_v27  ;;  %v11676_v62 = vadd.f32 %v11555_v3, %v3243_v53 }
 0xc54   : > { %v11672_v21 = vadd.f32 %v11555_v3, %v3246_v26  ;;  %v3244_v11 = vmul.f32 %v11544_v42, %v3216_v48 }
 0xc56   : > { %v11679_v1 = vadd.f32 %v11555_v3, %v3244_v11  ;;  %v9326_v15 = vpack.i.bf16 %v11672_v21, %v11669_v41 }
 0xc58   : > { %9327 = vrot.lane.b32.xlu0 %v9326_v15, %s10106_s22  ;;  %v9321_v27 = vpack.i.bf16 %v11679_v1, %v11676_v62 }
 0xc5a   : > { %9322 = vrot.lane.b32.xlu1 %v9321_v27, %s10106_s22 }
 0xc63   : > { %v9288_v60 = vpop.permute.xlu0 %9287 }
 0xc64   : > { %v9290_v46 = vunpack.i.h.bf16 %v9288_v60  ;;  %v9289_v57 = vunpack.i.l.bf16 %v9288_v60 }
 0xc66   : > { %v3348_v2 = vsel %vm658_vm2, %v3256_v56, %v9290_v46  ;;  %v3347_v55 = vsel %vm658_vm2, %v3255_v51, %v9289_v57 }
 0xc67   : > { %v3365_v34 = vpack.c.bf16 %v3348_v2, %v3347_v55 }
 0xc69   : > { %8590 = vmatmul.mubr.msk.bf16.vlgmr.msra.gmra.mxu1 %vm734_vm3, %v3365_v34 }
 0xc6a   : > { %8593 = vmatprep.mubr.msk.bf16.mxu1 %vm10111_vm6, %v13483_v25 }
 0xc6b   : > { %v9298_v5 = vpop.permute.xlu0 %9297 }
 0xc6c   : > { %v9300_v52 = vunpack.i.h.bf16 %v9298_v5  ;;  %v9299_v4 = vunpack.i.l.bf16 %v9298_v5 }
 0xc6d   : > { %v9293_v9 = vpop.permute.xlu1 %9292 }
 0xc6e   : > { %v9295_v8 = vunpack.i.h.bf16 %v9293_v9  ;;  %v9294_v42 = vunpack.i.l.bf16 %v9293_v9  ;;  %v3352_v13 = vsel %vm658_vm2, %v11589_v63, %v9300_v52  ;;  %v3351_v31 = vsel %vm658_vm2, %v11593_v19, %v9299_v4 }
 0xc6f   : > { %v3367_v17 = vpack.c.bf16 %v3352_v13, %v3351_v31  ;;  %v11765_v13 = vld [vmem:[%s13469_s4 + $0x2] ss:$0 sm:$0xff] }
 0xc70   : > { %v3350_v35 = vsel %vm658_vm2, %v11560_v45, %v9295_v8  ;;  %v3349_v3 = vsel %vm658_vm2, %v11564_v29, %v9294_v42 }
 0xc71   : > { %v3366_v7 = vpack.c.bf16 %v3350_v35, %v3349_v3 }
 0xc73   : > { %8594 = vmatmul.mubr.msk.bf16.gmra.mxu1 %vm734_vm3, %v3366_v7  ;;  %v9308_v38 = vpop.permute.xlu0 %9307 }
 0xc74   : > { %8597 = vmatprep.mubr.msk.bf16.mxu1 %vm10111_vm6, %v13483_v25  ;;  %v9310_v59 = vunpack.i.h.bf16 %v9308_v38  ;;  %v9309_v23 = vunpack.i.l.bf16 %v9308_v38 }
 0xc75   : > { %v9303_v50 = vpop.permute.xlu1 %9302 }
 0xc76   : > { %v9305_v16 = vunpack.i.h.bf16 %v9303_v50  ;;  %v9304_v43 = vunpack.i.l.bf16 %v9303_v50  ;;  %v3356_v58 = vsel %vm658_vm2, %v11619_v18, %v9310_v59  ;;  %v3355_v53 = vsel %vm658_vm2, %v11624_v6, %v9309_v23 }
 0xc77   : > { %v3369_v48 = vpack.c.bf16 %v3356_v58, %v3355_v53 }
 0xc78   : > { %v3354_v37 = vsel %vm658_vm2, %v11580_v14, %v9305_v16  ;;  %v3353_v12 = vsel %vm658_vm2, %v11585_v24, %v9304_v43 }
 0xc79   : > { %v3368_v49 = vpack.c.bf16 %v3354_v37, %v3353_v12 }
 0xc7b   : > { %8598 = vmatmul.mubr.msk.bf16.gmra.mxu1 %vm734_vm3, %v3367_v17  ;;  %v9318_v32 = vpop.permute.xlu0 %9317 }
 0xc7c   : > { %8601 = vmatprep.mubr.msk.bf16.mxu1 %vm10111_vm6, %v13483_v25  ;;  %v9320_v40 = vunpack.i.h.bf16 %v9318_v32  ;;  %v9319_v54 = vunpack.i.l.bf16 %v9318_v32 }
 0xc7d   : > { %v9313_v26 = vpop.permute.xlu1 %9312 }
 0xc7e   : > { %v9315_v11 = vunpack.i.h.bf16 %v9313_v26  ;;  %v9314_v15 = vunpack.i.l.bf16 %v9313_v26  ;;  %v3360_v44 = vsel %vm658_vm2, %v11649_v61, %v9320_v40  ;;  %v3359_v20 = vsel %vm658_vm2, %v11646_v28, %v9319_v54 }
 0xc7f   : > { %v3371_v60 = vpack.c.bf16 %v3360_v44, %v3359_v20 }
 0xc80   : > { %v3358_v27 = vsel %vm658_vm2, %v11610_v10, %v9315_v11  ;;  %v3357_v22 = vsel %vm658_vm2, %v11616_v33, %v9314_v15 }
 0xc81   : > { %v3370_v30 = vpack.c.bf16 %v3358_v27, %v3357_v22 }
 0xc83   : > { %8602 = vmatmul.mubr.msk.bf16.gmra.mxu1 %vm734_vm3, %v3368_v49 }
 0xc84   : > { %8605 = vmatprep.mubr.msk.bf16.mxu1 %vm10111_vm6, %v13483_v25 }
 0xc8b   : > { %8606 = vmatmul.mubr.msk.bf16.gmra.mxu1 %vm734_vm3, %v3369_v48 }
 0xc8c   : > { %8609 = vmatprep.mubr.msk.bf16.mxu1 %vm10111_vm6, %v13483_v25 }
 0xc93   : > { %8610 = vmatmul.mubr.msk.bf16.gmra.mxu1 %vm734_vm3, %v3370_v30 }
 0xc94   : > { %8613 = vmatprep.mubr.msk.bf16.mxu1 %vm10111_vm6, %v13483_v25 }
 0xc9b   : > { %8614 = vmatmul.mubr.msk.bf16.gmra.mxu1 %vm734_vm3, %v3371_v60 }
 0xc9c   : > { %8617 = vmatprep.mubr.msk.bf16.mxu1 %vm10111_vm6, %v13483_v25 }
 0xcca   : > { %v9328_v57 = vpop.permute.xlu0 %9327 }
 0xccb   : > { %v9330_v9 = vunpack.i.h.bf16 %v9328_v57  ;;  %v9329_v8 = vunpack.i.l.bf16 %v9328_v57 }
 0xccc   : > { %v9323_v51 = vpop.permute.xlu1 %9322 }
 0xccd   : > { %v9325_v56 = vunpack.i.h.bf16 %v9323_v51  ;;  %v9324_v46 = vunpack.i.l.bf16 %v9323_v51  ;;  %v3364_v42 = vsel %vm658_vm2, %v11679_v1, %v9330_v9  ;;  %v3363_v5 = vsel %vm658_vm2, %v11676_v62, %v9329_v8 }
 0xcce   : > { %v3373_v35 = vpack.c.bf16 %v3364_v42, %v3363_v5 }
 0xccf   : > { %v3362_v2 = vsel %vm658_vm2, %v11642_v0, %v9325_v56  ;;  %v3361_v55 = vsel %vm658_vm2, %v11639_v36, %v9324_v46 }
 0xcd0   : > { %v3372_v34 = vpack.c.bf16 %v3362_v2, %v3361_v55 }
 0xcd2   : > { %8618 = vmatmul.mubr.msk.bf16.gmra.mxu1 %vm734_vm3, %v3372_v34 }
 0xcd3   : > { %8621 = vmatprep.mubr.msk.bf16.mxu1 %vm10111_vm6, %v13483_v25 }
 0xcda   : > { %8622 = vmatmul.mubr.msk.bf16.gmra.mxu1 %vm734_vm3, %v3373_v35 }
 0xcdb   : > { %8633 = vmatprep.mubr.msk.bf16.mxu1 %vm10111_vm6, %v13483_v25 }
 0xd29   : > { %v11758_v3 = vpop.f32.mrf.mxu1 }
 0xd2b   : > { %v8591_v7 = vpop.f32.mrf.mxu1 }
 0xd2d   : > { %v11760_v52 = vpop.f32.mrf.mxu1 }
 0xd2f   : > { %v8592_v4 = vpop.f32.mrf.mxu1 }
 0xd33   : > { %v3484_v31 = vpop.f32.mrf.mxu1 }
 0xd34   : > { %v3485_v50 = vadd.f32 %v11765_v13, %v3484_v31 }
 0xd35   : > { %v8595_v17 = vpop.f32.mrf.mxu1 }
 0xd36   : > { %9954 = vtanh.f32 %v3485_v50 }
 0xd37   : > { %v3487_v16 = vpop.f32.mrf.mxu1 }
 0xd38   : > { %v3488_v43 = vadd.f32 %v11765_v13, %v3487_v16 }
 0xd39   : > { %v8596_v37 = vpop.f32.mrf.mxu1 }
 0xd3a   : > { %9956 = vtanh.f32 %v3488_v43 }
 0xd3b   : > { %v3492_v12 = vpop.f32.mrf.mxu1 }
 0xd3c   : > { %v3493_v38 = vadd.f32 %v11765_v13, %v3492_v12 }
 0xd3d   : > { %v8599_v49 = vpop.f32.mrf.mxu1 }
 0xd3e   : > { %9958 = vtanh.f32 %v3493_v38 }
 0xd3f   : > { %v3495_v59 = vpop.f32.mrf.mxu1 }
 0xd40   : > { %v3496_v23 = vadd.f32 %v11765_v13, %v3495_v59 }
 0xd41   : > { %v8600_v58 = vpop.f32.mrf.mxu1 }
 0xd42   : > { %9960 = vtanh.f32 %v3496_v23 }
 0xd43   : > { %v11771_v53 = vpop.eup %9954  ;;  %v3500_v26 = vpop.f32.mrf.mxu1 }
 0xd44   : > { %v3567_v48 = vmul.f32 0.5, %v11771_v53 }
 0xd45   : > { %v8603_v11 = vpop.f32.mrf.mxu1 }
 0xd46   : > { %v3585_v15 = vadd.f32 0.5, %v3567_v48 }
 0xd47   : > { %v11774_v27 = vpop.eup %9956  ;;  %v3503_v22 = vpop.f32.mrf.mxu1 }
 0xd48   : > { %3623 = vrot.lane.b32.xlu1 %v3585_v15, %s10107_s25  ;;  %v3568_v32 = vmul.f32 0.5, %v11774_v27 }
 0xd49   : > { %v8604_v30 = vpop.f32.mrf.mxu1 }
 0xd4a   : > { %v3586_v40 = vadd.f32 0.5, %v3568_v32  ;;  %v3501_v30 = vadd.f32 %v11765_v13, %v3500_v26 }
 0xd4b   : > { %v11778_v54 = vpop.eup %9958  ;;  %v3508_v44 = vpop.f32.mrf.mxu1 }
 0xd4c   : > { %3625 = vrot.lane.b32.xlu0 %v3586_v40, %s10107_s25  ;;  %v3569_v20 = vmul.f32 0.5, %v11778_v54 }
 0xd4d   : > { %v8607_v60 = vpop.f32.mrf.mxu1 }
 0xd4e   : > { %v3587_v51 = vadd.f32 0.5, %v3569_v20  ;;  %v3504_v20 = vadd.f32 %v11765_v13, %v3503_v22 }
 0xd4f   : > { %v11782_v56 = vpop.eup %9960  ;;  %v3511_v46 = vpop.f32.mrf.mxu1 }
 0xd50   : > { %3627 = vrot.lane.b32.xlu1 %v3587_v51, %s10107_s25  ;;  %v3570_v57 = vmul.f32 0.5, %v11782_v56  ;;  %v3509_v51 = vadd.f32 %v11765_v13, %v3508_v44  ;;  %v3512_v26 = vadd.f32 %v11765_v13, %v3511_v46 }
 0xd51   : > { %v8608_v2 = vpop.f32.mrf.mxu1 }
 0xd52   : > { %v3588_v55 = vadd.f32 0.5, %v3570_v57 }
 0xd53   : > { %v3516_v34 = vpop.f32.mrf.mxu1 }
 0xd54   : > { %v3517_v9 = vadd.f32 %v11765_v13, %v3516_v34  ;;  %3629 = vrot.lane.b32.xlu0 %v3588_v55, %s10107_s25  ;;  %v3477_v34 = vadd.f32 %v11765_v13, %v11758_v3 }
 0xd55   : > { %v8611_v8 = vpop.f32.mrf.mxu1 }
 0xd56   : > { %9962 = vtanh.f32 %v3517_v9  ;;  %v3480_v8 = vadd.f32 %v11765_v13, %v11760_v52 }
 0xd57   : > { %v3519_v42 = vpop.f32.mrf.mxu1 }
 0xd58   : > { %v3520_v5 = vadd.f32 %v11765_v13, %v3519_v42 }
 0xd59   : > { %v8612_v35 = vpop.f32.mrf.mxu1 }
 0xd5a   : > { %9964 = vtanh.f32 %v3520_v5 }
 0xd5b   : > { %v3524_v7 = vpop.f32.mrf.mxu1 }
 0xd5c   : > { %v3525_v4 = vadd.f32 %v11765_v13, %v3524_v7 }
 0xd5d   : > { %v8615_v31 = vpop.f32.mrf.mxu1 }
 0xd5e   : > { %9966 = vtanh.f32 %v3525_v4 }
 0xd5f   : > { %v3527_v50 = vpop.f32.mrf.mxu1 }
 0xd60   : > { %v3528_v17 = vadd.f32 %v11765_v13, %v3527_v50 }
 0xd61   : > { %v8616_v16 = vpop.f32.mrf.mxu1 }
 0xd62   : > { %9968 = vtanh.f32 %v3528_v17 }
 0xd63   : > { %v11791_v43 = vpop.eup %9962  ;;  %9970 = vtanh.f32 %v3501_v30 }
 0xd64   : > { %v3575_v37 = vmul.f32 0.5, %v11791_v43 }
 0xd66   : > { %v3593_v12 = vadd.f32 0.5, %v3575_v37 }
 0xd67   : > { %v11794_v38 = vpop.eup %9964 }
 0xd68   : > { %3639 = vrot.lane.b32.xlu1 %v3593_v12, %s10107_s25  ;;  %v3576_v49 = vmul.f32 0.5, %v11794_v38 }
 0xd6a   : > { %v3594_v59 = vadd.f32 0.5, %v3576_v49 }
 0xd6b   : > { %v11798_v23 = vpop.eup %9966 }
 0xd6c   : > { %3641 = vrot.lane.b32.xlu0 %v3594_v59, %s10107_s25  ;;  %v3577_v58 = vmul.f32 0.5, %v11798_v23 }
 0xd6e   : > { %v3595_v48 = vadd.f32 0.5, %v3577_v58 }
 0xd6f   : > { %v11802_v11 = vpop.eup %9968 }
 0xd70   : > { %3643 = vrot.lane.b32.xlu1 %v3595_v48, %s10107_s25  ;;  %v3578_v15 = vmul.f32 0.5, %v11802_v11  ;;  %v11818_v7 = vpop.eup %9970  ;;  %v9774_v48 = vld [vmem:[%s13470_s5 + $0x54] ss:$8 sps:$4 sm:$0xff]  }
 0xd71   : > { %v3571_v17 = vmul.f32 0.5, %v11818_v7  ;;  %3732 = vmatprep.subr.bf16.mxu0 %v9774_v48 }
 0xd72   : > { %v3596_v32 = vadd.f32 0.5, %v3578_v15 }
 0xd74   : > { %3645 = vrot.lane.b32.xlu0 %v3596_v32, %s10107_s25  ;;  %v9772_v32 = vld [vmem:[%s13470_s5 + $0x50] ss:$8 sps:$4 sm:$0xff]  }
 0xd75   : > { %3733 = vmatpush1.bf16.msra.mxu0 %v9772_v32 }
 0xd92   : > { %v3532_v40 = vpop.f32.mrf.mxu1 }
 0xd93   : > { %v3533_v60 = vadd.f32 %v11765_v13, %v3532_v40 }
 0xd94   : > { %v8619_v57 = vpop.f32.mrf.mxu1 }
 0xd95   : > { %9972 = vtanh.f32 %v3533_v60  ;;  %v9777_v57 = vld [vmem:[%s13470_s5 + $0x44] ss:$8 sps:$4 sm:$0xff]  }
 0xd96   : > { %v3535_v2 = vpop.f32.mrf.mxu1  ;;  %9974 = vtanh.f32 %v3504_v20  ;;  %3734 = vmatprep.subr.bf16.mxu0 %v9777_v57 }
 0xd97   : > { %v3536_v55 = vadd.f32 %v11765_v13, %v3535_v2  ;;  %9976 = vtanh.f32 %v3509_v51 }
 0xd98   : > { %v8620_v9 = vpop.f32.mrf.mxu1 }
 0xd99   : > { %9978 = vtanh.f32 %v3536_v55  ;;  %v9775_v55 = vld [vmem:[%s13470_s5 + $0x40] ss:$8 sps:$4 sm:$0xff]  }
 0xd9a   : > { %v3540_v22 = vpop.f32.mrf.mxu1  ;;  %9980 = vtanh.f32 %v3477_v34  ;;  %3735 = vmatpush1.bf16.msra.mxu0 %v9775_v55 }
 0xd9b   : > { %9982 = vtanh.f32 %v3512_v26  ;;  %v3541_v42 = vadd.f32 %v11765_v13, %v3540_v22 }
 0xd9c   : > { %v8623_v44 = vpop.f32.mrf.mxu1  ;;  %9984 = vtanh.f32 %v3480_v8 }
 0xd9d   : > { %9986 = vtanh.f32 %v3541_v42 }
 0xd9e   : > { %v3543_v5 = vpop.f32.mrf.mxu1 }
 0xd9f   : > { %v3544_v3 = vadd.f32 %v11765_v13, %v3543_v5  ;;  %v3589_v13 = vadd.f32 0.5, %v3571_v17 }
 0xda0   : > { %v8624_v35 = vpop.f32.mrf.mxu1 }
 0xda1   : > { %9988 = vtanh.f32 %v3544_v3 }
 0xda2   : > { %v11821_v4 = vpop.eup %9972 }
 0xda3   : > { %v3579_v46 = vmul.f32 0.5, %v11821_v4  ;;  %v11824_v31 = vpop.eup %9974 }
 0xda4   : > { %v11826_v50 = vpop.eup %9976  ;;  %v3572_v58 = vmul.f32 0.5, %v11824_v31 }
 0xda5   : > { %v3597_v52 = vadd.f32 0.5, %v3579_v46  ;;  %v3573_v59 = vmul.f32 0.5, %v11826_v50 }
 0xda6   : > { %v11829_v16 = vpop.eup %9978  ;;  %v3590_v20 = vadd.f32 0.5, %v3572_v58 }
 0xda7   : > { %3647 = vrot.lane.b32.xlu1 %v3597_v52, %s10107_s25  ;;  %v3580_v37 = vmul.f32 0.5, %v11829_v16  ;;  %v11833_v12 = vpop.eup %9980  ;;  %v3591_v40 = vadd.f32 0.5, %v3573_v59 }
 0xda8   : > { %v11840_v15 = vpop.eup %9982  ;;  %v3565_v60 = vmul.f32 0.5, %v11833_v12 }
 0xda9   : > { %v3598_v49 = vadd.f32 0.5, %v3580_v37  ;;  %v11847_v30 = vpop.eup %9984  ;;  %v3574_v51 = vmul.f32 0.5, %v11840_v15 }
 0xdaa   : > { %v11854_v2 = vpop.eup %9986  ;;  %v3583_v34 = vadd.f32 0.5, %v3565_v60  ;;  %v3566_v26 = vmul.f32 0.5, %v11847_v30 }
 0xdab   : > { %3631 = vrot.lane.b32.xlu1 %v3589_v13, %s10107_s25  ;;  %3649 = vrot.lane.b32.xlu0 %v3598_v49, %s10107_s25  ;;  %v3592_v9 = vadd.f32 0.5, %v3574_v51  ;;  %v3581_v22 = vmul.f32 0.5, %v11854_v2 }
 0xdac   : > { %v3584_v44 = vadd.f32 0.5, %v3566_v26 }
 0xdad   : > { %v3599_v42 = vadd.f32 0.5, %v3581_v22 }
 0xdae   : > { %v11863_v8 = vpop.eup %9988 }
 0xdaf   : > { %3635 = vrot.lane.b32.xlu1 %v3591_v40, %s10107_s25  ;;  %3633 = vrot.lane.b32.xlu0 %v3590_v20, %s10107_s25  ;;  %v3582_v5 = vmul.f32 0.5, %v11863_v8 }
 0xdb1   : > { %v3600_v35 = vadd.f32 0.5, %v3582_v5 }
 0xdb3   : > { %3619 = vrot.lane.b32.xlu1 %v3583_v34, %s10107_s25  ;;  %3637 = vrot.lane.b32.xlu0 %v3592_v9, %s10107_s25 }
 0xdb7   : > { %3621 = vrot.lane.b32.xlu0 %v3584_v44, %s10107_s25  ;;  %3651 = vrot.lane.b32.xlu1 %v3599_v42, %s10107_s25 }
 0xdba   : > { %v3624_v3 = vpop.permute.xlu1 %3623 }
 0xdbb   : > { %3653 = vrot.lane.b32.xlu0 %v3600_v35, %s10107_s25  ;;  %v11872_v52 = vmul.f32 %v11771_v53, %v3624_v3 }
 0xdbe   : > { %v3626_v46 = vpop.permute.xlu0 %3625 }
 0xdbf   : > { %v11875_v17 = vmul.f32 %v11774_v27, %v3626_v46 }
 0xdc1   : > { %v9331_v37 = vpack.i.bf16 %v11875_v17, %v11872_v52  ;;  %v3828_v13 = vpack.c.bf16 %v11875_v17, %v11872_v52 }
 0xdc2   : > { %v3628_v49 = vpop.permute.xlu1 %3627 }
 0xdc3   : > { %9332 = vrot.lane.b32.xlu0 %v9331_v37, %s10106_s22  ;;  %v11883_v58 = vmul.f32 %v11778_v54, %v3628_v49 }
 0xdc6   : > { %v3630_v59 = vpop.permute.xlu0 %3629 }
 0xdc7   : > { %v11886_v48 = vmul.f32 %v11782_v56, %v3630_v59 }
 0xdc9   : > { %v9336_v53 = vpack.i.bf16 %v11886_v48, %v11883_v58  ;;  %v3829_v27 = vpack.c.bf16 %v11886_v48, %v11883_v58 }
 0xdcb   : > { %9337 = vrot.lane.b32.xlu0 %v9336_v53, %s10108_s26 }
 0xdda   : > { %v3640_v32 = vpop.permute.xlu1 %3639 }
 0xddb   : > { %v11894_v20 = vmul.f32 %v11791_v43, %v3640_v32 }
 0xdde   : > { %v3642_v40 = vpop.permute.xlu0 %3641 }
 0xddf   : > { %v11897_v60 = vmul.f32 %v11794_v38, %v3642_v40 }
 0xde1   : > { %v9341_v54 = vpack.i.bf16 %v11897_v60, %v11894_v20 }
 0xde2   : > { %v3644_v51 = vpop.permute.xlu1 %3643 }
 0xde3   : > { %9342 = vrot.lane.b32.xlu1 %v9341_v54, %s10106_s22  ;;  %v11905_v55 = vmul.f32 %v11798_v23, %v3644_v51 }
 0xde6   : > { %v3646_v57 = vpop.permute.xlu0 %3645 }
 0xde7   : > { %v11908_v34 = vmul.f32 %v11802_v11, %v3646_v57 }
 0xde9   : > { %v9346_v43 = vpack.i.bf16 %v11908_v34, %v11905_v55 }
 0xdeb   : > { %9347 = vrot.lane.b32.xlu1 %v9346_v43, %s10108_s26 }
 0xe19   : > { %v3648_v9 = vpop.permute.xlu1 %3647 }
 0xe1a   : > { %v11916_v44 = vmul.f32 %v11821_v4, %v3648_v9 }
 0xe1d   : > { %v3632_v26 = vpop.permute.xlu1 %3631  ;;  %v3650_v22 = vpop.permute.xlu0 %3649 }
 0xe1e   : > { %v11919_v23 = vmul.f32 %v11829_v16, %v3650_v22  ;;  %v11926_v3 = vmul.f32 %v11818_v7, %v3632_v26 }
 0xe20   : > { %v9351_v11 = vpack.i.bf16 %v11919_v23, %v11916_v44 }
 0xe21   : > { %v3636_v5 = vpop.permute.xlu1 %3635  ;;  %v3634_v35 = vpop.permute.xlu0 %3633 }
 0xe22   : > { %v11929_v46 = vmul.f32 %v11824_v31, %v3634_v35  ;;  %9352 = vrot.lane.b32.xlu1 %v9351_v11, %s10107_s25  ;;  %v11937_v59 = vmul.f32 %v11826_v50, %v3636_v5 }
 0xe24   : > { %v9356_v4 = vpack.i.bf16 %v11929_v46, %v11926_v3 }
 0xe25   : > { %v3620_v37 = vpop.permute.xlu1 %3619  ;;  %v3638_v49 = vpop.permute.xlu0 %3637 }
 0xe26   : > { %v11940_v53 = vmul.f32 %v11840_v15, %v3638_v49  ;;  %9357 = vrot.lane.b32.xlu0 %v9356_v4, %s10107_s25  ;;  %v11946_v32 = vmul.f32 %v11833_v12, %v3620_v37 }
 0xe29   : > { %v3622_v31 = vpop.permute.xlu0 %3621  ;;  %v3652_v54 = vpop.permute.xlu1 %3651 }
 0xe2a   : > { %v11949_v40 = vmul.f32 %v11847_v30, %v3622_v31  ;;  %v3689_v15 = vmul.f32 %v11854_v2, %v3652_v54 }
 0xe2c   : > { %v3827_v50 = vpack.c.bf16 %v11949_v40, %v11946_v32 }
 0xe2d   : > { %v3654_v51 = vpop.permute.xlu0 %3653 }
 0xe2e   : > { %v3690_v57 = vmul.f32 %v11863_v8, %v3654_v51 }
 0xe30   : > { %v11955_v43 = vpack.c.bf16 %v3690_v57, %v3689_v15 }
 0xe32   : > { %7920 = vmatmul.mubr.msk.bf16.vlgmr.msra.gmra.mxu0 %vm658_vm2, %v11955_v43 }
 0xe33   : > { %3869 = vmatprep.mubr.bf16.mxu0 %v13495_v39 }
 0xe35   : > { %v9333_v9 = vpop.permute.xlu0 %9332 }
 0xe36   : > { %v9335_v4 = vunpack.i.h.bf16 %v9333_v9  ;;  %v9334_v37 = vunpack.i.l.bf16 %v9333_v9 }
 0xe3d   : > { %v9338_v35 = vpop.permute.xlu0 %9337 }
 0xe3e   : > { %v9340_v51 = vunpack.i.h.bf16 %v9338_v35  ;;  %v9339_v15 = vunpack.i.l.bf16 %v9338_v35 }
 0xe55   : > { %v9343_v12 = vpop.permute.xlu1 %9342 }
 0xe56   : > { %v9345_v26 = vunpack.i.h.bf16 %v9343_v12  ;;  %v9344_v22 = vunpack.i.l.bf16 %v9343_v12 }
 0xe58   : > { %v3822_v8 = vsel %vm658_vm2, %v11940_v53, %v9345_v26  ;;  %v3821_v49 = vsel %vm658_vm2, %v11937_v59, %v9344_v22  ;;  %v3816_v26 = vsel %vm658_vm2, %v11949_v40, %v9335_v4  ;;  %v3815_v22 = vsel %vm658_vm2, %v11946_v32, %v9334_v37  ;;  %v13498_v37 = vld [vmem:[#allocation5_spill] sm:$0xff] }
 0xe59   : > { %v3817_v35 = vsel %vm734_vm3, %v3815_v22, %v9339_v15 }
 0xe5d   : > { %v9348_v30 = vpop.permute.xlu1 %9347 }
 0xe5e   : > { %v9350_v11 = vunpack.i.h.bf16 %v9348_v30  ;;  %v9349_v5 = vunpack.i.l.bf16 %v9348_v30 }
 0xe60   : > { %v3823_v57 = vsel %vm734_vm3, %v3821_v49, %v9349_v5  ;;  %v3824_v12 = vsel %vm734_vm3, %v3822_v8, %v9350_v11  ;;  %v3818_v5 = vsel %vm734_vm3, %v3816_v26, %v9340_v51  ;;  %v13499_v51 = vld [vmem:[#allocation6_spill] sm:$0xff] }
 0xe94   : > { %v9353_v2 = vpop.permute.xlu1 %9352 }
 0xe95   : > { %v9355_v31 = vunpack.i.h.bf16 %v9353_v2  ;;  %v9354_v54 = vunpack.i.l.bf16 %v9353_v2 }
 0xe97   : > { %v3825_v30 = vsel %vm1173_vm5, %v3823_v57, %v9354_v54  ;;  %v3826_v42 = vsel %vm1173_vm5, %v3824_v12, %v9355_v31 }
 0xe98   : > { %v9358_v9 = vpop.permute.xlu0 %9357  ;;  %v3836_v38 = vpack.c.bf16 %v3826_v42, %v3825_v30  ;;  %v13497_v42 = vld [vmem:[#allocation4_spill] sm:$0xff] }
 0xe99   : > { %v9360_v56 = vunpack.i.h.bf16 %v9358_v9  ;;  %v9359_v2 = vunpack.i.l.bf16 %v9358_v9 }
 0xe9a   : > { %3851 = vmatprep.subr.bf16.mxu0 %v3836_v38 }
 0xe9b   : > { %v3819_v11 = vsel %vm1173_vm5, %v3817_v35, %v9359_v2  ;;  %v3820_v8 = vsel %vm1173_vm5, %v3818_v5, %v9360_v56 }
 0xe9c   : > { %v3835_v49 = vpack.c.bf16 %v3820_v8, %v3819_v11 }
 0xe9e   : > { %3852 = vmatpush1.bf16.msra.mxu0 %v3835_v49 }
 0xe9f   : > { %8625 = vmatprep.subr.bf16.mxu0 %v13483_v25 }
 0xea1   : > { %7921 = vmatmul.mubr.msk.bf16.vlgmr.msra.gmra.mxu0 %vm480_vm4, %v10686_v47 }
 0xea2   : > { %8626 = vmatpush3.bf16.msra.mxu0 %v11955_v43  ;;  %8627 = vmatprep.mubr.msk.bf16.mxu0 %vm10111_vm6, %v13483_v25 }
 0xea9   : > { %8628 = vmatmul.mubr.msk.bf16.vlgmr.msra.gmra.mxu0 %vm480_vm4, %v10686_v47 }
 0xeaa   : > { %4002 = vmatprep.mubr.bf16.mxu0 %v13495_v39 }
 0xef2   : > { %v3754_v38 = vpop.f32.mrf.mxu0 }
 0xef3   : > { %v11986_v56 = vadd.f32 %v3754_v38, %v13497_v42 }
 0xef4   : > { %v3756_v4 = vpop.f32.mrf.mxu0 }
 0xef5   : > { %v11989_v31 = vadd.f32 %v3756_v4, %v13498_v37 }
 0xef6   : > { %v3758_v54 = vpop.f32.mrf.mxu0 }
 0xef7   : > { %v11992_v15 = vadd.f32 %v3758_v54, %v13499_v51 }
 0xef8   : > { %v11994_v57 = vpop.f32.mrf.mxu0 }
 0xf61   : > { %v3871_v12 = vpop.f32.mrf.mxu0 }
 0xf63   : > { %v3873_v30 = vpop.f32.mrf.mxu0 }
 0xf65   : > { %v3875_v9 = vpop.f32.mrf.mxu0 }
 0xf66   : > { %v9361_v26 = vpack.i.bf16 %v3875_v9, %v3871_v12  ;;  %v3961_v35 = vpack.c.bf16 %v3875_v9, %v3871_v12 }
 0xf67   : > { %v3877_v22 = vpop.f32.mrf.mxu0 }
 0xf68   : > { %9362 = vrot.lane.b32.xlu1 %v9361_v26, %s10107_s25  ;;  %v3965_v2 = vpack.c.bf16 %v3877_v22, %v3873_v30  ;;  %v9391_v42 = vpack.i.bf16 %v3877_v22, %v3873_v30 }
 0xf69   : > { %v3914_v5 = vpop.f32.mrf.mxu0 }
 0xf6a   : > { %3984 = vmatprep.subr.bf16.mxu0 %v3965_v2 }
 0xf6b   : > { %v8629_v11 = vpop.f32.mrf.mxu0  ;;  %3985 = vmatpush1.bf16.msra.mxu0 %v3961_v35 }
 0xf6c   : > { %9372 = vrot.lane.b32.xlu1 %v9361_v26, %s10108_s26  ;;  %8637 = vmatprep.subr.bf16.mxu0 %v13483_v25 }
 0xf6d   : > { %v3917_v8 = vpop.f32.mrf.mxu0 }
 0xf6e   : > { %v3969_v49 = vpack.c.bf16 %v3917_v8, %v3914_v5  ;;  %7923 = vmatmul.mubr.msk.bf16.vlgmr.msra.gmra.mxu0 %vm480_vm4, %v10686_v47 }
 0xf6f   : > { %v8630_v38 = vpop.f32.mrf.mxu0  ;;  %8649 = vmatprep.mubr.msk.bf16.mxu0 %vm10111_vm6, %v13483_v25 }
 0xf70   : > { %9382 = vrot.lane.b32.xlu1 %v9361_v26, %s10106_s22  ;;  %8632 = vmatpush3.bf16.msra.mxu1 %v3969_v49 }
 0xf71   : > { %8685 = vmatprep.subr.bf16.mxu1 %v13483_v25 }
 0xf73   : > { %8634 = vmatmul.mubr.msk.bf16.vlgmr.msra.gmra.mxu1 %vm480_vm4, %v10686_v47 }
 0xf74   : > { %9392 = vrot.lane.b32.xlu1 %v9391_v42, %s10107_s25  ;;  %8693 = vmatprep.mubr.msk.bf16.mxu1 %vm10111_vm6, %v13483_v25 }
 0xf78   : > { %9402 = vrot.lane.b32.xlu1 %v9391_v42, %s10108_s26 }
 0xf7c   : > { %9412 = vrot.lane.b32.xlu1 %v9391_v42, %s10106_s22 }
 0xf80   : > { %4112 = vrot.lane.b32.xlu1 %v3961_v35, %s10106_s22 }
 0xfda   : > { %v9363_v4 = vpop.permute.xlu1 %9362 }
 0xfdb   : > { %v9365_v37 = vunpack.i.h.bf16 %v9363_v4  ;;  %v9364_v54 = vunpack.i.l.bf16 %v9363_v4 }
 0xfdd   : > { %v3962_v51 = vpack.c.bf16 %v9365_v37, %v9364_v54 }
 0xfde   : > { %v9373_v12 = vpop.permute.xlu1 %9372 }
 0xfdf   : > { %v9375_v30 = vunpack.i.h.bf16 %v9373_v12  ;;  %v9374_v9 = vunpack.i.l.bf16 %v9373_v12  ;;  %4114 = vrot.lane.b32.xlu1 %v3962_v51, %s10106_s22 }
 0xfe1   : > { %v3963_v26 = vpack.c.bf16 %v9375_v30, %v9374_v9 }
 0xfe2   : > { %v9383_v22 = vpop.permute.xlu1 %9382 }
 0xfe3   : > { %v9385_v5 = vunpack.i.h.bf16 %v9383_v22  ;;  %v9384_v11 = vunpack.i.l.bf16 %v9383_v22  ;;  %4116 = vrot.lane.b32.xlu1 %v3963_v26, %s10106_s22 }
 0xfe5   : > { %v3964_v8 = vpack.c.bf16 %v9385_v5, %v9384_v11 }
 0xfe6   : > { %v9393_v38 = vpop.permute.xlu1 %9392 }
 0xfe7   : > { %4118 = vrot.lane.b32.xlu1 %v3964_v8, %s10106_s22  ;;  %v9395_v35 = vunpack.i.h.bf16 %v9393_v38  ;;  %v9394_v42 = vunpack.i.l.bf16 %v9393_v38 }
 0xfe9   : > { %v3966_v4 = vpack.c.bf16 %v9395_v35, %v9394_v42  ;;  %v9781_v42 = vld [vmem:[%s13471_s6 + $0x70] sm:$0xff]  }
 0xfea   : > { %v9403_v7 = vpop.permute.xlu1 %9402 }
 0xfeb   : > { %4120 = vrot.lane.b32.xlu1 %v3965_v2, %s10106_s22  ;;  %v9405_v37 = vunpack.i.h.bf16 %v9403_v7  ;;  %v9404_v54 = vunpack.i.l.bf16 %v9403_v7  ;;  %v9778_v2 = vld [vmem:[%s13471_s6 + $0x88] sm:$0xff]   ;;  %v9779_v7 = vld [vmem:[%s13471_s6 + $0x80] sm:$0xff]  }
 0xfec   : > { %8638 = vmatpush3.bf16.msra.mxu0 %v9778_v2 }
 0xfed   : > { %v3967_v51 = vpack.c.bf16 %v9405_v37, %v9404_v54  ;;  %8639 = vmatprep.subr.bf16.mxu0 %v13483_v25 }
 0xfee   : > { %v9413_v12 = vpop.permute.xlu1 %9412 }
 0xfef   : > { %4122 = vrot.lane.b32.xlu1 %v3966_v4, %s10106_s22  ;;  %v9415_v30 = vunpack.i.h.bf16 %v9413_v12  ;;  %v9414_v9 = vunpack.i.l.bf16 %v9413_v12  ;;  %v9782_v12 = vld [vmem:[%s13471_s6 + $0x68] sm:$0xff]  }
 0xff0   : > { %8640 = vmatpush3.bf16.msra.mxu0 %v9779_v7 }
 0xff1   : > { %v3968_v26 = vpack.c.bf16 %v9415_v30, %v9414_v9  ;;  %8641 = vmatprep.subr.bf16.mxu0 %v13483_v25  ;;  %v9783_v30 = vld [vmem:[%s13471_s6 + $0x60] sm:$0xff]  }
 0xff3   : > { %4124 = vrot.lane.b32.xlu1 %v3967_v51, %s10106_s22 }
 0xff7   : > { %4126 = vrot.lane.b32.xlu1 %v3968_v26, %s10106_s22 }
 0xffb   : > { %4128 = vrot.lane.b32.xlu1 %v3969_v49, %s10106_s22  ;;  %v9780_v49 = vld [vmem:[%s13471_s6 + $0x78] sm:$0xff]  }
 0xffc   : > { %8642 = vmatpush3.bf16.msra.mxu0 %v9780_v49 }
 0xffd   : > { %8643 = vmatprep.subr.bf16.mxu0 %v13483_v25 }
0x1000   : > { %8644 = vmatpush3.bf16.msra.mxu0 %v9781_v42 }
0x1001   : > { %8645 = vmatprep.subr.bf16.mxu0 %v13483_v25 }
0x1004   : > { %8646 = vmatpush3.bf16.msra.mxu0 %v9782_v12 }
0x1005   : > { %8647 = vmatprep.subr.bf16.mxu0 %v13483_v25 }
0x1008   : > { %8648 = vmatpush3.bf16.msra.mxu0 %v9783_v30 }
0x1009   : > { %8721 = vmatprep.subr.bf16.mxu0 %v13483_v25 }
0x102e   : > { %v4004_v22 = vpop.f32.mrf.mxu0 }
0x1030   : > { %v4006_v5 = vpop.f32.mrf.mxu0 }
0x1032   : > { %v4008_v11 = vpop.f32.mrf.mxu0 }
0x1033   : > { %v9366_v8 = vpack.i.bf16 %v4008_v11, %v4004_v22  ;;  %v12032_v38 = vpop.f32.mrf.mxu1  ;;  %v4094_v26 = vpack.c.bf16 %v4008_v11, %v4004_v22 }
0x1034   : > { %v4010_v51 = vpop.f32.mrf.mxu0 }
0x1035   : > { %9367 = vrot.lane.b32.xlu0 %v9366_v8, %s10107_s25  ;;  %v8635_v35 = vpop.f32.mrf.mxu1  ;;  %v9396_v9 = vpack.i.bf16 %v4010_v51, %v4006_v5 }
0x1037   : > { %v4050_v4 = vpop.f32.mrf.mxu1 }
0x1038   : > { %v4102_v37 = vpack.c.bf16 %v4050_v4, %v12032_v38 }
0x1039   : > { %9377 = vrot.lane.b32.xlu0 %v9366_v8, %s10108_s26  ;;  %v8636_v54 = vpop.f32.mrf.mxu1 }
0x103d   : > { %9387 = vrot.lane.b32.xlu0 %v9366_v8, %s10106_s22 }
0x1041   : > { %9397 = vrot.lane.b32.xlu0 %v9396_v9, %s10107_s25 }
0x1045   : > { %9407 = vrot.lane.b32.xlu0 %v9396_v9, %s10108_s26 }
0x1049   : > { %9417 = vrot.lane.b32.xlu0 %v9396_v9, %s10106_s22 }
0x104d   : > { %4139 = vrot.lane.b32.xlu0 %v4094_v26, %s10108_s26  ;;  %v4098_v26 = vpack.c.bf16 %v4010_v51, %v4006_v5 }
0x10a7   : > { %v9368_v2 = vpop.permute.xlu0 %9367 }
0x10a8   : > { %v9370_v7 = vunpack.i.h.bf16 %v9368_v2  ;;  %v9369_v49 = vunpack.i.l.bf16 %v9368_v2 }
0x10aa   : > { %v4095_v8 = vpack.c.bf16 %v9370_v7, %v9369_v49 }
0x10ab   : > { %v9378_v38 = vpop.permute.xlu0 %9377 }
0x10ac   : > { %v9380_v35 = vunpack.i.h.bf16 %v9378_v38  ;;  %v9379_v42 = vunpack.i.l.bf16 %v9378_v38  ;;  %4141 = vrot.lane.b32.xlu0 %v4095_v8, %s10108_s26 }
0x10ae   : > { %v4096_v4 = vpack.c.bf16 %v9380_v35, %v9379_v42  ;;  %v4113_v35 = vpop.permute.xlu1 %4112 }
0x10af   : > { %v9388_v54 = vpop.permute.xlu0 %9387 }
0x10b0   : > { %v9390_v12 = vunpack.i.h.bf16 %v9388_v54  ;;  %v9389_v30 = vunpack.i.l.bf16 %v9388_v54  ;;  %4143 = vrot.lane.b32.xlu0 %v4096_v4, %s10108_s26 }
0x10b2   : > { %v4097_v16 = vpack.c.bf16 %v9390_v12, %v9389_v30  ;;  %v4115_v30 = vpop.permute.xlu1 %4114 }
0x10b3   : > { %v9398_v9 = vpop.permute.xlu0 %9397  ;;  %v4162_v32 = vsel %vm658_vm2, %v3828_v13, %v4115_v30  ;;  %v13500_v13 = vpack.c.bf16 %v11929_v46, %v11926_v3 }
0x10b4   : > { %4145 = vrot.lane.b32.xlu0 %v4097_v16, %s10108_s26  ;;  %v9400_v22 = vunpack.i.h.bf16 %v9398_v9  ;;  %v9399_v11 = vunpack.i.l.bf16 %v9398_v9  ;;  %v4159_v16 = vsel %vm658_vm2, %v3827_v50, %v4113_v35 }
0x10b6   : > { %v4099_v7 = vpack.c.bf16 %v9400_v22, %v9399_v11  ;;  %v4117_v9 = vpop.permute.xlu1 %4116 }
0x10b7   : > { %v9408_v2 = vpop.permute.xlu0 %9407 }
0x10b8   : > { %4147 = vrot.lane.b32.xlu0 %v4098_v26, %s10108_s26  ;;  %v9410_v49 = vunpack.i.h.bf16 %v9408_v2  ;;  %v9409_v38 = vunpack.i.l.bf16 %v9408_v2 }
0x10ba   : > { %v4100_v42 = vpack.c.bf16 %v9410_v49, %v9409_v38  ;;  %v4119_v52 = vpop.permute.xlu1 %4118  ;;  %v13502_v38 = vpack.c.bf16 %v11897_v60, %v11894_v20 }
0x10bb   : > { %v9418_v8 = vpop.permute.xlu0 %9417  ;;  %v4168_v26 = vsel %vm658_vm2, %v13500_v13, %v4119_v52 }
0x10bc   : > { %4149 = vrot.lane.b32.xlu0 %v4099_v7, %s10108_s26  ;;  %v9420_v54 = vunpack.i.h.bf16 %v9418_v8  ;;  %v9419_v4 = vunpack.i.l.bf16 %v9418_v8 }
0x10be   : > { %v4101_v51 = vpack.c.bf16 %v9420_v54, %v9419_v4  ;;  %v4121_v58 = vpop.permute.xlu1 %4120 }
0x10bf   : > { %v4140_v12 = vpop.permute.xlu0 %4139 }
0x10c0   : > { %v4184_v5 = vsel %vm734_vm3, %v4159_v16, %v4140_v12  ;;  %4151 = vrot.lane.b32.xlu0 %v4100_v42, %s10108_s26  ;;  %v13503_v42 = vpack.c.bf16 %v11908_v34, %v11905_v55  ;;  %v13504_v16 = vpack.c.bf16 %v11919_v23, %v11916_v44 }
0x10c1   : > { %8650 = vmatmul.mubr.msk.bf16.vlgmr.msra.gmra.mxu0 %vm1173_vm5, %v4184_v5 }
0x10c2   : > { %8653 = vmatprep.mubr.msk.bf16.mxu0 %vm10111_vm6, %v13483_v25  ;;  %v4123_v3 = vpop.permute.xlu1 %4122 }
0x10c3   : > { %v4174_v8 = vsel %vm658_vm2, %v13502_v38, %v4123_v3 }
0x10c4   : > { %4153 = vrot.lane.b32.xlu0 %v4101_v51, %s10108_s26 }
0x10c8   : > { %4155 = vrot.lane.b32.xlu0 %v4102_v37, %s10108_s26  ;;  %v4165_v37 = vsel %vm658_vm2, %v3829_v27, %v4117_v9  ;;  %v13501_v27 = vpack.c.bf16 %v11940_v53, %v11937_v59  ;;  %v4125_v59 = vpop.permute.xlu1 %4124  ;;  %v9786_v9 = vld [vmem:[%s13468_s3 + $0x68] sm:$0xff]  }
0x10c9   : > { %v4177_v54 = vsel %vm658_vm2, %v13503_v42, %v4125_v59  ;;  %v12176_v59 = vld [vmem:[%s13474_s9 + $0x2] ss:$0 sm:$0xff] }
0x10ca   : > { %v4171_v7 = vsel %vm658_vm2, %v13501_v27, %v4121_v58 }
0x10cc   : > { %v4127_v20 = vpop.permute.xlu1 %4126 }
0x10cd   : > { %v4180_v12 = vsel %vm658_vm2, %v13504_v16, %v4127_v20 }
0x10d0   : > { %v4129_v55 = vpop.permute.xlu1 %4128 }
0x10d1   : > { %v4182_v51 = vsel %vm658_vm2, %v11955_v43, %v4129_v55  ;;  %v9785_v43 = vld [vmem:[%s13468_s3 + $0x70] sm:$0xff]  }
0x111e   : > { %v4142_v40 = vpop.permute.xlu0 %4141 }
0x111f   : > { %v4186_v50 = vsel %vm734_vm3, %v4162_v32, %v4142_v40 }
0x1120   : > { %8654 = vmatmul.mubr.msk.bf16.gmra.mxu0 %vm1173_vm5, %v4186_v50  ;;  %v9784_v50 = vld [vmem:[%s13468_s3 + $0x78] sm:$0xff]  }
0x1121   : > { %8657 = vmatprep.mubr.msk.bf16.mxu0 %vm10111_vm6, %v13483_v25  ;;  %8686 = vmatpush3.bf16.msra.mxu1 %v9784_v50 }
0x1122   : > { %v4144_v22 = vpop.permute.xlu0 %4143  ;;  %8687 = vmatprep.subr.bf16.mxu1 %v13483_v25 }
0x1123   : > { %v4188_v11 = vsel %vm734_vm3, %v4165_v37, %v4144_v22 }
0x1125   : > { %8688 = vmatpush3.bf16.msra.mxu1 %v9785_v43 }
0x1126   : > { %v4146_v17 = vpop.permute.xlu0 %4145  ;;  %8689 = vmatprep.subr.bf16.mxu1 %v13483_v25 }
0x1127   : > { %v4190_v2 = vsel %vm734_vm3, %v4168_v26, %v4146_v17  ;;  %v12156_v17 = vld [vmem:[%s13472_s7 + $0x2] ss:$0 sm:$0xff] }
0x1128   : > { %8658 = vmatmul.mubr.msk.bf16.gmra.mxu0 %vm1173_vm5, %v4188_v11 }
0x1129   : > { %8661 = vmatprep.mubr.msk.bf16.mxu0 %vm10111_vm6, %v13483_v25  ;;  %8690 = vmatpush3.bf16.msra.mxu1 %v9786_v9 }
0x112a   : > { %v4148_v48 = vpop.permute.xlu0 %4147  ;;  %8691 = vmatprep.subr.bf16.mxu1 %v13483_v25 }
0x112b   : > { %v4192_v49 = vsel %vm734_vm3, %v4171_v7, %v4148_v48  ;;  %v9787_v48 = vld [vmem:[%s13468_s3 + $0x60] sm:$0xff]  }
0x112d   : > { %8692 = vmatpush3.bf16.msra.mxu1 %v9787_v48 }
0x112e   : > { %v4150_v46 = vpop.permute.xlu0 %4149 }
0x112f   : > { %v4194_v35 = vsel %vm734_vm3, %v4174_v8, %v4150_v46 }
0x1130   : > { %8662 = vmatmul.mubr.msk.bf16.gmra.mxu0 %vm1173_vm5, %v4190_v2 }
0x1131   : > { %8665 = vmatprep.mubr.msk.bf16.mxu0 %vm10111_vm6, %v13483_v25 }
0x1132   : > { %v4152_v53 = vpop.permute.xlu0 %4151 }
0x1133   : > { %v4196_v4 = vsel %vm734_vm3, %v4177_v54, %v4152_v53 }
0x1136   : > { %v4154_v60 = vpop.permute.xlu0 %4153 }
0x1137   : > { %v4198_v5 = vsel %vm734_vm3, %v4180_v12, %v4154_v60 }
0x1138   : > { %8666 = vmatmul.mubr.msk.bf16.gmra.mxu0 %vm1173_vm5, %v4192_v49  ;;  %v12167_v49 = vld [vmem:[%s13473_s8 + $0x2] ss:$0 sm:$0xff] }
0x1139   : > { %8669 = vmatprep.mubr.msk.bf16.mxu0 %vm10111_vm6, %v13483_v25 }
0x113a   : > { %v4156_v34 = vpop.permute.xlu0 %4155 }
0x113b   : > { %v4200_v30 = vsel %vm734_vm3, %v4182_v51, %v4156_v34 }
0x1140   : > { %8670 = vmatmul.mubr.msk.bf16.gmra.mxu0 %vm1173_vm5, %v4194_v35 }
0x1141   : > { %8673 = vmatprep.mubr.msk.bf16.mxu0 %vm10111_vm6, %v13483_v25 }
0x1148   : > { %8674 = vmatmul.mubr.msk.bf16.gmra.mxu0 %vm1173_vm5, %v4196_v4 }
0x1149   : > { %8677 = vmatprep.mubr.msk.bf16.mxu0 %vm10111_vm6, %v13483_v25 }
0x1150   : > { %8678 = vmatmul.mubr.msk.bf16.gmra.mxu0 %vm1173_vm5, %v4198_v5 }
0x1151   : > { %8681 = vmatprep.mubr.msk.bf16.mxu0 %vm10111_vm6, %v13483_v25 }
0x1158   : > { %8682 = vmatmul.mubr.msk.bf16.gmra.mxu0 %vm1173_vm5, %v4200_v30 }
0x1159   : > { %8733 = vmatprep.mubr.msk.bf16.mxu0 %vm10111_vm6, %v13483_v25 }
0x1181   : > { %v12133_v44 = vpop.f32.mrf.mxu0 }
0x1183   : > { %v8651_v23 = vpop.f32.mrf.mxu0 }
0x1185   : > { %v12135_v32 = vpop.f32.mrf.mxu0 }
0x1187   : > { %v8652_v40 = vpop.f32.mrf.mxu0 }
0x11e0   : > { %v12149_v22 = vpop.f32.mrf.mxu0 }
0x11e2   : > { %v8655_v37 = vpop.f32.mrf.mxu0 }
0x11e4   : > { %v12151_v11 = vpop.f32.mrf.mxu0 }
0x11e6   : > { %v8656_v52 = vpop.f32.mrf.mxu0 }
0x11e8   : > { %v4326_v13 = vpop.f32.mrf.mxu0 }
0x11e9   : > { %v4327_v26 = vadd.f32 %v12156_v17, %v4326_v13 }
0x11ea   : > { %v8659_v2 = vpop.f32.mrf.mxu0 }
0x11eb   : > { %v4385_v58 = vadd.f32 %v4327_v26, %v11585_v24 }
0x11ec   : > { %v4329_v27 = vpop.f32.mrf.mxu0 }
0x11ed   : > { %v4330_v7 = vadd.f32 %v12156_v17, %v4329_v27  ;;  %v4411_v46 = vmul.f32 %v12167_v49, %v4385_v58 }
0x11ee   : > { %v8660_v3 = vpop.f32.mrf.mxu0 }
0x11ef   : > { %v4386_v38 = vadd.f32 %v4330_v7, %v11580_v14  ;;  %v12179_v42 = vadd.f32 %v12176_v59, %v4411_v46 }
0x11f0   : > { %v4334_v8 = vpop.f32.mrf.mxu0 }
0x11f1   : > { %v4412_v24 = vmul.f32 %v12167_v49, %v4386_v38  ;;  %v4335_v35 = vadd.f32 %v12156_v17, %v4334_v8 }
0x11f2   : > { %v8663_v53 = vpop.f32.mrf.mxu0 }
0x11f3   : > { %v12182_v54 = vadd.f32 %v12176_v59, %v4412_v24  ;;  %v4387_v4 = vadd.f32 %v4335_v35, %v11624_v6 }
0x11f4   : > { %v4337_v14 = vpop.f32.mrf.mxu0 }
0x11f5   : > { %v4338_v20 = vadd.f32 %v12156_v17, %v4337_v14  ;;  %v9421_v60 = vpack.i.bf16 %v12182_v54, %v12179_v42  ;;  %v4413_v12 = vmul.f32 %v12167_v49, %v4387_v4 }
0x11f6   : > { %v8664_v16 = vpop.f32.mrf.mxu0 }
0x11f7   : > { %v4388_v5 = vadd.f32 %v4338_v20, %v11619_v18  ;;  %9422 = vrot.lane.b32.xlu1 %v9421_v60, %s10106_s22  ;;  %v12194_v6 = vadd.f32 %v12176_v59, %v4413_v12 }
0x11f8   : > { %v4342_v55 = vpop.f32.mrf.mxu0 }
0x11f9   : > { %v4414_v34 = vmul.f32 %v12167_v49, %v4388_v5  ;;  %v4343_v51 = vadd.f32 %v12156_v17, %v4342_v55 }
0x11fa   : > { %v8667_v30 = vpop.f32.mrf.mxu0 }
0x11fb   : > { %v12197_v23 = vadd.f32 %v12176_v59, %v4414_v34  ;;  %v4389_v40 = vadd.f32 %v4343_v51, %v11616_v33 }
0x11fc   : > { %v4345_v50 = vpop.f32.mrf.mxu0 }
0x11fd   : > { %v4346_v43 = vadd.f32 %v12156_v17, %v4345_v50  ;;  %v9426_v18 = vpack.i.bf16 %v12197_v23, %v12194_v6  ;;  %v4415_v37 = vmul.f32 %v12167_v49, %v4389_v40 }
0x11fe   : > { %v8668_v9 = vpop.f32.mrf.mxu0 }
0x11ff   : > { %v4390_v52 = vadd.f32 %v4346_v43, %v11610_v10  ;;  %9427 = vrot.lane.b32.xlu0 %v9426_v18, %s10106_s22  ;;  %v12209_v33 = vadd.f32 %v12176_v59, %v4415_v37 }
0x1200   : > { %v4350_v13 = vpop.f32.mrf.mxu0 }
0x1201   : > { %v4416_v26 = vmul.f32 %v12167_v49, %v4390_v52  ;;  %v4351_v2 = vadd.f32 %v12156_v17, %v4350_v13 }
0x1202   : > { %v8671_v58 = vpop.f32.mrf.mxu0 }
0x1203   : > { %v12212_v48 = vadd.f32 %v12176_v59, %v4416_v26  ;;  %v4391_v27 = vadd.f32 %v4351_v2, %v11646_v28 }
0x1204   : > { %v4353_v7 = vpop.f32.mrf.mxu0 }
0x1205   : > { %v4354_v3 = vadd.f32 %v12156_v17, %v4353_v7  ;;  %v9431_v10 = vpack.i.bf16 %v12212_v48, %v12209_v33  ;;  %v4417_v38 = vmul.f32 %v12167_v49, %v4391_v27 }
0x1206   : > { %v8672_v46 = vpop.f32.mrf.mxu0 }
0x1207   : > { %v4392_v8 = vadd.f32 %v4354_v3, %v11649_v61  ;;  %9432 = vrot.lane.b32.xlu1 %v9431_v10, %s10106_s22  ;;  %v12224_v28 = vadd.f32 %v12176_v59, %v4417_v38 }
0x1208   : > { %v4358_v24 = vpop.f32.mrf.mxu0 }
0x1209   : > { %v4418_v35 = vmul.f32 %v12167_v49, %v4392_v8  ;;  %v4359_v53 = vadd.f32 %v12156_v17, %v4358_v24 }
0x120a   : > { %v8675_v4 = vpop.f32.mrf.mxu0 }
0x120b   : > { %v12227_v14 = vadd.f32 %v12176_v59, %v4418_v35  ;;  %v4393_v20 = vadd.f32 %v4359_v53, %v11639_v36 }
0x120c   : > { %v4361_v60 = vpop.f32.mrf.mxu0 }
0x120d   : > { %v4362_v16 = vadd.f32 %v12156_v17, %v4361_v60  ;;  %v9436_v61 = vpack.i.bf16 %v12227_v14, %v12224_v28  ;;  %v4419_v5 = vmul.f32 %v12167_v49, %v4393_v20  ;;  %v4311_v20 = vadd.f32 %v12156_v17, %v12133_v44 }
0x120e   : > { %v8676_v12 = vpop.f32.mrf.mxu0 }
0x120f   : > { %v4394_v55 = vadd.f32 %v4362_v16, %v11642_v0  ;;  %9437 = vrot.lane.b32.xlu0 %v9436_v61, %s10106_s22  ;;  %v12239_v36 = vadd.f32 %v12176_v59, %v4419_v5  ;;  %v4381_v60 = vadd.f32 %v4311_v20, %v11564_v29  ;;  %v4319_v5 = vadd.f32 %v12156_v17, %v12149_v22 }
0x1210   : > { %v4366_v34 = vpop.f32.mrf.mxu0 }
0x1211   : > { %v4420_v51 = vmul.f32 %v12167_v49, %v4394_v55  ;;  %v4367_v30 = vadd.f32 %v12156_v17, %v4366_v34  ;;  %v4407_v61 = vmul.f32 %v12167_v49, %v4381_v60  ;;  %v4322_v55 = vadd.f32 %v12156_v17, %v12151_v11 }
0x1212   : > { %v8679_v40 = vpop.f32.mrf.mxu0 }
0x1213   : > { %v12242_v50 = vadd.f32 %v12176_v59, %v4420_v51  ;;  %v4395_v43 = vadd.f32 %v4367_v30, %v11676_v62  ;;  %v4433_v34 = vadd.f32 %v12176_v59, %v4407_v61  ;;  %v4384_v29 = vadd.f32 %v4322_v55, %v11589_v63 }
0x1214   : > { %v4369_v18 = vpop.f32.mrf.mxu0 }
0x1215   : > { %v4370_v9 = vadd.f32 %v12156_v17, %v4369_v18  ;;  %v9441_v0 = vpack.i.bf16 %v12242_v50, %v12239_v36  ;;  %v4421_v52 = vmul.f32 %v12167_v49, %v4395_v43  ;;  %v4410_v11 = vmul.f32 %v12167_v49, %v4384_v29 }
0x1216   : > { %v8680_v37 = vpop.f32.mrf.mxu0 }
0x1217   : > { %v4396_v13 = vadd.f32 %v4370_v9, %v11679_v1  ;;  %9442 = vrot.lane.b32.xlu1 %v9441_v0, %s10106_s22  ;;  %v12254_v62 = vadd.f32 %v12176_v59, %v4421_v52  ;;  %v4436_v63 = vadd.f32 %v12176_v59, %v4410_v11  ;;  %v12343_v11 = vld [vmem:[%s13469_s4 + $0x3] ss:$0 sm:$0xff] }
0x1218   : > { %v4374_v26 = vpop.f32.mrf.mxu0 }
0x1219   : > { %v4422_v2 = vmul.f32 %v12167_v49, %v4396_v13  ;;  %v4375_v58 = vadd.f32 %v12156_v17, %v4374_v26 }
0x121a   : > { %v8683_v27 = vpop.f32.mrf.mxu0 }
0x121b   : > { %v12257_v7 = vadd.f32 %v12176_v59, %v4422_v2  ;;  %v4397_v3 = vadd.f32 %v4375_v58, %v11669_v41 }
0x121c   : > { %v4377_v10 = vpop.f32.mrf.mxu0 }
0x121d   : > { %v4378_v46 = vadd.f32 %v12156_v17, %v4377_v10  ;;  %v9446_v1 = vpack.i.bf16 %v12257_v7, %v12254_v62  ;;  %v4423_v8 = vmul.f32 %v12167_v49, %v4397_v3 }
0x121e   : > { %v8684_v38 = vpop.f32.mrf.mxu0 }
0x121f   : > { %v4398_v24 = vadd.f32 %v4378_v46, %v11672_v21  ;;  %9447 = vrot.lane.b32.xlu0 %v9446_v1, %s10106_s22  ;;  %v12268_v53 = vadd.f32 %v12176_v59, %v4423_v8  ;;  %v4314_v21 = vadd.f32 %v12156_v17, %v12135_v32  ;;  %v4383_v32 = vadd.f32 %v4319_v5, %v11593_v19 }
0x1221   : > { %v4424_v35 = vmul.f32 %v12167_v49, %v4398_v24  ;;  %v4382_v16 = vadd.f32 %v4314_v21, %v11560_v45  ;;  %v4409_v22 = vmul.f32 %v12167_v49, %v4383_v32 }
0x1223   : > { %v12271_v41 = vadd.f32 %v12176_v59, %v4424_v35  ;;  %v4408_v12 = vmul.f32 %v12167_v49, %v4382_v16  ;;  %v4435_v19 = vadd.f32 %v12176_v59, %v4409_v22 }
0x1225   : > { %v9451_v4 = vpack.i.bf16 %v12271_v41, %v12268_v53  ;;  %v4434_v44 = vadd.f32 %v12176_v59, %v4408_v12 }
0x1227   : > { %9452 = vrot.lane.b32.xlu1 %v9451_v4, %s10106_s22 }
0x1269   : > { %v9423_v51 = vpop.permute.xlu1 %9422 }
0x126a   : > { %v9425_v45 = vunpack.i.h.bf16 %v9423_v51  ;;  %v9424_v30 = vunpack.i.l.bf16 %v9423_v51 }
0x126c   : > { %v4508_v40 = vsel %vm658_vm2, %v4434_v44, %v9425_v45  ;;  %v4507_v43 = vsel %vm658_vm2, %v4433_v34, %v9424_v30 }
0x126d   : > { %v4521_v18 = vpack.c.bf16 %v4508_v40, %v4507_v43 }
0x126f   : > { %8694 = vmatmul.mubr.msk.bf16.vlgmr.msra.gmra.mxu1 %vm734_vm3, %v4521_v18 }
0x1270   : > { %8697 = vmatprep.mubr.msk.bf16.mxu1 %vm10111_vm6, %v13483_v25 }
0x1271   : > { %v9428_v17 = vpop.permute.xlu0 %9427 }
0x1272   : > { %v9430_v9 = vunpack.i.h.bf16 %v9428_v17  ;;  %v9429_v0 = vunpack.i.l.bf16 %v9428_v17 }
0x1274   : > { %v4510_v37 = vsel %vm658_vm2, %v4436_v63, %v9430_v9  ;;  %v4509_v52 = vsel %vm658_vm2, %v4435_v19, %v9429_v0 }
0x1275   : > { %v4522_v13 = vpack.c.bf16 %v4510_v37, %v4509_v52 }
0x1277   : > { %8698 = vmatmul.mubr.msk.bf16.gmra.mxu1 %vm734_vm3, %v4522_v13 }
0x1278   : > { %8701 = vmatprep.mubr.msk.bf16.mxu1 %vm10111_vm6, %v13483_v25 }
0x1279   : > { %v9433_v49 = vpop.permute.xlu1 %9432 }
0x127a   : > { %v9435_v26 = vunpack.i.h.bf16 %v9433_v49  ;;  %v9434_v2 = vunpack.i.l.bf16 %v9433_v49 }
0x127c   : > { %v4512_v58 = vsel %vm658_vm2, %v12182_v54, %v9435_v26  ;;  %v4511_v59 = vsel %vm658_vm2, %v12179_v42, %v9434_v2 }
0x127d   : > { %v4523_v27 = vpack.c.bf16 %v4512_v58, %v4511_v59 }
0x127f   : > { %8702 = vmatmul.mubr.msk.bf16.gmra.mxu1 %vm734_vm3, %v4523_v27 }
0x1280   : > { %8705 = vmatprep.mubr.msk.bf16.mxu1 %vm10111_vm6, %v13483_v25 }
0x1281   : > { %v9438_v3 = vpop.permute.xlu0 %9437 }
0x1282   : > { %v9440_v10 = vunpack.i.h.bf16 %v9438_v3  ;;  %v9439_v46 = vunpack.i.l.bf16 %v9438_v3 }
0x1284   : > { %v4514_v1 = vsel %vm658_vm2, %v12197_v23, %v9440_v10  ;;  %v4513_v38 = vsel %vm658_vm2, %v12194_v6, %v9439_v46 }
0x1285   : > { %v4524_v8 = vpack.c.bf16 %v4514_v1, %v4513_v38 }
0x1287   : > { %8706 = vmatmul.mubr.msk.bf16.gmra.mxu1 %vm734_vm3, %v4524_v8 }
0x1288   : > { %8709 = vmatprep.mubr.msk.bf16.mxu1 %vm10111_vm6, %v13483_v25 }
0x1289   : > { %v9443_v24 = vpop.permute.xlu1 %9442 }
0x128a   : > { %v9445_v35 = vunpack.i.h.bf16 %v9443_v24  ;;  %v9444_v4 = vunpack.i.l.bf16 %v9443_v24 }
0x128c   : > { %v4516_v20 = vsel %vm658_vm2, %v12212_v48, %v9445_v35  ;;  %v4515_v21 = vsel %vm658_vm2, %v12209_v33, %v9444_v4 }
0x128d   : > { %v4525_v60 = vpack.c.bf16 %v4516_v20, %v4515_v21 }
0x128f   : > { %8710 = vmatmul.mubr.msk.bf16.gmra.mxu1 %vm734_vm3, %v4525_v60 }
0x1290   : > { %8713 = vmatprep.mubr.msk.bf16.mxu1 %vm10111_vm6, %v13483_v25 }
0x1291   : > { %v9448_v16 = vpop.permute.xlu0 %9447 }
0x1292   : > { %v9450_v61 = vunpack.i.h.bf16 %v9448_v16  ;;  %v9449_v12 = vunpack.i.l.bf16 %v9448_v16 }
0x1294   : > { %v4518_v5 = vsel %vm658_vm2, %v12227_v14, %v9450_v61  ;;  %v4517_v55 = vsel %vm658_vm2, %v12224_v28, %v9449_v12 }
0x1295   : > { %v4526_v34 = vpack.c.bf16 %v4518_v5, %v4517_v55 }
0x1297   : > { %8714 = vmatmul.mubr.msk.bf16.gmra.mxu1 %vm734_vm3, %v4526_v34 }
0x1298   : > { %8717 = vmatprep.mubr.msk.bf16.mxu1 %vm10111_vm6, %v13483_v25 }
0x1299   : > { %v9453_v44 = vpop.permute.xlu1 %9452 }
0x129a   : > { %v9455_v51 = vunpack.i.h.bf16 %v9453_v44  ;;  %v9454_v32 = vunpack.i.l.bf16 %v9453_v44 }
0x129c   : > { %v4520_v29 = vsel %vm658_vm2, %v12242_v50, %v9455_v51  ;;  %v4519_v45 = vsel %vm658_vm2, %v12239_v36, %v9454_v32 }
0x129d   : > { %v4527_v30 = vpack.c.bf16 %v4520_v29, %v4519_v45 }
0x129f   : > { %8718 = vmatmul.mubr.msk.bf16.gmra.mxu1 %vm734_vm3, %v4527_v30 }
0x12a0   : > { %4852 = vmatprep.mubr.bf16.mxu1 %v13495_v39 }
0x132f   : > { %v4624_v40 = vpop.f32.mrf.mxu1 }
0x1331   : > { %v8695_v43 = vpop.f32.mrf.mxu1 }
0x1333   : > { %v4627_v18 = vpop.f32.mrf.mxu1 }
0x1335   : > { %v8696_v22 = vpop.f32.mrf.mxu1 }
0x1337   : > { %v4632_v17 = vpop.f32.mrf.mxu1 }
0x1338   : > { %v4633_v19 = vadd.f32 %v12343_v11, %v4632_v17  ;;  %v4625_v17 = vadd.f32 %v12343_v11, %v4624_v40  ;;  %v9790_v40 = vld [vmem:[%s13470_s5 + $0x74] ss:$8 sps:$4 sm:$0xff]  }
0x1339   : > { %v8699_v63 = vpop.f32.mrf.mxu1  ;;  %4832 = vmatprep.subr.bf16.mxu1 %v9790_v40 }
0x133a   : > { %9990 = vtanh.f32 %v4633_v19 }
0x133b   : > { %v4635_v9 = vpop.f32.mrf.mxu1 }
0x133c   : > { %v4636_v0 = vadd.f32 %v12343_v11, %v4635_v9 }
0x133d   : > { %v8700_v37 = vpop.f32.mrf.mxu1 }
0x133e   : > { %9992 = vtanh.f32 %v4636_v0 }
0x133f   : > { %v4640_v52 = vpop.f32.mrf.mxu1 }
0x1340   : > { %v4641_v13 = vadd.f32 %v12343_v11, %v4640_v52  ;;  %v4628_v52 = vadd.f32 %v12343_v11, %v4627_v18 }
0x1341   : > { %v8703_v49 = vpop.f32.mrf.mxu1 }
0x1342   : > { %9994 = vtanh.f32 %v4641_v13 }
0x1343   : > { %v4643_v26 = vpop.f32.mrf.mxu1 }
0x1344   : > { %v4644_v2 = vadd.f32 %v12343_v11, %v4643_v26 }
0x1345   : > { %v8704_v58 = vpop.f32.mrf.mxu1 }
0x1346   : > { %9996 = vtanh.f32 %v4644_v2  ;;  %v9788_v2 = vld [vmem:[%s13470_s5 + $0x70] ss:$8 sps:$4 sm:$0xff]  }
0x1347   : > { %v12349_v59 = vpop.eup %9990  ;;  %v4648_v27 = vpop.f32.mrf.mxu1  ;;  %4833 = vmatpush1.bf16.msra.mxu1 %v9788_v2 }
0x1348   : > { %v4695_v3 = vmul.f32 0.5, %v12349_v59  ;;  %v4649_v30 = vadd.f32 %v12343_v11, %v4648_v27 }
0x1349   : > { %v8707_v10 = vpop.f32.mrf.mxu1 }
0x134a   : > { %v4709_v46 = vadd.f32 0.5, %v4695_v3  ;;  %v9793_v3 = vld [vmem:[%s13470_s5 + $0x64] ss:$8 sps:$4 sm:$0xff]  }
0x134b   : > { %v12352_v1 = vpop.eup %9992  ;;  %v4651_v38 = vpop.f32.mrf.mxu1  ;;  %4834 = vmatprep.subr.bf16.mxu1 %v9793_v3 }
0x134c   : > { %4739 = vrot.lane.b32.xlu0 %v4709_v46, %s10107_s25  ;;  %v4696_v8 = vmul.f32 0.5, %v12352_v1  ;;  %v4652_v63 = vadd.f32 %v12343_v11, %v4651_v38  ;;  %v9791_v46 = vld [vmem:[%s13470_s5 + $0x60] ss:$8 sps:$4 sm:$0xff]  }
0x134d   : > { %v8708_v24 = vpop.f32.mrf.mxu1  ;;  %4835 = vmatpush1.bf16.msra.mxu1 %v9791_v46 }
0x134e   : > { %v4710_v35 = vadd.f32 0.5, %v4696_v8 }
0x134f   : > { %v12356_v4 = vpop.eup %9994  ;;  %v4656_v20 = vpop.f32.mrf.mxu1 }
0x1350   : > { %4741 = vrot.lane.b32.xlu1 %v4710_v35, %s10107_s25  ;;  %v4697_v21 = vmul.f32 0.5, %v12356_v4  ;;  %v4657_v49 = vadd.f32 %v12343_v11, %v4656_v20 }
0x1351   : > { %v8711_v60 = vpop.f32.mrf.mxu1 }
0x1352   : > { %v4711_v16 = vadd.f32 0.5, %v4697_v21 }
0x1353   : > { %v12360_v61 = vpop.eup %9996  ;;  %v4659_v12 = vpop.f32.mrf.mxu1 }
0x1354   : > { %4743 = vrot.lane.b32.xlu0 %v4711_v16, %s10107_s25  ;;  %v4698_v5 = vmul.f32 0.5, %v12360_v61  ;;  %v4660_v18 = vadd.f32 %v12343_v11, %v4659_v12 }
0x1355   : > { %v8712_v55 = vpop.f32.mrf.mxu1 }
0x1356   : > { %v4712_v34 = vadd.f32 0.5, %v4698_v5 }
0x1357   : > { %v4664_v44 = vpop.f32.mrf.mxu1 }
0x1358   : > { %v4665_v51 = vadd.f32 %v12343_v11, %v4664_v44  ;;  %4745 = vrot.lane.b32.xlu1 %v4712_v34, %s10107_s25 }
0x1359   : > { %v8715_v32 = vpop.f32.mrf.mxu1 }
0x135a   : > { %9998 = vtanh.f32 %v4665_v51 }
0x135b   : > { %v4667_v29 = vpop.f32.mrf.mxu1 }
0x135c   : > { %v4668_v45 = vadd.f32 %v12343_v11, %v4667_v29 }
0x135d   : > { %v8716_v43 = vpop.f32.mrf.mxu1 }
0x135e   : > { %10000 = vtanh.f32 %v4668_v45 }
0x135f   : > { %v4672_v22 = vpop.f32.mrf.mxu1  ;;  %10002 = vtanh.f32 %v4649_v30 }
0x1360   : > { %v4673_v19 = vadd.f32 %v12343_v11, %v4672_v22 }
0x1361   : > { %v8719_v9 = vpop.f32.mrf.mxu1 }
0x1362   : > { %10004 = vtanh.f32 %v4673_v19 }
0x1363   : > { %v4675_v0 = vpop.f32.mrf.mxu1  ;;  %10006 = vtanh.f32 %v4625_v17 }
0x1364   : > { %v4676_v37 = vadd.f32 %v12343_v11, %v4675_v0  ;;  %10008 = vtanh.f32 %v4652_v63 }
0x1365   : > { %v8720_v13 = vpop.f32.mrf.mxu1 }
0x1366   : > { %10010 = vtanh.f32 %v4676_v37 }
0x1367   : > { %v12377_v26 = vpop.eup %9998  ;;  %10012 = vtanh.f32 %v4628_v52 }
0x1368   : > { %v4703_v58 = vmul.f32 0.5, %v12377_v26  ;;  %10014 = vtanh.f32 %v4657_v49 }
0x1369   : > { %10016 = vtanh.f32 %v4660_v18 }
0x136a   : > { %v4717_v27 = vadd.f32 0.5, %v4703_v58 }
0x136b   : > { %v10001_v10 = vpop.eup %10000 }
0x136c   : > { %4755 = vrot.lane.b32.xlu0 %v4717_v27, %s10107_s25  ;;  %v4704_v38 = vmul.f32 0.5, %v10001_v10  ;;  %v12391_v8 = vpop.eup %10002 }
0x136d   : > { %v4699_v16 = vmul.f32 0.5, %v12391_v8 }
0x136e   : > { %v4718_v24 = vadd.f32 0.5, %v4704_v38 }
0x136f   : > { %v10005_v11 = vpop.eup %10004  ;;  %v4713_v34 = vadd.f32 0.5, %v4699_v16 }
0x1370   : > { %4757 = vrot.lane.b32.xlu1 %v4718_v24, %s10107_s25  ;;  %v4705_v35 = vmul.f32 0.5, %v10005_v11  ;;  %v12394_v20 = vpop.eup %10006 }
0x1371   : > { %v10009_v21 = vpop.eup %10008  ;;  %v4693_v51 = vmul.f32 0.5, %v12394_v20 }
0x1372   : > { %v4719_v60 = vadd.f32 0.5, %v4705_v35  ;;  %v4700_v32 = vmul.f32 0.5, %v10009_v21 }
0x1373   : > { %v10011_v12 = vpop.eup %10010  ;;  %v4707_v45 = vadd.f32 0.5, %v4693_v51 }
0x1374   : > { %4759 = vrot.lane.b32.xlu0 %v4719_v60, %s10107_s25  ;;  %v4706_v5 = vmul.f32 0.5, %v10011_v12  ;;  %v12398_v55 = vpop.eup %10012  ;;  %v4714_v30 = vadd.f32 0.5, %v4700_v32 }
0x1375   : > { %v12401_v29 = vpop.eup %10014  ;;  %v4694_v22 = vmul.f32 0.5, %v12398_v55 }
0x1376   : > { %v4720_v44 = vadd.f32 0.5, %v4706_v5  ;;  %v4701_v43 = vmul.f32 0.5, %v12401_v29  ;;  %v10017_v17 = vpop.eup %10016 }
0x1377   : > { %v4708_v63 = vadd.f32 0.5, %v4694_v22  ;;  %v4702_v9 = vmul.f32 0.5, %v10017_v17 }
0x1378   : > { %4747 = vrot.lane.b32.xlu0 %v4713_v34, %s10107_s25  ;;  %4761 = vrot.lane.b32.xlu1 %v4720_v44, %s10107_s25  ;;  %v4715_v19 = vadd.f32 0.5, %v4701_v43 }
0x1379   : > { %v4716_v0 = vadd.f32 0.5, %v4702_v9 }
0x137c   : > { %4735 = vrot.lane.b32.xlu0 %v4707_v45, %s10107_s25  ;;  %4749 = vrot.lane.b32.xlu1 %v4714_v30, %s10107_s25 }
0x1380   : > { %4751 = vrot.lane.b32.xlu0 %v4715_v19, %s10107_s25  ;;  %4737 = vrot.lane.b32.xlu1 %v4708_v63, %s10107_s25 }
0x1384   : > { %4753 = vrot.lane.b32.xlu1 %v4716_v0, %s10107_s25 }
0x13be   : > { %v4740_v37 = vpop.permute.xlu0 %4739 }
0x13bf   : > { %v12413_v13 = vmul.f32 %v12349_v59, %v4740_v37 }
0x13c2   : > { %v4742_v52 = vpop.permute.xlu1 %4741 }
0x13c3   : > { %v12416_v49 = vmul.f32 %v12352_v1, %v4742_v52 }
0x13c5   : > { %v9456_v40 = vpack.i.bf16 %v12416_v49, %v12413_v13  ;;  %v4918_v2 = vpack.c.bf16 %v12416_v49, %v12413_v13 }
0x13c6   : > { %v4744_v58 = vpop.permute.xlu0 %4743 }
0x13c7   : > { %9457 = vrot.lane.b32.xlu0 %v9456_v40, %s10106_s22  ;;  %v12424_v27 = vmul.f32 %v12356_v4, %v4744_v58 }
0x13ca   : > { %v4746_v18 = vpop.permute.xlu1 %4745 }
0x13cb   : > { %v12427_v3 = vmul.f32 %v12360_v61, %v4746_v18 }
0x13cd   : > { %v9461_v59 = vpack.i.bf16 %v12427_v3, %v12424_v27  ;;  %v4919_v1 = vpack.c.bf16 %v12427_v3, %v12424_v27 }
0x13cf   : > { %9462 = vrot.lane.b32.xlu0 %v9461_v59, %s10108_s26 }
0x13de   : > { %v4756_v46 = vpop.permute.xlu0 %4755 }
0x13df   : > { %v12435_v24 = vmul.f32 %v12377_v26, %v4756_v46 }
0x13e2   : > { %v4758_v38 = vpop.permute.xlu1 %4757 }
0x13e3   : > { %v12437_v35 = vmul.f32 %v10001_v10, %v4758_v38 }
0x13e5   : > { %v9466_v4 = vpack.i.bf16 %v12437_v35, %v12435_v24  ;;  %v4922_v61 = vpack.c.bf16 %v12437_v35, %v12435_v24 }
0x13e6   : > { %v4760_v60 = vpop.permute.xlu0 %4759 }
0x13e7   : > { %9467 = vrot.lane.b32.xlu1 %v9466_v4, %s10106_s22  ;;  %v4789_v5 = vmul.f32 %v10005_v11, %v4760_v60 }
0x13ea   : > { %v4762_v16 = vpop.permute.xlu1 %4761  ;;  %v4748_v44 = vpop.permute.xlu0 %4747 }
0x13eb   : > { %v4790_v34 = vmul.f32 %v10011_v12, %v4762_v16  ;;  %v12447_v10 = vmul.f32 %v12391_v8, %v4748_v44 }
0x13ed   : > { %v9471_v51 = vpack.i.bf16 %v4790_v34, %v4789_v5  ;;  %v12444_v32 = vpack.c.bf16 %v4790_v34, %v4789_v5 }
0x13ee   : > { %v4750_v26 = vpop.permute.xlu1 %4749  ;;  %v4736_v30 = vpop.permute.xlu0 %4735 }
0x13ef   : > { %v12449_v45 = vmul.f32 %v10009_v21, %v4750_v26  ;;  %9472 = vrot.lane.b32.xlu1 %v9471_v51, %s10108_s26  ;;  %7987 = vmatmul.mubr.msk.bf16.vlgmr.msra.gmra.mxu1 %vm658_vm2, %v12444_v32  ;;  %v12470_v5 = vmul.f32 %v12394_v20, %v4736_v30 }
0x13f0   : > { %4957 = vmatprep.mubr.bf16.mxu1 %v13495_v39 }
0x13f1   : > { %v9476_v11 = vpack.i.bf16 %v12449_v45, %v12447_v10  ;;  %v4920_v12 = vpack.c.bf16 %v12449_v45, %v12447_v10 }
0x13f2   : > { %v4738_v8 = vpop.permute.xlu1 %4737  ;;  %v4752_v43 = vpop.permute.xlu0 %4751 }
0x13f3   : > { %9477 = vrot.lane.b32.xlu0 %v9476_v11, %s10107_s25  ;;  %v12461_v37 = vmul.f32 %v12401_v29, %v4752_v43  ;;  %v12473_v29 = vmul.f32 %v12398_v55, %v4738_v8 }
0x13f6   : > { %v4754_v21 = vpop.permute.xlu1 %4753 }
0x13f7   : > { %v12463_v52 = vmul.f32 %v10017_v17, %v4754_v21 }
0x13f9   : > { %v4921_v3 = vpack.c.bf16 %v12463_v52, %v12461_v37 }
0x1439   : > { %v9458_v22 = vpop.permute.xlu0 %9457 }
0x143a   : > { %v9460_v58 = vunpack.i.h.bf16 %v9458_v22  ;;  %v9459_v18 = vunpack.i.l.bf16 %v9458_v22 }
0x143c   : > { %v4907_v26 = vsel %vm658_vm2, %v12470_v5, %v9459_v18  ;;  %v4908_v11 = vsel %vm658_vm2, %v12473_v29, %v9460_v58 }
0x1441   : > { %v9463_v0 = vpop.permute.xlu0 %9462 }
0x1442   : > { %v9465_v38 = vunpack.i.h.bf16 %v9463_v0  ;;  %v9464_v4 = vunpack.i.l.bf16 %v9463_v0 }
0x1444   : > { %v4909_v20 = vsel %vm734_vm3, %v4907_v26, %v9464_v4  ;;  %v4910_v30 = vsel %vm734_vm3, %v4908_v11, %v9465_v38 }
0x1459   : > { %v9468_v19 = vpop.permute.xlu1 %9467 }
0x145a   : > { %v9470_v63 = vunpack.i.h.bf16 %v9468_v19  ;;  %v9469_v9 = vunpack.i.l.bf16 %v9468_v19 }
0x145c   : > { %v4913_v60 = vsel %vm658_vm2, %v12461_v37, %v9469_v9  ;;  %v4914_v16 = vsel %vm658_vm2, %v12463_v52, %v9470_v63 }
0x1461   : > { %v9473_v40 = vpop.permute.xlu1 %9472 }
0x1462   : > { %v9475_v59 = vunpack.i.h.bf16 %v9473_v40  ;;  %v9474_v46 = vunpack.i.l.bf16 %v9473_v40 }
0x1464   : > { %v4915_v17 = vsel %vm734_vm3, %v4913_v60, %v9474_v46  ;;  %v4916_v34 = vsel %vm734_vm3, %v4914_v16, %v9475_v59 }
0x1465   : > { %v9478_v44 = vpop.permute.xlu0 %9477  ;;  %v4924_v51 = vpack.c.bf16 %v4916_v34, %v4915_v17 }
0x1466   : > { %v9480_v43 = vunpack.i.h.bf16 %v9478_v44  ;;  %v9479_v21 = vunpack.i.l.bf16 %v9478_v44 }
0x1467   : > { %4939 = vmatprep.subr.bf16.mxu1 %v4924_v51 }
0x1468   : > { %v4911_v55 = vsel %vm1173_vm5, %v4909_v20, %v9479_v21  ;;  %v4912_v8 = vsel %vm1173_vm5, %v4910_v30, %v9480_v43 }
0x1469   : > { %v4923_v22 = vpack.c.bf16 %v4912_v8, %v4911_v55 }
0x146b   : > { %4940 = vmatpush1.bf16.msra.mxu1 %v4923_v22  ;;  %v9794_v22 = vld [vmem:[%s13471_s6 + $0xb8] sm:$0xff]  }
0x146c   : > { %8722 = vmatpush3.bf16.msra.mxu0 %v9794_v22 }
0x146d   : > { %8723 = vmatprep.subr.bf16.mxu0 %v13483_v25 }
0x146e   : > { %7988 = vmatmul.mubr.msk.bf16.vlgmr.msra.gmra.mxu1 %vm480_vm4, %v10686_v47 }
0x146f   : > { %5041 = vmatprep.mubr.bf16.mxu1 %v13495_v39 }
0x14af   : > { %v4854_v19 = vpop.f32.mrf.mxu1 }
0x14b0   : > { %v12489_v63 = vadd.f32 %v4854_v19, %v11986_v56 }
0x14b1   : > { %v4856_v9 = vpop.f32.mrf.mxu1 }
0x14b2   : > { %v12492_v0 = vadd.f32 %v4856_v9, %v11989_v31 }
0x14b3   : > { %v4858_v40 = vpop.f32.mrf.mxu1 }
0x14b4   : > { %v12495_v58 = vadd.f32 %v4858_v40, %v11992_v15 }
0x14b5   : > { %v12497_v18 = vpop.f32.mrf.mxu1 }
0x152e   : > { %v4959_v59 = vpop.f32.mrf.mxu1 }
0x1530   : > { %v4961_v46 = vpop.f32.mrf.mxu1 }
0x1532   : > { %v4963_v38 = vpop.f32.mrf.mxu1 }
0x1533   : > { %v9481_v4 = vpack.i.bf16 %v4963_v38, %v4959_v59  ;;  %v5002_v56 = vpack.c.bf16 %v4963_v38, %v4959_v59 }
0x1534   : > { %v4965_v60 = vpop.f32.mrf.mxu1 }
0x1535   : > { %v5006_v16 = vpack.c.bf16 %v4965_v60, %v4961_v46  ;;  %9482 = vrot.lane.b32.xlu1 %v9481_v4, %s10107_s25  ;;  %v9511_v31 = vpack.i.bf16 %v4965_v60, %v4961_v46  ;;  %v9795_v60 = vld [vmem:[%s13471_s6 + $0xb0] sm:$0xff]  }
0x1536   : > { %8724 = vmatpush3.bf16.msra.mxu0 %v9795_v60 }
0x1537   : > { %5023 = vmatprep.subr.bf16.mxu1 %v5006_v16  ;;  %8725 = vmatprep.subr.bf16.mxu0 %v13483_v25 }
0x1538   : > { %5024 = vmatpush1.bf16.msra.mxu1 %v5002_v56 }
0x1539   : > { %9492 = vrot.lane.b32.xlu1 %v9481_v4, %s10108_s26 }
0x153b   : > { %7989 = vmatmul.mubr.msk.bf16.vlgmr.msra.gmra.mxu1 %vm480_vm4, %v10686_v47 }
0x153d   : > { %9502 = vrot.lane.b32.xlu1 %v9481_v4, %s10106_s22 }
0x1541   : > { %9512 = vrot.lane.b32.xlu1 %v9511_v31, %s10107_s25 }
0x1545   : > { %9522 = vrot.lane.b32.xlu1 %v9511_v31, %s10108_s26 }
0x1549   : > { %5100 = vrot.lane.b32.xlu1 %v5002_v56, %s10106_s22  ;;  %v9796_v56 = vld [vmem:[%s13471_s6 + $0xa8] sm:$0xff]  }
0x154a   : > { %8726 = vmatpush3.bf16.msra.mxu0 %v9796_v56 }
0x154b   : > { %8727 = vmatprep.subr.bf16.mxu0 %v13483_v25 }
0x15a7   : > { %v9483_v15 = vpop.permute.xlu1 %9482 }
0x15a8   : > { %v9485_v17 = vunpack.i.h.bf16 %v9483_v15  ;;  %v9484_v34 = vunpack.i.l.bf16 %v9483_v15  ;;  %v9797_v15 = vld [vmem:[%s13471_s6 + $0xa0] sm:$0xff]  }
0x15a9   : > { %8728 = vmatpush3.bf16.msra.mxu0 %v9797_v15 }
0x15aa   : > { %v5003_v44 = vpack.c.bf16 %v9485_v17, %v9484_v34  ;;  %8729 = vmatprep.subr.bf16.mxu0 %v13483_v25 }
0x15ab   : > { %v9493_v51 = vpop.permute.xlu1 %9492 }
0x15ac   : > { %v9495_v26 = vunpack.i.h.bf16 %v9493_v51  ;;  %v9494_v11 = vunpack.i.l.bf16 %v9493_v51  ;;  %5102 = vrot.lane.b32.xlu1 %v5003_v44, %s10106_s22  ;;  %v9798_v44 = vld [vmem:[%s13471_s6 + $0x98] sm:$0xff]   ;;  %v9799_v51 = vld [vmem:[%s13471_s6 + $0x90] sm:$0xff]  }
0x15ad   : > { %8730 = vmatpush3.bf16.msra.mxu0 %v9798_v44 }
0x15ae   : > { %v5004_v43 = vpack.c.bf16 %v9495_v26, %v9494_v11  ;;  %8731 = vmatprep.subr.bf16.mxu0 %v13483_v25 }
0x15af   : > { %v9503_v21 = vpop.permute.xlu1 %9502 }
0x15b0   : > { %v9505_v20 = vunpack.i.h.bf16 %v9503_v21  ;;  %v9504_v30 = vunpack.i.l.bf16 %v9503_v21  ;;  %5104 = vrot.lane.b32.xlu1 %v5004_v43, %s10106_s22 }
0x15b1   : > { %8732 = vmatpush3.bf16.msra.mxu0 %v9799_v51 }
0x15b2   : > { %v5005_v55 = vpack.c.bf16 %v9505_v20, %v9504_v30 }
0x15b3   : > { %v9513_v8 = vpop.permute.xlu1 %9512 }
0x15b4   : > { %5106 = vrot.lane.b32.xlu1 %v5005_v55, %s10106_s22  ;;  %v9515_v19 = vunpack.i.h.bf16 %v9513_v8  ;;  %v9514_v9 = vunpack.i.l.bf16 %v9513_v8 }
0x15b6   : > { %v5007_v59 = vpack.c.bf16 %v9515_v19, %v9514_v9 }
0x15b7   : > { %v9523_v40 = vpop.permute.xlu1 %9522 }
0x15b8   : > { %5108 = vrot.lane.b32.xlu1 %v5006_v16, %s10106_s22  ;;  %v9525_v46 = vunpack.i.h.bf16 %v9523_v40  ;;  %v9524_v38 = vunpack.i.l.bf16 %v9523_v40 }
0x15ba   : > { %v5008_v4 = vpack.c.bf16 %v9525_v46, %v9524_v38 }
0x15bc   : > { %5110 = vrot.lane.b32.xlu1 %v5007_v59, %s10106_s22 }
0x15c0   : > { %5112 = vrot.lane.b32.xlu1 %v5008_v4, %s10106_s22 }
0x15fb   : > { %v5043_v16 = vpop.f32.mrf.mxu1 }
0x15fd   : > { %v5045_v31 = vpop.f32.mrf.mxu1 }
0x15ff   : > { %v5047_v17 = vpop.f32.mrf.mxu1 }
0x1600   : > { %v9486_v34 = vpack.i.bf16 %v5047_v17, %v5043_v16  ;;  %v5086_v43 = vpack.c.bf16 %v5047_v17, %v5043_v16  ;;  %v5101_v17 = vpop.permute.xlu1 %5100 }
0x1601   : > { %v5049_v26 = vpop.f32.mrf.mxu1 }
0x1602   : > { %9487 = vrot.lane.b32.xlu0 %v9486_v34, %s10107_s25  ;;  %v9516_v11 = vpack.i.bf16 %v5049_v26, %v5045_v31  ;;  %v5090_v60 = vpack.c.bf16 %v5049_v26, %v5045_v31 }
0x1606   : > { %9497 = vrot.lane.b32.xlu0 %v9486_v34, %s10108_s26 }
0x160a   : > { %9507 = vrot.lane.b32.xlu0 %v9486_v34, %s10106_s22  ;;  %v4917_v34 = vpack.c.bf16 %v12473_v29, %v12470_v5 }
0x160e   : > { %9517 = vrot.lane.b32.xlu0 %v9516_v11, %s10107_s25 }
0x1612   : > { %9527 = vrot.lane.b32.xlu0 %v9516_v11, %s10108_s26 }
0x1616   : > { %5121 = vrot.lane.b32.xlu0 %v5086_v43, %s10108_s26  ;;  %v5137_v43 = vsel %vm658_vm2, %v4917_v34, %v5101_v17  ;;  %v9801_v34 = vld [vmem:[%s13468_s3 + $0x90] sm:$0xff]  }
0x161e   : > { %v5103_v26 = vpop.permute.xlu1 %5102 }
0x161f   : > { %v5140_v5 = vsel %vm658_vm2, %v4918_v2, %v5103_v26 }
0x1674   : > { %v9488_v21 = vpop.permute.xlu0 %9487 }
0x1675   : > { %v9490_v20 = vunpack.i.h.bf16 %v9488_v21  ;;  %v9489_v30 = vunpack.i.l.bf16 %v9488_v21 }
0x1677   : > { %v5087_v55 = vpack.c.bf16 %v9490_v20, %v9489_v30 }
0x1678   : > { %v9498_v8 = vpop.permute.xlu0 %9497 }
0x1679   : > { %v9500_v22 = vunpack.i.h.bf16 %v9498_v8  ;;  %v9499_v19 = vunpack.i.l.bf16 %v9498_v8  ;;  %5123 = vrot.lane.b32.xlu0 %v5087_v55, %s10108_s26  ;;  %v5105_v55 = vpop.permute.xlu1 %5104 }
0x167b   : > { %v5088_v9 = vpack.c.bf16 %v9500_v22, %v9499_v19  ;;  %v5143_v22 = vsel %vm658_vm2, %v4919_v1, %v5105_v55 }
0x167c   : > { %v9508_v40 = vpop.permute.xlu0 %9507 }
0x167d   : > { %v9510_v59 = vunpack.i.h.bf16 %v9508_v40  ;;  %v9509_v46 = vunpack.i.l.bf16 %v9508_v40  ;;  %5125 = vrot.lane.b32.xlu0 %v5088_v9, %s10108_s26  ;;  %v5107_v13 = vpop.permute.xlu1 %5106 }
0x167e   : > { %v5146_v2 = vsel %vm658_vm2, %v4920_v12, %v5107_v13 }
0x167f   : > { %v5089_v38 = vpack.c.bf16 %v9510_v59, %v9509_v46 }
0x1680   : > { %v9518_v4 = vpop.permute.xlu0 %9517 }
0x1681   : > { %5127 = vrot.lane.b32.xlu0 %v5089_v38, %s10108_s26  ;;  %v9520_v56 = vunpack.i.h.bf16 %v9518_v4  ;;  %v9519_v16 = vunpack.i.l.bf16 %v9518_v4  ;;  %v5109_v27 = vpop.permute.xlu1 %5108 }
0x1682   : > { %v5149_v40 = vsel %vm658_vm2, %v4921_v3, %v5109_v27 }
0x1683   : > { %v5091_v44 = vpack.c.bf16 %v9520_v56, %v9519_v16  ;;  %v9800_v56 = vld [vmem:[%s13468_s3 + $0x98] sm:$0xff]  }
0x1684   : > { %v9528_v15 = vpop.permute.xlu0 %9527  ;;  %8761 = vmatprep.subr.bf16.mxu1 %v9800_v56 }
0x1685   : > { %5129 = vrot.lane.b32.xlu0 %v5090_v60, %s10108_s26  ;;  %v9530_v51 = vunpack.i.h.bf16 %v9528_v15  ;;  %v9529_v11 = vunpack.i.l.bf16 %v9528_v15  ;;  %v5111_v10 = vpop.permute.xlu1 %5110  ;;  %8762 = vmatpush3.bf16.msra.mxu1 %v9800_v56 }
0x1686   : > { %v5152_v12 = vsel %vm658_vm2, %v4922_v61, %v5111_v10  ;;  %8763 = vmatprep.subr.bf16.mxu1 %v9801_v34 }
0x1687   : > { %v5092_v31 = vpack.c.bf16 %v9530_v51, %v9529_v11 }
0x1688   : > { %v5122_v21 = vpop.permute.xlu0 %5121 }
0x1689   : > { %v5156_v20 = vsel %vm734_vm3, %v5137_v43, %v5122_v21  ;;  %5131 = vrot.lane.b32.xlu0 %v5091_v44, %s10108_s26  ;;  %v5113_v37 = vpop.permute.xlu1 %5112  ;;  %8764 = vmatpush3.bf16.msra.mxu1 %v9801_v34  ;;  %v9802_v43 = vld [vmem:[%s13468_s3 + $0x88] sm:$0xff]   ;;  %v12622_v21 = vld [vmem:[%s13473_s8 + $0x3] ss:$0 sm:$0xff] }
0x168a   : > { %8734 = vmatmul.mubr.msk.bf16.vlgmr.msra.gmra.mxu0 %vm1173_vm5, %v5156_v20  ;;  %v5154_v38 = vsel %vm658_vm2, %v12444_v32, %v5113_v37  ;;  %v12608_v32 = vld [vmem:[%s13472_s7 + $0x3] ss:$0 sm:$0xff]  ;;  %8765 = vmatprep.subr.bf16.mxu1 %v9802_v43 }
0x168b   : > { %8737 = vmatprep.mubr.msk.bf16.mxu0 %vm10111_vm6, %v13483_v25 }
0x168d   : > { %5133 = vrot.lane.b32.xlu0 %v5092_v31, %s10108_s26  ;;  %8766 = vmatpush3.bf16.msra.mxu1 %v9802_v43 }
0x16eb   : > { %v5124_v29 = vpop.permute.xlu0 %5123 }
0x16ec   : > { %v5158_v30 = vsel %vm734_vm3, %v5140_v5, %v5124_v29 }
0x16ed   : > { %8738 = vmatmul.mubr.msk.bf16.gmra.mxu0 %vm1173_vm5, %v5158_v30  ;;  %v12631_v30 = vld [vmem:[%s13474_s9 + $0x3] ss:$0 sm:$0xff] }
0x16ee   : > { %8741 = vmatprep.mubr.msk.bf16.mxu0 %vm10111_vm6, %v13483_v25 }
0x16ef   : > { %v5126_v8 = vpop.permute.xlu0 %5125 }
0x16f0   : > { %v5160_v19 = vsel %vm734_vm3, %v5143_v22, %v5126_v8  ;;  %v9803_v8 = vld [vmem:[%s13468_s3 + $0x80] sm:$0xff]  }
0x16f1   : > { %8767 = vmatprep.subr.bf16.mxu1 %v9803_v8 }
0x16f2   : > { %8768 = vmatpush3.bf16.msra.mxu1 %v9803_v8 }
0x16f3   : > { %v5128_v49 = vpop.permute.xlu0 %5127 }
0x16f4   : > { %v5162_v9 = vsel %vm734_vm3, %v5146_v2, %v5128_v49 }
0x16f5   : > { %8742 = vmatmul.mubr.msk.bf16.gmra.mxu0 %vm1173_vm5, %v5160_v19 }
0x16f6   : > { %8745 = vmatprep.mubr.msk.bf16.mxu0 %vm10111_vm6, %v13483_v25 }
0x16f7   : > { %v5130_v1 = vpop.permute.xlu0 %5129 }
0x16f8   : > { %v5164_v59 = vsel %vm734_vm3, %v5149_v40, %v5130_v1 }
0x16fb   : > { %v5132_v45 = vpop.permute.xlu0 %5131 }
0x16fc   : > { %v5166_v46 = vsel %vm734_vm3, %v5152_v12, %v5132_v45 }
0x16fd   : > { %8746 = vmatmul.mubr.msk.bf16.gmra.mxu0 %vm1173_vm5, %v5162_v9 }
0x16fe   : > { %8749 = vmatprep.mubr.msk.bf16.mxu0 %vm10111_vm6, %v13483_v25 }
0x16ff   : > { %v5134_v52 = vpop.permute.xlu0 %5133 }
0x1700   : > { %v5168_v4 = vsel %vm734_vm3, %v5154_v38, %v5134_v52 }
0x1705   : > { %8750 = vmatmul.mubr.msk.bf16.gmra.mxu0 %vm1173_vm5, %v5164_v59 }
0x1706   : > { %8753 = vmatprep.mubr.msk.bf16.mxu0 %vm10111_vm6, %v13483_v25 }
0x170d   : > { %8754 = vmatmul.mubr.msk.bf16.gmra.mxu0 %vm1173_vm5, %v5166_v46 }
0x170e   : > { %8757 = vmatprep.mubr.msk.bf16.mxu0 %vm10111_vm6, %v13483_v25 }
0x1715   : > { %8758 = vmatmul.mubr.msk.bf16.gmra.mxu0 %vm1173_vm5, %v5168_v4 }
0x174a   : > { %v12598_v60 = vpop.f32.mrf.mxu0 }
0x174c   : > { %v8735_v24 = vpop.f32.mrf.mxu0 }
0x174e   : > { %v12600_v35 = vpop.f32.mrf.mxu0 }
0x1750   : > { %v8736_v61 = vpop.f32.mrf.mxu0 }
0x17ad   : > { %v5282_v16 = vpop.f32.mrf.mxu0 }
0x17ae   : > { %v5283_v15 = vadd.f32 %v12608_v32, %v5282_v16 }
0x17af   : > { %v8739_v17 = vpop.f32.mrf.mxu0 }
0x17b0   : > { %v5331_v44 = vadd.f32 %v5283_v15, %v12194_v6 }
0x17b1   : > { %v5285_v51 = vpop.f32.mrf.mxu0 }
0x17b2   : > { %v5286_v11 = vadd.f32 %v12608_v32, %v5285_v51  ;;  %v5353_v31 = vmul.f32 %v12622_v21, %v5331_v44 }
0x17b3   : > { %v8740_v20 = vpop.f32.mrf.mxu0 }
0x17b4   : > { %v5332_v26 = vadd.f32 %v5286_v11, %v12197_v23  ;;  %v12637_v22 = vadd.f32 %v12631_v30, %v5353_v31 }
0x17b5   : > { %v5290_v6 = vpop.f32.mrf.mxu0 }
0x17b6   : > { %v5354_v5 = vmul.f32 %v12622_v21, %v5332_v26  ;;  %v5291_v29 = vadd.f32 %v12608_v32, %v5290_v6 }
0x17b7   : > { %v8743_v55 = vpop.f32.mrf.mxu0 }
0x17b8   : > { %v12640_v23 = vadd.f32 %v12631_v30, %v5354_v5  ;;  %v5333_v19 = vadd.f32 %v5291_v29, %v12209_v33 }
0x17b9   : > { %v5293_v13 = vpop.f32.mrf.mxu0 }
0x17ba   : > { %v5294_v49 = vadd.f32 %v12608_v32, %v5293_v13  ;;  %v9531_v2 = vpack.i.bf16 %v12640_v23, %v12637_v22  ;;  %v5355_v27 = vmul.f32 %v12622_v21, %v5333_v19 }
0x17bb   : > { %v8744_v9 = vpop.f32.mrf.mxu0 }
0x17bc   : > { %v5334_v3 = vadd.f32 %v5294_v49, %v12212_v48  ;;  %9532 = vrot.lane.b32.xlu1 %v9531_v2, %s10106_s22  ;;  %v12652_v10 = vadd.f32 %v12631_v30, %v5355_v27 }
0x17bd   : > { %v5298_v1 = vpop.f32.mrf.mxu0 }
0x17be   : > { %v5356_v40 = vmul.f32 %v12622_v21, %v5334_v3  ;;  %v5299_v33 = vadd.f32 %v12608_v32, %v5298_v1 }
0x17bf   : > { %v8747_v59 = vpop.f32.mrf.mxu0 }
0x17c0   : > { %v12655_v45 = vadd.f32 %v12631_v30, %v5356_v40  ;;  %v5335_v12 = vadd.f32 %v5299_v33, %v12224_v28 }
0x17c1   : > { %v5301_v46 = vpop.f32.mrf.mxu0 }
0x17c2   : > { %v5302_v37 = vadd.f32 %v12608_v32, %v5301_v46  ;;  %v9536_v48 = vpack.i.bf16 %v12655_v45, %v12652_v10  ;;  %v5357_v38 = vmul.f32 %v12622_v21, %v5335_v12 }
0x17c3   : > { %v8748_v52 = vpop.f32.mrf.mxu0 }
0x17c4   : > { %v5336_v4 = vadd.f32 %v5302_v37, %v12227_v14  ;;  %9537 = vrot.lane.b32.xlu0 %v9536_v48, %s10106_s22  ;;  %v12667_v28 = vadd.f32 %v12631_v30, %v5357_v38 }
0x17c5   : > { %v5306_v24 = vpop.f32.mrf.mxu0 }
0x17c6   : > { %v5358_v61 = vmul.f32 %v12622_v21, %v5336_v4  ;;  %v5307_v56 = vadd.f32 %v12608_v32, %v5306_v24  ;;  %v5275_v4 = vadd.f32 %v12608_v32, %v12598_v60 }
0x17c7   : > { %v8751_v16 = vpop.f32.mrf.mxu0 }
0x17c8   : > { %v12670_v15 = vadd.f32 %v12631_v30, %v5358_v61  ;;  %v5337_v17 = vadd.f32 %v5307_v56, %v12239_v36  ;;  %v5329_v24 = vadd.f32 %v5275_v4, %v12179_v42  ;;  %v8030_v4 = vld [vmem:[%s13469_s4 + $0x4] ss:$0 sm:$0xff] }
0x17c9   : > { %v5309_v34 = vpop.f32.mrf.mxu0 }
0x17ca   : > { %v5310_v44 = vadd.f32 %v12608_v32, %v5309_v34  ;;  %v9541_v14 = vpack.i.bf16 %v12670_v15, %v12667_v28  ;;  %v5359_v11 = vmul.f32 %v12622_v21, %v5337_v17  ;;  %v5351_v56 = vmul.f32 %v12622_v21, %v5329_v24 }
0x17cb   : > { %v8752_v51 = vpop.f32.mrf.mxu0 }
0x17cc   : > { %v5338_v43 = vadd.f32 %v5310_v44, %v12242_v50  ;;  %9542 = vrot.lane.b32.xlu1 %v9541_v14, %s10106_s22  ;;  %v12682_v36 = vadd.f32 %v12631_v30, %v5359_v11  ;;  %v5373_v34 = vadd.f32 %v12631_v30, %v5351_v56 }
0x17cd   : > { %v5314_v20 = vpop.f32.mrf.mxu0 }
0x17ce   : > { %v5360_v31 = vmul.f32 %v12622_v21, %v5338_v43  ;;  %v5315_v26 = vadd.f32 %v12608_v32, %v5314_v20 }
0x17cf   : > { %v8755_v6 = vpop.f32.mrf.mxu0 }
0x17d0   : > { %v12685_v5 = vadd.f32 %v12631_v30, %v5360_v31  ;;  %v5339_v29 = vadd.f32 %v5315_v26, %v12254_v62 }
0x17d1   : > { %v5317_v55 = vpop.f32.mrf.mxu0 }
0x17d2   : > { %v5318_v8 = vadd.f32 %v12608_v32, %v5317_v55  ;;  %v9546_v50 = vpack.i.bf16 %v12685_v5, %v12682_v36  ;;  %v5361_v13 = vmul.f32 %v12622_v21, %v5339_v29 }
0x17d3   : > { %v8756_v19 = vpop.f32.mrf.mxu0 }
0x17d4   : > { %v5340_v49 = vadd.f32 %v5318_v8, %v12257_v7  ;;  %9547 = vrot.lane.b32.xlu0 %v9546_v50, %s10106_s22  ;;  %v12697_v62 = vadd.f32 %v12631_v30, %v5361_v13 }
0x17d5   : > { %v5322_v2 = vpop.f32.mrf.mxu0 }
0x17d6   : > { %v5362_v9 = vmul.f32 %v12622_v21, %v5340_v49  ;;  %v5323_v27 = vadd.f32 %v12608_v32, %v5322_v2 }
0x17d7   : > { %v8759_v3 = vpop.f32.mrf.mxu0 }
0x17d8   : > { %v12700_v1 = vadd.f32 %v12631_v30, %v5362_v9  ;;  %v5341_v40 = vadd.f32 %v5323_v27, %v12268_v53 }
0x17d9   : > { %v5325_v33 = vpop.f32.mrf.mxu0 }
0x17da   : > { %v5326_v59 = vadd.f32 %v12608_v32, %v5325_v33  ;;  %v9551_v7 = vpack.i.bf16 %v12700_v1, %v12697_v62  ;;  %v5363_v46 = vmul.f32 %v12622_v21, %v5341_v40 }
0x17db   : > { %v8760_v12 = vpop.f32.mrf.mxu0 }
0x17dc   : > { %v5342_v37 = vadd.f32 %v5326_v59, %v12271_v41  ;;  %9552 = vrot.lane.b32.xlu1 %v9551_v7, %s10106_s22  ;;  %v12711_v52 = vadd.f32 %v12631_v30, %v5363_v46  ;;  %v5278_v41 = vadd.f32 %v12608_v32, %v12600_v35 }
0x17de   : > { %v5364_v48 = vmul.f32 %v12622_v21, %v5342_v37  ;;  %v5330_v61 = vadd.f32 %v5278_v41, %v12182_v54 }
0x17e0   : > { %v12714_v53 = vadd.f32 %v12631_v30, %v5364_v48  ;;  %v5352_v16 = vmul.f32 %v12622_v21, %v5330_v61 }
0x17e2   : > { %v9556_v38 = vpack.i.bf16 %v12714_v53, %v12711_v52  ;;  %v5374_v44 = vadd.f32 %v12631_v30, %v5352_v16 }
0x17e4   : > { %9557 = vrot.lane.b32.xlu0 %v9556_v38, %s10106_s22 }
0x182e   : > { %v9533_v17 = vpop.permute.xlu1 %9532 }
0x182f   : > { %v9535_v14 = vunpack.i.h.bf16 %v9533_v17  ;;  %v9534_v51 = vunpack.i.l.bf16 %v9533_v17 }
0x1831   : > { %v5436_v60 = vsel %vm658_vm2, %v5374_v44, %v9535_v14  ;;  %v5435_v11 = vsel %vm658_vm2, %v5373_v34, %v9534_v51 }
0x1832   : > { %v5447_v35 = vpack.c.bf16 %v5436_v60, %v5435_v11 }
0x1834   : > { %8769 = vmatprep.mubr.msk.bf16.mxu1 %vm734_vm3, %v5447_v35 }
0x1836   : > { %v9538_v42 = vpop.permute.xlu0 %9537 }
0x1837   : > { %v9540_v54 = vunpack.i.h.bf16 %v9538_v42  ;;  %v9539_v32 = vunpack.i.l.bf16 %v9538_v42 }
0x1839   : > { %v5438_v21 = vsel %vm658_vm2, %v12640_v23, %v9540_v54  ;;  %v5437_v43 = vsel %vm658_vm2, %v12637_v22, %v9539_v32 }
0x183a   : > { %v5448_v20 = vpack.c.bf16 %v5438_v21, %v5437_v43 }
0x183c   : > { %8770 = vmatmul.mubr.msk.bf16.vlgmr.msra.gmra.mxu1 %vm734_vm3, %v5448_v20 }
0x183e   : > { %v9543_v30 = vpop.permute.xlu1 %9542 }
0x183f   : > { %v9545_v31 = vunpack.i.h.bf16 %v9543_v30  ;;  %v9544_v26 = vunpack.i.l.bf16 %v9543_v30 }
0x1841   : > { %v5440_v6 = vsel %vm658_vm2, %v12655_v45, %v9545_v31  ;;  %v5439_v29 = vsel %vm658_vm2, %v12652_v10, %v9544_v26 }
0x1842   : > { %v5449_v55 = vpack.c.bf16 %v5440_v6, %v5439_v29 }
0x1844   : > { %8773 = vmatprep.mubr.msk.bf16.mxu1 %vm734_vm3, %v5449_v55 }
0x1846   : > { %v9548_v8 = vpop.permute.xlu0 %9547 }
0x1847   : > { %v9550_v50 = vunpack.i.h.bf16 %v9548_v8  ;;  %v9549_v19 = vunpack.i.l.bf16 %v9548_v8 }
0x1849   : > { %v5442_v13 = vsel %vm658_vm2, %v12670_v15, %v9550_v50  ;;  %v5441_v49 = vsel %vm658_vm2, %v12667_v28, %v9549_v19 }
0x184a   : > { %v5450_v2 = vpack.c.bf16 %v5442_v13, %v5441_v49 }
0x184c   : > { %8774 = vmatmul.mubr.msk.bf16.gmra.mxu1 %vm734_vm3, %v5450_v2 }
0x184e   : > { %v9553_v9 = vpop.permute.xlu1 %9552 }
0x184f   : > { %v9555_v27 = vunpack.i.h.bf16 %v9553_v9  ;;  %v9554_v3 = vunpack.i.l.bf16 %v9553_v9 }
0x1851   : > { %v5444_v40 = vsel %vm658_vm2, %v12685_v5, %v9555_v27  ;;  %v5443_v33 = vsel %vm658_vm2, %v12682_v36, %v9554_v3  ;;  %v9806_v3 = vld [vmem:[%s13470_s5 + $0x94] ss:$8 sps:$4 sm:$0xff]  }
0x1852   : > { %v5451_v59 = vpack.c.bf16 %v5444_v40, %v5443_v33  ;;  %v9804_v33 = vld [vmem:[%s13470_s5 + $0x90] ss:$8 sps:$4 sm:$0xff]   ;;  %5730 = vmatprep.subr.bf16.mxu1 %v9806_v3 }
0x1853   : > { %5731 = vmatpush1.bf16.msra.mxu1 %v9804_v33 }
0x1854   : > { %8777 = vmatprep.mubr.msk.bf16.mxu1 %vm734_vm3, %v5451_v59 }
0x1856   : > { %v9558_v7 = vpop.permute.xlu0 %9557 }
0x1857   : > { %v9560_v12 = vunpack.i.h.bf16 %v9558_v7  ;;  %v9559_v46 = vunpack.i.l.bf16 %v9558_v7 }
0x1859   : > { %v5446_v37 = vsel %vm658_vm2, %v12700_v1, %v9560_v12  ;;  %v5445_v48 = vsel %vm658_vm2, %v12697_v62, %v9559_v46  ;;  %v9809_v12 = vld [vmem:[%s13470_s5 + $0x84] ss:$8 sps:$4 sm:$0xff]   ;;  %v9807_v46 = vld [vmem:[%s13470_s5 + $0x80] ss:$8 sps:$4 sm:$0xff]  }
0x185a   : > { %v5452_v38 = vpack.c.bf16 %v5446_v37, %v5445_v48  ;;  %5732 = vmatprep.subr.bf16.mxu1 %v9809_v12 }
0x185b   : > { %5733 = vmatpush1.bf16.msra.mxu1 %v9807_v46 }
0x185c   : > { %8778 = vmatmul.mubr.msk.bf16.gmra.mxu1 %vm734_vm3, %v5452_v38 }
0x185d   : > { %5750 = vmatprep.mubr.bf16.mxu1 %v13495_v39 }
0x18fc   : > { %v8771_v41 = vpop.f32.mrf.mxu1 }
0x18fd   : > { %v5555_v24 = vadd.f32 %v8771_v41, %v8030_v4 }
0x18fe   : > { %v5546_v61 = vpop.f32.mrf.mxu1 }
0x18ff   : > { %10018 = vtanh.f32 %v5555_v24  ;;  %v5547_v31 = vadd.f32 %v8030_v4, %v5546_v61 }
0x1900   : > { %v8772_v56 = vpop.f32.mrf.mxu1 }
0x1901   : > { %v5558_v16 = vadd.f32 %v8772_v56, %v8030_v4 }
0x1902   : > { %v5549_v17 = vpop.f32.mrf.mxu1 }
0x1903   : > { %10020 = vtanh.f32 %v5558_v16  ;;  %v5550_v2 = vadd.f32 %v8030_v4, %v5549_v17 }
0x190c   : > { %v12761_v34 = vpop.eup %10018  ;;  %v8775_v44 = vpop.f32.mrf.mxu1 }
0x190d   : > { %v5607_v14 = vmul.f32 0.5, %v12761_v34  ;;  %v5571_v20 = vadd.f32 %v8775_v44, %v8030_v4 }
0x190e   : > { %v5562_v51 = vpop.f32.mrf.mxu1 }
0x190f   : > { %v5563_v60 = vadd.f32 %v8030_v4, %v5562_v51  ;;  %v5619_v11 = vadd.f32 0.5, %v5607_v14 }
0x1910   : > { %v12764_v35 = vpop.eup %10020  ;;  %v8776_v42 = vpop.f32.mrf.mxu1 }
0x1911   : > { %10022 = vtanh.f32 %v5563_v60  ;;  %5645 = vrot.lane.b32.xlu1 %v5619_v11, %s10107_s25  ;;  %v5608_v54 = vmul.f32 0.5, %v12764_v35  ;;  %v5574_v29 = vadd.f32 %v8776_v42, %v8030_v4 }
0x1912   : > { %v5565_v32 = vpop.f32.mrf.mxu1 }
0x1913   : > { %v5566_v21 = vadd.f32 %v8030_v4, %v5565_v32  ;;  %v5620_v43 = vadd.f32 0.5, %v5608_v54 }
0x1915   : > { %10024 = vtanh.f32 %v5566_v21  ;;  %5647 = vrot.lane.b32.xlu0 %v5620_v43, %s10107_s25 }
0x1916   : > { %10026 = vtanh.f32 %v5571_v20 }
0x191c   : > { %v8779_v30 = vpop.f32.mrf.mxu1 }
0x191d   : > { %v5587_v26 = vadd.f32 %v8779_v30, %v8030_v4 }
0x191e   : > { %v12769_v6 = vpop.eup %10022  ;;  %v5578_v55 = vpop.f32.mrf.mxu1 }
0x191f   : > { %10028 = vtanh.f32 %v5587_v26  ;;  %v5609_v8 = vmul.f32 0.5, %v12769_v6  ;;  %v5579_v9 = vadd.f32 %v8030_v4, %v5578_v55 }
0x1920   : > { %v8780_v50 = vpop.f32.mrf.mxu1  ;;  %10030 = vtanh.f32 %v5547_v31 }
0x1921   : > { %v5590_v19 = vadd.f32 %v8780_v50, %v8030_v4  ;;  %v5621_v13 = vadd.f32 0.5, %v5609_v8  ;;  %10032 = vtanh.f32 %v5574_v29 }
0x1922   : > { %v12772_v49 = vpop.eup %10024  ;;  %v5581_v40 = vpop.f32.mrf.mxu1 }
0x1923   : > { %10034 = vtanh.f32 %v5590_v19  ;;  %5649 = vrot.lane.b32.xlu1 %v5621_v13, %s10107_s25  ;;  %v5610_v27 = vmul.f32 0.5, %v12772_v49  ;;  %v5582_v7 = vadd.f32 %v8030_v4, %v5581_v40  ;;  %v10027_v37 = vpop.eup %10026 }
0x1924   : > { %10036 = vtanh.f32 %v5550_v2  ;;  %v5611_v61 = vmul.f32 0.5, %v10027_v37 }
0x1925   : > { %v5622_v59 = vadd.f32 0.5, %v5610_v27  ;;  %10038 = vtanh.f32 %v5579_v9 }
0x1926   : > { %10040 = vtanh.f32 %v5582_v7  ;;  %v5623_v14 = vadd.f32 0.5, %v5611_v61 }
0x1927   : > { %5651 = vrot.lane.b32.xlu0 %v5622_v59, %s10107_s25 }
0x192c   : > { %v10029_v48 = vpop.eup %10028 }
0x192d   : > { %v5615_v38 = vmul.f32 0.5, %v10029_v48  ;;  %v12789_v41 = vpop.eup %10030 }
0x192e   : > { %v10033_v24 = vpop.eup %10032  ;;  %v5605_v60 = vmul.f32 0.5, %v12789_v41 }
0x192f   : > { %v5627_v4 = vadd.f32 0.5, %v5615_v38  ;;  %v5612_v51 = vmul.f32 0.5, %v10033_v24 }
0x1930   : > { %v10035_v56 = vpop.eup %10034  ;;  %v5617_v54 = vadd.f32 0.5, %v5605_v60 }
0x1931   : > { %5661 = vrot.lane.b32.xlu1 %v5627_v4, %s10107_s25  ;;  %v5616_v16 = vmul.f32 0.5, %v10035_v56  ;;  %v12792_v17 = vpop.eup %10036  ;;  %v5624_v42 = vadd.f32 0.5, %v5612_v51 }
0x1932   : > { %v10039_v11 = vpop.eup %10038  ;;  %v5606_v32 = vmul.f32 0.5, %v12792_v17 }
0x1933   : > { %v5628_v44 = vadd.f32 0.5, %v5616_v16  ;;  %v5613_v21 = vmul.f32 0.5, %v10039_v11  ;;  %v10041_v43 = vpop.eup %10040 }
0x1934   : > { %v5618_v20 = vadd.f32 0.5, %v5606_v32  ;;  %v5614_v31 = vmul.f32 0.5, %v10041_v43 }
0x1935   : > { %5663 = vrot.lane.b32.xlu0 %v5628_v44, %s10107_s25  ;;  %5653 = vrot.lane.b32.xlu1 %v5623_v14, %s10107_s25  ;;  %v5625_v30 = vadd.f32 0.5, %v5613_v21 }
0x1936   : > { %v5626_v26 = vadd.f32 0.5, %v5614_v31 }
0x1939   : > { %5655 = vrot.lane.b32.xlu0 %v5624_v42, %s10107_s25  ;;  %5641 = vrot.lane.b32.xlu1 %v5617_v54, %s10107_s25 }
0x193d   : > { %5643 = vrot.lane.b32.xlu0 %v5618_v20, %s10107_s25  ;;  %5657 = vrot.lane.b32.xlu1 %v5625_v30, %s10107_s25 }
0x1941   : > { %5659 = vrot.lane.b32.xlu0 %v5626_v26, %s10107_s25 }
0x1983   : > { %v5646_v29 = vpop.permute.xlu1 %5645 }
0x1984   : > { %v12804_v8 = vmul.f32 %v12761_v34, %v5646_v29 }
0x1987   : > { %v5648_v55 = vpop.permute.xlu0 %5647 }
0x1988   : > { %v12807_v50 = vmul.f32 %v12764_v35, %v5648_v55 }
0x198a   : > { %v9561_v19 = vpack.i.bf16 %v12807_v50, %v12804_v8  ;;  %v5806_v13 = vpack.c.bf16 %v12807_v50, %v12804_v8 }
0x198c   : > { %9562 = vrot.lane.b32.xlu1 %v9561_v19, %s10106_s22 }
0x1995   : > { %v5650_v2 = vpop.permute.xlu1 %5649 }
0x1996   : > { %v12815_v27 = vmul.f32 %v12769_v6, %v5650_v2 }
0x1999   : > { %v5652_v9 = vpop.permute.xlu0 %5651 }
0x199a   : > { %v12818_v3 = vmul.f32 %v12772_v49, %v5652_v9 }
0x199c   : > { %v9566_v34 = vpack.i.bf16 %v12818_v3, %v12815_v27  ;;  %v5807_v35 = vpack.c.bf16 %v12818_v3, %v12815_v27 }
0x199e   : > { %9567 = vrot.lane.b32.xlu0 %v9566_v34, %s10108_s26 }
0x19a3   : > { %v5662_v40 = vpop.permute.xlu1 %5661 }
0x19a4   : > { %v5687_v59 = vmul.f32 %v10029_v48, %v5662_v40 }
0x19a7   : > { %v5664_v33 = vpop.permute.xlu0 %5663  ;;  %v5654_v12 = vpop.permute.xlu1 %5653 }
0x19a8   : > { %v5688_v7 = vmul.f32 %v10035_v56, %v5664_v33  ;;  %v12827_v4 = vmul.f32 %v10027_v37, %v5654_v12 }
0x19aa   : > { %v9571_v46 = vpack.i.bf16 %v5688_v7, %v5687_v59  ;;  %v12825_v38 = vpack.c.bf16 %v5688_v7, %v5687_v59 }
0x19ab   : > { %v5656_v6 = vpop.permute.xlu0 %5655  ;;  %v5642_v56 = vpop.permute.xlu1 %5641 }
0x19ac   : > { %v12829_v49 = vmul.f32 %v10033_v24, %v5656_v6  ;;  %8049 = vmatmul.mubr.msk.bf16.vlgmr.msra.gmra.mxu1 %vm658_vm2, %v12825_v38  ;;  %9572 = vrot.lane.b32.xlu1 %v9571_v46, %s10106_s22  ;;  %v12845_v26 = vmul.f32 %v12789_v41, %v5642_v56 }
0x19ad   : > { %5844 = vmatprep.mubr.bf16.mxu1 %v13495_v39 }
0x19ae   : > { %v9576_v48 = vpack.i.bf16 %v12829_v49, %v12827_v4  ;;  %v5808_v61 = vpack.c.bf16 %v12829_v49, %v12827_v4  ;;  %v9816_v4 = vld [vmem:[%s13468_s3 + $0xb8] sm:$0xff]   ;;  %v9817_v49 = vld [vmem:[%s13468_s3 + $0xb0] sm:$0xff]  }
0x19af   : > { %v5644_v37 = vpop.permute.xlu0 %5643  ;;  %v5658_v16 = vpop.permute.xlu1 %5657 }
0x19b0   : > { %9577 = vrot.lane.b32.xlu0 %v9576_v48, %s10107_s25  ;;  %v12840_v51 = vmul.f32 %v10039_v11, %v5658_v16  ;;  %v12848_v29 = vmul.f32 %v12792_v17, %v5644_v37 }
0x19b3   : > { %v5660_v24 = vpop.permute.xlu0 %5659 }
0x19b4   : > { %v12842_v60 = vmul.f32 %v10041_v43, %v5660_v24 }
0x19b6   : > { %v5809_v27 = vpack.c.bf16 %v12842_v60, %v12840_v51 }
0x19fe   : > { %v9563_v44 = vpop.permute.xlu1 %9562 }
0x19ff   : > { %v9565_v54 = vunpack.i.h.bf16 %v9563_v44  ;;  %v9564_v32 = vunpack.i.l.bf16 %v9563_v44 }
0x1a01   : > { %v5798_v2 = vsel %vm658_vm2, %v12848_v29, %v9565_v54  ;;  %v5797_v9 = vsel %vm658_vm2, %v12845_v26, %v9564_v32 }
0x1a10   : > { %v9568_v14 = vpop.permute.xlu0 %9567 }
0x1a11   : > { %v9570_v30 = vunpack.i.h.bf16 %v9568_v14  ;;  %v9569_v31 = vunpack.i.l.bf16 %v9568_v14 }
0x1a13   : > { %v5799_v40 = vsel %vm734_vm3, %v5797_v9, %v9569_v31  ;;  %v5800_v17 = vsel %vm734_vm3, %v5798_v2, %v9570_v30 }
0x1a1e   : > { %v9573_v42 = vpop.permute.xlu1 %9572 }
0x1a1f   : > { %v9575_v21 = vunpack.i.h.bf16 %v9573_v42  ;;  %v9574_v20 = vunpack.i.l.bf16 %v9573_v42 }
0x1a21   : > { %v5803_v55 = vsel %vm658_vm2, %v12840_v51, %v9574_v20  ;;  %v5804_v11 = vsel %vm658_vm2, %v12842_v60, %v9575_v21 }
0x1a22   : > { %v9578_v43 = vpop.permute.xlu0 %9577  ;;  %v5811_v19 = vpack.c.bf16 %v5804_v11, %v5803_v55 }
0x1a23   : > { %v9580_v34 = vunpack.i.h.bf16 %v9578_v43  ;;  %v9579_v41 = vunpack.i.l.bf16 %v9578_v43  ;;  %v9810_v43 = vld [vmem:[%s13471_s6 + $0xe8] sm:$0xff]  }
0x1a24   : > { %5826 = vmatprep.subr.bf16.mxu1 %v5811_v19  ;;  %v9811_v19 = vld [vmem:[%s13471_s6 + $0xe0] sm:$0xff]   ;;  %8781 = vmatprep.subr.bf16.mxu0 %v9810_v43 }
0x1a25   : > { %v5801_v33 = vsel %vm1173_vm5, %v5799_v40, %v9579_v41  ;;  %v5802_v59 = vsel %vm1173_vm5, %v5800_v17, %v9580_v34  ;;  %8782 = vmatpush3.bf16.msra.mxu0 %v9810_v43 }
0x1a26   : > { %v5810_v7 = vpack.c.bf16 %v5802_v59, %v5801_v33  ;;  %8783 = vmatprep.subr.bf16.mxu0 %v9811_v19  ;;  %v9812_v33 = vld [vmem:[%s13471_s6 + $0xd8] sm:$0xff]  }
0x1a28   : > { %5827 = vmatpush1.bf16.msra.mxu1 %v5810_v7 }
0x1a29   : > { %8784 = vmatpush3.bf16.msra.mxu0 %v9811_v19 }
0x1a2a   : > { %8785 = vmatprep.subr.bf16.mxu0 %v9812_v33 }
0x1a2b   : > { %8050 = vmatmul.mubr.msk.bf16.vlgmr.msra.gmra.mxu1 %vm480_vm4, %v10686_v47 }
0x1a2c   : > { %5921 = vmatprep.mubr.bf16.mxu1 %v13495_v39 }
0x1a2d   : > { %8786 = vmatpush3.bf16.msra.mxu0 %v9812_v33 }
0x1a6c   : > { %v5752_v12 = vpop.f32.mrf.mxu1 }
0x1a6d   : > { %v12866_v46 = vadd.f32 %v5752_v12, %v12489_v63  ;;  %v9813_v12 = vld [vmem:[%s13471_s6 + $0xd0] sm:$0xff]  }
0x1a6e   : > { %v5754_v6 = vpop.f32.mrf.mxu1  ;;  %8787 = vmatprep.subr.bf16.mxu0 %v9813_v12 }
0x1a6f   : > { %v12869_v48 = vadd.f32 %v5754_v6, %v12492_v0  ;;  %v9814_v6 = vld [vmem:[%s13471_s6 + $0xc8] sm:$0xff]   ;;  %8788 = vmatpush3.bf16.msra.mxu0 %v9813_v12 }
0x1a70   : > { %v5756_v56 = vpop.f32.mrf.mxu1  ;;  %8789 = vmatprep.subr.bf16.mxu0 %v9814_v6 }
0x1a71   : > { %v12872_v37 = vadd.f32 %v5756_v56, %v12495_v58  ;;  %v9815_v56 = vld [vmem:[%s13471_s6 + $0xc0] sm:$0xff]  }
0x1a72   : > { %v12874_v16 = vpop.f32.mrf.mxu1 }
0x1a73   : > { %8790 = vmatpush3.bf16.msra.mxu0 %v9814_v6 }
0x1a74   : > { %8791 = vmatprep.subr.bf16.mxu0 %v9815_v56 }
0x1a77   : > { %8792 = vmatpush3.bf16.msra.mxu0 %v9815_v56 }
0x1aeb   : > { %v5846_v24 = vpop.f32.mrf.mxu1 }
0x1aed   : > { %v5848_v44 = vpop.f32.mrf.mxu1 }
0x1aef   : > { %v5850_v14 = vpop.f32.mrf.mxu1 }
0x1af0   : > { %v9596_v42 = vpack.i.bf16 %v5850_v14, %v5846_v24  ;;  %v5883_v63 = vpack.c.bf16 %v5850_v14, %v5846_v24 }
0x1af1   : > { %v5852_v54 = vpop.f32.mrf.mxu1 }
0x1af2   : > { %v12876_v32 = vpack.c.bf16 %v5852_v54, %v5848_v44  ;;  %9582 = vrot.lane.b32.xlu1 %v9596_v42, %s10107_s25  ;;  %v9611_v31 = vpack.i.bf16 %v5852_v54, %v5848_v44 }
0x1af4   : > { %5903 = vmatprep.subr.bf16.mxu1 %v12876_v32 }
0x1af5   : > { %5904 = vmatpush1.bf16.msra.mxu1 %v5883_v63 }
0x1af6   : > { %9587 = vrot.lane.b32.xlu1 %v9596_v42, %s10108_s26  ;;  %8805 = vmatprep.subr.bf16.mxu1 %v9816_v4 }
0x1af8   : > { %8051 = vmatmul.mubr.msk.bf16.vlgmr.msra.gmra.mxu1 %vm480_vm4, %v10686_v47 }
0x1af9   : > { %8806 = vmatpush3.bf16.msra.mxu1 %v9816_v4 }
0x1afa   : > { %8807 = vmatprep.subr.bf16.mxu1 %v9817_v49 }
0x1afd   : > { %8808 = vmatpush3.bf16.msra.mxu1 %v9817_v49 }
0x1b64   : > { %v9583_v30 = vpop.permute.xlu1 %9582 }
0x1b65   : > { %v9585_v2 = vunpack.i.h.bf16 %v9583_v30  ;;  %v9584_v9 = vunpack.i.l.bf16 %v9583_v30 }
0x1b67   : > { %v5884_v59 = vpack.c.bf16 %v9585_v2, %v9584_v9 }
0x1b68   : > { %v9588_v55 = vpop.permute.xlu1 %9587 }
0x1b69   : > { %v9590_v34 = vunpack.i.h.bf16 %v9588_v55  ;;  %v9589_v41 = vunpack.i.l.bf16 %v9588_v55 }
0x1b6b   : > { %v5885_v7 = vpack.c.bf16 %v9590_v34, %v9589_v41  ;;  %v5805_v41 = vpack.c.bf16 %v12848_v29, %v12845_v26 }
0x1bb8   : > { %v5923_v0 = vpop.f32.mrf.mxu1 }
0x1bba   : > { %v12883_v58 = vpop.f32.mrf.mxu1 }
0x1bbc   : > { %v5927_v21 = vpop.f32.mrf.mxu1 }
0x1bbd   : > { %v9601_v20 = vpack.i.bf16 %v5927_v21, %v5923_v0  ;;  %v5960_v40 = vpack.c.bf16 %v5927_v21, %v5923_v0 }
0x1bbe   : > { %v12889_v11 = vpop.f32.mrf.mxu1 }
0x1bbf   : > { %9602 = vrot.lane.b32.xlu1 %v9601_v20, %s10108_s26  ;;  %9592 = vrot.lane.b32.xlu0 %v9601_v20, %s10107_s25  ;;  %v9616_v17 = vpack.i.bf16 %v12889_v11, %v12883_v58 }
0x1bc3   : > { %9612 = vrot.lane.b32.xlu1 %v9611_v31, %s10107_s25  ;;  %9597 = vrot.lane.b32.xlu0 %v9596_v42, %s10106_s22 }
0x1bc7   : > { %5972 = vrot.lane.b32.xlu1 %v5883_v63, %s10106_s22  ;;  %9607 = vrot.lane.b32.xlu0 %v9601_v20, %s10106_s22 }
0x1bcb   : > { %5990 = vrot.lane.b32.xlu1 %v5960_v40, %s10108_s26  ;;  %9617 = vrot.lane.b32.xlu0 %v9616_v17, %s10107_s25  ;;  %v5964_v40 = vpack.c.bf16 %v12889_v11, %v12883_v58 }
0x1bcf   : > { %5976 = vrot.lane.b32.xlu1 %v5885_v7, %s10106_s22  ;;  %5974 = vrot.lane.b32.xlu0 %v5884_v59, %s10106_s22 }
0x1c31   : > { %v9603_v24 = vpop.permute.xlu1 %9602  ;;  %v9593_v44 = vpop.permute.xlu0 %9592 }
0x1c32   : > { %v9605_v14 = vunpack.i.h.bf16 %v9603_v24  ;;  %v9604_v42 = vunpack.i.l.bf16 %v9603_v24  ;;  %v9595_v54 = vunpack.i.h.bf16 %v9593_v44  ;;  %v9594_v63 = vunpack.i.l.bf16 %v9593_v44 }
0x1c34   : > { %v5962_v0 = vpack.c.bf16 %v9605_v14, %v9604_v42  ;;  %v5961_v21 = vpack.c.bf16 %v9595_v54, %v9594_v63 }
0x1c35   : > { %v9613_v20 = vpop.permute.xlu1 %9612  ;;  %v9598_v30 = vpop.permute.xlu0 %9597 }
0x1c36   : > { %v9600_v31 = vunpack.i.h.bf16 %v9598_v30  ;;  %v9599_v55 = vunpack.i.l.bf16 %v9598_v30  ;;  %5994 = vrot.lane.b32.xlu1 %v5962_v0, %s10108_s26  ;;  %5992 = vrot.lane.b32.xlu0 %v5961_v21, %s10108_s26  ;;  %v9615_v17 = vunpack.i.h.bf16 %v9613_v20  ;;  %v9614_v33 = vunpack.i.l.bf16 %v9613_v20 }
0x1c38   : > { %v5886_v43 = vpack.c.bf16 %v9600_v31, %v9599_v55 }
0x1c39   : > { %v5973_v19 = vpop.permute.xlu1 %5972  ;;  %v9608_v2 = vpop.permute.xlu0 %9607 }
0x1c3a   : > { %v9610_v9 = vunpack.i.h.bf16 %v9608_v2  ;;  %v9609_v34 = vunpack.i.l.bf16 %v9608_v2  ;;  %5980 = vrot.lane.b32.xlu1 %v12876_v32, %s10106_s22  ;;  %5978 = vrot.lane.b32.xlu0 %v5886_v43, %s10106_s22  ;;  %v6004_v7 = vsel %vm658_vm2, %v5805_v41, %v5973_v19  ;;  %v5888_v32 = vpack.c.bf16 %v9615_v17, %v9614_v33  ;;  %v12973_v19 = vld [vmem:[%s13473_s8 + $0x4] ss:$0 sm:$0xff] }
0x1c3b   : > { %v12979_v41 = vld [vmem:[%s13474_s9 + $0x4] ss:$0 sm:$0xff] }
0x1c3c   : > { %v5963_v59 = vpack.c.bf16 %v9610_v9, %v9609_v34 }
0x1c3d   : > { %v5991_v12 = vpop.permute.xlu1 %5990  ;;  %v9618_v6 = vpop.permute.xlu0 %9617 }
0x1c3e   : > { %v6020_v56 = vsel %vm734_vm3, %v6004_v7, %v5991_v12  ;;  %5996 = vrot.lane.b32.xlu0 %v5963_v59, %s10108_s26  ;;  %5998 = vrot.lane.b32.xlu1 %v5964_v40, %s10108_s26  ;;  %v9620_v26 = vunpack.i.h.bf16 %v9618_v6  ;;  %v9619_v29 = vunpack.i.l.bf16 %v9618_v6 }
0x1c3f   : > { %8793 = vmatprep.mubr.msk.bf16.mxu0 %vm1173_vm5, %v6020_v56 }
0x1c40   : > { %v5965_v58 = vpack.c.bf16 %v9620_v26, %v9619_v29 }
0x1c41   : > { %v5977_v11 = vpop.permute.xlu1 %5976  ;;  %v5975_v24 = vpop.permute.xlu0 %5974 }
0x1c42   : > { %5982 = vrot.lane.b32.xlu0 %v5888_v32, %s10106_s22  ;;  %v6010_v44 = vsel %vm658_vm2, %v5807_v35, %v5977_v11  ;;  %v6007_v14 = vsel %vm658_vm2, %v5806_v13, %v5975_v24 }
0x1c46   : > { %6000 = vrot.lane.b32.xlu0 %v5965_v58, %s10108_s26 }
0x1ca8   : > { %v5995_v42 = vpop.permute.xlu1 %5994  ;;  %v5993_v54 = vpop.permute.xlu0 %5992 }
0x1ca9   : > { %v6024_v63 = vsel %vm734_vm3, %v6010_v44, %v5995_v42  ;;  %v6022_v0 = vsel %vm734_vm3, %v6007_v14, %v5993_v54 }
0x1caa   : > { %8794 = vmatmul.mubr.msk.bf16.vlgmr.msra.gmra.mxu0 %vm1173_vm5, %v6022_v0 }
0x1cab   : > { %8797 = vmatprep.mubr.msk.bf16.mxu0 %vm1173_vm5, %v6024_v63 }
0x1cac   : > { %v5981_v21 = vpop.permute.xlu1 %5980  ;;  %v5979_v20 = vpop.permute.xlu0 %5978 }
0x1cad   : > { %v6016_v3 = vsel %vm658_vm2, %v5809_v27, %v5981_v21  ;;  %v6013_v8 = vsel %vm658_vm2, %v5808_v61, %v5979_v20 }
0x1cb0   : > { %v5997_v50 = vpop.permute.xlu0 %5996  ;;  %v5999_v13 = vpop.permute.xlu1 %5998 }
0x1cb1   : > { %v6026_v35 = vsel %vm734_vm3, %v6013_v8, %v5997_v50  ;;  %v6028_v30 = vsel %vm734_vm3, %v6016_v3, %v5999_v13 }
0x1cb2   : > { %8798 = vmatmul.mubr.msk.bf16.gmra.mxu0 %vm1173_vm5, %v6026_v35 }
0x1cb3   : > { %8801 = vmatprep.mubr.msk.bf16.mxu0 %vm1173_vm5, %v6028_v30 }
0x1cb4   : > { %v5983_v31 = vpop.permute.xlu0 %5982 }
0x1cb5   : > { %v6018_v51 = vsel %vm658_vm2, %v12825_v38, %v5983_v31  ;;  %v8065_v38 = vld [vmem:[%s13472_s7 + $0x4] ss:$0 sm:$0xff] }
0x1cb8   : > { %v6001_v60 = vpop.permute.xlu0 %6000 }
0x1cb9   : > { %v6030_v55 = vsel %vm734_vm3, %v6018_v51, %v6001_v60 }
0x1cba   : > { %8802 = vmatmul.mubr.msk.bf16.gmra.mxu0 %vm1173_vm5, %v6030_v55 }
0x1cbb   : > { %6520 = vmatprep.mubr.bf16.mxu0 %v13495_v39 }
0x1d6a   : > { %v8795_v61 = vpop.f32.mrf.mxu0 }
0x1d6b   : > { %v6143_v43 = vadd.f32 %v8795_v61, %v8065_v38 }
0x1d6c   : > { %v6134_v2 = vpop.f32.mrf.mxu0 }
0x1d6d   : > { %v6183_v9 = vadd.f32 %v6143_v43, %v12652_v10  ;;  %v6135_v34 = vadd.f32 %v8065_v38, %v6134_v2 }
0x1d6e   : > { %v8796_v40 = vpop.f32.mrf.mxu0 }
0x1d6f   : > { %v6203_v17 = vmul.f32 %v12973_v19, %v6183_v9  ;;  %v6181_v33 = vadd.f32 %v6135_v34, %v12637_v22  ;;  %v6146_v59 = vadd.f32 %v8796_v40, %v8065_v38  ;;  %v9818_v22 = vld [vmem:[%s13468_s3 + $0xa8] sm:$0xff]  }
0x1d70   : > { %v6137_v7 = vpop.f32.mrf.mxu0  ;;  %8809 = vmatprep.subr.bf16.mxu1 %v9818_v22 }
0x1d71   : > { %v12984_v12 = vadd.f32 %v12979_v41, %v6203_v17  ;;  %v6201_v6 = vmul.f32 %v12973_v19, %v6181_v33  ;;  %v6184_v10 = vadd.f32 %v6146_v59, %v12655_v45  ;;  %v6138_v56 = vadd.f32 %v8065_v38, %v6137_v7  ;;  %8810 = vmatpush3.bf16.msra.mxu1 %v9818_v22 }
0x1d72   : > { %v8799_v32 = vpop.f32.mrf.mxu0 }
0x1d73   : > { %v12989_v26 = vadd.f32 %v12979_v41, %v6201_v6  ;;  %v6204_v29 = vmul.f32 %v12973_v19, %v6184_v10  ;;  %v6182_v58 = vadd.f32 %v6138_v56, %v12640_v23  ;;  %v6159_v11 = vadd.f32 %v8799_v32, %v8065_v38  ;;  %v9819_v23 = vld [vmem:[%s13468_s3 + $0xa0] sm:$0xff]  }
0x1d74   : > { %v6150_v24 = vpop.f32.mrf.mxu0  ;;  %8811 = vmatprep.subr.bf16.mxu1 %v9819_v23 }
0x1d75   : > { %v6224_v44 = vadd.f32 %v12979_v41, %v6204_v29  ;;  %v6202_v14 = vmul.f32 %v12973_v19, %v6182_v58  ;;  %v6151_v45 = vadd.f32 %v8065_v38, %v6150_v24  ;;  %v6187_v42 = vadd.f32 %v6159_v11, %v12682_v36  ;;  %8812 = vmatpush3.bf16.msra.mxu1 %v9819_v23 }
0x1d76   : > { %v8800_v54 = vpop.f32.mrf.mxu0  ;;  %8821 = vmatprep.subr.bf16.mxu1 %v13483_v25 }
0x1d77   : > { %v6222_v63 = vadd.f32 %v12979_v41, %v6202_v14  ;;  %v6162_v0 = vadd.f32 %v8800_v54, %v8065_v38  ;;  %v6185_v21 = vadd.f32 %v6151_v45, %v12667_v28  ;;  %v6207_v8 = vmul.f32 %v12973_v19, %v6187_v42 }
0x1d78   : > { %v6153_v20 = vpop.f32.mrf.mxu0 }
0x1d79   : > { %v6188_v27 = vadd.f32 %v6162_v0, %v12685_v5  ;;  %v6154_v3 = vadd.f32 %v8065_v38, %v6153_v20  ;;  %v6205_v30 = vmul.f32 %v12973_v19, %v6185_v21  ;;  %v13016_v55 = vadd.f32 %v12979_v41, %v6207_v8 }
0x1d7a   : > { %v8803_v50 = vpop.f32.mrf.mxu0 }
0x1d7b   : > { %v6208_v36 = vmul.f32 %v12973_v19, %v6188_v27  ;;  %v6186_v13 = vadd.f32 %v6154_v3, %v12670_v15  ;;  %v6175_v35 = vadd.f32 %v8803_v50, %v8065_v38  ;;  %v13023_v43 = vadd.f32 %v12979_v41, %v6205_v30 }
0x1d7c   : > { %v6166_v31 = vpop.f32.mrf.mxu0 }
0x1d7d   : > { %v13011_v28 = vadd.f32 %v12979_v41, %v6208_v36  ;;  %v6206_v5 = vmul.f32 %v12973_v19, %v6186_v13  ;;  %v6191_v51 = vadd.f32 %v6175_v35, %v12711_v52  ;;  %v6167_v60 = vadd.f32 %v8065_v38, %v6166_v31  ;;  %v8091_v36 = vld [vmem:[%s13469_s4 + $0x5] ss:$0 sm:$0xff] }
0x1d7e   : > { %v8804_v4 = vpop.f32.mrf.mxu0 }
0x1d7f   : > { %v13019_v15 = vadd.f32 %v12979_v41, %v6206_v5  ;;  %v6189_v49 = vadd.f32 %v6167_v60, %v12697_v62  ;;  %v6178_v61 = vadd.f32 %v8804_v4, %v8065_v38  ;;  %v9626_v9 = vpack.i.bf16 %v13011_v28, %v13016_v55 }
0x1d80   : > { %v6169_v2 = vpop.f32.mrf.mxu0  ;;  %v6211_v52 = vmul.f32 %v12973_v19, %v6191_v51 }
0x1d81   : > { %v6192_v34 = vadd.f32 %v6178_v61, %v12714_v53  ;;  %v6170_v40 = vadd.f32 %v8065_v38, %v6169_v2  ;;  %9627 = vrot.lane.b32.xlu0 %v9626_v9, %s10106_s22  ;;  %v9621_v17 = vpack.i.bf16 %v13019_v15, %v13023_v43  ;;  %v6209_v62 = vmul.f32 %v12973_v19, %v6189_v49 }
0x1d82   : > { %v13037_v7 = vadd.f32 %v12979_v41, %v6211_v52 }
0x1d83   : > { %v6212_v33 = vmul.f32 %v12973_v19, %v6192_v34  ;;  %v6190_v59 = vadd.f32 %v6170_v40, %v12700_v1  ;;  %9622 = vrot.lane.b32.xlu1 %v9621_v17, %s10106_s22  ;;  %v13044_v38 = vadd.f32 %v12979_v41, %v6209_v62 }
0x1d85   : > { %v13040_v6 = vadd.f32 %v12979_v41, %v6212_v33  ;;  %v6210_v53 = vmul.f32 %v12973_v19, %v6190_v59 }
0x1d87   : > { %v13047_v10 = vadd.f32 %v12979_v41, %v6210_v53  ;;  %v9636_v56 = vpack.i.bf16 %v13040_v6, %v13037_v7 }
0x1d89   : > { %9637 = vrot.lane.b32.xlu0 %v9636_v56, %s10106_s22  ;;  %v9631_v1 = vpack.i.bf16 %v13047_v10, %v13044_v38  ;;  %v9822_v56 = vld [vmem:[%s13470_s5 + $0xb4] ss:$8 sps:$4 sm:$0xff]  }
0x1d8a   : > { %6500 = vmatprep.subr.bf16.mxu0 %v9822_v56 }
0x1d8b   : > { %9632 = vrot.lane.b32.xlu1 %v9631_v1, %s10106_s22 }
0x1df3   : > { %v9628_v32 = vpop.permute.xlu0 %9627 }
0x1df4   : > { %v9630_v29 = vunpack.i.h.bf16 %v9628_v32  ;;  %v9629_v58 = vunpack.i.l.bf16 %v9628_v32  ;;  %v9820_v32 = vld [vmem:[%s13470_s5 + $0xb0] ss:$8 sps:$4 sm:$0xff]  }
0x1df5   : > { %v9623_v19 = vpop.permute.xlu1 %9622  ;;  %6501 = vmatpush1.bf16.msra.mxu0 %v9820_v32 }
0x1df6   : > { %v6268_v11 = vsel %vm658_vm2, %v6224_v44, %v9630_v29  ;;  %v6267_v41 = vsel %vm658_vm2, %v12984_v12, %v9629_v58  ;;  %v9625_v22 = vunpack.i.h.bf16 %v9623_v19  ;;  %v9624_v24 = vunpack.i.l.bf16 %v9623_v19  ;;  %v9825_v58 = vld [vmem:[%s13470_s5 + $0xa4] ss:$8 sps:$4 sm:$0xff]  }
0x1df7   : > { %v6274_v14 = vpack.c.bf16 %v6268_v11, %v6267_v41  ;;  %v9823_v11 = vld [vmem:[%s13470_s5 + $0xa0] ss:$8 sps:$4 sm:$0xff]   ;;  %6502 = vmatprep.subr.bf16.mxu0 %v9825_v58 }
0x1df8   : > { %v6266_v45 = vsel %vm658_vm2, %v6222_v63, %v9625_v22  ;;  %v6265_v42 = vsel %vm658_vm2, %v12989_v26, %v9624_v24 }
0x1df9   : > { %v6273_v54 = vpack.c.bf16 %v6266_v45, %v6265_v42  ;;  %6503 = vmatpush1.bf16.msra.mxu0 %v9823_v11 }
0x1dfa   : > { %8827 = vmatprep.subr.bf16.mxu0 %v13483_v25 }
0x1dfb   : > { %v9638_v0 = vpop.permute.xlu0 %9637  ;;  %8813 = vmatprep.mubr.msk.bf16.mxu1 %vm734_vm3, %v6273_v54 }
0x1dfc   : > { %v9640_v23 = vunpack.i.h.bf16 %v9638_v0  ;;  %v9639_v21 = vunpack.i.l.bf16 %v9638_v0  ;;  %8814 = vmatmul.mubr.msk.bf16.vlgmr.msra.gmra.mxu1 %vm734_vm3, %v6274_v14 }
0x1dfd   : > { %v9633_v44 = vpop.permute.xlu1 %9632 }
0x1dfe   : > { %v9635_v20 = vunpack.i.h.bf16 %v9633_v44  ;;  %v9634_v27 = vunpack.i.l.bf16 %v9633_v44  ;;  %v6272_v12 = vsel %vm658_vm2, %v13011_v28, %v9640_v23  ;;  %v6271_v63 = vsel %vm658_vm2, %v13016_v55, %v9639_v21 }
0x1dff   : > { %v6276_v50 = vpack.c.bf16 %v6272_v12, %v6271_v63 }
0x1e00   : > { %v6270_v26 = vsel %vm658_vm2, %v13019_v15, %v9635_v20  ;;  %v6269_v3 = vsel %vm658_vm2, %v13023_v43, %v9634_v27 }
0x1e01   : > { %v6275_v8 = vpack.c.bf16 %v6270_v26, %v6269_v3 }
0x1e03   : > { %8817 = vmatprep.mubr.msk.bf16.mxu1 %vm734_vm3, %v6275_v8 }
0x1e04   : > { %8818 = vmatmul.mubr.msk.bf16.gmra.mxu1 %vm734_vm3, %v6276_v50 }
0x1e05   : > { %8823 = vmatprep.mubr.msk.bf16.mxu1 %vm10111_vm6, %v13483_v25 }
0x1ebc   : > { %v8815_v13 = vpop.f32.mrf.mxu1 }
0x1ebd   : > { %v6373_v35 = vadd.f32 %v8815_v13, %v8091_v36 }
0x1ebe   : > { %v6364_v30 = vpop.f32.mrf.mxu1 }
0x1ebf   : > { %10042 = vtanh.f32 %v6373_v35  ;;  %v6365_v61 = vadd.f32 %v8091_v36, %v6364_v30 }
0x1ec0   : > { %v8816_v31 = vpop.f32.mrf.mxu1 }
0x1ec1   : > { %v6376_v5 = vadd.f32 %v8816_v31, %v8091_v36 }
0x1ec2   : > { %v6367_v51 = vpop.f32.mrf.mxu1 }
0x1ec3   : > { %10044 = vtanh.f32 %v6376_v5  ;;  %v6368_v62 = vadd.f32 %v8091_v36, %v6367_v51 }
0x1ec4   : > { %v8819_v60 = vpop.f32.mrf.mxu1 }
0x1ec5   : > { %v6389_v4 = vadd.f32 %v8819_v60, %v8091_v36 }
0x1ec6   : > { %v6380_v49 = vpop.f32.mrf.mxu1 }
0x1ec7   : > { %v6381_v2 = vadd.f32 %v8091_v36, %v6380_v49  ;;  %10046 = vtanh.f32 %v6389_v4 }
0x1ec8   : > { %v8820_v9 = vpop.f32.mrf.mxu1 }
0x1ec9   : > { %10048 = vtanh.f32 %v6381_v2  ;;  %v6392_v52 = vadd.f32 %v8820_v9, %v8091_v36 }
0x1eca   : > { %v6383_v34 = vpop.f32.mrf.mxu1  ;;  %10050 = vtanh.f32 %v6365_v61 }
0x1ecb   : > { %v6384_v40 = vadd.f32 %v8091_v36, %v6383_v34  ;;  %10052 = vtanh.f32 %v6392_v52 }
0x1ecc   : > { %v10043_v17 = vpop.eup %10042 }
0x1ecd   : > { %10054 = vtanh.f32 %v6384_v40  ;;  %v6405_v33 = vmul.f32 0.5, %v10043_v17 }
0x1ece   : > { %10056 = vtanh.f32 %v6368_v62 }
0x1ecf   : > { %v6413_v59 = vadd.f32 0.5, %v6405_v33 }
0x1ed0   : > { %v10045_v53 = vpop.eup %10044 }
0x1ed1   : > { %6431 = vrot.lane.b32.xlu1 %v6413_v59, %s10107_s25  ;;  %v6406_v1 = vmul.f32 0.5, %v10045_v53 }
0x1ed3   : > { %v6414_v29 = vadd.f32 0.5, %v6406_v1 }
0x1ed4   : > { %v10047_v19 = vpop.eup %10046 }
0x1ed5   : > { %6433 = vrot.lane.b32.xlu0 %v6414_v29, %s10107_s25  ;;  %v6409_v42 = vmul.f32 0.5, %v10047_v19 }
0x1ed6   : > { %v10049_v41 = vpop.eup %10048 }
0x1ed7   : > { %v6407_v22 = vmul.f32 0.5, %v10049_v41  ;;  %v10051_v24 = vpop.eup %10050  ;;  %v6417_v21 = vadd.f32 0.5, %v6409_v42 }
0x1ed8   : > { %v10053_v14 = vpop.eup %10052  ;;  %v6403_v20 = vmul.f32 0.5, %v10051_v24 }
0x1ed9   : > { %v6415_v45 = vadd.f32 0.5, %v6407_v22  ;;  %v6410_v44 = vmul.f32 0.5, %v10053_v14 }
0x1eda   : > { %v10055_v54 = vpop.eup %10054  ;;  %v6411_v63 = vadd.f32 0.5, %v6403_v20 }
0x1edb   : > { %6435 = vrot.lane.b32.xlu1 %v6415_v45, %s10107_s25  ;;  %v6408_v0 = vmul.f32 0.5, %v10055_v54  ;;  %v10057_v27 = vpop.eup %10056  ;;  %v6418_v12 = vadd.f32 0.5, %v6410_v44 }
0x1edc   : > { %v6404_v26 = vmul.f32 0.5, %v10057_v27 }
0x1edd   : > { %v6416_v23 = vadd.f32 0.5, %v6408_v0 }
0x1ede   : > { %v6412_v3 = vadd.f32 0.5, %v6404_v26 }
0x1edf   : > { %6437 = vrot.lane.b32.xlu0 %v6416_v23, %s10107_s25  ;;  %6439 = vrot.lane.b32.xlu1 %v6417_v21, %s10107_s25 }
0x1ee3   : > { %6441 = vrot.lane.b32.xlu0 %v6418_v12, %s10107_s25  ;;  %6427 = vrot.lane.b32.xlu1 %v6411_v63, %s10107_s25 }
0x1ee7   : > { %6429 = vrot.lane.b32.xlu0 %v6412_v3, %s10107_s25 }
0x1f43   : > { %v6432_v8 = vpop.permute.xlu1 %6431 }
0x1f44   : > { %v13099_v36 = vmul.f32 %v10043_v17, %v6432_v8 }
0x1f47   : > { %v6434_v50 = vpop.permute.xlu0 %6433 }
0x1f48   : > { %v13101_v13 = vmul.f32 %v10045_v53, %v6434_v50 }
0x1f4a   : > { %v9641_v35 = vpack.i.bf16 %v13101_v13, %v13099_v36  ;;  %v6566_v30 = vpack.c.bf16 %v13101_v13, %v13099_v36 }
0x1f4c   : > { %9642 = vrot.lane.b32.xlu1 %v9641_v35, %s10106_s22 }
0x1f4d   : > { %v6436_v31 = vpop.permute.xlu1 %6435 }
0x1f4e   : > { %v13108_v51 = vmul.f32 %v10049_v41, %v6436_v31 }
0x1f51   : > { %v6438_v5 = vpop.permute.xlu0 %6437  ;;  %v6440_v4 = vpop.permute.xlu1 %6439 }
0x1f52   : > { %v13110_v60 = vmul.f32 %v10055_v54, %v6438_v5  ;;  %v6457_v9 = vmul.f32 %v10047_v19, %v6440_v4 }
0x1f54   : > { %v9646_v49 = vpack.i.bf16 %v13110_v60, %v13108_v51  ;;  %v6567_v61 = vpack.c.bf16 %v13110_v60, %v13108_v51  ;;  %v9832_v51 = vld [vmem:[%s13468_s3 + $0xd8] sm:$0xff]   ;;  %v9833_v60 = vld [vmem:[%s13468_s3 + $0xd0] sm:$0xff]  }
0x1f55   : > { %v6442_v2 = vpop.permute.xlu0 %6441  ;;  %v6428_v17 = vpop.permute.xlu1 %6427 }
0x1f56   : > { %v6458_v52 = vmul.f32 %v10053_v14, %v6442_v2  ;;  %9647 = vrot.lane.b32.xlu0 %v9646_v49, %s10108_s26  ;;  %v13124_v29 = vmul.f32 %v10051_v24, %v6428_v17  ;;  %v9826_v2 = vld [vmem:[%s13471_s6 + $0x118] sm:$0xff]  }
0x1f58   : > { %v9651_v34 = vpack.i.bf16 %v6458_v52, %v6457_v9  ;;  %v13117_v40 = vpack.c.bf16 %v6458_v52, %v6457_v9  ;;  %v9827_v9 = vld [vmem:[%s13471_s6 + $0x110] sm:$0xff]  }
0x1f59   : > { %v6430_v62 = vpop.permute.xlu0 %6429 }
0x1f5a   : > { %8108 = vmatmul.mubr.msk.bf16.vlgmr.msra.gmra.mxu0 %vm658_vm2, %v13117_v40  ;;  %9652 = vrot.lane.b32.xlu1 %v9651_v34, %s10107_s25  ;;  %v13126_v58 = vmul.f32 %v10057_v27, %v6430_v62  ;;  %v9828_v34 = vld [vmem:[%s13471_s6 + $0x108] sm:$0xff]  }
0x1f5b   : > { %8829 = vmatprep.mubr.msk.bf16.mxu0 %vm10111_vm6, %v13483_v25 }
0x1fbe   : > { %v9643_v33 = vpop.permute.xlu1 %9642 }
0x1fbf   : > { %v9645_v53 = vunpack.i.h.bf16 %v9643_v33  ;;  %v9644_v56 = vunpack.i.l.bf16 %v9643_v33 }
0x1fc1   : > { %v6560_v11 = vsel %vm658_vm2, %v13126_v58, %v9645_v53  ;;  %v6559_v41 = vsel %vm658_vm2, %v13124_v29, %v9644_v56  ;;  %v9829_v56 = vld [vmem:[%s13471_s6 + $0x100] sm:$0xff]  }
0x1fc8   : > { %v9648_v59 = vpop.permute.xlu0 %9647 }
0x1fc9   : > { %v9650_v1 = vunpack.i.h.bf16 %v9648_v59  ;;  %v9649_v32 = vunpack.i.l.bf16 %v9648_v59 }
0x1fcb   : > { %v6561_v45 = vsel %vm734_vm3, %v6559_v41, %v9649_v32  ;;  %v6562_v42 = vsel %vm734_vm3, %v6560_v11, %v9650_v1  ;;  %v9831_v11 = vld [vmem:[%s13471_s6 + $0xf0] sm:$0xff]  }
0x1fcc   : > { %v9653_v19 = vpop.permute.xlu1 %9652 }
0x1fcd   : > { %v9655_v22 = vunpack.i.h.bf16 %v9653_v19  ;;  %v9654_v14 = vunpack.i.l.bf16 %v9653_v19  ;;  %v9830_v19 = vld [vmem:[%s13471_s6 + $0xf8] sm:$0xff]  }
0x1fcf   : > { %v6563_v54 = vsel %vm1173_vm5, %v6561_v45, %v9654_v14  ;;  %v6564_v24 = vsel %vm1173_vm5, %v6562_v42, %v9655_v22 }
0x1fd0   : > { %v6568_v0 = vpack.c.bf16 %v6564_v24, %v6563_v54 }
0x1fd2   : > { %8822 = vmatpush3.bf16.msra.mxu1 %v6568_v0 }
0x1fd3   : > { %8833 = vmatprep.subr.bf16.mxu1 %v9826_v2 }
0x1fd5   : > { %8824 = vmatmul.mubr.msk.bf16.vlgmr.msra.gmra.mxu1 %vm480_vm4, %v10686_v47 }
0x1fd6   : > { %8834 = vmatpush3.bf16.msra.mxu1 %v9826_v2 }
0x1fd7   : > { %8835 = vmatprep.subr.bf16.mxu1 %v9827_v9 }
0x1fda   : > { %8836 = vmatpush3.bf16.msra.mxu1 %v9827_v9 }
0x1fdb   : > { %8837 = vmatprep.subr.bf16.mxu1 %v9828_v34 }
0x1fde   : > { %8838 = vmatpush3.bf16.msra.mxu1 %v9828_v34 }
0x1fdf   : > { %8839 = vmatprep.subr.bf16.mxu1 %v9829_v56 }
0x1fe2   : > { %8840 = vmatpush3.bf16.msra.mxu1 %v9829_v56  ;;  %v9835_v56 = vld [vmem:[%s13468_s3 + $0xc0] sm:$0xff]  }
0x1fe3   : > { %8841 = vmatprep.subr.bf16.mxu1 %v9830_v19 }
0x1fe6   : > { %8842 = vmatpush3.bf16.msra.mxu1 %v9830_v19  ;;  %v8136_v19 = vld [vmem:[%s13473_s8 + $0x5] ss:$0 sm:$0xff] }
0x1fe7   : > { %8843 = vmatprep.subr.bf16.mxu1 %v9831_v11 }
0x1fea   : > { %8844 = vmatpush3.bf16.msra.mxu1 %v9831_v11 }
0x201a   : > { %v6522_v23 = vpop.f32.mrf.mxu0 }
0x201b   : > { %v13139_v21 = vadd.f32 %v6522_v23, %v12866_v46 }
0x201c   : > { %v6524_v44 = vpop.f32.mrf.mxu0 }
0x201d   : > { %v13142_v20 = vadd.f32 %v6524_v44, %v12869_v48 }
0x201e   : > { %v6526_v27 = vpop.f32.mrf.mxu0 }
0x201f   : > { %v13145_v12 = vadd.f32 %v6526_v27, %v12872_v37 }
0x2020   : > { %v13154_v46 = vpop.f32.mrf.mxu0 }
0x2095   : > { %v6603_v63 = vpop.f32.mrf.mxu1 }
0x2097   : > { %v8825_v26 = vpop.f32.mrf.mxu1 }
0x2098   : > { %v6565_v26 = vpack.c.bf16 %v13126_v58, %v13124_v29 }
0x2099   : > { %v6606_v3 = vpop.f32.mrf.mxu1 }
0x209a   : > { %v9671_v8 = vpack.i.bf16 %v6606_v3, %v6603_v63  ;;  %v6630_v50 = vpack.c.bf16 %v6606_v3, %v6603_v63 }
0x209b   : > { %v8826_v35 = vpop.f32.mrf.mxu1 }
0x209c   : > { %9657 = vrot.lane.b32.xlu0 %v9671_v8, %s10107_s25  ;;  %8828 = vmatpush3.bf16.msra.mxu0 %v6630_v50 }
0x209d   : > { %8853 = vmatprep.subr.bf16.mxu0 %v13483_v25 }
0x209f   : > { %8830 = vmatmul.mubr.msk.bf16.vlgmr.msra.gmra.mxu0 %vm480_vm4, %v10686_v47 }
0x20a0   : > { %9662 = vrot.lane.b32.xlu0 %v9671_v8, %s10108_s26  ;;  %8861 = vmatprep.mubr.msk.bf16.mxu0 %vm10111_vm6, %v13483_v25 }
0x20a1   : > { %8854 = vmatpush3.bf16.msra.mxu0 %v9832_v51 }
0x20a2   : > { %8855 = vmatprep.subr.bf16.mxu0 %v13483_v25 }
0x20a5   : > { %8856 = vmatpush3.bf16.msra.mxu0 %v9833_v60 }
0x20a6   : > { %8857 = vmatprep.subr.bf16.mxu0 %v13483_v25 }
0x210e   : > { %v9658_v31 = vpop.permute.xlu0 %9657 }
0x210f   : > { %v9660_v17 = vunpack.i.h.bf16 %v9658_v31  ;;  %v9659_v62 = vunpack.i.l.bf16 %v9658_v31 }
0x2111   : > { %v6631_v1 = vpack.c.bf16 %v9660_v17, %v9659_v62 }
0x2112   : > { %v9663_v52 = vpop.permute.xlu0 %9662 }
0x2113   : > { %v9665_v33 = vunpack.i.h.bf16 %v9663_v52  ;;  %v9664_v59 = vunpack.i.l.bf16 %v9663_v52 }
0x2115   : > { %v6632_v32 = vpack.c.bf16 %v9665_v33, %v9664_v59 }
0x215f   : > { %v6668_v48 = vpop.f32.mrf.mxu0 }
0x2161   : > { %v8831_v37 = vpop.f32.mrf.mxu0 }
0x2163   : > { %v6671_v5 = vpop.f32.mrf.mxu0 }
0x2164   : > { %v9676_v4 = vpack.i.bf16 %v6671_v5, %v6668_v48  ;;  %v6695_v53 = vpack.c.bf16 %v6671_v5, %v6668_v48 }
0x2165   : > { %v8832_v49 = vpop.f32.mrf.mxu0 }
0x2166   : > { %9677 = vrot.lane.b32.xlu0 %v9676_v4, %s10108_s26  ;;  %9667 = vrot.lane.b32.xlu1 %v9676_v4, %s10107_s25 }
0x216a   : > { %6703 = vrot.lane.b32.xlu0 %v6630_v50, %s10106_s22  ;;  %9672 = vrot.lane.b32.xlu1 %v9671_v8, %s10106_s22 }
0x216e   : > { %9682 = vrot.lane.b32.xlu1 %v9676_v4, %s10106_s22  ;;  %6715 = vrot.lane.b32.xlu0 %v6695_v53, %s10108_s26 }
0x2172   : > { %6705 = vrot.lane.b32.xlu1 %v6631_v1, %s10106_s22  ;;  %6707 = vrot.lane.b32.xlu0 %v6632_v32, %s10106_s22 }
0x21d8   : > { %v9678_v41 = vpop.permute.xlu0 %9677  ;;  %v9668_v22 = vpop.permute.xlu1 %9667 }
0x21d9   : > { %v9680_v14 = vunpack.i.h.bf16 %v9678_v41  ;;  %v9679_v45 = vunpack.i.l.bf16 %v9678_v41  ;;  %v9670_v42 = vunpack.i.h.bf16 %v9668_v22  ;;  %v9669_v54 = vunpack.i.l.bf16 %v9668_v22 }
0x21db   : > { %v6697_v24 = vpack.c.bf16 %v9680_v14, %v9679_v45  ;;  %v6696_v0 = vpack.c.bf16 %v9670_v42, %v9669_v54 }
0x21dc   : > { %v6704_v23 = vpop.permute.xlu0 %6703  ;;  %v9673_v44 = vpop.permute.xlu1 %9672 }
0x21dd   : > { %v9675_v27 = vunpack.i.h.bf16 %v9673_v44  ;;  %v9674_v63 = vunpack.i.l.bf16 %v9673_v44  ;;  %6717 = vrot.lane.b32.xlu1 %v6696_v0, %s10108_s26  ;;  %6719 = vrot.lane.b32.xlu0 %v6697_v24, %s10108_s26  ;;  %v6725_v8 = vsel %vm658_vm2, %v6565_v26, %v6704_v23 }
0x21df   : > { %v6633_v3 = vpack.c.bf16 %v9675_v27, %v9674_v63 }
0x21e0   : > { %v9683_v50 = vpop.permute.xlu1 %9682  ;;  %v6716_v35 = vpop.permute.xlu0 %6715 }
0x21e1   : > { %v9685_v48 = vunpack.i.h.bf16 %v9683_v50  ;;  %v9684_v37 = vunpack.i.l.bf16 %v9683_v50  ;;  %v6735_v31 = vsel %vm734_vm3, %v6725_v8, %v6716_v35  ;;  %6709 = vrot.lane.b32.xlu1 %v6633_v3, %s10106_s22 }
0x21e2   : > { %8845 = vmatprep.mubr.msk.bf16.mxu1 %vm1173_vm5, %v6735_v31 }
0x21e3   : > { %v6698_v5 = vpack.c.bf16 %v9685_v48, %v9684_v37 }
0x21e4   : > { %v6706_v4 = vpop.permute.xlu1 %6705  ;;  %v6708_v49 = vpop.permute.xlu0 %6707 }
0x21e5   : > { %6721 = vrot.lane.b32.xlu1 %v6698_v5, %s10108_s26  ;;  %v6728_v29 = vsel %vm658_vm2, %v6566_v30, %v6706_v4  ;;  %v6731_v58 = vsel %vm658_vm2, %v6567_v61, %v6708_v49  ;;  %v9834_v61 = vld [vmem:[%s13468_s3 + $0xc8] sm:$0xff]  }
0x21e6   : > { %8858 = vmatpush3.bf16.msra.mxu0 %v9834_v61 }
0x21e7   : > { %8859 = vmatprep.subr.bf16.mxu0 %v13483_v25 }
0x21ea   : > { %8860 = vmatpush3.bf16.msra.mxu0 %v9835_v56 }
0x21eb   : > { %8873 = vmatprep.subr.bf16.mxu0 %v13483_v25 }
0x224f   : > { %v6718_v2 = vpop.permute.xlu1 %6717  ;;  %v6720_v9 = vpop.permute.xlu0 %6719 }
0x2250   : > { %v6737_v52 = vsel %vm734_vm3, %v6728_v29, %v6718_v2  ;;  %v6739_v34 = vsel %vm734_vm3, %v6731_v58, %v6720_v9 }
0x2251   : > { %8846 = vmatmul.mubr.msk.bf16.vlgmr.msra.gmra.mxu1 %vm1173_vm5, %v6737_v52 }
0x2252   : > { %8849 = vmatprep.mubr.msk.bf16.mxu1 %vm1173_vm5, %v6739_v34 }
0x2253   : > { %v6710_v17 = vpop.permute.xlu1 %6709 }
0x2254   : > { %v6733_v36 = vsel %vm658_vm2, %v13117_v40, %v6710_v17  ;;  %v8124_v40 = vld [vmem:[%s13472_s7 + $0x5] ss:$0 sm:$0xff] }
0x2257   : > { %v6722_v13 = vpop.permute.xlu1 %6721 }
0x2258   : > { %v6741_v30 = vsel %vm734_vm3, %v6733_v36, %v6722_v13 }
0x2259   : > { %8850 = vmatmul.mubr.msk.bf16.gmra.mxu1 %vm1173_vm5, %v6741_v30 }
0x225a   : > { %7161 = vmatprep.mubr.bf16.mxu1 %v13495_v39 }
0x2311   : > { %v8847_v62 = vpop.f32.mrf.mxu1 }
0x2312   : > { %v6850_v33 = vadd.f32 %v8847_v62, %v8124_v40 }
0x2313   : > { %v6841_v59 = vpop.f32.mrf.mxu1 }
0x2314   : > { %v6842_v53 = vadd.f32 %v8124_v40, %v6841_v59  ;;  %v6874_v1 = vadd.f32 %v6850_v33, %v13016_v55  ;;  %v8138_v55 = vld [vmem:[%s13474_s9 + $0x5] ss:$0 sm:$0xff] }
0x2315   : > { %v8848_v32 = vpop.f32.mrf.mxu1 }
0x2316   : > { %v6872_v11 = vadd.f32 %v6842_v53, %v13023_v43  ;;  %v6853_v41 = vadd.f32 %v8848_v32, %v8124_v40  ;;  %v6890_v54 = vmul.f32 %v8136_v19, %v6874_v1 }
0x2317   : > { %v6844_v22 = vpop.f32.mrf.mxu1 }
0x2318   : > { %v6888_v14 = vmul.f32 %v8136_v19, %v6872_v11  ;;  %v6875_v45 = vadd.f32 %v6853_v41, %v13011_v28  ;;  %v6845_v42 = vadd.f32 %v8124_v40, %v6844_v22  ;;  %v13240_v28 = vadd.f32 %v8138_v55, %v6890_v54  ;;  %v8148_v54 = vld [vmem:[%s13469_s4 + $0x6] ss:$0 sm:$0xff] }
0x2319   : > { %v8851_v24 = vpop.f32.mrf.mxu1 }
0x231a   : > { %v6904_v0 = vadd.f32 %v8138_v55, %v6888_v14  ;;  %v6891_v23 = vmul.f32 %v8136_v19, %v6875_v45  ;;  %v6873_v44 = vadd.f32 %v6845_v42, %v13019_v15  ;;  %v6866_v43 = vadd.f32 %v8851_v24, %v8124_v40 }
0x231b   : > { %v6857_v27 = vpop.f32.mrf.mxu1 }
0x231c   : > { %v13237_v63 = vadd.f32 %v8138_v55, %v6891_v23  ;;  %v6889_v26 = vmul.f32 %v8136_v19, %v6873_v44  ;;  %v6878_v3 = vadd.f32 %v6866_v43, %v13037_v7  ;;  %v6858_v8 = vadd.f32 %v8124_v40, %v6857_v27 }
0x231d   : > { %v8852_v50 = vpop.f32.mrf.mxu1 }
0x231e   : > { %v6905_v35 = vadd.f32 %v8138_v55, %v6889_v26  ;;  %v6876_v48 = vadd.f32 %v6858_v8, %v13044_v38  ;;  %v6869_v37 = vadd.f32 %v8852_v50, %v8124_v40  ;;  %v9686_v5 = vpack.i.bf16 %v13237_v63, %v13240_v28 }
0x231f   : > { %v6860_v31 = vpop.f32.mrf.mxu1  ;;  %v6894_v15 = vmul.f32 %v8136_v19, %v6878_v3 }
0x2320   : > { %v6879_v4 = vadd.f32 %v6869_v37, %v13040_v6  ;;  %v6861_v49 = vadd.f32 %v8124_v40, %v6860_v31  ;;  %9687 = vrot.lane.b32.xlu0 %v9686_v5, %s10106_s22  ;;  %v6892_v29 = vmul.f32 %v8136_v19, %v6876_v48  ;;  %v9838_v31 = vld [vmem:[%s13470_s5 + $0xd4] ss:$8 sps:$4 sm:$0xff]  }
0x2321   : > { %v13248_v2 = vadd.f32 %v8138_v55, %v6894_v15  ;;  %v9836_v15 = vld [vmem:[%s13470_s5 + $0xd0] ss:$8 sps:$4 sm:$0xff]   ;;  %7141 = vmatprep.subr.bf16.mxu1 %v9838_v31 }
0x2322   : > { %v6895_v7 = vmul.f32 %v8136_v19, %v6879_v4  ;;  %v6877_v58 = vadd.f32 %v6861_v49, %v13047_v10  ;;  %v6908_v52 = vadd.f32 %v8138_v55, %v6892_v29  ;;  %7142 = vmatpush1.bf16.msra.mxu1 %v9836_v15  ;;  %v9841_v29 = vld [vmem:[%s13470_s5 + $0xc4] ss:$8 sps:$4 sm:$0xff]  }
0x2323   : > { %7143 = vmatprep.subr.bf16.mxu1 %v9841_v29 }
0x2324   : > { %v13250_v9 = vadd.f32 %v8138_v55, %v6895_v7  ;;  %v6893_v38 = vmul.f32 %v8136_v19, %v6877_v58  ;;  %v9839_v58 = vld [vmem:[%s13470_s5 + $0xc0] ss:$8 sps:$4 sm:$0xff]  }
0x2326   : > { %v6909_v34 = vadd.f32 %v8138_v55, %v6893_v38  ;;  %v9696_v17 = vpack.i.bf16 %v13250_v9, %v13248_v2  ;;  %7144 = vmatpush1.bf16.msra.mxu1 %v9839_v58 }
0x2327   : > { %8879 = vmatprep.subr.bf16.mxu1 %v13483_v25 }
0x2328   : > { %9697 = vrot.lane.b32.xlu0 %v9696_v17, %s10106_s22  ;;  %v9691_v6 = vpack.i.bf16 %v6909_v34, %v6908_v52 }
0x232a   : > { %9692 = vrot.lane.b32.xlu1 %v9691_v6, %s10106_s22 }
0x2392   : > { %v9688_v36 = vpop.permute.xlu0 %9687 }
0x2393   : > { %v9690_v13 = vunpack.i.h.bf16 %v9688_v36  ;;  %v9689_v30 = vunpack.i.l.bf16 %v9688_v36 }
0x2395   : > { %v6936_v10 = vsel %vm658_vm2, %v6904_v0, %v9689_v30  ;;  %v6937_v51 = vsel %vm658_vm2, %v6905_v35, %v9690_v13 }
0x2396   : > { %v6942_v60 = vpack.c.bf16 %v6937_v51, %v6936_v10 }
0x2398   : > { %8862 = vmatmul.mubr.msk.bf16.vlgmr.msra.gmra.mxu0 %vm734_vm3, %v6942_v60 }
0x2399   : > { %8865 = vmatprep.mubr.msk.bf16.mxu0 %vm10111_vm6, %v13483_v25 }
0x239a   : > { %v9698_v33 = vpop.permute.xlu0 %9697 }
0x239b   : > { %v9700_v1 = vunpack.i.h.bf16 %v9698_v33  ;;  %v9699_v32 = vunpack.i.l.bf16 %v9698_v33 }
0x239c   : > { %v9693_v61 = vpop.permute.xlu1 %9692 }
0x239d   : > { %v9695_v40 = vunpack.i.h.bf16 %v9693_v61  ;;  %v9694_v62 = vunpack.i.l.bf16 %v9693_v61  ;;  %v6940_v19 = vsel %vm658_vm2, %v6908_v52, %v9699_v32  ;;  %v6941_v11 = vsel %vm658_vm2, %v6909_v34, %v9700_v1 }
0x239e   : > { %v6944_v41 = vpack.c.bf16 %v6941_v11, %v6940_v19 }
0x239f   : > { %v6939_v59 = vsel %vm658_vm2, %v13237_v63, %v9695_v40  ;;  %v6938_v53 = vsel %vm658_vm2, %v13240_v28, %v9694_v62 }
0x23a0   : > { %v6943_v56 = vpack.c.bf16 %v6939_v59, %v6938_v53 }
0x23a2   : > { %8866 = vmatmul.mubr.msk.bf16.gmra.mxu0 %vm734_vm3, %v6943_v56 }
0x23a3   : > { %8869 = vmatprep.mubr.msk.bf16.mxu0 %vm10111_vm6, %v13483_v25 }
0x23aa   : > { %8870 = vmatmul.mubr.msk.bf16.gmra.mxu0 %vm734_vm3, %v6944_v41 }
0x23ab   : > { %8875 = vmatprep.mubr.msk.bf16.mxu0 %vm10111_vm6, %v13483_v25 }
0x2458   : > { %v7029_v22 = vpop.f32.mrf.mxu0 }
0x2459   : > { %v7030_v43 = vadd.f32 %v8148_v54, %v7029_v22 }
0x245a   : > { %v8863_v14 = vpop.f32.mrf.mxu0 }
0x245c   : > { %v7032_v45 = vpop.f32.mrf.mxu0 }
0x245d   : > { %v7033_v8 = vadd.f32 %v8148_v54, %v7032_v45 }
0x245e   : > { %v8864_v42 = vpop.f32.mrf.mxu0 }
0x2462   : > { %v7037_v55 = vpop.f32.mrf.mxu0 }
0x2463   : > { %v7038_v24 = vadd.f32 %v8148_v54, %v7037_v55 }
0x2464   : > { %v8867_v0 = vpop.f32.mrf.mxu0 }
0x2465   : > { %10058 = vtanh.f32 %v7038_v24 }
0x2466   : > { %v7040_v23 = vpop.f32.mrf.mxu0 }
0x2467   : > { %v7041_v44 = vadd.f32 %v8148_v54, %v7040_v23 }
0x2468   : > { %v8868_v27 = vpop.f32.mrf.mxu0 }
0x2469   : > { %10060 = vtanh.f32 %v7041_v44 }
0x246a   : > { %v7045_v26 = vpop.f32.mrf.mxu0  ;;  %10062 = vtanh.f32 %v7030_v43 }
0x246b   : > { %v7046_v3 = vadd.f32 %v8148_v54, %v7045_v26 }
0x246c   : > { %v8871_v50 = vpop.f32.mrf.mxu0 }
0x246d   : > { %10064 = vtanh.f32 %v7046_v3 }
0x246e   : > { %v7048_v35 = vpop.f32.mrf.mxu0  ;;  %10066 = vtanh.f32 %v7033_v8 }
0x246f   : > { %v7049_v48 = vadd.f32 %v8148_v54, %v7048_v35 }
0x2470   : > { %v8872_v37 = vpop.f32.mrf.mxu0 }
0x2471   : > { %10068 = vtanh.f32 %v7049_v48 }
0x2472   : > { %v10059_v5 = vpop.eup %10058 }
0x2473   : > { %v7060_v4 = vmul.f32 0.5, %v10059_v5 }
0x2475   : > { %v7066_v49 = vadd.f32 0.5, %v7060_v4 }
0x2476   : > { %v10061_v7 = vpop.eup %10060 }
0x2477   : > { %7080 = vrot.lane.b32.xlu1 %v7066_v49, %s10107_s25  ;;  %v7061_v38 = vmul.f32 0.5, %v10061_v7  ;;  %v10063_v52 = vpop.eup %10062 }
0x2478   : > { %v7058_v30 = vmul.f32 0.5, %v10063_v52 }
0x2479   : > { %v7067_v34 = vadd.f32 0.5, %v7061_v38 }
0x247a   : > { %v10065_v17 = vpop.eup %10064  ;;  %v7064_v60 = vadd.f32 0.5, %v7058_v30 }
0x247b   : > { %7082 = vrot.lane.b32.xlu0 %v7067_v34, %s10107_s25  ;;  %v7062_v6 = vmul.f32 0.5, %v10065_v17  ;;  %v10067_v36 = vpop.eup %10066 }
0x247c   : > { %v7059_v40 = vmul.f32 0.5, %v10067_v36 }
0x247d   : > { %v7068_v13 = vadd.f32 0.5, %v7062_v6  ;;  %v9844_v6 = vld [vmem:[%s13471_s6 + $0x138] sm:$0xff]  }
0x247e   : > { %v10069_v10 = vpop.eup %10068  ;;  %v7065_v62 = vadd.f32 0.5, %v7059_v40 }
0x247f   : > { %7084 = vrot.lane.b32.xlu1 %v7068_v13, %s10107_s25  ;;  %v7063_v51 = vmul.f32 0.5, %v10069_v10 }
0x2481   : > { %v7069_v61 = vadd.f32 0.5, %v7063_v51  ;;  %v9845_v51 = vld [vmem:[%s13471_s6 + $0x130] sm:$0xff]  }
0x2483   : > { %7076 = vrot.lane.b32.xlu1 %v7064_v60, %s10107_s25  ;;  %7086 = vrot.lane.b32.xlu0 %v7069_v61, %s10107_s25  ;;  %v9846_v61 = vld [vmem:[%s13471_s6 + $0x128] sm:$0xff]  }
0x2487   : > { %7078 = vrot.lane.b32.xlu0 %v7065_v62, %s10107_s25  ;;  %v9847_v62 = vld [vmem:[%s13471_s6 + $0x120] sm:$0xff]  }
0x24e9   : > { %v7081_v33 = vpop.permute.xlu1 %7080 }
0x24ea   : > { %v13295_v53 = vmul.f32 %v10059_v5, %v7081_v33 }
0x24ed   : > { %v7083_v59 = vpop.permute.xlu0 %7082 }
0x24ee   : > { %v13297_v56 = vmul.f32 %v10061_v7, %v7083_v59 }
0x24f0   : > { %v9701_v1 = vpack.i.bf16 %v13297_v56, %v13295_v53  ;;  %v7197_v32 = vpack.c.bf16 %v13297_v56, %v13295_v53 }
0x24f1   : > { %v7085_v19 = vpop.permute.xlu1 %7084 }
0x24f2   : > { %9702 = vrot.lane.b32.xlu1 %v9701_v1, %s10106_s22  ;;  %v7098_v41 = vmul.f32 %v10065_v17, %v7085_v19 }
0x24f5   : > { %v7087_v11 = vpop.permute.xlu0 %7086  ;;  %v7077_v42 = vpop.permute.xlu1 %7076 }
0x24f6   : > { %v7099_v22 = vmul.f32 %v10069_v10, %v7087_v11  ;;  %v13311_v23 = vmul.f32 %v10063_v52, %v7077_v42 }
0x24f8   : > { %v9706_v14 = vpack.i.bf16 %v7099_v22, %v7098_v41  ;;  %v13304_v45 = vpack.c.bf16 %v7099_v22, %v7098_v41 }
0x24f9   : > { %v7079_v55 = vpop.permute.xlu0 %7078 }
0x24fa   : > { %9707 = vrot.lane.b32.xlu0 %v9706_v14, %s10108_s26  ;;  %8164 = vmatmul.mubr.msk.bf16.vlgmr.msra.gmra.mxu1 %vm658_vm2, %v13304_v45  ;;  %v13313_v44 = vmul.f32 %v10067_v36, %v7079_v55 }
0x24fb   : > { %8881 = vmatprep.mubr.msk.bf16.mxu1 %vm10111_vm6, %v13483_v25 }
0x2564   : > { %v9703_v54 = vpop.permute.xlu1 %9702 }
0x2565   : > { %v9705_v24 = vunpack.i.h.bf16 %v9703_v54  ;;  %v9704_v0 = vunpack.i.l.bf16 %v9703_v54 }
0x2567   : > { %v7192_v3 = vsel %vm658_vm2, %v13311_v23, %v9704_v0  ;;  %v7193_v8 = vsel %vm658_vm2, %v13313_v44, %v9705_v24 }
0x256c   : > { %v9708_v43 = vpop.permute.xlu0 %9707 }
0x256d   : > { %v9710_v27 = vunpack.i.h.bf16 %v9708_v43  ;;  %v9709_v26 = vunpack.i.l.bf16 %v9708_v43 }
0x256f   : > { %v7195_v50 = vsel %vm734_vm3, %v7193_v8, %v9710_v27  ;;  %v7194_v35 = vsel %vm734_vm3, %v7192_v3, %v9709_v26  ;;  %v7196_v27 = vpack.c.bf16 %v13313_v44, %v13311_v23 }
0x2570   : > { %v7198_v48 = vpack.c.bf16 %v7195_v50, %v7194_v35 }
0x2572   : > { %8874 = vmatpush3.bf16.msra.mxu0 %v7198_v48 }
0x2573   : > { %8885 = vmatprep.subr.bf16.mxu0 %v13483_v25 }
0x2575   : > { %8876 = vmatmul.mubr.msk.bf16.vlgmr.msra.gmra.mxu0 %vm480_vm4, %v10686_v47 }
0x2576   : > { %8897 = vmatprep.mubr.msk.bf16.mxu0 %vm10111_vm6, %v13483_v25 }
0x25ba   : > { %v7163_v37 = vpop.f32.mrf.mxu1 }
0x25bb   : > { %v13327_v31 = vadd.f32 %v7163_v37, %v13139_v21  ;;  %v9842_v21 = vld [vmem:[%s13471_s6 + $0x148] sm:$0xff]  }
0x25bc   : > { %v7165_v5 = vpop.f32.mrf.mxu1  ;;  %8886 = vmatpush3.bf16.msra.mxu0 %v9842_v21 }
0x25bd   : > { %v13330_v15 = vadd.f32 %v7165_v5, %v13142_v20  ;;  %v9843_v20 = vld [vmem:[%s13471_s6 + $0x140] sm:$0xff]   ;;  %8887 = vmatprep.subr.bf16.mxu0 %v13483_v25 }
0x25be   : > { %v7167_v4 = vpop.f32.mrf.mxu1 }
0x25bf   : > { %v13333_v49 = vadd.f32 %v7167_v4, %v13145_v12 }
0x25c0   : > { %8888 = vmatpush3.bf16.msra.mxu0 %v9843_v20  ;;  %v13364_v40 = vpop.f32.mrf.mxu1 }
0x25c1   : > { %8889 = vmatprep.subr.bf16.mxu0 %v13483_v25 }
0x25c4   : > { %8890 = vmatpush3.bf16.msra.mxu0 %v9844_v6 }
0x25c5   : > { %8891 = vmatprep.subr.bf16.mxu0 %v13483_v25 }
0x25c8   : > { %8892 = vmatpush3.bf16.msra.mxu0 %v9845_v51 }
0x25c9   : > { %8893 = vmatprep.subr.bf16.mxu0 %v13483_v25 }
0x25cc   : > { %8894 = vmatpush3.bf16.msra.mxu0 %v9846_v61 }
0x25cd   : > { %8895 = vmatprep.subr.bf16.mxu0 %v13483_v25 }
0x25d0   : > { %8896 = vmatpush3.bf16.msra.mxu0 %v9847_v62 }
0x2635   : > { %v7233_v29 = vpop.f32.mrf.mxu0 }
0x2637   : > { %v8877_v7 = vpop.f32.mrf.mxu0 }
0x2639   : > { %v7236_v58 = vpop.f32.mrf.mxu0 }
0x263a   : > { %v9711_v38 = vpack.i.bf16 %v7236_v58, %v7233_v29  ;;  %v7254_v52 = vpack.c.bf16 %v7236_v58, %v7233_v29  ;;  %v9848_v58 = vld [vmem:[%s13468_s3 + $0xf8] sm:$0xff]  }
0x263b   : > { %v8878_v34 = vpop.f32.mrf.mxu0 }
0x263c   : > { %9712 = vrot.lane.b32.xlu1 %v9711_v38, %s10107_s25  ;;  %8880 = vmatpush3.bf16.msra.mxu1 %v7254_v52 }
0x263d   : > { %8909 = vmatprep.subr.bf16.mxu1 %v13483_v25 }
0x263f   : > { %8882 = vmatmul.mubr.msk.bf16.vlgmr.msra.gmra.mxu1 %vm480_vm4, %v10686_v47 }
0x2640   : > { %9722 = vrot.lane.b32.xlu1 %v9711_v38, %s10108_s26  ;;  %8917 = vmatprep.mubr.msk.bf16.mxu1 %vm10111_vm6, %v13483_v25  ;;  %v9849_v38 = vld [vmem:[%s13468_s3 + $0xf0] sm:$0xff]  }
0x2641   : > { %8910 = vmatpush3.bf16.msra.mxu1 %v9848_v58 }
0x2642   : > { %8911 = vmatprep.subr.bf16.mxu1 %v13483_v25 }
0x2644   : > { %7318 = vrot.lane.b32.xlu1 %v7254_v52, %s10106_s22 }
0x2645   : > { %8912 = vmatpush3.bf16.msra.mxu1 %v9849_v38 }
0x2646   : > { %8913 = vmatprep.subr.bf16.mxu1 %v13483_v25 }
0x26ae   : > { %v9713_v12 = vpop.permute.xlu1 %9712 }
0x26af   : > { %v9715_v47 = vunpack.i.h.bf16 %v9713_v12  ;;  %v9714_v17 = vunpack.i.l.bf16 %v9713_v12  ;;  %v8180_v12 = vld [vmem:[%s13472_s7 + $0x6] ss:$0 sm:$0xff] }
0x26b1   : > { %v7255_v36 = vpack.c.bf16 %v9715_v47, %v9714_v17 }
0x26b2   : > { %v9723_v13 = vpop.permute.xlu1 %9722 }
0x26b3   : > { %v9725_v30 = vunpack.i.h.bf16 %v9723_v13  ;;  %v9724_v10 = vunpack.i.l.bf16 %v9723_v13  ;;  %7320 = vrot.lane.b32.xlu1 %v7255_v36, %s10106_s22  ;;  %v9851_v13 = vld [vmem:[%s13468_s3 + $0xe0] sm:$0xff]  }
0x26b5   : > { %v7256_v60 = vpack.c.bf16 %v9725_v30, %v9724_v10 }
0x26b6   : > { %v7319_v24 = vpop.permute.xlu1 %7318 }
0x26b7   : > { %7322 = vrot.lane.b32.xlu1 %v7256_v60, %s10106_s22  ;;  %v7335_v3 = vsel %vm658_vm2, %v7196_v27, %v7319_v24 }
0x26ff   : > { %v7291_v33 = vpop.f32.mrf.mxu1 }
0x2701   : > { %v8883_v59 = vpop.f32.mrf.mxu1 }
0x2703   : > { %v7294_v1 = vpop.f32.mrf.mxu1 }
0x2704   : > { %v9716_v19 = vpack.i.bf16 %v7294_v1, %v7291_v33  ;;  %v7312_v41 = vpack.c.bf16 %v7294_v1, %v7291_v33 }
0x2705   : > { %v8884_v11 = vpop.f32.mrf.mxu1 }
0x2706   : > { %9717 = vrot.lane.b32.xlu0 %v9716_v19, %s10107_s25 }
0x270a   : > { %9727 = vrot.lane.b32.xlu0 %v9716_v19, %s10108_s26 }
0x270e   : > { %7327 = vrot.lane.b32.xlu0 %v7312_v41, %s10108_s26 }
0x2725   : > { %v7321_v35 = vpop.permute.xlu1 %7320 }
0x2726   : > { %v7338_v48 = vsel %vm658_vm2, %v7197_v32, %v7321_v35 }
0x2729   : > { %v7323_v37 = vpop.permute.xlu1 %7322 }
0x272a   : > { %v7340_v4 = vsel %vm658_vm2, %v13304_v45, %v7323_v37  ;;  %v9850_v45 = vld [vmem:[%s13468_s3 + $0xe8] sm:$0xff]  }
0x272b   : > { %8914 = vmatpush3.bf16.msra.mxu1 %v9850_v45  ;;  %v9855_v37 = vld [vmem:[%s13470_s5 + $0xe0] ss:$8 sps:$4 sm:$0xff]  }
0x272c   : > { %8915 = vmatprep.subr.bf16.mxu1 %v13483_v25 }
0x272f   : > { %8916 = vmatpush3.bf16.msra.mxu1 %v9851_v13 }
0x2778   : > { %v9718_v22 = vpop.permute.xlu0 %9717 }
0x2779   : > { %v9720_v14 = vunpack.i.h.bf16 %v9718_v22  ;;  %v9719_v42 = vunpack.i.l.bf16 %v9718_v22 }
0x277b   : > { %v7313_v54 = vpack.c.bf16 %v9720_v14, %v9719_v42 }
0x277c   : > { %v9728_v55 = vpop.permute.xlu0 %9727 }
0x277d   : > { %v9730_v0 = vunpack.i.h.bf16 %v9728_v55  ;;  %v9729_v43 = vunpack.i.l.bf16 %v9728_v55  ;;  %7329 = vrot.lane.b32.xlu0 %v7313_v54, %s10108_s26 }
0x277f   : > { %v7314_v26 = vpack.c.bf16 %v9730_v0, %v9729_v43 }
0x2780   : > { %v7328_v8 = vpop.permute.xlu0 %7327 }
0x2781   : > { %v7342_v50 = vsel %vm734_vm3, %v7335_v3, %v7328_v8  ;;  %7331 = vrot.lane.b32.xlu0 %v7314_v26, %s10108_s26 }
0x2782   : > { %8898 = vmatmul.mubr.msk.bf16.vlgmr.msra.gmra.mxu0 %vm1173_vm5, %v7342_v50 }
0x2783   : > { %8901 = vmatprep.mubr.msk.bf16.mxu0 %vm10111_vm6, %v13483_v25 }
0x27ef   : > { %v7330_v23 = vpop.permute.xlu0 %7329 }
0x27f0   : > { %v7344_v44 = vsel %vm734_vm3, %v7338_v48, %v7330_v23  ;;  %v9854_v23 = vld [vmem:[%s13470_s5 + $0xf4] ss:$8 sps:$4 sm:$0xff]  }
0x27f1   : > { %8902 = vmatmul.mubr.msk.bf16.gmra.mxu0 %vm1173_vm5, %v7344_v44  ;;  %7646 = vmatprep.subr.bf16.mxu1 %v9854_v23  ;;  %v9857_v44 = vld [vmem:[%s13470_s5 + $0xe4] ss:$8 sps:$4 sm:$0xff]  }
0x27f2   : > { %8905 = vmatprep.mubr.msk.bf16.mxu0 %vm10111_vm6, %v13483_v25  ;;  %v8191_v25 = vld [vmem:[%s13473_s8 + $0x6] ss:$0 sm:$0xff] }
0x27f3   : > { %v7332_v5 = vpop.permute.xlu0 %7331 }
0x27f4   : > { %v7346_v29 = vsel %vm734_vm3, %v7340_v4, %v7332_v5 }
0x27f9   : > { %8906 = vmatmul.mubr.msk.bf16.gmra.mxu0 %vm1173_vm5, %v7346_v29 }
0x2842   : > { %v7444_v53 = vpop.f32.mrf.mxu0 }
0x2843   : > { %v7445_v19 = vadd.f32 %v8180_v12, %v7444_v53 }
0x2844   : > { %v8899_v56 = vpop.f32.mrf.mxu0 }
0x2845   : > { %v7465_v41 = vadd.f32 %v7445_v19, %v13240_v28 }
0x2846   : > { %v7447_v32 = vpop.f32.mrf.mxu0 }
0x2847   : > { %v7448_v11 = vadd.f32 %v8180_v12, %v7447_v32  ;;  %v7477_v14 = vmul.f32 %v8191_v25, %v7465_v41 }
0x2848   : > { %v8900_v7 = vpop.f32.mrf.mxu0 }
0x2849   : > { %v7466_v22 = vadd.f32 %v7448_v11, %v13237_v63  ;;  %v8203_v63 = vld [vmem:[%s13469_s4 + $0x7] ss:$0 sm:$0xff] }
0x284b   : > { %v7478_v42 = vmul.f32 %v8191_v25, %v7466_v22 }
0x28b1   : > { %v7452_v52 = vpop.f32.mrf.mxu0 }
0x28b3   : > { %v8903_v34 = vpop.f32.mrf.mxu0 }
0x28b4   : > { %v7683_v34 = vlaneseq }
0x28b5   : > { %v7454_v21 = vpop.f32.mrf.mxu0 }
0x28b6   : > { %v7684_v21 = vshrl.u32 %v7683_v34, 7 }
0x28b7   : > { %v8904_v20 = vpop.f32.mrf.mxu0 }
0x28b8   : > { %v13505_v20 = vld [vmem:[#allocation3_spill] sm:$0xff]  ;;  %v7689_v13 = vsub.s32 1, %v7684_v21 }
0x28b9   : > { %v7458_v47 = vpop.f32.mrf.mxu0 }
0x28ba   : > { %v7459_v17 = vadd.f32 %v8180_v12, %v7458_v47 }
0x28bb   : > { %v8907_v6 = vpop.f32.mrf.mxu0 }
0x28bc   : > { %v7467_v36 = vadd.f32 %v7459_v17, %v13248_v2  ;;  %v8193_v2 = vld [vmem:[%s13474_s9 + $0x6] ss:$0 sm:$0xff]  ;;  %v7685_v17 = vsub.s32 0, %v7684_v21  ;;  %v7681_v6 = vld [vmem:[%s13475_s10] sm:$0x3] }
0x28bd   : > { %v7461_v30 = vpop.f32.mrf.mxu0  ;;  %v7490_v55 = vadd.f32 %v8193_v2, %v7478_v42 }
0x28be   : > { %v7462_v10 = vadd.f32 %v8180_v12, %v7461_v30  ;;  %v7479_v60 = vmul.f32 %v8191_v25, %v7467_v36  ;;  %v13506_v12 = vld [vmem:[#allocation7_spill] sm:$0xff] }
0x28bf   : > { %v8908_v51 = vpop.f32.mrf.mxu0  ;;  %v2532_v47 = vadd.f32 %v13506_v12, %v13505_v20 }
0x28c0   : > { %v7468_v61 = vadd.f32 %v7462_v10, %v13250_v9  ;;  %v7491_v33 = vadd.f32 %v8193_v2, %v7479_v60  ;;  %v7489_v9 = vadd.f32 %v8193_v2, %v7477_v14  ;;  %v7686_v10 = vrot.slane %v7681_v6, %v7685_v17 }
0x28c1   : > { %v3766_v36 = vadd.f32 %v11994_v57, %v2532_v47 }
0x28c2   : > { %v7480_v62 = vmul.f32 %v8191_v25, %v7468_v61  ;;  %v7690_v61 = vrot.slane %v7681_v6, %v7689_v13 }
0x28c3   : > { %v4866_v30 = vadd.f32 %v12497_v18, %v3766_v36 }
0x28c4   : > { %v7492_v59 = vadd.f32 %v8193_v2, %v7480_v62 }
0x28c5   : > { %v5764_v51 = vadd.f32 %v12874_v16, %v4866_v30 }
0x28c6   : > { %v9731_v1 = vpack.i.bf16 %v7492_v59, %v7491_v33 }
0x28c7   : > { %v6534_v2 = vadd.f32 %v13154_v46, %v5764_v51 }
0x28c8   : > { %9732 = vrot.lane.b32.xlu1 %v9731_v1, %s10106_s22 }
0x28c9   : > { %v7175_v18 = vadd.f32 %v13364_v40, %v6534_v2 }
0x293a   : > { %v9733_v54 = vpop.permute.xlu1 %9732 }
0x293b   : > { %v9735_v24 = vunpack.i.h.bf16 %v9733_v54  ;;  %v9734_v0 = vunpack.i.l.bf16 %v9733_v54 }
0x293d   : > { %v7502_v43 = vsel %vm658_vm2, %v7490_v55, %v9735_v24  ;;  %v7501_v27 = vsel %vm658_vm2, %v7489_v9, %v9734_v0 }
0x293e   : > { %v7503_v26 = vpack.c.bf16 %v7502_v43, %v7501_v27 }
0x2940   : > { %8918 = vmatmul.mubr.msk.bf16.vlgmr.msra.gmra.mxu1 %vm734_vm3, %v7503_v26 }
0x2941   : > { %7666 = vmatprep.mubr.bf16.mxu1 %v13495_v39  ;;  %v9852_v39 = vld [vmem:[%s13470_s5 + $0xf0] ss:$8 sps:$4 sm:$0xff]  }
0x2942   : > { %7647 = vmatpush1.bf16.msra.mxu1 %v9852_v39 }
0x2943   : > { %7648 = vmatprep.subr.bf16.mxu1 %v9857_v44 }
0x2946   : > { %7649 = vmatpush1.bf16.msra.mxu1 %v9855_v37 }
0x2a00   : > { %v7582_v28 = vpop.f32.mrf.mxu1 }
0x2a01   : > { %v7583_v3 = vadd.f32 %v8203_v63, %v7582_v28 }
0x2a02   : > { %v8919_v8 = vpop.f32.mrf.mxu1 }
0x2a03   : > { %10070 = vtanh.f32 %v7583_v3 }
0x2a04   : > { %v7585_v50 = vpop.f32.mrf.mxu1 }
0x2a05   : > { %v7586_v35 = vadd.f32 %v8203_v63, %v7585_v50 }
0x2a06   : > { %v8920_v48 = vpop.f32.mrf.mxu1 }
0x2a07   : > { %10072 = vtanh.f32 %v7586_v35 }
0x2a10   : > { %v10071_v5 = vpop.eup %10070 }
0x2a11   : > { %v7591_v4 = vmul.f32 0.5, %v10071_v5 }
0x2a13   : > { %v7593_v29 = vadd.f32 0.5, %v7591_v4 }
0x2a14   : > { %v10073_v53 = vpop.eup %10072 }
0x2a15   : > { %7597 = vrot.lane.b32.xlu0 %v7593_v29, %s10107_s25  ;;  %v7592_v56 = vmul.f32 0.5, %v10073_v53 }
0x2a17   : > { %v7594_v32 = vadd.f32 0.5, %v7592_v56 }
0x2a19   : > { %7599 = vrot.lane.b32.xlu1 %v7594_v32, %s10107_s25  ;;  %s8220_s25 = sshll.u32 %s13508_s18, 5 }
0x2a1a   : > { %s386_s21 = scalar_lea.vmem %s13476_s11, %s8220_s25 }
0x2a87   : > { %v7598_v7 = vpop.permute.xlu0 %7597 }
0x2a88   : > { %v7603_v38 = vmul.f32 %v10071_v5, %v7598_v7 }
0x2a8b   : > { %v7600_v58 = vpop.permute.xlu1 %7599 }
0x2a8c   : > { %v7604_v45 = vmul.f32 %v10073_v53, %v7600_v58 }
0x2a8e   : > { %v7605_v52 = vpack.c.bf16 %v7604_v45, %v7603_v38 }
0x2a90   : > { %8217 = vmatmul.mubr.msk.bf16.vlgmr.msra.gmra.mxu1 %vm658_vm2, %v7605_v52 }
0x2b50   : > { %v7668_v25 = vpop.f32.mrf.mxu1 }
0x2b51   : > { %v7677_v60 = vadd.f32 %v7668_v25, %v13327_v31 }
0x2b52   : > { %v7670_v62 = vpop.f32.mrf.mxu1 }
0x2b53   : > { %v7693_v33 = vadd.f32 %v7686_v10, %v7677_v60  ;;  %v7678_v59 = vadd.f32 %v7670_v62, %v13330_v15 }
0x2b54   : > { %v7672_v57 = vpop.f32.mrf.mxu1 }
0x2b55   : > { %v7697_v1 = vmax.f32 %v7693_v33, 0.0  ;;  %v7694_v19 = vadd.f32 %v7690_v61, %v7678_v59  ;;  %v7679_v16 = vadd.f32 %v7672_v57, %v13333_v49 }
0x2b56   : > { %v7674_v11 = vpop.f32.mrf.mxu1 }
0x2b57   : > { %7701 = vst [vmem:[%s386_s21] sm:$0xff] %v7697_v1  ;;  %v7698_v31 = vmax.f32 %v7694_v19, 0.0  ;;  %v7695_v41 = vadd.f32 %v7686_v10, %v7679_v16  ;;  %v7680_v22 = vadd.f32 %v7674_v11, %v7175_v18 }
0x2b59   : > { %7702 = vst [vmem:[%s386_s21 + $0x8] sm:$0xff] %v7698_v31  ;;  %v7699_v46 = vmax.f32 %v7695_v41, 0.0  ;;  %v7696_v14 = vadd.f32 %v7690_v61, %v7680_v22 }
0x2b5b   : > { %7703 = vst [vmem:[%s386_s21 + $0x10] sm:$0xff] %v7699_v46  ;;  %v7700_v15 = vmax.f32 %v7696_v14, 0.0 }
0x2b5d   : > { %7704 = vst [vmem:[%s386_s21 + $0x18] sm:$0xff] %v7700_v15 }
0x2b5e PF: > { %s21_s17 = sadd.s32 1, %s10104_s17  }
0x2b5f   : > { %p18_p4 = scmp.ge.s32.totalorder %s21_s17, 4  }
0x2b61   :  { %20 = sbr.rel (!%p18_p4) target bundleno = 1 (0x1), region = 139 }

</bundles_post_ra>
